<compile_context>
chip_gen: v6e
topology: v6e:2x2x1
jax: 0.10.0
libtpu: 0.0.40
codegen_flags: <defaults>
</compile_context>

<pallas_src>
import jax
import jax.numpy as jnp
from jax import lax
from jax.experimental import pallas as pl
from jax.experimental.pallas import tpu as pltpu

LANE = 128  # TPU vreg lane width; channel dim padded to a multiple of this


def basic_block_kernel(xp_ref, w1_ref, s1_ref, b1_ref, w2_ref, s2_ref, b2_ref,
                       o_ref, p_ref, hpad_ref):
    # xp_ref   : (1, H+2, W+2, Cp) f32   spatially pre-padded, channel-padded input
    # w*_ref   : (9*Cp, Cp)        bf16  conv weights in im2col (tap-major) order
    # s*_ref   : (1, Cp)           f32   folded BN scale
    # b*_ref   : (1, Cp)           f32   folded BN shift
    # o_ref    : (1, H, W, Cp)     f32   output tile (lane-dense last dim)
    # p_ref    : (H*W, 9*Cp)       bf16  VMEM im2col patch matrix (reused by both convs)
    # hpad_ref : (H+2, W+2, Cp)    f32   VMEM zero-padded buffer for conv2's input
    _, Hp, Wp, Cp = xp_ref.shape
    H, W = Hp - 2, Wp - 2
    HW = H * W

    def im2col(src_hwc):
        # 9 lane-aligned column-slab stores; one big matmul afterwards does the conv.
        t = 0
        for dy in range(3):
            for dx in range(3):
                patch = src_hwc[dy:dy + H, dx:dx + W, :].reshape(HW, Cp)
                p_ref[:, t * Cp:(t + 1) * Cp] = patch.astype(jnp.bfloat16)
                t += 1

    x = xp_ref[0]                                            # (H+2, W+2, Cp) f32

    # ---- conv1 as one MXU matmul; fused bn1 + relu epilogue (f32 accumulation) ----
    im2col(x)
    h = jnp.dot(p_ref[...], w1_ref[...], preferred_element_type=jnp.float32)
    h = jnp.maximum(h * s1_ref[...] + b1_ref[...], 0.0)       # (HW, Cp) f32

    # ---- re-pad hidden activation for conv2 (interior overwritten every step) ----
    hpad_ref[...] = jnp.zeros(hpad_ref.shape, hpad_ref.dtype)
    hpad_ref[1:H + 1, 1:W + 1, :] = h.reshape(H, W, Cp)

    # ---- conv2 as one MXU matmul; fused bn2 + residual add + relu epilogue ----
    im2col(hpad_ref[...])
    out = jnp.dot(p_ref[...], w2_ref[...], preferred_element_type=jnp.float32)
    out = out * s2_ref[...] + b2_ref[...]
    identity = x[1:H + 1, 1:W + 1, :].reshape(HW, Cp)          # exact f32 residual
    out = jnp.maximum(out + identity, 0.0)

    o_ref[0] = out.reshape(H, W, Cp).astype(o_ref.dtype)


def basic_block(x_nchw, w1_oihw, gamma1, beta1, mean1, var1,
                w2_oihw, gamma2, beta2, mean2, var2, eps=1e-5):
    N, C, H, W = x_nchw.shape
    Cp = ((C + LANE - 1) // LANE) * LANE                      # lane-dense channel pad

    # ---- glue (plain JAX): layout change, spatial + channel pre-pad, BN fold ----
    # TODO(synk): in a full network keep activations NHWC end-to-end so these
    # boundary transposes do not rewrite the tensor in HBM around every block.
    x = jnp.transpose(x_nchw, (0, 2, 3, 1)).astype(jnp.float32)              # NHWC
    xp = jnp.pad(x, ((0, 0), (1, 1), (1, 1), (0, Cp - C)))                   # (N,H+2,W+2,Cp)

    def prep_w(w_oihw):
        w = jnp.transpose(w_oihw, (2, 3, 1, 0)).astype(jnp.float32)          # HWIO
        w = jnp.pad(w, ((0, 0), (0, 0), (0, Cp - C), (0, Cp - C)))
        return w.reshape(9 * Cp, Cp).astype(jnp.bfloat16)                    # im2col order

    def fold_bn(g, b, m, v):
        inv = (g / jnp.sqrt(v + eps)).astype(jnp.float32)
        scale = jnp.pad(inv, (0, Cp - C)).reshape(1, Cp)
        shift = jnp.pad((b - m * inv).astype(jnp.float32), (0, Cp - C)).reshape(1, Cp)
        return scale, shift

    w1m, w2m = prep_w(w1_oihw), prep_w(w2_oihw)
    s1, b1 = fold_bn(gamma1, beta1, mean1, var1)
    s2, b2 = fold_bn(gamma2, beta2, mean2, var2)

    flops = 4 * N * H * W * 9 * Cp * Cp                       # 2 convs, 2 flops/MAC
    bytes_accessed = (N * (H + 2) * (W + 2) * Cp * 4          # padded input (f32)
                      + 2 * 9 * Cp * Cp * 2                   # both weights (bf16)
                      + 4 * Cp * 4                            # BN scale/shift
                      + N * H * W * Cp * 4)                   # output (f32)

    out_pad = pl.pallas_call(
        basic_block_kernel,
        out_shape=jax.ShapeDtypeStruct((N, H, W, Cp), jnp.float32),
        grid_spec=pltpu.PrefetchScalarGridSpec(
            num_scalar_prefetch=0,
            grid=(N,),                                        # one batch element per step
            in_specs=[
                pl.BlockSpec((1, H + 2, W + 2, Cp), lambda n: (n, 0, 0, 0)),
                pl.BlockSpec((9 * Cp, Cp), lambda n: (0, 0)),
                pl.BlockSpec((1, Cp), lambda n: (0, 0)),
                pl.BlockSpec((1, Cp), lambda n: (0, 0)),
                pl.BlockSpec((9 * Cp, Cp), lambda n: (0, 0)),
                pl.BlockSpec((1, Cp), lambda n: (0, 0)),
                pl.BlockSpec((1, Cp), lambda n: (0, 0)),
            ],
            out_specs=pl.BlockSpec((1, H, W, Cp), lambda n: (n, 0, 0, 0)),
            scratch_shapes=[
                pltpu.VMEM((H * W, 9 * Cp), jnp.bfloat16),    # im2col patch matrix
                pltpu.VMEM((H + 2, W + 2, Cp), jnp.float32),  # padded hidden buffer
            ],
        ),
        compiler_params=pltpu.CompilerParams(
            dimension_semantics=("parallel",)),
        cost_estimate=pl.CostEstimate(flops=flops, transcendentals=0,
                                      bytes_accessed=bytes_accessed),
    )(xp, w1m, s1, b1, w2m, s2, b2)

    return jnp.transpose(out_pad[..., :C], (0, 3, 1, 2))      # back to NCHW


def basic_block_reference(x, w1, g1, be1, m1, v1, w2, g2, be2, m2, v2,
                          eps=1e-5, cast_bf16=False):
    """Pure-JAX reference (NCHW / OIHW), mirrors the PyTorch forward.

    cast_bf16=True mimics the kernel's mixed precision (bf16 conv operands,
    f32 accumulation) for a tight numerical comparison.
    """
    def conv(a, w):
        if cast_bf16:
            a = a.astype(jnp.bfloat16).astype(jnp.float32)
            w = w.astype(jnp.bfloat16).astype(jnp.float32)
        return lax.conv_general_dilated(
            a, w, window_strides=(1, 1), padding=((1, 1), (1, 1)),
            dimension_numbers=('NCHW', 'OIHW', 'NCHW'),
            precision=lax.Precision.HIGHEST)

    def bn(a, g, b, m, v):
        inv = g / jnp.sqrt(v + eps)
        return a * inv[None, :, None, None] + (b - m * inv)[None, :, None, None]

    h = jnp.maximum(bn(conv(x, w1), g1, be1, m1, v1), 0.0)
    out = bn(conv(h, w2), g2, be2, m2, v2)
    return jnp.maximum(out + x, 0.0)


if __name__ == "__main__":
    N, C, H, W = 2, 4, 16, 16          # in_planes = planes = 4, stride = 1
    key = jax.random.PRNGKey(0)
    ks = jax.random.split(key, 11)

    x = jax.random.normal(ks[0], (N, C, H, W), jnp.float32)
    w1 = jax.random.normal(ks[1], (C, C, 3, 3), jnp.float32) * 0.1
    w2 = jax.random.normal(ks[2], (C, C, 3, 3), jnp.float32) * 0.1
    gamma1 = jax.random.uniform(ks[3], (C,), jnp.float32, 0.5, 1.5)
    beta1 = jax.random.normal(ks[4], (C,), jnp.float32) * 0.1
    mean1 = jax.random.normal(ks[5], (C,), jnp.float32) * 0.1
    var1 = jax.random.uniform(ks[6], (C,), jnp.float32, 0.5, 1.5)
    gamma2 = jax.random.uniform(ks[7], (C,), jnp.float32, 0.5, 1.5)
    beta2 = jax.random.normal(ks[8], (C,), jnp.float32) * 0.1
    mean2 = jax.random.normal(ks[9], (C,), jnp.float32) * 0.1
    var2 = jax.random.uniform(ks[10], (C,), jnp.float32, 0.5, 1.5)

    out = basic_block(x, w1, gamma1, beta1, mean1, var1,
                      w2, gamma2, beta2, mean2, var2)
    out = jax.block_until_ready(out)
    assert out.shape == (N, C, H, W)

    # Tight check against a reference with the same bf16-operand / f32-accum scheme.
    ref_mp = basic_block_reference(x, w1, gamma1, beta1, mean1, var1,
                                   w2, gamma2, beta2, mean2, var2, cast_bf16=True)
    assert jnp.allclose(out, ref_mp, atol=1e-2, rtol=1e-2), \
        f"mixed-precision max abs err = {jnp.max(jnp.abs(out - ref_mp))}"

    # Looser check against the full-f32 PyTorch-equivalent forward.
    ref_f32 = basic_block_reference(x, w1, gamma1, beta1, mean1, var1,
                                    w2, gamma2, beta2, mean2, var2, cast_bf16=False)
    assert jnp.allclose(out, ref_f32, atol=5e-2, rtol=5e-2), \
        f"f32-reference max abs err = {jnp.max(jnp.abs(out - ref_f32))}"

    print("KERNEL_OK")
</pallas_src>

<mosaic_0001>
module attributes {stable_mosaic.version = 11 : i64} {
  func.func @basic_block_kernel(%arg0: i32, %arg1: memref<1x18x18x128xf32, #tpu.memory_space<vmem>>, %arg2: memref<1152x128xbf16, #tpu.memory_space<vmem>>, %arg3: memref<1x128xf32, #tpu.memory_space<vmem>>, %arg4: memref<1x128xf32, #tpu.memory_space<vmem>>, %arg5: memref<1152x128xbf16, #tpu.memory_space<vmem>>, %arg6: memref<1x128xf32, #tpu.memory_space<vmem>>, %arg7: memref<1x128xf32, #tpu.memory_space<vmem>>, %arg8: memref<1x16x16x128xf32, #tpu.memory_space<vmem>>, %arg9: memref<256x1152xbf16, #tpu.memory_space<vmem>>, %arg10: memref<18x18x128xf32, #tpu.memory_space<vmem>>) attributes {dimension_semantics = [#tpu.dimension_semantics<parallel>], iteration_bounds = array<i64: 2>, scalar_prefetch = 0 : i64, scratch_operands = 2 : i64, tpu.core_type = #tpu.core_type<tc>, window_params = [{transform_indices = @transform_0, window_bounds = array<i64: 1, 18, 18, 128>}, {pipeline_mode = #tpu.pipeline_mode<synchronous>, transform_indices = @transform_1, window_bounds = array<i64: 1152, 128>}, {pipeline_mode = #tpu.pipeline_mode<synchronous>, transform_indices = @transform_2, window_bounds = array<i64: 1, 128>}, {pipeline_mode = #tpu.pipeline_mode<synchronous>, transform_indices = @transform_3, window_bounds = array<i64: 1, 128>}, {pipeline_mode = #tpu.pipeline_mode<synchronous>, transform_indices = @transform_4, window_bounds = array<i64: 1152, 128>}, {pipeline_mode = #tpu.pipeline_mode<synchronous>, transform_indices = @transform_5, window_bounds = array<i64: 1, 128>}, {pipeline_mode = #tpu.pipeline_mode<synchronous>, transform_indices = @transform_6, window_bounds = array<i64: 1, 128>}, {transform_indices = @transform_7, window_bounds = array<i64: 1, 16, 16, 128>}]} {
    %c0 = arith.constant 0 : index
    %c0_0 = arith.constant 0 : index
    %c0_1 = arith.constant 0 : index
    %c0_2 = arith.constant 0 : index
    %0 = vector.load %arg1[%c0, %c0_0, %c0_1, %c0_2] : memref<1x18x18x128xf32, #tpu.memory_space<vmem>>, vector<1x18x18x128xf32>
    %1 = vector.shape_cast %0 : vector<1x18x18x128xf32> to vector<18x18x128xf32>
    %2 = vector.extract_strided_slice %1 {offsets = [0, 0, 0], sizes = [16, 16, 128], strides = [1, 1, 1]} : vector<18x18x128xf32> to vector<16x16x128xf32>
    %3 = vector.shape_cast %2 : vector<16x16x128xf32> to vector<256x128xf32>
    %4 = arith.truncf %3 : vector<256x128xf32> to vector<256x128xbf16>
    %c0_3 = arith.constant 0 : index
    %c0_4 = arith.constant 0 : index
    %5 = vector.load %arg9[%c0_3, %c0_4] : memref<256x1152xbf16, #tpu.memory_space<vmem>>, vector<256x128xbf16>
    tpu.vector_store %arg9[%c0_3, %c0_4], %4 {strides = array<i32>} : memref<256x1152xbf16, #tpu.memory_space<vmem>>, vector<256x128xbf16>,
    %6 = vector.extract_strided_slice %1 {offsets = [0, 1, 0], sizes = [16, 16, 128], strides = [1, 1, 1]} : vector<18x18x128xf32> to vector<16x16x128xf32>
    %7 = vector.shape_cast %6 : vector<16x16x128xf32> to vector<256x128xf32>
    %8 = arith.truncf %7 : vector<256x128xf32> to vector<256x128xbf16>
    %c0_5 = arith.constant 0 : index
    %c128 = arith.constant 128 : index
    %9 = vector.load %arg9[%c0_5, %c128] : memref<256x1152xbf16, #tpu.memory_space<vmem>>, vector<256x128xbf16>
    tpu.vector_store %arg9[%c0_5, %c128], %8 {strides = array<i32>} : memref<256x1152xbf16, #tpu.memory_space<vmem>>, vector<256x128xbf16>,
    %10 = vector.extract_strided_slice %1 {offsets = [0, 2, 0], sizes = [16, 16, 128], strides = [1, 1, 1]} : vector<18x18x128xf32> to vector<16x16x128xf32>
    %11 = vector.shape_cast %10 : vector<16x16x128xf32> to vector<256x128xf32>
    %12 = arith.truncf %11 : vector<256x128xf32> to vector<256x128xbf16>
    %c0_6 = arith.constant 0 : index
    %c256 = arith.constant 256 : index
    %13 = vector.load %arg9[%c0_6, %c256] : memref<256x1152xbf16, #tpu.memory_space<vmem>>, vector<256x128xbf16>
    tpu.vector_store %arg9[%c0_6, %c256], %12 {strides = array<i32>} : memref<256x1152xbf16, #tpu.memory_space<vmem>>, vector<256x128xbf16>,
    %14 = vector.extract_strided_slice %1 {offsets = [1, 0, 0], sizes = [16, 16, 128], strides = [1, 1, 1]} : vector<18x18x128xf32> to vector<16x16x128xf32>
    %15 = vector.shape_cast %14 : vector<16x16x128xf32> to vector<256x128xf32>
    %16 = arith.truncf %15 : vector<256x128xf32> to vector<256x128xbf16>
    %c0_7 = arith.constant 0 : index
    %c384 = arith.constant 384 : index
    %17 = vector.load %arg9[%c0_7, %c384] : memref<256x1152xbf16, #tpu.memory_space<vmem>>, vector<256x128xbf16>
    tpu.vector_store %arg9[%c0_7, %c384], %16 {strides = array<i32>} : memref<256x1152xbf16, #tpu.memory_space<vmem>>, vector<256x128xbf16>,
    %18 = vector.extract_strided_slice %1 {offsets = [1, 1, 0], sizes = [16, 16, 128], strides = [1, 1, 1]} : vector<18x18x128xf32> to vector<16x16x128xf32>
    %19 = vector.shape_cast %18 : vector<16x16x128xf32> to vector<256x128xf32>
    %20 = arith.truncf %19 : vector<256x128xf32> to vector<256x128xbf16>
    %c0_8 = arith.constant 0 : index
    %c512 = arith.constant 512 : index
    %21 = vector.load %arg9[%c0_8, %c512] : memref<256x1152xbf16, #tpu.memory_space<vmem>>, vector<256x128xbf16>
    tpu.vector_store %arg9[%c0_8, %c512], %20 {strides = array<i32>} : memref<256x1152xbf16, #tpu.memory_space<vmem>>, vector<256x128xbf16>,
    %22 = vector.extract_strided_slice %1 {offsets = [1, 2, 0], sizes = [16, 16, 128], strides = [1, 1, 1]} : vector<18x18x128xf32> to vector<16x16x128xf32>
    %23 = vector.shape_cast %22 : vector<16x16x128xf32> to vector<256x128xf32>
    %24 = arith.truncf %23 : vector<256x128xf32> to vector<256x128xbf16>
    %c0_9 = arith.constant 0 : index
    %c640 = arith.constant 640 : index
    %25 = vector.load %arg9[%c0_9, %c640] : memref<256x1152xbf16, #tpu.memory_space<vmem>>, vector<256x128xbf16>
    tpu.vector_store %arg9[%c0_9, %c640], %24 {strides = array<i32>} : memref<256x1152xbf16, #tpu.memory_space<vmem>>, vector<256x128xbf16>,
    %26 = vector.extract_strided_slice %1 {offsets = [2, 0, 0], sizes = [16, 16, 128], strides = [1, 1, 1]} : vector<18x18x128xf32> to vector<16x16x128xf32>
    %27 = vector.shape_cast %26 : vector<16x16x128xf32> to vector<256x128xf32>
    %28 = arith.truncf %27 : vector<256x128xf32> to vector<256x128xbf16>
    %c0_10 = arith.constant 0 : index
    %c768 = arith.constant 768 : index
    %29 = vector.load %arg9[%c0_10, %c768] : memref<256x1152xbf16, #tpu.memory_space<vmem>>, vector<256x128xbf16>
    tpu.vector_store %arg9[%c0_10, %c768], %28 {strides = array<i32>} : memref<256x1152xbf16, #tpu.memory_space<vmem>>, vector<256x128xbf16>,
    %30 = vector.extract_strided_slice %1 {offsets = [2, 1, 0], sizes = [16, 16, 128], strides = [1, 1, 1]} : vector<18x18x128xf32> to vector<16x16x128xf32>
    %31 = vector.shape_cast %30 : vector<16x16x128xf32> to vector<256x128xf32>
    %32 = arith.truncf %31 : vector<256x128xf32> to vector<256x128xbf16>
    %c0_11 = arith.constant 0 : index
    %c896 = arith.constant 896 : index
    %33 = vector.load %arg9[%c0_11, %c896] : memref<256x1152xbf16, #tpu.memory_space<vmem>>, vector<256x128xbf16>
    tpu.vector_store %arg9[%c0_11, %c896], %32 {strides = array<i32>} : memref<256x1152xbf16, #tpu.memory_space<vmem>>, vector<256x128xbf16>,
    %34 = vector.extract_strided_slice %1 {offsets = [2, 2, 0], sizes = [16, 16, 128], strides = [1, 1, 1]} : vector<18x18x128xf32> to vector<16x16x128xf32>
    %35 = vector.shape_cast %34 : vector<16x16x128xf32> to vector<256x128xf32>
    %36 = arith.truncf %35 : vector<256x128xf32> to vector<256x128xbf16>
    %c0_12 = arith.constant 0 : index
    %c1024 = arith.constant 1024 : index
    %37 = vector.load %arg9[%c0_12, %c1024] : memref<256x1152xbf16, #tpu.memory_space<vmem>>, vector<256x128xbf16>
    tpu.vector_store %arg9[%c0_12, %c1024], %36 {strides = array<i32>} : memref<256x1152xbf16, #tpu.memory_space<vmem>>, vector<256x128xbf16>,
    %c0_13 = arith.constant 0 : index
    %c0_14 = arith.constant 0 : index
    %38 = vector.load %arg9[%c0_13, %c0_14] : memref<256x1152xbf16, #tpu.memory_space<vmem>>, vector<256x1152xbf16>
    %c0_15 = arith.constant 0 : index
    %c0_16 = arith.constant 0 : index
    %39 = vector.load %arg2[%c0_15, %c0_16] : memref<1152x128xbf16, #tpu.memory_space<vmem>>, vector<1152x128xbf16>
    %cst = arith.constant dense<0.000000e+00> : vector<256x128xf32>
    %40 = tpu.matmul %38, %39, %cst {dimension_numbers = #tpu.dot_dimension_numbers<[1], [0], [0], [1], [0, 0, 1, 1], [], []>} : vector<256x1152xbf16>, vector<1152x128xbf16>, vector<256x128xf32> -> vector<256x128xf32>
    %c0_17 = arith.constant 0 : index
    %c0_18 = arith.constant 0 : index
    %41 = vector.load %arg3[%c0_17, %c0_18] : memref<1x128xf32, #tpu.memory_space<vmem>>, vector<1x128xf32>
    %42 = vector.broadcast %41 : vector<1x128xf32> to vector<256x128xf32>
    %43 = arith.mulf %40, %42 : vector<256x128xf32>
    %c0_19 = arith.constant 0 : index
    %c0_20 = arith.constant 0 : index
    %44 = vector.load %arg4[%c0_19, %c0_20] : memref<1x128xf32, #tpu.memory_space<vmem>>, vector<1x128xf32>
    %45 = vector.broadcast %44 : vector<1x128xf32> to vector<256x128xf32>
    %46 = arith.addf %43, %45 : vector<256x128xf32>
    %cst_21 = arith.constant 0.000000e+00 : f32
    %47 = vector.broadcast %cst_21 : f32 to vector<256x128xf32>
    %48 = arith.maximumf %46, %47 : vector<256x128xf32>
    %cst_22 = arith.constant 0.000000e+00 : f32
    %49 = vector.broadcast %cst_22 : f32 to vector<18x18x128xf32>
    %c0_23 = arith.constant 0 : index
    %c0_24 = arith.constant 0 : index
    %c0_25 = arith.constant 0 : index
    %50 = vector.load %arg10[%c0_23, %c0_24, %c0_25] : memref<18x18x128xf32, #tpu.memory_space<vmem>>, vector<18x18x128xf32>
    tpu.vector_store %arg10[%c0_23, %c0_24, %c0_25], %49 {strides = array<i32>} : memref<18x18x128xf32, #tpu.memory_space<vmem>>, vector<18x18x128xf32>,
    %51 = vector.shape_cast %48 : vector<256x128xf32> to vector<16x16x128xf32>
    %c1 = arith.constant 1 : index
    %c1_26 = arith.constant 1 : index
    %c0_27 = arith.constant 0 : index
    %52 = vector.load %arg10[%c1, %c1_26, %c0_27] : memref<18x18x128xf32, #tpu.memory_space<vmem>>, vector<16x16x128xf32>
    tpu.vector_store %arg10[%c1, %c1_26, %c0_27], %51 {strides = array<i32>} : memref<18x18x128xf32, #tpu.memory_space<vmem>>, vector<16x16x128xf32>,
    %c0_28 = arith.constant 0 : index
    %c0_29 = arith.constant 0 : index
    %c0_30 = arith.constant 0 : index
    %53 = vector.load %arg10[%c0_28, %c0_29, %c0_30] : memref<18x18x128xf32, #tpu.memory_space<vmem>>, vector<18x18x128xf32>
    %54 = vector.extract_strided_slice %53 {offsets = [0, 0, 0], sizes = [16, 16, 128], strides = [1, 1, 1]} : vector<18x18x128xf32> to vector<16x16x128xf32>
    %55 = vector.shape_cast %54 : vector<16x16x128xf32> to vector<256x128xf32>
    %56 = arith.truncf %55 : vector<256x128xf32> to vector<256x128xbf16>
    %c0_31 = arith.constant 0 : index
    %c0_32 = arith.constant 0 : index
    %57 = vector.load %arg9[%c0_31, %c0_32] : memref<256x1152xbf16, #tpu.memory_space<vmem>>, vector<256x128xbf16>
    tpu.vector_store %arg9[%c0_31, %c0_32], %56 {strides = array<i32>} : memref<256x1152xbf16, #tpu.memory_space<vmem>>, vector<256x128xbf16>,
    %58 = vector.extract_strided_slice %53 {offsets = [0, 1, 0], sizes = [16, 16, 128], strides = [1, 1, 1]} : vector<18x18x128xf32> to vector<16x16x128xf32>
    %59 = vector.shape_cast %58 : vector<16x16x128xf32> to vector<256x128xf32>
    %60 = arith.truncf %59 : vector<256x128xf32> to vector<256x128xbf16>
    %c0_33 = arith.constant 0 : index
    %c128_34 = arith.constant 128 : index
    %61 = vector.load %arg9[%c0_33, %c128_34] : memref<256x1152xbf16, #tpu.memory_space<vmem>>, vector<256x128xbf16>
    tpu.vector_store %arg9[%c0_33, %c128_34], %60 {strides = array<i32>} : memref<256x1152xbf16, #tpu.memory_space<vmem>>, vector<256x128xbf16>,
    %62 = vector.extract_strided_slice %53 {offsets = [0, 2, 0], sizes = [16, 16, 128], strides = [1, 1, 1]} : vector<18x18x128xf32> to vector<16x16x128xf32>
    %63 = vector.shape_cast %62 : vector<16x16x128xf32> to vector<256x128xf32>
    %64 = arith.truncf %63 : vector<256x128xf32> to vector<256x128xbf16>
    %c0_35 = arith.constant 0 : index
    %c256_36 = arith.constant 256 : index
    %65 = vector.load %arg9[%c0_35, %c256_36] : memref<256x1152xbf16, #tpu.memory_space<vmem>>, vector<256x128xbf16>
    tpu.vector_store %arg9[%c0_35, %c256_36], %64 {strides = array<i32>} : memref<256x1152xbf16, #tpu.memory_space<vmem>>, vector<256x128xbf16>,
    %66 = vector.extract_strided_slice %53 {offsets = [1, 0, 0], sizes = [16, 16, 128], strides = [1, 1, 1]} : vector<18x18x128xf32> to vector<16x16x128xf32>
    %67 = vector.shape_cast %66 : vector<16x16x128xf32> to vector<256x128xf32>
    %68 = arith.truncf %67 : vector<256x128xf32> to vector<256x128xbf16>
    %c0_37 = arith.constant 0 : index
    %c384_38 = arith.constant 384 : index
    %69 = vector.load %arg9[%c0_37, %c384_38] : memref<256x1152xbf16, #tpu.memory_space<vmem>>, vector<256x128xbf16>
    tpu.vector_store %arg9[%c0_37, %c384_38], %68 {strides = array<i32>} : memref<256x1152xbf16, #tpu.memory_space<vmem>>, vector<256x128xbf16>,
    %70 = vector.extract_strided_slice %53 {offsets = [1, 1, 0], sizes = [16, 16, 128], strides = [1, 1, 1]} : vector<18x18x128xf32> to vector<16x16x128xf32>
    %71 = vector.shape_cast %70 : vector<16x16x128xf32> to vector<256x128xf32>
    %72 = arith.truncf %71 : vector<256x128xf32> to vector<256x128xbf16>
    %c0_39 = arith.constant 0 : index
    %c512_40 = arith.constant 512 : index
    %73 = vector.load %arg9[%c0_39, %c512_40] : memref<256x1152xbf16, #tpu.memory_space<vmem>>, vector<256x128xbf16>
    tpu.vector_store %arg9[%c0_39, %c512_40], %72 {strides = array<i32>} : memref<256x1152xbf16, #tpu.memory_space<vmem>>, vector<256x128xbf16>,
    %74 = vector.extract_strided_slice %53 {offsets = [1, 2, 0], sizes = [16, 16, 128], strides = [1, 1, 1]} : vector<18x18x128xf32> to vector<16x16x128xf32>
    %75 = vector.shape_cast %74 : vector<16x16x128xf32> to vector<256x128xf32>
    %76 = arith.truncf %75 : vector<256x128xf32> to vector<256x128xbf16>
    %c0_41 = arith.constant 0 : index
    %c640_42 = arith.constant 640 : index
    %77 = vector.load %arg9[%c0_41, %c640_42] : memref<256x1152xbf16, #tpu.memory_space<vmem>>, vector<256x128xbf16>
    tpu.vector_store %arg9[%c0_41, %c640_42], %76 {strides = array<i32>} : memref<256x1152xbf16, #tpu.memory_space<vmem>>, vector<256x128xbf16>,
    %78 = vector.extract_strided_slice %53 {offsets = [2, 0, 0], sizes = [16, 16, 128], strides = [1, 1, 1]} : vector<18x18x128xf32> to vector<16x16x128xf32>
    %79 = vector.shape_cast %78 : vector<16x16x128xf32> to vector<256x128xf32>
    %80 = arith.truncf %79 : vector<256x128xf32> to vector<256x128xbf16>
    %c0_43 = arith.constant 0 : index
    %c768_44 = arith.constant 768 : index
    %81 = vector.load %arg9[%c0_43, %c768_44] : memref<256x1152xbf16, #tpu.memory_space<vmem>>, vector<256x128xbf16>
    tpu.vector_store %arg9[%c0_43, %c768_44], %80 {strides = array<i32>} : memref<256x1152xbf16, #tpu.memory_space<vmem>>, vector<256x128xbf16>,
    %82 = vector.extract_strided_slice %53 {offsets = [2, 1, 0], sizes = [16, 16, 128], strides = [1, 1, 1]} : vector<18x18x128xf32> to vector<16x16x128xf32>
    %83 = vector.shape_cast %82 : vector<16x16x128xf32> to vector<256x128xf32>
    %84 = arith.truncf %83 : vector<256x128xf32> to vector<256x128xbf16>
    %c0_45 = arith.constant 0 : index
    %c896_46 = arith.constant 896 : index
    %85 = vector.load %arg9[%c0_45, %c896_46] : memref<256x1152xbf16, #tpu.memory_space<vmem>>, vector<256x128xbf16>
    tpu.vector_store %arg9[%c0_45, %c896_46], %84 {strides = array<i32>} : memref<256x1152xbf16, #tpu.memory_space<vmem>>, vector<256x128xbf16>,
    %86 = vector.extract_strided_slice %53 {offsets = [2, 2, 0], sizes = [16, 16, 128], strides = [1, 1, 1]} : vector<18x18x128xf32> to vector<16x16x128xf32>
    %87 = vector.shape_cast %86 : vector<16x16x128xf32> to vector<256x128xf32>
    %88 = arith.truncf %87 : vector<256x128xf32> to vector<256x128xbf16>
    %c0_47 = arith.constant 0 : index
    %c1024_48 = arith.constant 1024 : index
    %89 = vector.load %arg9[%c0_47, %c1024_48] : memref<256x1152xbf16, #tpu.memory_space<vmem>>, vector<256x128xbf16>
    tpu.vector_store %arg9[%c0_47, %c1024_48], %88 {strides = array<i32>} : memref<256x1152xbf16, #tpu.memory_space<vmem>>, vector<256x128xbf16>,
    %c0_49 = arith.constant 0 : index
    %c0_50 = arith.constant 0 : index
    %90 = vector.load %arg9[%c0_49, %c0_50] : memref<256x1152xbf16, #tpu.memory_space<vmem>>, vector<256x1152xbf16>
    %c0_51 = arith.constant 0 : index
    %c0_52 = arith.constant 0 : index
    %91 = vector.load %arg5[%c0_51, %c0_52] : memref<1152x128xbf16, #tpu.memory_space<vmem>>, vector<1152x128xbf16>
    %cst_53 = arith.constant dense<0.000000e+00> : vector<256x128xf32>
    %92 = tpu.matmul %90, %91, %cst_53 {dimension_numbers = #tpu.dot_dimension_numbers<[1], [0], [0], [1], [0, 0, 1, 1], [], []>} : vector<256x1152xbf16>, vector<1152x128xbf16>, vector<256x128xf32> -> vector<256x128xf32>
    %c0_54 = arith.constant 0 : index
    %c0_55 = arith.constant 0 : index
    %93 = vector.load %arg6[%c0_54, %c0_55] : memref<1x128xf32, #tpu.memory_space<vmem>>, vector<1x128xf32>
    %94 = vector.broadcast %93 : vector<1x128xf32> to vector<256x128xf32>
    %95 = arith.mulf %92, %94 : vector<256x128xf32>
    %c0_56 = arith.constant 0 : index
    %c0_57 = arith.constant 0 : index
    %96 = vector.load %arg7[%c0_56, %c0_57] : memref<1x128xf32, #tpu.memory_space<vmem>>, vector<1x128xf32>
    %97 = vector.broadcast %96 : vector<1x128xf32> to vector<256x128xf32>
    %98 = arith.addf %95, %97 : vector<256x128xf32>
    %99 = vector.extract_strided_slice %1 {offsets = [1, 1, 0], sizes = [16, 16, 128], strides = [1, 1, 1]} : vector<18x18x128xf32> to vector<16x16x128xf32>
    %100 = vector.shape_cast %99 : vector<16x16x128xf32> to vector<256x128xf32>
    %101 = arith.addf %98, %100 : vector<256x128xf32>
    %cst_58 = arith.constant 0.000000e+00 : f32
    %102 = vector.broadcast %cst_58 : f32 to vector<256x128xf32>
    %103 = arith.maximumf %101, %102 : vector<256x128xf32>
    %104 = vector.shape_cast %103 : vector<256x128xf32> to vector<16x16x128xf32>
    %c0_59 = arith.constant 0 : index
    %c0_60 = arith.constant 0 : index
    %c0_61 = arith.constant 0 : index
    %c0_62 = arith.constant 0 : index
    %105 = vector.load %arg8[%c0_59, %c0_60, %c0_61, %c0_62] : memref<1x16x16x128xf32, #tpu.memory_space<vmem>>, vector<1x16x16x128xf32>
    %106 = vector.shape_cast %105 : vector<1x16x16x128xf32> to vector<16x16x128xf32>
    %107 = vector.shape_cast %104 : vector<16x16x128xf32> to vector<1x16x16x128xf32>
    tpu.vector_store %arg8[%c0_59, %c0_60, %c0_61, %c0_62], %107 {strides = array<i32>} : memref<1x16x16x128xf32, #tpu.memory_space<vmem>>, vector<1x16x16x128xf32>,
    return
  }
  func.func @transform_0(%arg0: i32) -> (i32, i32, i32, i32) {
    %c0_i32 = arith.constant 0 : i32
    %c0_i32_0 = arith.constant 0 : i32
    %c0_i32_1 = arith.constant 0 : i32
    %c0_i32_2 = arith.constant 0 : i32
    return %arg0, %c0_i32, %c0_i32_0, %c0_i32_1 : i32, i32, i32, i32
  }
  func.func @transform_1(%arg0: i32) -> (i32, i32) {
    %c0_i32 = arith.constant 0 : i32
    %c0_i32_0 = arith.constant 0 : i32
    %c0_i32_1 = arith.constant 0 : i32
    return %c0_i32, %c0_i32_0 : i32, i32
  }
  func.func @transform_2(%arg0: i32) -> (i32, i32) {
    %c0_i32 = arith.constant 0 : i32
    %c0_i32_0 = arith.constant 0 : i32
    %c0_i32_1 = arith.constant 0 : i32
    return %c0_i32, %c0_i32_0 : i32, i32
  }
  func.func @transform_3(%arg0: i32) -> (i32, i32) {
    %c0_i32 = arith.constant 0 : i32
    %c0_i32_0 = arith.constant 0 : i32
    %c0_i32_1 = arith.constant 0 : i32
    return %c0_i32, %c0_i32_0 : i32, i32
  }
  func.func @transform_4(%arg0: i32) -> (i32, i32) {
    %c0_i32 = arith.constant 0 : i32
    %c0_i32_0 = arith.constant 0 : i32
    %c0_i32_1 = arith.constant 0 : i32
    return %c0_i32, %c0_i32_0 : i32, i32
  }
  func.func @transform_5(%arg0: i32) -> (i32, i32) {
    %c0_i32 = arith.constant 0 : i32
    %c0_i32_0 = arith.constant 0 : i32
    %c0_i32_1 = arith.constant 0 : i32
    return %c0_i32, %c0_i32_0 : i32, i32
  }
  func.func @transform_6(%arg0: i32) -> (i32, i32) {
    %c0_i32 = arith.constant 0 : i32
    %c0_i32_0 = arith.constant 0 : i32
    %c0_i32_1 = arith.constant 0 : i32
    return %c0_i32, %c0_i32_0 : i32, i32
  }
  func.func @transform_7(%arg0: i32) -> (i32, i32, i32, i32) {
    %c0_i32 = arith.constant 0 : i32
    %c0_i32_0 = arith.constant 0 : i32
    %c0_i32_1 = arith.constant 0 : i32
    %c0_i32_2 = arith.constant 0 : i32
    return %arg0, %c0_i32, %c0_i32_0, %c0_i32_1 : i32, i32, i32, i32
  }
}

</mosaic_0001>

<bundles_post_ra>
// kernel: tpu_custom_call.1
= control target key start
LH: loop header
LB: loop body
LE: loop exit
PB: predicated region body
PF: predicated region fallthrough
CT: control target
= control target key end

     0   :  { %12 = vsyncpa [#allocation5], 0  ;;  %s12877_s0 = inlined_call_operand.vmem [shape: f32[2,18,18,128], index: 0, kind: input, shape index: {}]   ;;  %s12878_s1 = inlined_call_operand.vmem [shape: bf16[1152,128], index: 1, kind: input, shape index: {}]   ;;  %s12879_s2 = inlined_call_operand.vmem [shape: f32[1,128], index: 2, kind: input, shape index: {}]   ;;  %s12880_s3 = inlined_call_operand.vmem [shape: f32[1,128], index: 3, kind: input, shape index: {}]   ;;  %s12881_s4 = inlined_call_operand.vmem [shape: bf16[1152,128], index: 4, kind: input, shape index: {}]   ;;  %s12882_s5 = inlined_call_operand.vmem [shape: f32[1,128], index: 5, kind: input, shape index: {}]   ;;  %s12883_s6 = inlined_call_operand.vmem [shape: f32[1,128], index: 6, kind: input, shape index: {}]   ;;  %s12884_s7 = inlined_call_operand.hbm [shape: f32[2,16,16,128], index: 7, kind: output, shape index: {}]  }
   0x1   :  { %14 = vsyncpa [#allocation5 + $0x1], 0  ;;  %s10057_s24 = smov 0   ;;  %s10059_s25 = smov 0  }
   0x2   :  { %s10061_s26 = smov 0   ;;  %s10063_s27 = smov 0  }
   0x3 LB: > { %s10078_s28 = sadd.s32 4294967295, %s10010_s27   ;;  %s7441_s29 = sadd.s32 4294967294, %s10010_s27   ;;  %s10010_s27 = sphi %s10063_s27, %s13177_s27   ;;  %s10006_s26 = sphi %s10061_s26, %s13176_s26   ;;  %s10002_s25 = sphi %s10059_s25, %s13175_s25   ;;  %s9998_s24 = sphi %s10057_s24, %s13174_s24  }
   0x4   : > { %s10082_s30 = sadd.s32 1, %s10010_s27   ;;  %s179_s8 = sadd.s32 1, %s10006_s26 }
   0x5   : > { %s176_s9 = ssub.s32 %s10010_s27, %s10082_s30  ;;  %p189_p0 = scmp.ne.s32.totalorder %s10006_s26, %s10002_s25 }
   0x6   : > { %p177_p1 = scmp.eq.s32.totalorder %s176_s9, 0  ;;  %p190_p2 = scmp.eq.s32.totalorder %s10078_s28, 1 }
   0x7   : > { %p195_p3 = scmp.ne.s32.totalorder %s10002_s25, %s9998_s24  ;;  %p196_p4 = scmp.eq.s32.totalorder %s7441_s29, 1 }
   0x8   : > { %s10093_s10 = scalar_select %p177_p1, %s10006_s26, %s179_s8  }
   0x9   : > { %p10095_p5 = por %p190_p2, %p189_p0  ;;  %p10099_p6 = por %p196_p4, %p195_p3 }
   0xa   : > { %p7444_p7 = scmp.ge.s32.totalorder %s10010_s27, 1  ;;  %p240_p8 = scmp.lt.s32.totalorder %s10010_s27, 3 }
   0xc   : > { %p241_p9 = pnand %p7444_p7, %p240_p8 }
   0xe   : > { %244 = sbr.rel (%p241_p9) target bundleno = 1192 (0x4a8), region = 48 }
  0x13   : > { %v9404_v0 = vld [vmem:[%s12878_s1 + $0x78] sm:$0xff]   ;;  %v9408_v4 = vld [vmem:[%s12878_s1 + $0x70] sm:$0xff]   ;;  %v10012_v5 = vmov 0.0   ;;  %v9412_v9 = vld [vmem:[%s12878_s1 + $0x68] sm:$0xff]   ;;  %p272_p10 = scmp.lt.s32.totalorder %s10078_s28, 1  ;;  %vm540_vm0 = vcmask 1046528  }
  0x14   : > { %v9405_v1 = vld [vmem:[%s12878_s1 + $0xf8] sm:$0xff]   ;;  %8321 = vmatprep.subr.bf16.mxu0 %v9404_v0  ;;  %3747 = vst [vmem:[#allocation3] sm:$0xff] %v10012_v5  ;;  %3749 = vst [vmem:[#allocation3 + $0x10] sm:$0x3] %v10012_v5  ;;  %v9409_v6 = vld [vmem:[%s12878_s1 + $0xf0] sm:$0xff]   ;;  %v10234_v26 = vrot.slane %v10012_v5, 1 }
  0x15   : > { %v9406_v2 = vld [vmem:[%s12878_s1 + $0x38] sm:$0xff]   ;;  %8433 = vmatprep.subr.bf16.mxu1 %v9405_v1  ;;  %3750 = vst [vmem:[#allocation3 + $0x18] sm:$0xff] %v10012_v5  ;;  %3751 = vst [vmem:[#allocation3 + $0x20] sm:$0xff] %v10012_v5  ;;  %v9410_v7 = vld [vmem:[%s12878_s1 + $0x30] sm:$0xff]   ;;  %s273_s8 = scalar_select %p272_p10, %s10078_s28, 1  ;;  %v10240_v28 = vrot.slane %v10012_v5, 2 }
  0x16   : > { %v9407_v3 = vld [vmem:[%s12878_s1 + $0xb8] sm:$0xff]   ;;  %8322 = vmatpush3.bf16.msra.mxu0 %v9406_v2  ;;  %3752 = vst [vmem:[#allocation3 + $0x28] sm:$0x3] %v10012_v5  ;;  %3753 = vst [vmem:[#allocation3 + $0x30] sm:$0xff] %v10012_v5  ;;  %v9411_v8 = vld [vmem:[%s12878_s1 + $0xb0] sm:$0xff]   ;;  %vm813_vm1 = vcmask 1045504   ;;  %v8244_v38 = vpack.c.bf16 %v10234_v26, %v10234_v26 }
  0x17   : > { %3754 = vst [vmem:[#allocation3 + $0x38] sm:$0xff] %v10012_v5  ;;  %3755 = vst [vmem:[#allocation3 + $0x40] sm:$0x3] %v10012_v5  ;;  %8434 = vmatpush3.bf16.msra.mxu1 %v9407_v3  ;;  %8323 = vmatprep.subr.bf16.mxu0 %v9408_v4  ;;  %v9413_v10 = vld [vmem:[%s12878_s1 + $0xe8] sm:$0xff]   ;;  %v9416_v13 = vld [vmem:[%s12878_s1 + $0x60] sm:$0xff]   ;;  %s9361_s20 = smul.u32 432, %s273_s8  ;;  %v8276_v39 = vpack.c.bf16 %v10240_v28, %v10240_v28 }
  0x18   : > { %3756 = vst [vmem:[#allocation3 + $0x48] sm:$0xff] %v10012_v5  ;;  %3757 = vst [vmem:[#allocation3 + $0x50] sm:$0xff] %v10012_v5  ;;  %8435 = vmatprep.subr.bf16.mxu1 %v9409_v6  ;;  %v9414_v11 = vld [vmem:[%s12878_s1 + $0x28] sm:$0xff]   ;;  %v9417_v14 = vld [vmem:[%s12878_s1 + $0xe0] sm:$0xff]   ;;  %s269_s14 = sand.u32 1, %s10002_s25   ;;  %s8320_s19 = sshll.u32 %s10078_s28, 12 }
  0x19   : > { %3758 = vst [vmem:[#allocation3 + $0x58] sm:$0x3] %v10012_v5  ;;  %3759 = vst [vmem:[#allocation3 + $0x60] sm:$0xff] %v10012_v5  ;;  %v9415_v12 = vld [vmem:[%s12878_s1 + $0xa8] sm:$0xff]   ;;  %v9418_v15 = vld [vmem:[%s12878_s1 + $0x20] sm:$0xff]   ;;  %s10257_s22 = scalar_lea.vmem %s12877_s0, %s9361_s20  ;;  %s7445_s17 = sshll.u32 %s269_s14, 8 }
  0x1a   : > { %3760 = vst [vmem:[#allocation3 + $0x68] sm:$0xff] %v10012_v5  ;;  %3761 = vst [vmem:[#allocation3 + $0x70] sm:$0x3] %v10012_v5  ;;  %8324 = vmatpush3.bf16.msra.mxu0 %v9410_v7  ;;  %v9419_v16 = vld [vmem:[%s12878_s1 + $0xa0] sm:$0xff]   ;;  %v9420_v17 = vld [vmem:[%s12878_s1 + $0x58] sm:$0xff]   ;;  %s12622_s18 = scalar_lea.vmem [#allocation4], %s7445_s17  ;;  %s12829_s9 = scalar_lea.hbm %s12884_s7, %s8320_s19 }
  0x1b   : > { %3762 = vst [vmem:[#allocation3 + $0x78] sm:$0xff] %v10012_v5  ;;  %3763 = vst [vmem:[#allocation3 + $0x80] sm:$0xff] %v10012_v5  ;;  %8436 = vmatpush3.bf16.msra.mxu1 %v9411_v8  ;;  %8325 = vmatprep.subr.bf16.mxu0 %v9412_v9  ;;  %v9421_v18 = vld [vmem:[%s12878_s1 + $0xd8] sm:$0xff]   ;;  %v9424_v21 = vld [vmem:[%s12878_s1 + $0x50] sm:$0xff]   ;;  %s7379_s21 = sshll.u32 %s12622_s18, 4  ;;  %s12837_s28 = scalar_lea.sflag [#allocation5], %s269_s14  ;;  %s12831_s21 = int_to_ptr.vmem [resolvable:$true] %s7379_s21 }
  0x1c   : > { %3764 = vst [vmem:[#allocation3 + $0x88] sm:$0x3] %v10012_v5  ;;  %3765 = vst [vmem:[#allocation3 + $0x90] sm:$0xff] %v10012_v5  ;;  %8437 = vmatprep.subr.bf16.mxu1 %v9413_v10  ;;  %v9422_v19 = vld [vmem:[%s12878_s1 + $0x18] sm:$0xff]   ;;  %v9425_v22 = vld [vmem:[%s12878_s1 + $0xd0] sm:$0xff]   ;;  %s9950_s13 = scalar_lea.vmem %s12831_s21, 4096 }
  0x1d   : > { %3766 = vst [vmem:[#allocation3 + $0x98] sm:$0xff] %v10012_v5  ;;  %3767 = vst [vmem:[#allocation3 + $0xa0] sm:$0x3] %v10012_v5  ;;  %v9423_v20 = vld [vmem:[%s12878_s1 + $0x98] sm:$0xff]   ;;  %v9426_v23 = vld [vmem:[%s12878_s1 + $0x10] sm:$0xff]   ;;  %p9951_p11 = scmp.ne.s32.totalorder %s12831_s21, %s9950_s13  ;;  %s10014_s20 = smov [#allocation4]  }
  0x1e   : > { %3768 = vst [vmem:[#allocation3 + $0xa8] sm:$0xff] %v10012_v5  ;;  %3769 = vst [vmem:[#allocation3 + $0xb0] sm:$0xff] %v10012_v5  ;;  %8326 = vmatpush3.bf16.msra.mxu0 %v9414_v11  ;;  %v9427_v24 = vld [vmem:[%s12878_s1 + $0x90] sm:$0xff]   ;;  %v9428_v25 = vld [vmem:[%s12878_s1 + $0x48] sm:$0xff]  }
  0x1f   : > { %3770 = vst [vmem:[#allocation3 + $0xb8] sm:$0x3] %v10012_v5  ;;  %3771 = vst [vmem:[#allocation3 + $0xc0] sm:$0xff] %v10012_v5  ;;  %8438 = vmatpush3.bf16.msra.mxu1 %v9415_v12  ;;  %8327 = vmatprep.subr.bf16.mxu0 %v9416_v13  ;;  %v9429_v27 = vld [vmem:[%s12878_s1 + $0xc8] sm:$0xff]   ;;  %v9432_v31 = vld [vmem:[%s12878_s1 + $0x40] sm:$0xff]   ;;  %p9952_p12 = pnand %p9951_p11, %p10095_p5 }
  0x20   : > { %3772 = vst [vmem:[#allocation3 + $0xc8] sm:$0xff] %v10012_v5  ;;  %3773 = vst [vmem:[#allocation3 + $0xd0] sm:$0x3] %v10012_v5  ;;  %8439 = vmatprep.subr.bf16.mxu1 %v9417_v14  ;;  %v9430_v29 = vld [vmem:[%s12878_s1 + $0x8] sm:$0xff]   ;;  %v9433_v32 = vld [vmem:[%s12878_s1 + $0xc0] sm:$0xff]  }
  0x21   : > { %3774 = vst [vmem:[#allocation3 + $0xd8] sm:$0xff] %v10012_v5  ;;  %3775 = vst [vmem:[#allocation3 + $0xe0] sm:$0xff] %v10012_v5  ;;  %v9431_v30 = vld [vmem:[%s12878_s1 + $0x88] sm:$0xff]   ;;  %v9434_v33 = vld [vmem:[%s12878_s1] sm:$0xff]   ;;  %p9953_p13 = pneg %p9952_p12 }
  0x22   : > { %3776 = vst [vmem:[#allocation3 + $0xe8] sm:$0x3] %v10012_v5  ;;  %3777 = vst [vmem:[#allocation3 + $0xf0] sm:$0xff] %v10012_v5  ;;  %8328 = vmatpush3.bf16.msra.mxu0 %v9418_v15  ;;  %v9435_v34 = vld [vmem:[%s12878_s1 + $0x80] sm:$0xff]   ;;  %v279_v36 = vld [vmem:[%s10257_s22 + $0x8] sm:$0xff] }
  0x23   : > { %3778 = vst [vmem:[#allocation3 + $0xf8] sm:$0xff] %v10012_v5  ;;  %3779 = vst [vmem:[#allocation3 + $0x100] sm:$0x3] %v10012_v5  ;;  %8440 = vmatpush3.bf16.msra.mxu1 %v9419_v16  ;;  %8329 = vmatprep.subr.bf16.mxu0 %v9420_v17  ;;  %v278_v35 = vld [vmem:[%s10257_s22] sm:$0xff]  ;;  %v280_v37 = vld [vmem:[%s10257_s22 + $0x10] sm:$0x3]  ;;  %v8105_v41 = vpack.c.bf16 %v279_v36, %v279_v36 }
  0x24   : > { %3780 = vst [vmem:[#allocation3 + $0x108] sm:$0xff] %v10012_v5  ;;  %3781 = vst [vmem:[#allocation3 + $0x110] sm:$0xff] %v10012_v5  ;;  %8441 = vmatprep.subr.bf16.mxu1 %v9421_v18  ;;  %v8104_v40 = vpack.c.bf16 %v278_v35, %v278_v35  ;;  %v541_v42 = vrot.slane %v278_v35, 1  ;;  %v542_v43 = vrot.slane %v279_v36, 1  ;;  %v3836_v44 = vld [vmem:[#allocation3 + $0x10] sm:$0x3] }
  0x25   : > { %3782 = vst [vmem:[#allocation3 + $0x118] sm:$0x3] %v10012_v5  ;;  %3783 = vst [vmem:[#allocation3 + $0x120] sm:$0xff] %v10012_v5  ;;  %v281_v45 = vld [vmem:[%s10257_s22 + $0x18] sm:$0xff]  ;;  %v10274_v46 = vld [vmem:[%s10257_s22 + $0x20] sm:$0xff]  ;;  %v544_v47 = vrot.slane %v280_v37, 1 }
  0x26   : > { %3784 = vst [vmem:[#allocation3 + $0x128] sm:$0xff] %v10012_v5  ;;  %3785 = vst [vmem:[#allocation3 + $0x130] sm:$0x3] %v10012_v5  ;;  %8330 = vmatpush3.bf16.msra.mxu0 %v9422_v19  ;;  %v814_v48 = vrot.slane %v278_v35, 2  ;;  %v815_v49 = vrot.slane %v279_v36, 2  ;;  %v4099_v50 = vrot.slane %v3836_v44, 1  ;;  %v543_v51 = vsel %vm540_vm0, %v541_v42, %v542_v43 }
  0x27   : > { %3786 = vst [vmem:[#allocation3 + $0x138] sm:$0xff] %v10012_v5  ;;  %3787 = vst [vmem:[#allocation3 + $0x140] sm:$0xff] %v10012_v5  ;;  %8442 = vmatpush3.bf16.msra.mxu1 %v9423_v20  ;;  %8331 = vmatprep.subr.bf16.mxu0 %v9424_v21  ;;  %v8106_v52 = vpack.c.bf16 %v281_v45, %v281_v45  ;;  %v8107_v53 = vpack.c.bf16 %v10274_v46, %v10274_v46  ;;  %v546_v54 = vrot.slane %v281_v45, 1  ;;  %v9440_v55 = vld [vmem:[%s12878_s1 + $0x178] sm:$0xff]   ;;  %v283_v60 = vld [vmem:[%s10257_s22 + $0x28] sm:$0x3] }
  0x28   : > { %3788 = vst [vmem:[#allocation3 + $0x148] sm:$0x3] %v10012_v5  ;;  %3789 = vst [vmem:[#allocation3 + $0x150] sm:$0xff] %v10012_v5  ;;  %8443 = vmatprep.subr.bf16.mxu1 %v9425_v22  ;;  %v545_v56 = vsel %vm540_vm0, %v542_v43, %v544_v47  ;;  %v8136_v57 = vpack.c.bf16 %v543_v51, %v543_v51  ;;  %v10285_v58 = vsel %vm540_vm0, %v10234_v26, %v4099_v50  ;;  %v10293_v1 = vld [vmem:[%s10257_s22 + $0x30] sm:$0xff]  ;;  %v10296_v2 = vld [vmem:[%s10257_s22 + $0x38] sm:$0xff] }
  0x29   : > { %3790 = vst [vmem:[#allocation3 + $0x158] sm:$0xff] %v10012_v5  ;;  %3791 = vst [vmem:[#allocation3 + $0x160] sm:$0x3] %v10012_v5  ;;  %v547_v59 = vrot.slane %v10274_v46, 1  ;;  %v8137_v61 = vpack.c.bf16 %v545_v56, %v545_v56  ;;  %v8245_v62 = vpack.c.bf16 %v10285_v58, %v10285_v58  ;;  %v816_v63 = vsel %vm813_vm1, %v814_v48, %v815_v49  ;;  %v10314_v15 = vld [vmem:[%s10257_s22 + $0x40] sm:$0x3] }
  0x2a   : > { %3792 = vst [vmem:[#allocation3 + $0x168] sm:$0xff] %v10012_v5  ;;  %3793 = vst [vmem:[#allocation3 + $0x170] sm:$0xff] %v10012_v5  ;;  %8332 = vmatpush3.bf16.msra.mxu0 %v9426_v23  ;;  %v817_v0 = vrot.slane %v280_v37, 2  ;;  %v819_v3 = vrot.slane %v281_v45, 2  ;;  %v820_v4 = vrot.slane %v10274_v46, 2  ;;  %v4371_v6 = vrot.slane %v3836_v44, 2 }
  0x2b   : > { %3794 = vst [vmem:[#allocation3 + $0x178] sm:$0x3] %v10012_v5  ;;  %3795 = vst [vmem:[#allocation3 + $0x180] sm:$0xff] %v10012_v5  ;;  %8444 = vmatpush3.bf16.msra.mxu1 %v9427_v24  ;;  %8333 = vmatprep.subr.bf16.mxu0 %v9428_v25  ;;  %v10301_v8 = vsel %vm540_vm0, %v546_v54, %v547_v59  ;;  %v549_v9 = vrot.slane %v283_v60, 1  ;;  %v8108_v10 = vpack.c.bf16 %v10293_v1, %v10293_v1  ;;  %v10324_v20 = vld [vmem:[%s10257_s22 + $0x48] sm:$0xff]  ;;  %v10327_v21 = vld [vmem:[%s10257_s22 + $0x50] sm:$0xff] }
  0x2c   : > { %3796 = vst [vmem:[#allocation3 + $0x188] sm:$0xff] %v10012_v5  ;;  %3797 = vst [vmem:[#allocation3 + $0x190] sm:$0x3] %v10012_v5  ;;  %8445 = vmatprep.subr.bf16.mxu1 %v9429_v27  ;;  %v818_v7 = vsel %vm813_vm1, %v815_v49, %v817_v0  ;;  %v10307_v12 = vsel %vm813_vm1, %v10240_v28, %v4371_v6  ;;  %v8138_v13 = vpack.c.bf16 %v10301_v8, %v10301_v8  ;;  %v10356_v44 = vld [vmem:[%s10257_s22 + $0x58] sm:$0x3]  ;;  %v10359_v45 = vld [vmem:[%s10257_s22 + $0x60] sm:$0xff] }
  0x2d   : > { %3800 = vst [vmem:[#allocation3 + $0x1a8] sm:$0x3] %v10012_v5  ;;  %460 = vst [vmem:[#allocation2] sm:$0xf] %v8104_v40  ;;  %v8168_v5 = vpack.c.bf16 %v816_v63, %v816_v63  ;;  %v8169_v11 = vpack.c.bf16 %v818_v7, %v818_v7  ;;  %v8109_v14 = vpack.c.bf16 %v10296_v2, %v10296_v2  ;;  %v551_v18 = vrot.slane %v10293_v1, 1  ;;  %v10397_v0 = vld [vmem:[%s10257_s22 + $0x78] sm:$0xff] }
  0x2e   : > { %8334 = vmatpush3.bf16.msra.mxu0 %v9430_v29  ;;  %461 = vst [vmem:[#allocation2 + $0x24] sm:$0xf] %v8105_v41  ;;  %1094 = vst [vmem:[#allocation2 + $0xc] sm:$0xf] %v8106_v52  ;;  %v8277_v16 = vpack.c.bf16 %v10307_v12, %v10307_v12  ;;  %v10319_v17 = vsel %vm540_vm0, %v547_v59, %v549_v9  ;;  %v552_v19 = vrot.slane %v10296_v2, 1  ;;  %v822_v24 = vrot.slane %v283_v60, 2 }
  0x2f   : > { %8446 = vmatpush3.bf16.msra.mxu1 %v9431_v30  ;;  %8335 = vmatprep.subr.bf16.mxu0 %v9432_v31  ;;  %1095 = vst [vmem:[#allocation2 + $0x30] sm:$0xf] %v8107_v53  ;;  %462 = vst [vmem:[#allocation2 + $0x48] sm:$0xf] %v8106_v52  ;;  %v8139_v22 = vpack.c.bf16 %v10319_v17, %v10319_v17  ;;  %v821_v23 = vsel %vm813_vm1, %v819_v3, %v820_v4  ;;  %v824_v25 = vrot.slane %v10293_v1, 2  ;;  %v10367_v52 = vld [vmem:[%s10257_s22 + $0x68] sm:$0xff] }
  0x30   : > { %8447 = vmatprep.subr.bf16.mxu1 %v9433_v32  ;;  %463 = vst [vmem:[#allocation2 + $0x6c] sm:$0xf] %v8107_v53  ;;  %781 = vst [vmem:[#allocation2 + $0x4] sm:$0xf] %v8136_v57  ;;  %v825_v27 = vrot.slane %v10296_v2, 2  ;;  %v8170_v29 = vpack.c.bf16 %v821_v23, %v821_v23  ;;  %v10335_v30 = vsel %vm540_vm0, %v551_v18, %v552_v19  ;;  %v554_v31 = vrot.slane %v10314_v15, 1 }
  0x31   : > { %782 = vst [vmem:[#allocation2 + $0x28] sm:$0xf] %v8137_v61  ;;  %12919 = vst [vmem:[#allocation7_spill] sm:$0xff] %v10301_v8  ;;  %v10341_v32 = vld [vmem:[%s12878_s1 + $0x138] sm:$0xff]   ;;  %v8110_v35 = vpack.c.bf16 %v10324_v20, %v10324_v20  ;;  %v8111_v36 = vpack.c.bf16 %v10327_v21, %v10327_v21  ;;  %v556_v42 = vrot.slane %v10324_v20, 1  ;;  %v557_v43 = vrot.slane %v10327_v21, 1 }
  0x32   : > { %8336 = vmatpush3.bf16.msra.mxu0 %v9434_v33  ;;  %1054 = vst [vmem:[#allocation2 + $0x8] sm:$0xf] %v8168_v5  ;;  %12920 = vst [vmem:[#allocation8_spill] sm:$0xff] %v10319_v17  ;;  %v823_v33 = vsel %vm813_vm1, %v820_v4, %v822_v24  ;;  %v10351_v41 = vsel %vm540_vm0, %v552_v19, %v554_v31  ;;  %v826_v49 = vsel %vm813_vm1, %v824_v25, %v825_v27  ;;  %v10013_v53 = vmov 0.0|0.0   ;;  %v9452_v59 = vld [vmem:[%s12878_s1 + $0x170] sm:$0xff]   ;;  %v10400_v1 = vld [vmem:[%s10257_s22 + $0x80] sm:$0xff] }
  0x33   : > { %8448 = vmatpush3.bf16.msra.mxu1 %v9435_v34  ;;  %8545 = vmatprep.subr.bf16.mxu0 %v9440_v55  ;;  %1096 = vst [vmem:[#allocation2 + $0x54] sm:$0xf] %v8108_v10  ;;  %464 = vst [vmem:[#allocation2 + $0x90] sm:$0xf] %v8108_v10  ;;  %v8140_v34 = vpack.c.bf16 %v10335_v30, %v10335_v30  ;;  %v8171_v40 = vpack.c.bf16 %v823_v33, %v823_v33  ;;  %v827_v50 = vrot.slane %v10314_v15, 2  ;;  %v10389_v60 = vld [vmem:[%s12878_s1 + $0x130] sm:$0xff]  }
  0x34   : > { %1231 = vst [vmem:[#allocation2 + $0x18] sm:$0xf] %v8108_v10  ;;  %1055 = vst [vmem:[#allocation2 + $0x2c] sm:$0xf] %v8169_v11  ;;  %v8141_v48 = vpack.c.bf16 %v10351_v41, %v10351_v41  ;;  %v829_v51 = vrot.slane %v10324_v20, 2  ;;  %v830_v56 = vrot.slane %v10327_v21, 2  ;;  %v8172_v57 = vpack.c.bf16 %v826_v49, %v826_v49 }
  0x35   : > { %783 = vst [vmem:[#allocation2 + $0x4c] sm:$0xf] %v8138_v13  ;;  %1144 = vst [vmem:[#allocation2 + $0x10] sm:$0xf] %v8138_v13  ;;  %v10380_v26 = vsel %vm540_vm0, %v556_v42, %v557_v43  ;;  %v828_v58 = vsel %vm813_vm1, %v825_v27, %v827_v50  ;;  %v559_v61 = vrot.slane %v10356_v44, 1  ;;  %v8112_v63 = vpack.c.bf16 %v10359_v45, %v10359_v45  ;;  %v9464_v28 = vld [vmem:[%s12878_s1 + $0x168] sm:$0xff]  }
  0x36   : > { %1097 = vst [vmem:[#allocation2 + $0x78] sm:$0xf] %v8109_v14  ;;  %465 = vst [vmem:[#allocation2 + $0xb4] sm:$0xf] %v8109_v14  ;;  %v9438_v3 = vld [vmem:[#allocation2 + $0xc] ss:$36 sps:$4 sm:$0xff]   ;;  %v8173_v5 = vpack.c.bf16 %v828_v58, %v828_v58  ;;  %v8113_v6 = vpack.c.bf16 %v10367_v52, %v10367_v52  ;;  %v831_v13 = vsel %vm813_vm1, %v829_v51, %v830_v56 }
  0x37   : > { %1232 = vst [vmem:[#allocation2 + $0x3c] sm:$0xf] %v8109_v14  ;;  %12921 = vst [vmem:[#allocation9_spill] sm:$0xff] %v10335_v30  ;;  %v1360_v37 = vld [vmem:[#allocation2] sm:$0xff]  ;;  %v561_v7 = vrot.slane %v10359_v45, 1  ;;  %v562_v9 = vrot.slane %v10367_v52, 1  ;;  %v10416_v11 = vsel %vm540_vm0, %v557_v43, %v559_v61  ;;  %3025 = vmatprep.mubr.bf16.mxu1 %v9438_v3  ;;  %v8174_v19 = vpack.c.bf16 %v831_v13, %v831_v13 }
  0x38   : > { %784 = vst [vmem:[#allocation2 + $0x70] sm:$0xf] %v8139_v22  ;;  %1145 = vst [vmem:[#allocation2 + $0x34] sm:$0xf] %v8139_v22  ;;  %v1365_v46 = vld [vmem:[#allocation2 + $0x24] sm:$0xff]  ;;  %v832_v14 = vrot.slane %v10356_v44, 2  ;;  %v8143_v15 = vpack.c.bf16 %v10416_v11, %v10416_v11  ;;  %v8115_v31 = vpack.c.bf16 %v10400_v1, %v10400_v1 }
  0x39   : > { %1056 = vst [vmem:[#allocation2 + $0x50] sm:$0xf] %v8170_v29  ;;  %1191 = vst [vmem:[#allocation2 + $0x14] sm:$0xf] %v8170_v29  ;;  %v9436_v47 = vld [vmem:[#allocation2 + $0x4] ss:$36 sps:$4 sm:$0xff]   ;;  %v7555_v55 = vcombine.low %v1360_v37, %v1365_v46  ;;  %v10436_v23 = vsel %vm540_vm0, %v561_v7, %v562_v9  ;;  %v8114_v29 = vpack.c.bf16 %v10397_v0, %v10397_v0 }
  0x3a   : > { %12922 = vst [vmem:[#allocation10_spill] sm:$0xff] %v10351_v41  ;;  %785 = vst [vmem:[#allocation2 + $0x94] sm:$0xf] %v8140_v34  ;;  %v1361_v54 = vld [vmem:[#allocation2 + $0x8] sm:$0xff]  ;;  %2864 = vmatprep.mubr.bf16.mxu0 %v9436_v47  ;;  %v835_v18 = vrot.slane %v10367_v52, 2  ;;  %v10430_v20 = vld [vmem:[%s10257_s22 + $0x90] sm:$0xff]  ;;  %v833_v22 = vsel %vm813_vm1, %v830_v56, %v832_v14  ;;  %v8144_v27 = vpack.c.bf16 %v10436_v23, %v10436_v23 }
  0x3b   : > { %1146 = vst [vmem:[#allocation2 + $0x58] sm:$0xf] %v8140_v34  ;;  %1281 = vst [vmem:[#allocation2 + $0x1c] sm:$0xf] %v8140_v34  ;;  %v1366_v2 = vld [vmem:[#allocation2 + $0x2c] sm:$0xff]  ;;  %2865 = vmatmul.mubr.bf16.vlgmr.msra.gmra.mxu0 %v7555_v55  ;;  %v8175_v25 = vpack.c.bf16 %v833_v22, %v833_v22  ;;  %v10452_v34 = vld [vmem:[%s10257_s22 + $0x98] sm:$0xff]  ;;  %v8116_v43 = vpack.c.bf16 %v10430_v20, %v10430_v20 }
  0x3c   : > { %1098 = vst [vmem:[#allocation2 + $0x9c] sm:$0xf] %v8110_v35  ;;  %1099 = vst [vmem:[#allocation2 + $0xc0] sm:$0xf] %v8111_v36  ;;  %v10402_v4 = vld [vmem:[#allocation2 + $0x48] sm:$0xff]  ;;  %v7557_v10 = vcombine.low %v1361_v54, %v1366_v2  ;;  %8546 = vmatpush3.bf16.msra.mxu0 %v10341_v32  ;;  %v567_v46 = vrot.slane %v10400_v1, 1 }
  0x3d   : > { %466 = vst [vmem:[#allocation2 + $0xd8] sm:$0xf] %v8110_v35  ;;  %467 = vst [vmem:[#allocation2 + $0xfc] sm:$0xf] %v8111_v36  ;;  %8547 = vmatprep.subr.bf16.mxu0 %v9452_v59  ;;  %v9465_v32 = vld [vmem:[%s12878_s1 + $0x128] sm:$0xff]   ;;  %v9476_v50 = vld [vmem:[%s12878_s1 + $0x160] sm:$0xff]  }
  0x3e   : > { %1233 = vst [vmem:[#allocation2 + $0x60] sm:$0xf] %v8110_v35  ;;  %1234 = vst [vmem:[#allocation2 + $0x84] sm:$0xf] %v8111_v36  ;;  %3026 = vmatmul.mubr.bf16.vlgmr.msra.gmra.mxu1 %v7557_v10  ;;  %v10449_v33 = vld [vmem:[%s10257_s22 + $0x88] sm:$0x3] }
  0x3f   : > { %4016 = vst [vmem:[#allocation2] sm:$0xf] %v10013_v53  ;;  %4017 = vst [vmem:[#allocation2 + $0x24] sm:$0xf] %v10013_v53  ;;  %v9442_v12 = vld [vmem:[#allocation2 + $0x4c] ss:$36 sps:$4 sm:$0xff]  }
  0x40   : > { %4336 = vst [vmem:[#allocation2 + $0x4] sm:$0xf] %v8244_v38  ;;  %4337 = vst [vmem:[#allocation2 + $0x28] sm:$0xf] %v8245_v62  ;;  %v10383_v38 = vld [vmem:[%s10257_s22 + $0x70] sm:$0x3]  ;;  %v8142_v62 = vpack.c.bf16 %v10380_v26, %v10380_v26  ;;  %2872 = vmatprep.mubr.bf16.mxu0 %v9442_v12  ;;  %8548 = vmatpush3.bf16.msra.mxu0 %v10389_v60  ;;  %v8117_v60 = vpack.c.bf16 %v10452_v34, %v10452_v34 }
  0x41   : > { %1057 = vst [vmem:[#allocation2 + $0x74] sm:$0xf] %v8171_v40  ;;  %1192 = vst [vmem:[#allocation2 + $0x38] sm:$0xf] %v8171_v40  ;;  %v564_v24 = vrot.slane %v10383_v38, 1  ;;  %v566_v40 = vrot.slane %v10397_v0, 1  ;;  %8549 = vmatprep.subr.bf16.mxu0 %v9464_v28 }
  0x42   : > { %12923 = vst [vmem:[#allocation11_spill] sm:$0xff] %v10380_v26  ;;  %786 = vst [vmem:[#allocation2 + $0xb8] sm:$0xf] %v8141_v48  ;;  %v9444_v35 = vld [vmem:[#allocation2 + $0x54] ss:$36 sps:$4 sm:$0xff]   ;;  %v837_v47 = vrot.slane %v10383_v38, 2 }
  0x43   : > { %1147 = vst [vmem:[#allocation2 + $0x7c] sm:$0xf] %v8141_v48  ;;  %1282 = vst [vmem:[#allocation2 + $0x40] sm:$0xf] %v8141_v48  ;;  %v10458_v37 = vsel %vm540_vm0, %v562_v9, %v564_v24  ;;  %v839_v48 = vrot.slane %v10397_v0, 2  ;;  %3033 = vmatprep.mubr.bf16.mxu1 %v9444_v35  ;;  %v840_v51 = vrot.slane %v10400_v1, 2  ;;  %v10493_v58 = vsel %vm540_vm0, %v566_v40, %v567_v46 }
  0x44   : > { %1058 = vst [vmem:[#allocation2 + $0x98] sm:$0xf] %v8172_v57  ;;  %1193 = vst [vmem:[#allocation2 + $0x5c] sm:$0xf] %v8172_v57  ;;  %v10472_v49 = vld [vmem:[%s10257_s22 + $0xa0] sm:$0x3]  ;;  %v838_v38 = vsel %vm813_vm1, %v835_v18, %v837_v47  ;;  %8550 = vmatpush3.bf16.msra.mxu0 %v9465_v32  ;;  %v8146_v1 = vpack.c.bf16 %v10493_v58, %v10493_v58 }
  0x45   : > { %1328 = vst [vmem:[#allocation2 + $0x20] sm:$0xf] %v8172_v57  ;;  %4608 = vst [vmem:[#allocation2 + $0x8] sm:$0xf] %v8276_v39  ;;  %v10423_v39 = vld [vmem:[#allocation2 + $0x6c] sm:$0xff]  ;;  %v569_v54 = vrot.slane %v10449_v33, 1  ;;  %v8177_v0 = vpack.c.bf16 %v838_v38, %v838_v38  ;;  %8551 = vmatprep.subr.bf16.mxu0 %v9476_v50 }
  0x46   : > { %4609 = vst [vmem:[#allocation2 + $0x2c] sm:$0xf] %v8277_v16  ;;  %12924 = vst [vmem:[#allocation12_spill] sm:$0xff] %v10416_v11  ;;  %v834_v16 = vrot.slane %v10359_v45, 2  ;;  %v7564_v21 = vcombine.low %v10402_v4, %v10423_v39  ;;  %v8145_v45 = vpack.c.bf16 %v10458_v37, %v10458_v37  ;;  %v10480_v55 = vld [vmem:[%s10257_s22 + $0xa8] sm:$0xff]  ;;  %v9477_v56 = vld [vmem:[%s12878_s1 + $0x120] sm:$0xff]  }
  0x47   : > { %787 = vst [vmem:[#allocation2 + $0xdc] sm:$0xf] %v8142_v62  ;;  %1148 = vst [vmem:[#allocation2 + $0xa0] sm:$0xf] %v8142_v62  ;;  %v10485_v57 = vld [vmem:[#allocation2 + $0x90] sm:$0xff]  ;;  %v571_v61 = vrot.slane %v10430_v20, 1  ;;  %v10502_v52 = vsel %vm540_vm0, %v567_v46, %v569_v54 }
  0x48   : > { %1283 = vst [vmem:[#allocation2 + $0x64] sm:$0xf] %v8142_v62  ;;  %1100 = vst [vmem:[#allocation2 + $0xe4] sm:$0xf] %v8112_v63  ;;  %v10454_v36 = vld [vmem:[#allocation2 + $0x50] ss:$36 sps:$4 sm:$0xff]   ;;  %v836_v42 = vsel %vm813_vm1, %v834_v16, %v835_v18  ;;  %2873 = vmatmul.mubr.bf16.gmra.mxu0 %v7564_v21  ;;  %v8147_v4 = vpack.c.bf16 %v10502_v52, %v10502_v52 }
  0x49   : > { %468 = vst [vmem:[#allocation2 + $0x120] sm:$0xf] %v8112_v63  ;;  %1235 = vst [vmem:[#allocation2 + $0xa8] sm:$0xf] %v8112_v63  ;;  %v9447_v44 = vld [vmem:[#allocation2 + $0x94] ss:$36 sps:$4 sm:$0xff]   ;;  %v8176_v53 = vpack.c.bf16 %v836_v42, %v836_v42  ;;  %3034 = vmatmul.mubr.bf16.gmra.mxu1 %v10454_v36  ;;  %8552 = vmatpush3.bf16.msra.mxu0 %v9477_v56 }
  0x4a   : > { %1059 = vst [vmem:[#allocation2 + $0xbc] sm:$0xf] %v8173_v5  ;;  %1194 = vst [vmem:[#allocation2 + $0x80] sm:$0xf] %v8173_v5  ;;  %v10487_v59 = vld [vmem:[#allocation2 + $0xb4] sm:$0xff]  ;;  %2880 = vmatprep.mubr.bf16.mxu0 %v9447_v44  ;;  %v572_v2 = vrot.slane %v10452_v34, 1 }
  0x4b   : > { %1329 = vst [vmem:[#allocation2 + $0x44] sm:$0xf] %v8173_v5  ;;  %1101 = vst [vmem:[#allocation2 + $0x108] sm:$0xf] %v8113_v6  ;;  %v10499_v62 = vld [vmem:[%s10257_s22 + $0xb0] sm:$0xff]  ;;  %v9488_v3 = vld [vmem:[%s12878_s1 + $0x158] sm:$0xff]   ;;  %v841_v5 = vsel %vm813_vm1, %v839_v48, %v840_v51  ;;  %v7573_v28 = vcombine.low %v10485_v57, %v10487_v59 }
  0x4c   : > { %469 = vst [vmem:[#allocation2 + $0x144] sm:$0xf] %v8113_v6  ;;  %1236 = vst [vmem:[#allocation2 + $0xcc] sm:$0xf] %v8113_v6  ;;  %v9449_v63 = vld [vmem:[#allocation2 + $0x9c] ss:$36 sps:$4 sm:$0xff]   ;;  %v8178_v10 = vpack.c.bf16 %v841_v5, %v841_v5  ;;  %v10518_v13 = vsel %vm540_vm0, %v571_v61, %v572_v2  ;;  %v8119_v22 = vpack.c.bf16 %v10499_v62, %v10499_v62  ;;  %8553 = vmatprep.subr.bf16.mxu0 %v9488_v3 }
  0x4d   : > { %12925 = vst [vmem:[#allocation13_spill] sm:$0xff] %v10436_v23  ;;  %788 = vst [vmem:[#allocation2 + $0x100] sm:$0xf] %v8143_v15  ;;  %v842_v6 = vrot.slane %v10449_v33, 2  ;;  %v844_v7 = vrot.slane %v10430_v20, 2  ;;  %v845_v9 = vrot.slane %v10452_v34, 2  ;;  %3041 = vmatprep.mubr.bf16.mxu1 %v9449_v63  ;;  %v8148_v12 = vpack.c.bf16 %v10518_v13, %v10518_v13 }
  0x4e   : > { %1149 = vst [vmem:[#allocation2 + $0xc4] sm:$0xf] %v8143_v15  ;;  %1284 = vst [vmem:[#allocation2 + $0x88] sm:$0xf] %v8143_v15  ;;  %v574_v14 = vrot.slane %v10472_v49, 1  ;;  %v8118_v15 = vpack.c.bf16 %v10480_v55, %v10480_v55  ;;  %v10532_v18 = vld [vmem:[%s10257_s22 + $0xc0] sm:$0xff] }
  0x4f   : > { %1060 = vst [vmem:[#allocation2 + $0xe0] sm:$0xf] %v8174_v19  ;;  %1330 = vst [vmem:[#allocation2 + $0x68] sm:$0xf] %v8174_v19  ;;  %v843_v39 = vsel %vm813_vm1, %v840_v51, %v842_v6  ;;  %v10529_v16 = vld [vmem:[%s10257_s22 + $0xb8] sm:$0x3]  ;;  %v8120_v51 = vpack.c.bf16 %v10532_v18, %v10532_v18 }
  0x50   : > { %1195 = vst [vmem:[#allocation2 + $0xa4] sm:$0xf] %v8174_v19  ;;  %12926 = vst [vmem:[#allocation14_spill] sm:$0xff] %v10458_v37  ;;  %v8179_v20 = vpack.c.bf16 %v843_v39, %v843_v39  ;;  %v10535_v21 = vsel %vm540_vm0, %v572_v2, %v574_v14  ;;  %v576_v24 = vrot.slane %v10480_v55, 1  ;;  %v847_v32 = vrot.slane %v10472_v49, 2  ;;  %v10549_v33 = vld [vmem:[%s10257_s22 + $0xd8] sm:$0xff]  ;;  %2881 = vmatmul.mubr.bf16.gmra.mxu0 %v7573_v28 }
  0x51   : > { %1061 = vst [vmem:[#allocation2 + $0x104] sm:$0xf] %v8175_v25  ;;  %1331 = vst [vmem:[#allocation2 + $0x8c] sm:$0xf] %v8175_v25  ;;  %v10552_v34 = vld [vmem:[%s10257_s22 + $0xe0] sm:$0xff]  ;;  %v9489_v35 = vld [vmem:[%s12878_s1 + $0x118] sm:$0xff]   ;;  %v8122_v61 = vpack.c.bf16 %v10549_v33, %v10549_v33 }
  0x52   : > { %1196 = vst [vmem:[#allocation2 + $0xc8] sm:$0xf] %v8175_v25  ;;  %789 = vst [vmem:[#allocation2 + $0x124] sm:$0xf] %v8144_v27  ;;  %v10541_v25 = vld [vmem:[%s10257_s22 + $0xc8] sm:$0xff]  ;;  %v10557_v40 = vld [vmem:[#allocation2 + $0xd8] sm:$0xff]  ;;  %v848_v49 = vsel %vm813_vm1, %v845_v9, %v847_v32  ;;  %8554 = vmatpush3.bf16.msra.mxu0 %v9489_v35  ;;  %v8123_v2 = vpack.c.bf16 %v10552_v34, %v10552_v34 }
  0x53   : > { %1150 = vst [vmem:[#allocation2 + $0xe8] sm:$0xf] %v8144_v27  ;;  %1285 = vst [vmem:[#allocation2 + $0xac] sm:$0xf] %v8144_v27  ;;  %v8149_v27 = vpack.c.bf16 %v10535_v21, %v10535_v21  ;;  %v9451_v36 = vld [vmem:[#allocation2 + $0x98] ss:$36 sps:$4 sm:$0xff]   ;;  %v8121_v56 = vpack.c.bf16 %v10541_v25, %v10541_v25 }
  0x54   : > { %1102 = vst [vmem:[#allocation2 + $0x12c] sm:$0xf] %v8114_v29  ;;  %1103 = vst [vmem:[#allocation2 + $0x150] sm:$0xf] %v8115_v31  ;;  %v9454_v19 = vld [vmem:[#allocation2 + $0xdc] ss:$36 sps:$4 sm:$0xff]   ;;  %3042 = vmatmul.mubr.bf16.gmra.mxu1 %v9451_v36 }
  0x55   : > { %470 = vst [vmem:[#allocation2 + $0x168] sm:$0xf] %v8114_v29  ;;  %471 = vst [vmem:[#allocation2 + $0x18c] sm:$0xf] %v8115_v31  ;;  %v849_v42 = vrot.slane %v10480_v55, 2  ;;  %v10565_v47 = vld [vmem:[#allocation2 + $0xfc] sm:$0xff]  ;;  %2888 = vmatprep.mubr.bf16.mxu0 %v9454_v19 }
  0x56   : > { %1237 = vst [vmem:[#allocation2 + $0xf0] sm:$0xf] %v8114_v29  ;;  %1238 = vst [vmem:[#allocation2 + $0x114] sm:$0xf] %v8115_v31  ;;  %v577_v29 = vrot.slane %v10499_v62, 1  ;;  %v846_v31 = vsel %vm813_vm1, %v844_v7, %v845_v9  ;;  %v9500_v57 = vld [vmem:[%s12878_s1 + $0x150] sm:$0xff]  }
  0x57   : > { %1104 = vst [vmem:[#allocation2 + $0x174] sm:$0xf] %v8116_v43  ;;  %472 = vst [vmem:[#allocation2 + $0x1b0] sm:$0xf] %v8116_v43  ;;  %v8180_v44 = vpack.c.bf16 %v846_v31, %v846_v31  ;;  %v10563_v46 = vld [vmem:[%s10257_s22 + $0xd0] sm:$0x3]  ;;  %8555 = vmatprep.subr.bf16.mxu0 %v9500_v57 }
  0x58   : > { %1239 = vst [vmem:[#allocation2 + $0x138] sm:$0xf] %v8116_v43  ;;  %790 = vst [vmem:[#allocation2 + $0x148] sm:$0xf] %v8145_v45  ;;  %v850_v43 = vrot.slane %v10499_v62, 2  ;;  %v10569_v50 = vsel %vm540_vm0, %v576_v24, %v577_v29  ;;  %v581_v38 = vrot.slane %v10532_v18, 1 }
  0x59   : > { %1151 = vst [vmem:[#allocation2 + $0x10c] sm:$0xf] %v8145_v45  ;;  %1286 = vst [vmem:[#allocation2 + $0xd0] sm:$0xf] %v8145_v45  ;;  %v579_v45 = vrot.slane %v10529_v16, 1  ;;  %v8150_v55 = vpack.c.bf16 %v10569_v50, %v10569_v50  ;;  %v582_v63 = vrot.slane %v10541_v25, 1 }
  0x5a   : > { %12927 = vst [vmem:[#allocation15_spill] sm:$0xff] %v10493_v58  ;;  %1062 = vst [vmem:[#allocation2 + $0x128] sm:$0xf] %v8176_v53  ;;  %v9456_v48 = vld [vmem:[#allocation2 + $0xe4] ss:$36 sps:$4 sm:$0xff]   ;;  %v854_v5 = vrot.slane %v10532_v18, 2 }
  0x5b   : > { %1197 = vst [vmem:[#allocation2 + $0xec] sm:$0xf] %v8176_v53  ;;  %1332 = vst [vmem:[#allocation2 + $0xb0] sm:$0xf] %v8176_v53  ;;  %v8181_v53 = vpack.c.bf16 %v848_v49, %v848_v49  ;;  %v10574_v54 = vsel %vm540_vm0, %v577_v29, %v579_v45  ;;  %v10594_v3 = vld [vmem:[%s10257_s22 + $0xe8] sm:$0x3]  ;;  %3049 = vmatprep.mubr.bf16.mxu1 %v9456_v48 }
  0x5c   : > { %12928 = vst [vmem:[#allocation16_spill] sm:$0xff] %v10502_v52  ;;  %1105 = vst [vmem:[#allocation2 + $0x198] sm:$0xf] %v8117_v60  ;;  %v8151_v59 = vpack.c.bf16 %v10574_v54, %v10574_v54  ;;  %v855_v6 = vrot.slane %v10541_v25, 2  ;;  %v584_v7 = vrot.slane %v10563_v46, 1  ;;  %v586_v14 = vrot.slane %v10549_v33, 1 }
  0x5d   : > { %473 = vst [vmem:[#allocation2 + $0x1d4] sm:$0xf] %v8117_v60  ;;  %1240 = vst [vmem:[#allocation2 + $0x15c] sm:$0xf] %v8117_v60  ;;  %v851_v60 = vsel %vm813_vm1, %v849_v42, %v850_v43  ;;  %v587_v28 = vrot.slane %v10552_v34, 1  ;;  %v9501_v39 = vld [vmem:[%s12878_s1 + $0x110] sm:$0xff]  }
  0x5e   : > { %1063 = vst [vmem:[#allocation2 + $0x14c] sm:$0xf] %v8177_v0  ;;  %1198 = vst [vmem:[#allocation2 + $0x110] sm:$0xf] %v8177_v0  ;;  %v856_v18 = vsel %vm813_vm1, %v854_v5, %v855_v6  ;;  %v10617_v19 = vld [vmem:[%s10257_s22 + $0xf0] sm:$0xff]  ;;  %v857_v25 = vrot.slane %v10563_v46, 2  ;;  %8556 = vmatpush3.bf16.msra.mxu0 %v9501_v39 }
  0x5f   : > { %1333 = vst [vmem:[#allocation2 + $0xd4] sm:$0xf] %v8177_v0  ;;  %791 = vst [vmem:[#allocation2 + $0x16c] sm:$0xf] %v8146_v1  ;;  %v9459_v62 = vld [vmem:[#allocation2 + $0x124] ss:$36 sps:$4 sm:$0xff]   ;;  %v8184_v32 = vpack.c.bf16 %v856_v18, %v856_v18  ;;  %v10628_v35 = vsel %vm540_vm0, %v586_v14, %v587_v28 }
  0x60   : > { %1152 = vst [vmem:[#allocation2 + $0x130] sm:$0xf] %v8146_v1  ;;  %1287 = vst [vmem:[#allocation2 + $0xf4] sm:$0xf] %v8146_v1  ;;  %v852_v0 = vrot.slane %v10529_v16, 2  ;;  %v8182_v1 = vpack.c.bf16 %v851_v60, %v851_v60  ;;  %v860_v29 = vrot.slane %v10552_v34, 2  ;;  %v858_v42 = vsel %vm813_vm1, %v855_v6, %v857_v25 }
  0x61   : > { %12929 = vst [vmem:[#allocation17_spill] sm:$0xff] %v10518_v13  ;;  %792 = vst [vmem:[#allocation2 + $0x190] sm:$0xf] %v8147_v4  ;;  %v9461_v31 = vld [vmem:[#allocation2 + $0x12c] ss:$36 sps:$4 sm:$0xff]   ;;  %v589_v36 = vrot.slane %v10594_v3, 1 }
  0x62   : > { %1153 = vst [vmem:[#allocation2 + $0x154] sm:$0xf] %v8147_v4  ;;  %1288 = vst [vmem:[#allocation2 + $0x118] sm:$0xf] %v8147_v4  ;;  %v7582_v4 = vcombine.low %v10557_v40, %v10565_v47  ;;  %v853_v9 = vsel %vm813_vm1, %v850_v43, %v852_v0  ;;  %v10631_v40 = vld [vmem:[#allocation2 + $0x120] sm:$0xff]  ;;  %v8154_v43 = vpack.c.bf16 %v10628_v35, %v10628_v35  ;;  %v591_v49 = vrot.slane %v10617_v19, 1 }
  0x63   : > { %1064 = vst [vmem:[#allocation2 + $0x170] sm:$0xf] %v8178_v10  ;;  %1199 = vst [vmem:[#allocation2 + $0x134] sm:$0xf] %v8178_v10  ;;  %v10643_v46 = vld [vmem:[%s10257_s22 + $0x100] sm:$0x3]  ;;  %v8185_v47 = vpack.c.bf16 %v858_v42, %v858_v42  ;;  %v10646_v48 = vsel %vm540_vm0, %v587_v28, %v589_v36 }
  0x64   : > { %1334 = vst [vmem:[#allocation2 + $0xf8] sm:$0xf] %v8178_v10  ;;  %12930 = vst [vmem:[#allocation18_spill] sm:$0xff] %v10535_v21  ;;  %v10603_v10 = vsel %vm540_vm0, %v581_v38, %v582_v63  ;;  %2889 = vmatmul.mubr.bf16.gmra.mxu0 %v7582_v4  ;;  %v8155_v57 = vpack.c.bf16 %v10646_v48, %v10646_v48  ;;  %v862_v38 = vrot.slane %v10594_v3, 2  ;;  %v594_v3 = vrot.slane %v10643_v46, 1  ;;  %v10680_v5 = vld [vmem:[%s10257_s22 + $0x128] sm:$0xff] }
  0x65   : > { %793 = vst [vmem:[#allocation2 + $0x1b4] sm:$0xf] %v8148_v12  ;;  %1154 = vst [vmem:[#allocation2 + $0x178] sm:$0xf] %v8148_v12  ;;  %v8152_v16 = vpack.c.bf16 %v10603_v10, %v10603_v10  ;;  %2896 = vmatprep.mubr.bf16.mxu0 %v9459_v62  ;;  %v10677_v4 = vld [vmem:[%s10257_s22 + $0x118] sm:$0x3]  ;;  %v8129_v36 = vpack.c.bf16 %v10680_v5, %v10680_v5 }
  0x66   : > { %1289 = vst [vmem:[#allocation2 + $0x13c] sm:$0xf] %v8148_v12  ;;  %1106 = vst [vmem:[#allocation2 + $0x1bc] sm:$0xf] %v8118_v15  ;;  %v8183_v12 = vpack.c.bf16 %v853_v9, %v853_v9  ;;  %v9512_v6 = vld [vmem:[%s12878_s1 + $0x148] sm:$0xff]   ;;  %v9702_v52 = vld [vmem:[%s12881_s4 + $0x80] sm:$0xff]  }
  0x67   : > { %474 = vst [vmem:[#allocation2 + $0x1f8] sm:$0xf] %v8118_v15  ;;  %1241 = vst [vmem:[#allocation2 + $0x180] sm:$0xf] %v8118_v15  ;;  %v10611_v15 = vsel %vm540_vm0, %v582_v63, %v584_v7  ;;  %v10669_v63 = vld [vmem:[#allocation2 + $0x168] sm:$0xff]  ;;  %v863_v7 = vsel %vm813_vm1, %v860_v29, %v862_v38  ;;  %8557 = vmatprep.subr.bf16.mxu0 %v9512_v6  ;;  %v10742_v38 = vld [vmem:[%s10257_s22 + $0x138] sm:$0xff] }
  0x68   : > { %1065 = vst [vmem:[#allocation2 + $0x194] sm:$0xf] %v8179_v20  ;;  %1200 = vst [vmem:[#allocation2 + $0x158] sm:$0xf] %v8179_v20  ;;  %v8153_v24 = vpack.c.bf16 %v10611_v15, %v10611_v15  ;;  %v10671_v0 = vld [vmem:[#allocation2 + $0x18c] sm:$0xff]  ;;  %v8187_v39 = vpack.c.bf16 %v863_v7, %v863_v7 }
  0x69   : > { %1335 = vst [vmem:[#allocation2 + $0x11c] sm:$0xf] %v8179_v20  ;;  %1107 = vst [vmem:[#allocation2 + $0x1e0] sm:$0xf] %v8119_v22  ;;  %v10620_v20 = vld [vmem:[%s10257_s22 + $0xf8] sm:$0xff]  ;;  %v9513_v18 = vld [vmem:[%s12878_s1 + $0x108] sm:$0xff]  }
  0x6a   : > { %475 = vst [vmem:[#allocation2 + $0x21c] sm:$0xf] %v8119_v22  ;;  %1242 = vst [vmem:[#allocation2 + $0x1a4] sm:$0xf] %v8119_v22  ;;  %v9458_v22 = vld [vmem:[#allocation2 + $0xe0] ss:$36 sps:$4 sm:$0xff]   ;;  %v8125_v45 = vpack.c.bf16 %v10620_v20, %v10620_v20  ;;  %8558 = vmatpush3.bf16.msra.mxu0 %v9513_v18 }
  0x6b   : > { %794 = vst [vmem:[#allocation2 + $0x1d8] sm:$0xf] %v8149_v27  ;;  %1155 = vst [vmem:[#allocation2 + $0x19c] sm:$0xf] %v8149_v27  ;;  %3050 = vmatmul.mubr.bf16.gmra.mxu1 %v9458_v22  ;;  %v10769_v18 = vld [vmem:[%s10257_s22 + $0x150] sm:$0xff] }
  0x6c   : > { %1290 = vst [vmem:[#allocation2 + $0x160] sm:$0xf] %v8149_v27  ;;  %12931 = vst [vmem:[#allocation19_spill] sm:$0xff] %v10569_v50  ;;  %v859_v27 = vrot.slane %v10549_v33, 2  ;;  %v10633_v33 = vld [vmem:[#allocation2 + $0x144] sm:$0xff]  ;;  %3057 = vmatprep.mubr.bf16.mxu1 %v9461_v31 }
  0x6d   : > { %1066 = vst [vmem:[#allocation2 + $0x1b8] sm:$0xf] %v8180_v44  ;;  %1201 = vst [vmem:[#allocation2 + $0x17c] sm:$0xf] %v8180_v44  ;;  %v7591_v62 = vcombine.low %v10631_v40, %v10633_v33  ;;  %v10715_v40 = vld [vmem:[%s10257_s22 + $0x130] sm:$0x3]  ;;  %v7600_v33 = vcombine.low %v10669_v63, %v10671_v0 }
  0x6e   : > { %1336 = vst [vmem:[#allocation2 + $0x140] sm:$0xf] %v8180_v44  ;;  %12932 = vst [vmem:[#allocation20_spill] sm:$0xff] %v10574_v54  ;;  %v8124_v44 = vpack.c.bf16 %v10617_v19, %v10617_v19  ;;  %v877_v63 = vrot.slane %v10715_v40, 2 }
  0x6f   : > { %1108 = vst [vmem:[#allocation2 + $0x204] sm:$0xf] %v8120_v51  ;;  %476 = vst [vmem:[#allocation2 + $0x240] sm:$0xf] %v8120_v51  ;;  %2897 = vmatmul.mubr.bf16.gmra.mxu0 %v7591_v62 }
  0x70   : > { %1243 = vst [vmem:[#allocation2 + $0x1c8] sm:$0xf] %v8120_v51  ;;  %1067 = vst [vmem:[#allocation2 + $0x1dc] sm:$0xf] %v8181_v53  ;;  %v861_v51 = vsel %vm813_vm1, %v859_v27, %v860_v29  ;;  %v9468_v27 = vld [vmem:[#allocation2 + $0x174] ss:$36 sps:$4 sm:$0xff]  }
  0x71   : > { %1202 = vst [vmem:[#allocation2 + $0x1a0] sm:$0xf] %v8181_v53  ;;  %1337 = vst [vmem:[#allocation2 + $0x164] sm:$0xf] %v8181_v53  ;;  %v10653_v53 = vld [vmem:[%s10257_s22 + $0x108] sm:$0xff]  ;;  %v8186_v60 = vpack.c.bf16 %v861_v51, %v861_v51  ;;  %v867_v29 = vrot.slane %v10643_v46, 2 }
  0x72   : > { %795 = vst [vmem:[#allocation2 + $0x1fc] sm:$0xf] %v8150_v55  ;;  %1156 = vst [vmem:[#allocation2 + $0x1c0] sm:$0xf] %v8150_v55  ;;  %v8126_v14 = vpack.c.bf16 %v10653_v53, %v10653_v53  ;;  %v869_v31 = vrot.slane %v10653_v53, 2  ;;  %v602_v51 = vrot.slane %v10680_v5, 1 }
  0x73   : > { %1291 = vst [vmem:[#allocation2 + $0x184] sm:$0xf] %v8150_v55  ;;  %1109 = vst [vmem:[#allocation2 + $0x228] sm:$0xf] %v8121_v56  ;;  %v10656_v55 = vld [vmem:[%s10257_s22 + $0x110] sm:$0xff] }
  0x74   : > { %477 = vst [vmem:[#allocation2 + $0x264] sm:$0xf] %v8121_v56  ;;  %1244 = vst [vmem:[#allocation2 + $0x1ec] sm:$0xf] %v8121_v56  ;;  %v10658_v56 = vld [vmem:[#allocation2 + $0x16c] ss:$36 sps:$4 sm:$0xff]   ;;  %v8127_v28 = vpack.c.bf16 %v10656_v55, %v10656_v55 }
  0x75   : > { %796 = vst [vmem:[#allocation2 + $0x220] sm:$0xf] %v8151_v59  ;;  %1157 = vst [vmem:[#allocation2 + $0x1e4] sm:$0xf] %v8151_v59  ;;  %v597_v22 = vrot.slane %v10656_v55, 1  ;;  %2904 = vmatprep.mubr.bf16.mxu0 %v10658_v56  ;;  %v870_v42 = vrot.slane %v10656_v55, 2 }
  0x76   : > { %1292 = vst [vmem:[#allocation2 + $0x1a8] sm:$0xf] %v8151_v59  ;;  %1110 = vst [vmem:[#allocation2 + $0x24c] sm:$0xf] %v8122_v61  ;;  %v592_v59 = vrot.slane %v10620_v20, 1 }
  0x77   : > { %478 = vst [vmem:[#allocation2 + $0x288] sm:$0xf] %v8122_v61  ;;  %1245 = vst [vmem:[#allocation2 + $0x210] sm:$0xf] %v8122_v61  ;;  %v10665_v61 = vld [vmem:[%s10257_s22 + $0x120] sm:$0xff]  ;;  %2905 = vmatmul.mubr.bf16.gmra.mxu0 %v7600_v33  ;;  %v879_v33 = vrot.slane %v10742_v38, 2 }
  0x78   : > { %1068 = vst [vmem:[#allocation2 + $0x200] sm:$0xf] %v8182_v1  ;;  %1203 = vst [vmem:[#allocation2 + $0x1c4] sm:$0xf] %v8182_v1  ;;  %v10689_v9 = vsel %vm540_vm0, %v591_v49, %v592_v59  ;;  %v8128_v25 = vpack.c.bf16 %v10665_v61, %v10665_v61  ;;  %v601_v49 = vrot.slane %v10665_v61, 1 }
  0x79   : > { %1338 = vst [vmem:[#allocation2 + $0x188] sm:$0xf] %v8182_v1  ;;  %12933 = vst [vmem:[#allocation21_spill] sm:$0xff] %v10603_v10  ;;  %v864_v1 = vrot.slane %v10617_v19, 2  ;;  %v8156_v34 = vpack.c.bf16 %v10689_v9, %v10689_v9  ;;  %v9463_v19 = vld [vmem:[#allocation2 + $0x128] ss:$36 sps:$4 sm:$0xff]  }
  0x7a   : > { %1111 = vst [vmem:[#allocation2 + $0x270] sm:$0xf] %v8123_v2  ;;  %479 = vst [vmem:[#allocation2 + $0x2ac] sm:$0xf] %v8123_v2  ;;  %3058 = vmatmul.mubr.bf16.gmra.mxu1 %v9463_v19  ;;  %v9471_v62 = vld [vmem:[#allocation2 + $0x1b4] ss:$36 sps:$4 sm:$0xff]   ;;  %v10753_v7 = vsel %vm540_vm0, %v601_v49, %v602_v51 }
  0x7b   : > { %1246 = vst [vmem:[#allocation2 + $0x234] sm:$0xf] %v8123_v2  ;;  %12934 = vst [vmem:[#allocation22_spill] sm:$0xff] %v10611_v15  ;;  %v865_v2 = vrot.slane %v10620_v20, 2  ;;  %3065 = vmatprep.mubr.bf16.mxu1 %v9468_v27  ;;  %v9470_v19 = vld [vmem:[#allocation2 + $0x170] ss:$36 sps:$4 sm:$0xff]   ;;  %2912 = vmatprep.mubr.bf16.mxu0 %v9471_v62 }
  0x7c   : > { %1069 = vst [vmem:[#allocation2 + $0x224] sm:$0xf] %v8183_v12  ;;  %1204 = vst [vmem:[#allocation2 + $0x1e8] sm:$0xf] %v8183_v12  ;;  %v10781_v27 = vld [vmem:[#allocation2 + $0x1b0] sm:$0xff] }
  0x7d   : > { %1339 = vst [vmem:[#allocation2 + $0x1ac] sm:$0xf] %v8183_v12  ;;  %797 = vst [vmem:[#allocation2 + $0x244] sm:$0xf] %v8152_v16  ;;  %v10696_v12 = vsel %vm540_vm0, %v592_v59, %v594_v3  ;;  %v868_v46 = vsel %vm813_vm1, %v865_v2, %v867_v29  ;;  %v872_v59 = vrot.slane %v10677_v4, 2  ;;  %v875_v3 = vrot.slane %v10680_v5, 2 }
  0x7e   : > { %1158 = vst [vmem:[#allocation2 + $0x208] sm:$0xf] %v8152_v16  ;;  %1293 = vst [vmem:[#allocation2 + $0x1cc] sm:$0xf] %v8152_v16  ;;  %v596_v16 = vrot.slane %v10653_v53, 1  ;;  %v8157_v20 = vpack.c.bf16 %v10696_v12, %v10696_v12  ;;  %v9515_v53 = vld [vmem:[%s12878_s1 + $0x1b8] sm:$0xff]   ;;  %v8189_v55 = vpack.c.bf16 %v868_v46, %v868_v46 }
  0x7f   : > { %12935 = vst [vmem:[#allocation23_spill] sm:$0xff] %v10628_v35  ;;  %798 = vst [vmem:[#allocation2 + $0x268] sm:$0xf] %v8153_v24  ;;  %v10783_v29 = vld [vmem:[#allocation2 + $0x1d4] sm:$0xff]  ;;  %v878_v46 = vsel %vm813_vm1, %v875_v3, %v877_v63  ;;  %v9693_v10 = vld [vmem:[#allocation2] ss:$36 sps:$4 sm:$0xff]  }
  0x80   : > { %1159 = vst [vmem:[#allocation2 + $0x22c] sm:$0xf] %v8153_v24  ;;  %1294 = vst [vmem:[#allocation2 + $0x1f0] sm:$0xf] %v8153_v24  ;;  %v866_v24 = vsel %vm813_vm1, %v864_v1, %v865_v2  ;;  %v874_v2 = vrot.slane %v10665_v61, 2  ;;  %v9516_v61 = vld [vmem:[%s12878_s1 + $0x1f0] sm:$0xff]  }
  0x81   : > { %1070 = vst [vmem:[#allocation2 + $0x248] sm:$0xf] %v8184_v32  ;;  %1205 = vst [vmem:[#allocation2 + $0x20c] sm:$0xf] %v8184_v32 }
  0x82   : > { %1340 = vst [vmem:[#allocation2 + $0x1d0] sm:$0xf] %v8184_v32  ;;  %12936 = vst [vmem:[#allocation24_spill] sm:$0xff] %v10646_v48  ;;  %v8188_v32 = vpack.c.bf16 %v866_v24, %v866_v24  ;;  %v876_v24 = vsel %vm813_vm1, %v874_v2, %v875_v3  ;;  %3066 = vmatmul.mubr.bf16.gmra.mxu1 %v9470_v19  ;;  %v9478_v3 = vld [vmem:[#allocation2 + $0x1fc] ss:$36 sps:$4 sm:$0xff]  }
  0x83   : > { %799 = vst [vmem:[#allocation2 + $0x28c] sm:$0xf] %v8154_v43  ;;  %1160 = vst [vmem:[#allocation2 + $0x250] sm:$0xf] %v8154_v43  ;;  %v8192_v0 = vpack.c.bf16 %v876_v24, %v876_v24  ;;  %v9480_v19 = vld [vmem:[#allocation2 + $0x204] ss:$36 sps:$4 sm:$0xff]  }
  0x84   : > { %1295 = vst [vmem:[#allocation2 + $0x214] sm:$0xf] %v8154_v43  ;;  %1112 = vst [vmem:[#allocation2 + $0x294] sm:$0xf] %v8124_v44  ;;  %v10722_v43 = vsel %vm540_vm0, %v596_v16, %v597_v22  ;;  %v10766_v16 = vld [vmem:[%s10257_s22 + $0x148] sm:$0x3] }
  0x85   : > { %1113 = vst [vmem:[#allocation2 + $0x2b8] sm:$0xf] %v8125_v45  ;;  %480 = vst [vmem:[#allocation2 + $0x2d0] sm:$0xf] %v8124_v44  ;;  %v882_v2 = vrot.slane %v10766_v16, 2  ;;  %v1430_v24 = vld [vmem:[#allocation2 + $0x1f8] sm:$0xff] }
  0x86   : > { %481 = vst [vmem:[#allocation2 + $0x2f4] sm:$0xf] %v8125_v45  ;;  %1247 = vst [vmem:[#allocation2 + $0x258] sm:$0xf] %v8124_v44  ;;  %v599_v44 = vrot.slane %v10677_v4, 1  ;;  %v873_v4 = vsel %vm813_vm1, %v870_v42, %v872_v59 }
  0x87   : > { %1248 = vst [vmem:[#allocation2 + $0x27c] sm:$0xf] %v8125_v45  ;;  %1071 = vst [vmem:[#allocation2 + $0x26c] sm:$0xf] %v8185_v47  ;;  %v9514_v45 = vld [vmem:[%s12878_s1 + $0x1f8] sm:$0xff]   ;;  %v8191_v5 = vpack.c.bf16 %v873_v4, %v873_v4 }
  0x88   : > { %1206 = vst [vmem:[#allocation2 + $0x230] sm:$0xf] %v8185_v47  ;;  %1341 = vst [vmem:[#allocation2 + $0x1f4] sm:$0xf] %v8185_v47  ;;  %v8158_v47 = vpack.c.bf16 %v10722_v43, %v10722_v43  ;;  %v10737_v56 = vsel %vm540_vm0, %v597_v22, %v599_v44  ;;  %8657 = vmatprep.subr.bf16.mxu1 %v9514_v45  ;;  %v606_v22 = vrot.slane %v10742_v38, 1  ;;  %v609_v44 = vrot.slane %v10766_v16, 1 }
  0x89   : > { %800 = vst [vmem:[#allocation2 + $0x2b0] sm:$0xf] %v8155_v57  ;;  %1161 = vst [vmem:[#allocation2 + $0x274] sm:$0xf] %v8155_v57  ;;  %v8159_v1 = vpack.c.bf16 %v10737_v56, %v10737_v56  ;;  %8658 = vmatpush3.bf16.msra.mxu1 %v9515_v53  ;;  %v10793_v45 = vld [vmem:[%s10257_s22 + $0x158] sm:$0xff]  ;;  %v9523_v53 = vld [vmem:[%s12878_s1 + $0x1e8] sm:$0xff]  }
  0x8a   : > { %1296 = vst [vmem:[#allocation2 + $0x238] sm:$0xf] %v8155_v57  ;;  %1072 = vst [vmem:[#allocation2 + $0x290] sm:$0xf] %v8186_v60  ;;  %v871_v57 = vsel %vm813_vm1, %v869_v31, %v870_v42  ;;  %8659 = vmatprep.subr.bf16.mxu1 %v9516_v61  ;;  %v9473_v31 = vld [vmem:[#allocation2 + $0x1bc] ss:$36 sps:$4 sm:$0xff]   ;;  %v8133_v49 = vpack.c.bf16 %v10793_v45, %v10793_v45 }
  0x8b   : > { %1207 = vst [vmem:[#allocation2 + $0x254] sm:$0xf] %v8186_v60  ;;  %1342 = vst [vmem:[#allocation2 + $0x218] sm:$0xf] %v8186_v60  ;;  %v10745_v60 = vld [vmem:[%s10257_s22 + $0x140] sm:$0xff]  ;;  %v8190_v6 = vpack.c.bf16 %v871_v57, %v871_v57  ;;  %3073 = vmatprep.mubr.bf16.mxu1 %v9473_v31  ;;  %v885_v4 = vrot.slane %v10793_v45, 2 }
  0x8c   : > { %12937 = vst [vmem:[#allocation25_spill] sm:$0xff] %v10689_v9  ;;  %12938 = vst [vmem:[#allocation26_spill] sm:$0xff] %v10696_v12  ;;  %v880_v42 = vrot.slane %v10745_v60, 2  ;;  %v323_v31 = vld [vmem:[%s10257_s22 + $0x168] sm:$0xff] }
  0x8d   : > { %1114 = vst [vmem:[#allocation2 + $0x2dc] sm:$0xf] %v8126_v14  ;;  %1115 = vst [vmem:[#allocation2 + $0x300] sm:$0xf] %v8127_v28  ;;  %v8134_v63 = vpack.c.bf16 %v323_v31, %v323_v31 }
  0x8e   : > { %482 = vst [vmem:[#allocation2 + $0x318] sm:$0xf] %v8126_v14  ;;  %483 = vst [vmem:[#allocation2 + $0x33c] sm:$0xf] %v8127_v28 }
  0x8f   : > { %1249 = vst [vmem:[#allocation2 + $0x2a0] sm:$0xf] %v8126_v14  ;;  %1250 = vst [vmem:[#allocation2 + $0x2c4] sm:$0xf] %v8127_v28  ;;  %v604_v14 = vrot.slane %v10715_v40, 1  ;;  %v8160_v28 = vpack.c.bf16 %v10753_v7, %v10753_v7  ;;  %v9521_v40 = vld [vmem:[%s12878_s1 + $0x1b0] sm:$0xff]  }
  0x90   : > { %1073 = vst [vmem:[#allocation2 + $0x2b4] sm:$0xf] %v8187_v39  ;;  %1208 = vst [vmem:[#allocation2 + $0x278] sm:$0xf] %v8187_v39  ;;  %8660 = vmatpush3.bf16.msra.mxu1 %v9521_v40 }
  0x91   : > { %1343 = vst [vmem:[#allocation2 + $0x23c] sm:$0xf] %v8187_v39  ;;  %801 = vst [vmem:[#allocation2 + $0x2d4] sm:$0xf] %v8156_v34  ;;  %v8130_v39 = vpack.c.bf16 %v10742_v38, %v10742_v38  ;;  %v612_v38 = vrot.slane %v10793_v45, 1  ;;  %8661 = vmatprep.subr.bf16.mxu1 %v9523_v53  ;;  %v9530_v45 = vld [vmem:[%s12878_s1 + $0x1a0] sm:$0xff]  }
  0x92   : > { %1162 = vst [vmem:[#allocation2 + $0x298] sm:$0xf] %v8156_v34  ;;  %1297 = vst [vmem:[#allocation2 + $0x25c] sm:$0xf] %v8156_v34  ;;  %v8131_v34 = vpack.c.bf16 %v10745_v60, %v10745_v60 }
  0x93   : > { %802 = vst [vmem:[#allocation2 + $0x2f8] sm:$0xf] %v8157_v20  ;;  %1163 = vst [vmem:[#allocation2 + $0x2bc] sm:$0xf] %v8157_v20 }
  0x94   : > { %1298 = vst [vmem:[#allocation2 + $0x280] sm:$0xf] %v8157_v20  ;;  %12939 = vst [vmem:[#allocation27_spill] sm:$0xff] %v10722_v43  ;;  %v10772_v20 = vsel %vm540_vm0, %v602_v51, %v604_v14  ;;  %v611_v51 = vrot.slane %v10769_v18, 1 }
  0x95   : > { %1116 = vst [vmem:[#allocation2 + $0x324] sm:$0xf] %v8128_v25  ;;  %484 = vst [vmem:[#allocation2 + $0x360] sm:$0xf] %v8128_v25 }
  0x96   : > { %1251 = vst [vmem:[#allocation2 + $0x2e8] sm:$0xf] %v8128_v25  ;;  %1074 = vst [vmem:[#allocation2 + $0x2d8] sm:$0xf] %v8188_v32  ;;  %v8132_v25 = vpack.c.bf16 %v10769_v18, %v10769_v18  ;;  %v10825_v61 = vsel %vm540_vm0, %v611_v51, %v612_v38 }
  0x97   : > { %1209 = vst [vmem:[#allocation2 + $0x29c] sm:$0xf] %v8188_v32  ;;  %1344 = vst [vmem:[#allocation2 + $0x260] sm:$0xf] %v8188_v32  ;;  %v8161_v32 = vpack.c.bf16 %v10772_v20, %v10772_v20 }
  0x98   : > { %1117 = vst [vmem:[#allocation2 + $0x348] sm:$0xf] %v8129_v36  ;;  %485 = vst [vmem:[#allocation2 + $0x384] sm:$0xf] %v8129_v36 }
  0x99   : > { %1252 = vst [vmem:[#allocation2 + $0x30c] sm:$0xf] %v8129_v36  ;;  %12940 = vst [vmem:[#allocation28_spill] sm:$0xff] %v10737_v56  ;;  %v607_v36 = vrot.slane %v10745_v60, 1  ;;  %v7609_v60 = vcombine.low %v10781_v27, %v10783_v29  ;;  %v9525_v27 = vld [vmem:[%s12878_s1 + $0x1e0] sm:$0xff]  }
  0x9a   : > { %803 = vst [vmem:[#allocation2 + $0x31c] sm:$0xf] %v8158_v47  ;;  %1164 = vst [vmem:[#allocation2 + $0x2e0] sm:$0xf] %v8158_v47  ;;  %v322_v29 = vld [vmem:[%s10257_s22 + $0x160] sm:$0x3] }
  0x9b   : > { %1299 = vst [vmem:[#allocation2 + $0x2a4] sm:$0xf] %v8158_v47  ;;  %1075 = vst [vmem:[#allocation2 + $0x2fc] sm:$0xf] %v8189_v55  ;;  %v10800_v47 = vsel %vm540_vm0, %v606_v22, %v607_v36  ;;  %v10809_v57 = vsel %vm540_vm0, %v607_v36, %v609_v44  ;;  %2913 = vmatmul.mubr.bf16.gmra.mxu0 %v7609_v60  ;;  %v10840_v36 = vld [vmem:[%s10257_s22 + $0x170] sm:$0xff] }
  0x9c   : > { %1210 = vst [vmem:[#allocation2 + $0x2c0] sm:$0xf] %v8189_v55  ;;  %1345 = vst [vmem:[#allocation2 + $0x284] sm:$0xf] %v8189_v55  ;;  %v8193_v55 = vpack.c.bf16 %v878_v46, %v878_v46  ;;  %v8162_v59 = vpack.c.bf16 %v10800_v47, %v10800_v47  ;;  %v8163_v62 = vpack.c.bf16 %v10809_v57, %v10809_v57  ;;  %2920 = vmatprep.mubr.bf16.mxu0 %v9478_v3  ;;  %v9482_v46 = vld [vmem:[#allocation2 + $0x200] ss:$36 sps:$4 sm:$0xff]  }
  0x9d   : > { %12941 = vst [vmem:[#allocation29_spill] sm:$0xff] %v10753_v7  ;;  %804 = vst [vmem:[#allocation2 + $0x340] sm:$0xf] %v8159_v1  ;;  %v8135_v44 = vpack.c.bf16 %v10840_v36, %v10840_v36  ;;  %v617_v40 = vrot.slane %v10840_v36, 1 }
  0x9e   : > { %1165 = vst [vmem:[#allocation2 + $0x304] sm:$0xf] %v8159_v1  ;;  %1300 = vst [vmem:[#allocation2 + $0x2c8] sm:$0xf] %v8159_v1  ;;  %v881_v1 = vsel %vm813_vm1, %v879_v33, %v880_v42  ;;  %v887_v33 = vrot.slane %v322_v29, 2 }
  0x9f   : > { %1076 = vst [vmem:[#allocation2 + $0x320] sm:$0xf] %v8190_v6  ;;  %1211 = vst [vmem:[#allocation2 + $0x2e4] sm:$0xf] %v8190_v6  ;;  %v8194_v14 = vpack.c.bf16 %v881_v1, %v881_v1  ;;  %v1440_v1 = vld [vmem:[#allocation2 + $0x240] sm:$0xff] }
  0xa0   : > { %1346 = vst [vmem:[#allocation2 + $0x2a8] sm:$0xf] %v8190_v6  ;;  %12942 = vst [vmem:[#allocation30_spill] sm:$0xff] %v10772_v20  ;;  %v884_v6 = vrot.slane %v10769_v18, 2  ;;  %v888_v53 = vsel %vm813_vm1, %v885_v4, %v887_v33  ;;  %v1455_v33 = vld [vmem:[#allocation2 + $0x2ac] sm:$0xff] }
  0xa1   : > { %1077 = vst [vmem:[#allocation2 + $0x344] sm:$0xf] %v8191_v5  ;;  %1212 = vst [vmem:[#allocation2 + $0x308] sm:$0xf] %v8191_v5 }
  0xa2   : > { %1347 = vst [vmem:[#allocation2 + $0x2cc] sm:$0xf] %v8191_v5  ;;  %805 = vst [vmem:[#allocation2 + $0x364] sm:$0xf] %v8160_v28  ;;  %v883_v5 = vsel %vm813_vm1, %v880_v42, %v882_v2  ;;  %v886_v18 = vsel %vm813_vm1, %v884_v6, %v885_v4  ;;  %v1445_v6 = vld [vmem:[#allocation2 + $0x264] sm:$0xff] }
  0xa3   : > { %1166 = vst [vmem:[#allocation2 + $0x328] sm:$0xf] %v8160_v28  ;;  %1301 = vst [vmem:[#allocation2 + $0x2ec] sm:$0xf] %v8160_v28  ;;  %v9524_v28 = vld [vmem:[%s12878_s1 + $0x1a8] sm:$0xff]   ;;  %v8195_v16 = vpack.c.bf16 %v883_v5, %v883_v5  ;;  %v8196_v22 = vpack.c.bf16 %v886_v18, %v886_v18  ;;  %v9532_v5 = vld [vmem:[%s12878_s1 + $0x140] sm:$0xff]  }
  0xa4   : > { %1118 = vst [vmem:[#allocation2 + $0x36c] sm:$0xf] %v8130_v39  ;;  %1119 = vst [vmem:[#allocation2 + $0x390] sm:$0xf] %v8131_v34  ;;  %8662 = vmatpush3.bf16.msra.mxu1 %v9524_v28  ;;  %v9485_v4 = vld [vmem:[#allocation2 + $0x24c] ss:$36 sps:$4 sm:$0xff]   ;;  %8559 = vmatprep.subr.bf16.mxu0 %v9532_v5 }
  0xa5   : > { %486 = vst [vmem:[#allocation2 + $0x3a8] sm:$0xf] %v8130_v39  ;;  %487 = vst [vmem:[#allocation2 + $0x3cc] sm:$0xf] %v8131_v34  ;;  %8663 = vmatprep.subr.bf16.mxu1 %v9525_v27  ;;  %v9533_v28 = vld [vmem:[%s12878_s1 + $0x100] sm:$0xff]   ;;  %v9535_v18 = vld [vmem:[%s12878_s1 + $0x198] sm:$0xff]  }
  0xa6   : > { %1253 = vst [vmem:[#allocation2 + $0x330] sm:$0xf] %v8130_v39  ;;  %1254 = vst [vmem:[#allocation2 + $0x354] sm:$0xf] %v8131_v34  ;;  %v8164_v39 = vpack.c.bf16 %v10825_v61, %v10825_v61  ;;  %v9475_v34 = vld [vmem:[#allocation2 + $0x1b8] ss:$36 sps:$4 sm:$0xff]   ;;  %8560 = vmatpush3.bf16.msra.mxu0 %v9533_v28 }
  0xa7   : > { %1120 = vst [vmem:[#allocation2 + $0x3b4] sm:$0xf] %v8132_v25  ;;  %488 = vst [vmem:[#allocation2 + $0x3f0] sm:$0xf] %v8132_v25  ;;  %3074 = vmatmul.mubr.bf16.gmra.mxu1 %v9475_v34  ;;  %v9534_v34 = vld [vmem:[%s12878_s1 + $0x1d8] sm:$0xff]   ;;  %v10885_v27 = vld [vmem:[%s10257_s22 + $0x188] sm:$0xff] }
  0xa8   : > { %1255 = vst [vmem:[#allocation2 + $0x378] sm:$0xf] %v8132_v25  ;;  %806 = vst [vmem:[#allocation2 + $0x388] sm:$0xf] %v8161_v32  ;;  %v1435_v25 = vld [vmem:[#allocation2 + $0x21c] sm:$0xff]  ;;  %3081 = vmatprep.mubr.bf16.mxu1 %v9480_v19  ;;  %8664 = vmatpush3.bf16.msra.mxu1 %v9530_v45  ;;  %v9536_v19 = vld [vmem:[%s12878_s1 + $0x1d0] sm:$0xff]  }
  0xa9   : > { %1167 = vst [vmem:[#allocation2 + $0x34c] sm:$0xf] %v8161_v32  ;;  %1302 = vst [vmem:[#allocation2 + $0x310] sm:$0xf] %v8161_v32  ;;  %v614_v32 = vrot.slane %v322_v29, 1  ;;  %v7618_v42 = vcombine.low %v1430_v24, %v1435_v25  ;;  %8665 = vmatprep.subr.bf16.mxu1 %v9534_v34  ;;  %v10882_v25 = vld [vmem:[%s10257_s22 + $0x180] sm:$0xff] }
  0xaa   : > { %1078 = vst [vmem:[#allocation2 + $0x368] sm:$0xf] %v8192_v0  ;;  %1213 = vst [vmem:[#allocation2 + $0x32c] sm:$0xf] %v8192_v0  ;;  %v9545_v45 = vld [vmem:[%s12878_s1 + $0x1c0] sm:$0xff]   ;;  %v1470_v34 = vld [vmem:[#allocation2 + $0x318] sm:$0xff] }
  0xab   : > { %1348 = vst [vmem:[#allocation2 + $0x2f0] sm:$0xf] %v8192_v0  ;;  %12943 = vst [vmem:[#allocation31_spill] sm:$0xff] %v10800_v47  ;;  %v616_v0 = vrot.slane %v323_v31, 1  ;;  %v10848_v51 = vsel %vm540_vm0, %v612_v38, %v614_v32  ;;  %2921 = vmatmul.mubr.bf16.gmra.mxu0 %v7618_v42  ;;  %v8200_v32 = vpack.c.bf16 %v10882_v25, %v10882_v25  ;;  %v9492_v42 = vld [vmem:[#allocation2 + $0x294] ss:$36 sps:$4 sm:$0xff]  }
  0xac   : > { %12944 = vst [vmem:[#allocation32_spill] sm:$0xff] %v10809_v57  ;;  %1121 = vst [vmem:[#allocation2 + $0x3d8] sm:$0xf] %v8133_v49  ;;  %v8165_v60 = vpack.c.bf16 %v10848_v51, %v10848_v51  ;;  %8666 = vmatpush3.bf16.msra.mxu1 %v9535_v18  ;;  %v9502_v5 = vld [vmem:[#allocation2 + $0x31c] ss:$36 sps:$4 sm:$0xff]  }
  0xad   : > { %489 = vst [vmem:[#allocation2 + $0x414] sm:$0xf] %v8133_v49  ;;  %1256 = vst [vmem:[#allocation2 + $0x39c] sm:$0xf] %v8133_v49  ;;  %v9483_v49 = vld [vmem:[#allocation2 + $0x244] ss:$36 sps:$4 sm:$0xff]   ;;  %v10860_v38 = vsel %vm540_vm0, %v616_v0, %v617_v40  ;;  %8667 = vmatprep.subr.bf16.mxu1 %v9536_v19 }
  0xae   : > { %1079 = vst [vmem:[#allocation2 + $0x38c] sm:$0xf] %v8193_v55  ;;  %1214 = vst [vmem:[#allocation2 + $0x350] sm:$0xf] %v8193_v55  ;;  %v8166_v2 = vpack.c.bf16 %v10860_v38, %v10860_v38  ;;  %2928 = vmatprep.mubr.bf16.mxu0 %v9483_v49  ;;  %v1450_v0 = vld [vmem:[#allocation2 + $0x288] sm:$0xff] }
  0xaf   : > { %1349 = vst [vmem:[#allocation2 + $0x314] sm:$0xf] %v8193_v55  ;;  %807 = vst [vmem:[#allocation2 + $0x3ac] sm:$0xf] %v8162_v59  ;;  %v889_v55 = vrot.slane %v323_v31, 2  ;;  %3082 = vmatmul.mubr.bf16.gmra.mxu1 %v9482_v46 }
  0xb0   : > { %1168 = vst [vmem:[#allocation2 + $0x370] sm:$0xf] %v8162_v59  ;;  %1303 = vst [vmem:[#allocation2 + $0x334] sm:$0xf] %v8162_v59  ;;  %v890_v59 = vrot.slane %v10840_v36, 2  ;;  %3089 = vmatprep.mubr.bf16.mxu1 %v9485_v4  ;;  %v9543_v36 = vld [vmem:[%s12878_s1 + $0x1c8] sm:$0xff]  }
  0xb1   : > { %12945 = vst [vmem:[#allocation33_spill] sm:$0xff] %v10825_v61  ;;  %808 = vst [vmem:[#allocation2 + $0x3d0] sm:$0xf] %v8163_v62  ;;  %v9487_v31 = vld [vmem:[#allocation2 + $0x248] ss:$36 sps:$4 sm:$0xff]   ;;  %v1465_v4 = vld [vmem:[#allocation2 + $0x2f4] sm:$0xff] }
  0xb2   : > { %1169 = vst [vmem:[#allocation2 + $0x394] sm:$0xf] %v8163_v62  ;;  %1304 = vst [vmem:[#allocation2 + $0x358] sm:$0xf] %v8163_v62  ;;  %v8197_v62 = vpack.c.bf16 %v888_v53, %v888_v53  ;;  %v891_v3 = vsel %vm813_vm1, %v889_v55, %v890_v59  ;;  %v9541_v55 = vld [vmem:[%s12878_s1 + $0x190] sm:$0xff]  }
  0xb3   : > { %1080 = vst [vmem:[#allocation2 + $0x3b0] sm:$0xf] %v8194_v14  ;;  %1215 = vst [vmem:[#allocation2 + $0x374] sm:$0xf] %v8194_v14  ;;  %8668 = vmatpush3.bf16.msra.mxu1 %v9541_v55  ;;  %v9499_v28 = vld [vmem:[#allocation2 + $0x2d8] ss:$36 sps:$4 sm:$0xff]  }
  0xb4   : > { %1350 = vst [vmem:[#allocation2 + $0x338] sm:$0xf] %v8194_v14  ;;  %809 = vst [vmem:[#allocation2 + $0x3f4] sm:$0xf] %v8164_v39  ;;  %v8198_v14 = vpack.c.bf16 %v891_v3, %v891_v3  ;;  %8669 = vmatprep.subr.bf16.mxu1 %v9543_v36  ;;  %v10917_v3 = vld [vmem:[%s12878_s1 + $0x238] sm:$0xff]   ;;  %v1130_v55 = vrot.slane %v10885_v27, 1 }
  0xb5   : > { %1170 = vst [vmem:[#allocation2 + $0x3b8] sm:$0xf] %v8164_v39  ;;  %1305 = vst [vmem:[#allocation2 + $0x37c] sm:$0xf] %v8164_v39  ;;  %v9490_v39 = vld [vmem:[#allocation2 + $0x28c] ss:$36 sps:$4 sm:$0xff]   ;;  %9265 = vmatprep.subr.bf16.mxu0 %v10917_v3 }
  0xb6   : > { %1081 = vst [vmem:[#allocation2 + $0x3d4] sm:$0xf] %v8195_v16  ;;  %1216 = vst [vmem:[#allocation2 + $0x398] sm:$0xf] %v8195_v16  ;;  %v9507_v19 = vld [vmem:[#allocation2 + $0x364] ss:$36 sps:$4 sm:$0xff]  }
  0xb7   : > { %1351 = vst [vmem:[#allocation2 + $0x35c] sm:$0xf] %v8195_v16  ;;  %1082 = vst [vmem:[#allocation2 + $0x3f8] sm:$0xf] %v8196_v22  ;;  %v7627_v16 = vcombine.low %v1440_v1, %v1445_v6  ;;  %3090 = vmatmul.mubr.bf16.gmra.mxu1 %v9487_v31  ;;  %v9497_v1 = vld [vmem:[#allocation2 + $0x2dc] ss:$36 sps:$4 sm:$0xff]  }
  0xb8   : > { %1217 = vst [vmem:[#allocation2 + $0x3bc] sm:$0xf] %v8196_v22  ;;  %1352 = vst [vmem:[#allocation2 + $0x380] sm:$0xf] %v8196_v22  ;;  %v325_v22 = vld [vmem:[%s10257_s22 + $0x178] sm:$0x3]  ;;  %3097 = vmatprep.mubr.bf16.mxu1 %v9492_v42 }
  0xb9   : > { %12946 = vst [vmem:[#allocation34_spill] sm:$0xff] %v10848_v51  ;;  %1122 = vst [vmem:[#allocation2 + $0x3fc] sm:$0xf] %v8134_v63  ;;  %v619_v24 = vrot.slane %v325_v22, 1  ;;  %v892_v29 = vrot.slane %v325_v22, 2  ;;  %2929 = vmatmul.mubr.bf16.gmra.mxu0 %v7627_v16  ;;  %v1460_v6 = vld [vmem:[#allocation2 + $0x2d0] sm:$0xff] }
  0xba   : > { %490 = vst [vmem:[#allocation2 + $0x438] sm:$0xf] %v8134_v63  ;;  %1257 = vst [vmem:[#allocation2 + $0x3c0] sm:$0xf] %v8134_v63  ;;  %v8201_v63 = vpack.c.bf16 %v10885_v27, %v10885_v27  ;;  %2936 = vmatprep.mubr.bf16.mxu0 %v9490_v39  ;;  %v9504_v39 = vld [vmem:[#allocation2 + $0x324] ss:$36 sps:$4 sm:$0xff]  }
  0xbb   : > { %1123 = vst [vmem:[#allocation2 + $0x420] sm:$0xf] %v8135_v44  ;;  %491 = vst [vmem:[#allocation2 + $0x45c] sm:$0xf] %v8135_v44  ;;  %v893_v46 = vsel %vm813_vm1, %v890_v59, %v892_v29  ;;  %v7636_v59 = vcombine.low %v1450_v0, %v1455_v33  ;;  %v1475_v16 = vld [vmem:[#allocation2 + $0x33c] sm:$0xff]  ;;  %v1485_v31 = vld [vmem:[#allocation2 + $0x384] sm:$0xff] }
  0xbc   : > { %1258 = vst [vmem:[#allocation2 + $0x3e4] sm:$0xf] %v8135_v44  ;;  %12947 = vst [vmem:[#allocation35_spill] sm:$0xff] %v10860_v38  ;;  %v10894_v44 = vsel %vm540_vm0, %v617_v40, %v619_v24  ;;  %v8199_v53 = vpack.c.bf16 %v893_v46, %v893_v46  ;;  %v9495_v40 = vld [vmem:[#allocation2 + $0x2d4] ss:$36 sps:$4 sm:$0xff]   ;;  %v7654_v18 = vcombine.low %v1470_v34, %v1475_v16  ;;  %v1480_v24 = vld [vmem:[#allocation2 + $0x360] sm:$0xff] }
  0xbd   : > { %810 = vst [vmem:[#allocation2 + $0x418] sm:$0xf] %v8165_v60  ;;  %1171 = vst [vmem:[#allocation2 + $0x3dc] sm:$0xf] %v8165_v60  ;;  %v8167_v49 = vpack.c.bf16 %v10894_v44, %v10894_v44  ;;  %v9506_v22 = vld [vmem:[#allocation2 + $0x320] ss:$36 sps:$4 sm:$0xff]  }
  0xbe   : > { %1306 = vst [vmem:[#allocation2 + $0x3a0] sm:$0xf] %v8165_v60  ;;  %1083 = vst [vmem:[#allocation2 + $0x41c] sm:$0xf] %v8197_v62  ;;  %v9544_v60 = vld [vmem:[%s12878_s1 + $0x188] sm:$0xff]  }
  0xbf   : > { %1218 = vst [vmem:[#allocation2 + $0x3e0] sm:$0xf] %v8197_v62  ;;  %1353 = vst [vmem:[#allocation2 + $0x3a4] sm:$0xf] %v8197_v62  ;;  %v9494_v62 = vld [vmem:[#allocation2 + $0x290] ss:$36 sps:$4 sm:$0xff]   ;;  %8670 = vmatpush3.bf16.msra.mxu1 %v9544_v60 }
  0xc0   : > { %811 = vst [vmem:[#allocation2 + $0x43c] sm:$0xf] %v8166_v2  ;;  %1172 = vst [vmem:[#allocation2 + $0x400] sm:$0xf] %v8166_v2  ;;  %8671 = vmatprep.subr.bf16.mxu1 %v9545_v45  ;;  %3098 = vmatmul.mubr.bf16.gmra.mxu1 %v9494_v62  ;;  %v9509_v29 = vld [vmem:[#allocation2 + $0x36c] ss:$36 sps:$4 sm:$0xff]  }
  0xc1   : > { %1307 = vst [vmem:[#allocation2 + $0x3c4] sm:$0xf] %v8166_v2  ;;  %1084 = vst [vmem:[#allocation2 + $0x440] sm:$0xf] %v8198_v14  ;;  %v9548_v2 = vld [vmem:[%s12878_s1 + $0x180] sm:$0xff]   ;;  %2937 = vmatmul.mubr.bf16.gmra.mxu0 %v7636_v59  ;;  %3105 = vmatprep.mubr.bf16.mxu1 %v9497_v1  ;;  %v1490_v33 = vld [vmem:[#allocation2 + $0x3a8] sm:$0xff] }
  0xc2   : > { %1219 = vst [vmem:[#allocation2 + $0x404] sm:$0xf] %v8198_v14  ;;  %1354 = vst [vmem:[#allocation2 + $0x3c8] sm:$0xf] %v8198_v14  ;;  %2944 = vmatprep.mubr.bf16.mxu0 %v9495_v40  ;;  %v7645_v14 = vcombine.low %v1460_v6, %v1465_v4  ;;  %v9511_v0 = vld [vmem:[#allocation2 + $0x368] ss:$36 sps:$4 sm:$0xff]  }
  0xc3   : > { %12948 = vst [vmem:[#allocation36_spill] sm:$0xff] %v10894_v44  ;;  %1124 = vst [vmem:[#allocation2 + $0x444] sm:$0xf] %v8200_v32  ;;  %8672 = vmatpush3.bf16.msra.mxu1 %v9548_v2  ;;  %v9519_v42 = vld [vmem:[#allocation2 + $0x3b4] ss:$36 sps:$4 sm:$0xff]   ;;  %v1495_v46 = vld [vmem:[#allocation2 + $0x3cc] sm:$0xff] }
  0xc4   : > { %1125 = vst [vmem:[#allocation2 + $0x468] sm:$0xf] %v8201_v63  ;;  %1259 = vst [vmem:[#allocation2 + $0x408] sm:$0xf] %v8200_v32  ;;  %v7663_v32 = vcombine.low %v1480_v24, %v1485_v31  ;;  %v9526_v36 = vld [vmem:[#allocation2 + $0x3f4] ss:$36 sps:$4 sm:$0xff]  }
  0xc5   : > { %1260 = vst [vmem:[#allocation2 + $0x42c] sm:$0xf] %v8201_v63  ;;  %812 = vst [vmem:[#allocation2 + $0x460] sm:$0xf] %v8167_v49  ;;  %v9517_v63 = vld [vmem:[#allocation2 + $0x3ac] ss:$36 sps:$4 sm:$0xff]  }
  0xc6   : > { %1173 = vst [vmem:[#allocation2 + $0x424] sm:$0xf] %v8167_v49  ;;  %1308 = vst [vmem:[#allocation2 + $0x3e8] sm:$0xf] %v8167_v49  ;;  %v7672_v49 = vcombine.low %v1490_v33, %v1495_v46  ;;  %v9522_v40 = vld [vmem:[#allocation2 + $0x3b0] ss:$36 sps:$4 sm:$0xff]  }
  0xc7   : > { %1085 = vst [vmem:[#allocation2 + $0x464] sm:$0xf] %v8199_v53  ;;  %1220 = vst [vmem:[#allocation2 + $0x428] sm:$0xf] %v8199_v53  ;;  %v1500_v59 = vld [vmem:[#allocation2 + $0x3f0] sm:$0xff]  ;;  %v1176_v2 = vrot.slane %v10882_v25, 2 }
  0xc8   : > { %1355 = vst [vmem:[#allocation2 + $0x3ec] sm:$0xf] %v8199_v53  ;;  %3106 = vmatmul.mubr.bf16.gmra.mxu1 %v9499_v28  ;;  %v1129_v53 = vrot.slane %v10882_v25, 1  ;;  %v9528_v60 = vld [vmem:[#allocation2 + $0x3fc] ss:$36 sps:$4 sm:$0xff]   ;;  %v1505_v45 = vld [vmem:[#allocation2 + $0x414] sm:$0xff] }
  0xc9   : > { %2945 = vmatmul.mubr.bf16.gmra.mxu0 %v7645_v14  ;;  %3113 = vmatprep.mubr.bf16.mxu1 %v9504_v39  ;;  %v1177_v6 = vrot.slane %v10885_v27, 2  ;;  %v7681_v4 = vcombine.low %v1500_v59, %v1505_v45  ;;  %v1510_v39 = vld [vmem:[#allocation2 + $0x438] sm:$0xff]  ;;  %v328_v24 = vld [vmem:[%s10257_s22 + $0x190] sm:$0x3] }
  0xca   : > { %2952 = vmatprep.mubr.bf16.mxu0 %v9502_v5  ;;  %v10923_v62 = vsel %vm540_vm0, %v1129_v53, %v1130_v55  ;;  %v9531_v5 = vld [vmem:[#allocation2 + $0x3f8] ss:$36 sps:$4 sm:$0xff]   ;;  %v1179_v31 = vrot.slane %v328_v24, 2  ;;  %v9549_v59 = vld [vmem:[#allocation2 + $0x10] ss:$36 sps:$4 sm:$0xff]  }
  0xcb   : > { %12949 = vst [vmem:[#allocation37_spill] sm:$0xff] %v10923_v62  ;;  %v8202_v1 = vpack.c.bf16 %v10923_v62, %v10923_v62  ;;  %v1178_v28 = vsel %vm813_vm1, %v1176_v2, %v1177_v6  ;;  %v9539_v16 = vld [vmem:[#allocation2 + $0x444] ss:$36 sps:$4 sm:$0xff]   ;;  %v9554_v2 = vld [vmem:[#allocation2 + $0x5c] ss:$36 sps:$4 sm:$0xff]  }
  0xcc   : > { %v9537_v14 = vld [vmem:[#allocation2 + $0x43c] ss:$36 sps:$4 sm:$0xff]   ;;  %v8204_v34 = vpack.c.bf16 %v1178_v28, %v1178_v28  ;;  %v9651_v62 = vld [vmem:[#allocation2 + $0x68] ss:$36 sps:$4 sm:$0xff]   ;;  %v9656_v47 = vld [vmem:[#allocation2 + $0x1d0] ss:$36 sps:$4 sm:$0xff]  }
  0xcd   : > { %1309 = vst [vmem:[#allocation2 + $0x40c] sm:$0xf] %v8202_v1  ;;  %1174 = vst [vmem:[#allocation2 + $0x448] sm:$0xf] %v8202_v1  ;;  %v1515_v25 = vld [vmem:[#allocation2 + $0x45c] sm:$0xff] }
  0xce   : > { %1221 = vst [vmem:[#allocation2 + $0x44c] sm:$0xf] %v8204_v34  ;;  %1356 = vst [vmem:[#allocation2 + $0x410] sm:$0xf] %v8204_v34  ;;  %v7690_v27 = vcombine.low %v1510_v39, %v1515_v25  ;;  %v9553_v39 = vld [vmem:[#allocation2 + $0x18] ss:$36 sps:$4 sm:$0xff]  }
  0xcf   : > { %v9563_v34 = vld [vmem:[%s12878_s1 + $0x230] sm:$0xff]  }
  0xd0   : > { %3114 = vmatmul.mubr.bf16.gmra.mxu1 %v9506_v22  ;;  %v9551_v22 = vld [vmem:[#allocation2 + $0x1c] ss:$36 sps:$4 sm:$0xff]   ;;  %v9660_v43 = vld [vmem:[#allocation2 + $0x2f0] ss:$36 sps:$4 sm:$0xff]  }
  0xd1   : > { %2953 = vmatmul.mubr.bf16.gmra.mxu0 %v7654_v18  ;;  %3121 = vmatprep.mubr.bf16.mxu1 %v9509_v29  ;;  %v9546_v18 = vld [vmem:[#allocation2 + $0x14] ss:$36 sps:$4 sm:$0xff]   ;;  %v1132_v29 = vrot.slane %v328_v24, 1 }
  0xd2   : > { %2960 = vmatprep.mubr.bf16.mxu0 %v9507_v19  ;;  %v9542_v19 = vld [vmem:[#allocation2 + $0x440] ss:$36 sps:$4 sm:$0xff]  }
  0xd3   : > { %v10947_v53 = vsel %vm540_vm0, %v1130_v55, %v1132_v29  ;;  %v9556_v29 = vld [vmem:[#allocation2 + $0x58] ss:$36 sps:$4 sm:$0xff]  }
  0xd4   : > { %12950 = vst [vmem:[#allocation38_spill] sm:$0xff] %v10947_v53 }
  0xd8   : > { %3122 = vmatmul.mubr.bf16.gmra.mxu1 %v9511_v0  ;;  %v10938_v0 = vld [vmem:[%s10257_s22 + $0x1a8] sm:$0x3] }
  0xd9   : > { %2961 = vmatmul.mubr.bf16.gmra.mxu0 %v7663_v32  ;;  %3129 = vmatprep.mubr.bf16.mxu1 %v9519_v42  ;;  %v10932_v32 = vld [vmem:[%s10257_s22 + $0x198] sm:$0xff] }
  0xda   : > { %2968 = vmatprep.mubr.bf16.mxu0 %v9517_v63  ;;  %v10935_v63 = vld [vmem:[%s10257_s22 + $0x1a0] sm:$0xff]  ;;  %v8206_v33 = vpack.c.bf16 %v10932_v32, %v10932_v32  ;;  %v1266_v46 = vrot.slane %v10932_v32, 1  ;;  %s9954_s22 = sshll.u32 %s10014_s20, 4  ;;  %s9955_s22 = int_to_ptr.vmem [resolvable:$false] %s9954_s22 }
  0xdb   : > { %v8207_v42 = vpack.c.bf16 %v10935_v63, %v10935_v63  ;;  %s9956_s8 = scalar_lea.vmem %s9955_s22, 8192  ;;  %p9957_p0 = scmp.lt.s32.totalorder %s12831_s21, %s9955_s22 }
  0xdc   : > { %1261 = vst [vmem:[#allocation2 + $0x450] sm:$0xf] %v8206_v33  ;;  %v9560_v33 = vld [vmem:[#allocation2 + $0xa4] ss:$36 sps:$4 sm:$0xff]   ;;  %p9958_p1 = scmp.lt.s32.totalorder %s9956_s8, %s9950_s13 }
  0xdd   : > { %1262 = vst [vmem:[#allocation2 + $0x474] sm:$0xf] %v8207_v42 }
  0xde   : > { %p9959_p2 = por %p9958_p1, %p9957_p0 }
  0xe0   : > { %3130 = vmatmul.mubr.bf16.gmra.mxu1 %v9522_v40  ;;  %v1269_v40 = vrot.slane %v10938_v0, 1  ;;  %p9960_p3 = pnand %p9959_p2, %p9953_p13 }
  0xe1   : > { %2969 = vmatmul.mubr.bf16.gmra.mxu0 %v7672_v49  ;;  %3137 = vmatprep.mubr.bf16.mxu1 %v9528_v60  ;;  %v1267_v49 = vrot.slane %v10935_v63, 1  ;;  %v8203_v60 = vpack.c.bf16 %v10947_v53, %v10947_v53 }
  0xe2   : > { %2976 = vmatprep.mubr.bf16.mxu0 %v9526_v36  ;;  %v1180_v36 = vsel %vm813_vm1, %v1177_v6, %v1179_v31  ;;  %v10955_v6 = vld [vmem:[#allocation3 + $0x1a8] sm:$0x3]  ;;  %v9559_v31 = vld [vmem:[#allocation2 + $0x60] ss:$36 sps:$4 sm:$0xff]  }
  0xe3   : > { %v8205_v45 = vpack.c.bf16 %v1180_v36, %v1180_v36  ;;  %v1268_v1 = vsel %vm540_vm0, %v1266_v46, %v1267_v49  ;;  %1310 = vst [vmem:[#allocation2 + $0x430] sm:$0xf] %v8203_v60  ;;  %1175 = vst [vmem:[#allocation2 + $0x46c] sm:$0xf] %v8203_v60  ;;  %v9564_v46 = vld [vmem:[#allocation2 + $0xac] ss:$36 sps:$4 sm:$0xff]  }
  0xe4   : > { %v9562_v36 = vld [vmem:[#allocation2 + $0xa0] ss:$36 sps:$4 sm:$0xff]   ;;  %v9566_v60 = vld [vmem:[#allocation2 + $0xa8] ss:$36 sps:$4 sm:$0xff]  }
  0xe5   : > { %1222 = vst [vmem:[#allocation2 + $0x470] sm:$0xf] %v8205_v45  ;;  %1357 = vst [vmem:[#allocation2 + $0x434] sm:$0xf] %v8205_v45  ;;  %v9570_v45 = vld [vmem:[#allocation2 + $0xf4] ss:$36 sps:$4 sm:$0xff]  }
  0xe8   : > { %3138 = vmatmul.mubr.bf16.gmra.mxu1 %v9531_v5  ;;  %v10957_v5 = vld [vmem:[#allocation3] sm:$0xff] }
  0xe9   : > { %2977 = vmatmul.mubr.bf16.gmra.mxu0 %v7681_v4  ;;  %3145 = vmatprep.mubr.bf16.mxu1 %v9539_v16  ;;  %v1270_v4 = vsel %vm540_vm0, %v1267_v49, %v1269_v40  ;;  %v4820_v28 = vrot.slane %v10957_v5, 1  ;;  %v4823_v16 = vrot.slane %v10955_v6, 1  ;;  %v9602_v49 = vld [vmem:[%s12878_s1 + $0x218] sm:$0xff]   ;;  %v9567_v40 = vld [vmem:[#allocation2 + $0xec] ss:$36 sps:$4 sm:$0xff]  }
  0xea   : > { %2984 = vmatprep.mubr.bf16.mxu0 %v9537_v14  ;;  %v8208_v14 = vpack.c.bf16 %v1268_v1, %v1268_v1  ;;  %v8209_v55 = vpack.c.bf16 %v1270_v4, %v1270_v4  ;;  %v9628_v1 = vld [vmem:[%s12878_s1 + $0x208] sm:$0xff]   ;;  %v9573_v4 = vld [vmem:[#allocation2 + $0x134] ss:$36 sps:$4 sm:$0xff]  }
  0xeb   : > { %v4824_v25 = vsel %vm540_vm0, %v4820_v28, %v4823_v16  ;;  %v9579_v16 = vld [vmem:[#allocation2 + $0x138] ss:$36 sps:$4 sm:$0xff]  }
  0xec   : > { %1311 = vst [vmem:[#allocation2 + $0x454] sm:$0xf] %v8208_v14  ;;  %1312 = vst [vmem:[#allocation2 + $0x478] sm:$0xf] %v8209_v55  ;;  %v8317_v24 = vpack.c.bf16 %v4824_v25, %v4824_v25  ;;  %v9641_v14 = vld [vmem:[%s12878_s1 + $0x200] sm:$0xff]  }
  0xed   : > { %v9572_v55 = vld [vmem:[#allocation2 + $0xf0] ss:$36 sps:$4 sm:$0xff]   ;;  %v9583_v25 = vld [vmem:[#allocation2 + $0x184] ss:$36 sps:$4 sm:$0xff]  }
  0xee   : > { %v9664_v35 = vld [vmem:[#allocation2 + $0x410] ss:$36 sps:$4 sm:$0xff]  }
  0xf0   : > { %3146 = vmatmul.mubr.bf16.gmra.mxu1 %v9542_v19  ;;  %v8314_v19 = vpack.c.bf16 %v10957_v5, %v10957_v5 }
  0xf1   : > { %2985 = vmatmul.mubr.bf16.gmra.mxu0 %v7690_v27  ;;  %3347 = vmatprep.mubr.bf16.mxu1 %v9551_v22  ;;  %v9557_v27 = vld [vmem:[#allocation2 + $0x64] ss:$36 sps:$4 sm:$0xff]   ;;  %v8316_v22 = vpack.c.bf16 %v4820_v28, %v4820_v28  ;;  %v9577_v28 = vld [vmem:[#allocation2 + $0x13c] ss:$36 sps:$4 sm:$0xff]  }
  0xf2   : > { %3186 = vmatprep.mubr.bf16.mxu0 %v9546_v18  ;;  %v9576_v18 = vld [vmem:[%s12878_s1 + $0x228] sm:$0xff]   ;;  %4815 = vst [vmem:[#allocation2 + $0x450] sm:$0xf] %v8314_v19  ;;  %4816 = vst [vmem:[#allocation2 + $0x474] sm:$0xf] %v8314_v19 }
  0xf3   : > { %v10974_v42 = vld [vmem:[#allocation2 + $0x454] ss:$36 sps:$4 sm:$0xff]   ;;  %v9585_v19 = vld [vmem:[#allocation2 + $0x180] ss:$36 sps:$4 sm:$0xff]  }
  0xf4   : > { %4865 = vst [vmem:[#allocation2 + $0x454] sm:$0xf] %v8316_v22  ;;  %4866 = vst [vmem:[#allocation2 + $0x478] sm:$0xf] %v8317_v24  ;;  %v9590_v22 = vld [vmem:[#allocation2 + $0x1cc] ss:$36 sps:$4 sm:$0xff]  }
  0xf5   : > { %v9588_v24 = vld [vmem:[#allocation2 + $0x1c0] ss:$36 sps:$4 sm:$0xff]  }
  0xf8   : > { %3348 = vmatmul.mubr.bf16.vlgmr.msra.gmra.mxu1 %v9553_v39  ;;  %v9575_v39 = vld [vmem:[#allocation2 + $0x130] ss:$36 sps:$4 sm:$0xff]  }
  0xf9   : > { %3187 = vmatmul.mubr.bf16.vlgmr.msra.gmra.mxu0 %v9549_v59  ;;  %3355 = vmatprep.mubr.bf16.mxu1 %v9557_v27  ;;  %v9615_v59 = vld [vmem:[%s12878_s1 + $0x210] sm:$0xff]   ;;  %v9582_v27 = vld [vmem:[#allocation2 + $0x178] ss:$36 sps:$4 sm:$0xff]  }
  0xfa   : > { %9266 = vmatpush3.bf16.msra.mxu0 %v10917_v3  ;;  %3194 = vmatprep.mubr.bf16.mxu0 %v9554_v2  ;;  %v9589_v3 = vld [vmem:[%s12878_s1 + $0x220] sm:$0xff]   ;;  %v9569_v2 = vld [vmem:[#allocation2 + $0xe8] ss:$36 sps:$4 sm:$0xff]  }
  0xfb   : > { %9267 = vmatprep.subr.bf16.mxu0 %v9563_v34 }
  0xfe   : > { %9268 = vmatpush3.bf16.msra.mxu0 %v9563_v34  ;;  %v9580_v34 = vld [vmem:[#allocation2 + $0x17c] ss:$36 sps:$4 sm:$0xff]  }
  0xff   : > { %9269 = vmatprep.subr.bf16.mxu0 %v9576_v18 }
 0x100   : > { %3356 = vmatmul.mubr.bf16.gmra.mxu1 %v9559_v31  ;;  %v9592_v31 = vld [vmem:[#allocation2 + $0x1c8] ss:$36 sps:$4 sm:$0xff]  }
 0x101   : > { %3195 = vmatmul.mubr.bf16.gmra.mxu0 %v9556_v29  ;;  %3363 = vmatprep.mubr.bf16.mxu1 %v9564_v46  ;;  %v9593_v29 = vld [vmem:[#allocation2 + $0x20c] ss:$36 sps:$4 sm:$0xff]   ;;  %v1316_v46 = vrot.slane %v10938_v0, 2 }
 0x102   : > { %3202 = vmatprep.mubr.bf16.mxu0 %v9560_v33  ;;  %9270 = vmatpush3.bf16.msra.mxu0 %v9576_v18  ;;  %v9586_v18 = vld [vmem:[#allocation2 + $0x1c4] ss:$36 sps:$4 sm:$0xff]   ;;  %v1313_v33 = vrot.slane %v10932_v32, 2  ;;  %v9598_v32 = vld [vmem:[#allocation2 + $0x210] ss:$36 sps:$4 sm:$0xff]  }
 0x103   : > { %9271 = vmatprep.subr.bf16.mxu0 %v9589_v3  ;;  %v9601_v0 = vld [vmem:[#allocation2 + $0x250] ss:$36 sps:$4 sm:$0xff]  }
 0x106   : > { %9272 = vmatpush3.bf16.msra.mxu0 %v9589_v3  ;;  %v1314_v3 = vrot.slane %v10935_v63, 2  ;;  %v9603_v63 = vld [vmem:[#allocation2 + $0x25c] ss:$36 sps:$4 sm:$0xff]  }
 0x107   : > { %9273 = vmatprep.subr.bf16.mxu0 %v9602_v49 }
 0x108   : > { %3364 = vmatmul.mubr.bf16.gmra.mxu1 %v9566_v60 }
 0x109   : > { %3203 = vmatmul.mubr.bf16.gmra.mxu0 %v9562_v36  ;;  %3371 = vmatprep.mubr.bf16.mxu1 %v9570_v45  ;;  %v1317_v36 = vsel %vm813_vm1, %v1314_v3, %v1316_v46  ;;  %v9595_v45 = vld [vmem:[#allocation2 + $0x208] ss:$36 sps:$4 sm:$0xff]  }
 0x10a   : > { %3210 = vmatprep.mubr.bf16.mxu0 %v9567_v40  ;;  %9274 = vmatpush3.bf16.msra.mxu0 %v9602_v49  ;;  %v1315_v49 = vsel %vm813_vm1, %v1313_v33, %v1314_v3  ;;  %v9596_v40 = vld [vmem:[#allocation2 + $0x214] ss:$36 sps:$4 sm:$0xff]   ;;  %v8211_v60 = vpack.c.bf16 %v1317_v36, %v1317_v36 }
 0x10b   : > { %9275 = vmatprep.subr.bf16.mxu0 %v9615_v59 }
 0x10c   : > { %1359 = vst [vmem:[#allocation2 + $0x47c] sm:$0xf] %v8211_v60 }
 0x10e   : > { %9276 = vmatpush3.bf16.msra.mxu0 %v9615_v59  ;;  %v8210_v59 = vpack.c.bf16 %v1315_v49, %v1315_v49  ;;  %v9611_v49 = vld [vmem:[#allocation2 + $0x2a0] ss:$36 sps:$4 sm:$0xff]  }
 0x10f   : > { %9277 = vmatprep.subr.bf16.mxu0 %v9628_v1 }
 0x110   : > { %3372 = vmatmul.mubr.bf16.gmra.mxu1 %v9572_v55  ;;  %1358 = vst [vmem:[#allocation2 + $0x458] sm:$0xf] %v8210_v59  ;;  %v9616_v59 = vld [vmem:[#allocation2 + $0x2ec] ss:$36 sps:$4 sm:$0xff]  }
 0x111   : > { %3211 = vmatmul.mubr.bf16.gmra.mxu0 %v9569_v2  ;;  %3379 = vmatprep.mubr.bf16.mxu1 %v9577_v28  ;;  %v9606_v2 = vld [vmem:[#allocation2 + $0x29c] ss:$36 sps:$4 sm:$0xff]  }
 0x112   : > { %3218 = vmatprep.mubr.bf16.mxu0 %v9573_v4  ;;  %9278 = vmatpush3.bf16.msra.mxu0 %v9628_v1  ;;  %v9599_v1 = vld [vmem:[#allocation2 + $0x254] ss:$36 sps:$4 sm:$0xff]   ;;  %v4867_v4 = vrot.slane %v10957_v5, 2 }
 0x113   : > { %9279 = vmatprep.subr.bf16.mxu0 %v9641_v14  ;;  %v9605_v28 = vld [vmem:[#allocation2 + $0x258] ss:$36 sps:$4 sm:$0xff]  }
 0x116   : > { %9280 = vmatpush3.bf16.msra.mxu0 %v9641_v14  ;;  %v4870_v14 = vrot.slane %v10955_v6, 2 }
 0x118   : > { %3380 = vmatmul.mubr.bf16.gmra.mxu1 %v9579_v16  ;;  %v4871_v55 = vsel %vm813_vm1, %v4867_v4, %v4870_v14  ;;  %v8337_v16 = vpop.f32.mrf.mxu0 }
 0x119   : > { %3219 = vmatmul.mubr.bf16.gmra.mxu0 %v9575_v39  ;;  %3387 = vmatprep.mubr.bf16.mxu1 %v9583_v25  ;;  %v8318_v39 = vpack.c.bf16 %v4867_v4, %v4867_v4  ;;  %v9609_v25 = vld [vmem:[#allocation2 + $0x2a4] ss:$36 sps:$4 sm:$0xff]  }
 0x11a   : > { %3226 = vmatprep.mubr.bf16.mxu0 %v9580_v34  ;;  %v8319_v34 = vpack.c.bf16 %v4871_v55, %v4871_v55  ;;  %v9614_v4 = vld [vmem:[#allocation2 + $0x2e0] ss:$36 sps:$4 sm:$0xff]   ;;  %v9619_v55 = vld [vmem:[#allocation2 + $0x32c] ss:$36 sps:$4 sm:$0xff]  }
 0x120   : > { %3388 = vmatmul.mubr.bf16.gmra.mxu1 %v9585_v19  ;;  %v8449_v19 = vpop.f32.mrf.mxu1 }
 0x121   : > { %3227 = vmatmul.mubr.bf16.gmra.mxu0 %v9582_v27  ;;  %3395 = vmatprep.mubr.bf16.mxu1 %v9590_v22  ;;  %v10996_v27 = vld [vmem:[#allocation2 + $0x458] ss:$36 sps:$4 sm:$0xff]  }
 0x122   : > { %3234 = vmatprep.mubr.bf16.mxu0 %v9586_v18  ;;  %4912 = vst [vmem:[#allocation2 + $0x458] sm:$0xf] %v8318_v39  ;;  %4913 = vst [vmem:[#allocation2 + $0x47c] sm:$0xf] %v8319_v34  ;;  %v8338_v18 = vpop.f32.mrf.mxu0  ;;  %v8450_v6 = vpop.f32.mrf.mxu1 }
 0x123   : > { %v8339_v22 = vadd.f32 %v8338_v18, %v8337_v16 }
 0x124   : > { %v8340_v5 = vpop.f32.mrf.mxu0  ;;  %v8452_v3 = vpop.f32.mrf.mxu1 }
 0x126   : > { %v8341_v33 = vpop.f32.mrf.mxu0  ;;  %v8453_v60 = vpop.f32.mrf.mxu1 }
 0x127   : > { %v8342_v46 = vadd.f32 %v8341_v33, %v8340_v5 }
 0x128   : > { %3396 = vmatmul.mubr.bf16.gmra.mxu1 %v9592_v31  ;;  %v8451_v31 = vadd.f32 %v8450_v6, %v8449_v19 }
 0x129   : > { %3235 = vmatmul.mubr.bf16.gmra.mxu0 %v9588_v24  ;;  %3403 = vmatprep.mubr.bf16.mxu1 %v9596_v40  ;;  %v9608_v24 = vld [vmem:[#allocation2 + $0x298] ss:$36 sps:$4 sm:$0xff]   ;;  %v8343_v40 = vpop.f32.mrf.mxu0 }
 0x12a   : > { %3242 = vmatprep.mubr.bf16.mxu0 %v9593_v29  ;;  %v9612_v29 = vld [vmem:[#allocation2 + $0x2e4] ss:$36 sps:$4 sm:$0xff]   ;;  %v10998_v36 = vadd.f32 %v8451_v31, %v8339_v22  ;;  %v9622_v22 = vld [vmem:[#allocation2 + $0x334] ss:$36 sps:$4 sm:$0xff]  }
 0x130   : > { %3404 = vmatmul.mubr.bf16.gmra.mxu1 %v9598_v32  ;;  %v8455_v32 = vpop.f32.mrf.mxu1 }
 0x131   : > { %3243 = vmatmul.mubr.bf16.gmra.mxu0 %v9595_v45  ;;  %3411 = vmatprep.mubr.bf16.mxu1 %v9603_v63  ;;  %v8454_v45 = vadd.f32 %v8453_v60, %v8452_v3 }
 0x132   : > { %3250 = vmatprep.mubr.bf16.mxu0 %v9599_v1  ;;  %v8344_v1 = vpop.f32.mrf.mxu0  ;;  %v8456_v14 = vpop.f32.mrf.mxu1 }
 0x133   : > { %v8345_v63 = vadd.f32 %v8344_v1, %v8343_v40  ;;  %v9625_v40 = vld [vmem:[#allocation2 + $0x374] ss:$36 sps:$4 sm:$0xff]  }
 0x134   : > { %v8458_v34 = vpop.f32.mrf.mxu1 }
 0x136   : > { %v8459_v5 = vpop.f32.mrf.mxu1 }
 0x138   : > { %3412 = vmatmul.mubr.bf16.gmra.mxu1 %v9605_v28  ;;  %v8457_v28 = vadd.f32 %v8456_v14, %v8455_v32  ;;  %v9624_v32 = vld [vmem:[#allocation2 + $0x330] ss:$36 sps:$4 sm:$0xff]  }
 0x139   : > { %3251 = vmatmul.mubr.bf16.gmra.mxu0 %v9601_v0  ;;  %3419 = vmatprep.mubr.bf16.mxu1 %v9609_v25  ;;  %v11000_v0 = vadd.f32 %v8454_v45, %v8342_v46  ;;  %v9618_v25 = vld [vmem:[#allocation2 + $0x2e8] ss:$36 sps:$4 sm:$0xff]  }
 0x13a   : > { %3258 = vmatprep.mubr.bf16.mxu0 %v9606_v2  ;;  %v8346_v2 = vpop.f32.mrf.mxu0  ;;  %v11002_v18 = vadd.f32 %v8457_v28, %v8345_v63  ;;  %v9621_v46 = vld [vmem:[#allocation2 + $0x328] ss:$36 sps:$4 sm:$0xff]  }
 0x13c   : > { %v8347_v39 = vpop.f32.mrf.mxu0 }
 0x13d   : > { %v8348_v16 = vadd.f32 %v8347_v39, %v8346_v2 }
 0x13e   : > { %v8349_v19 = vpop.f32.mrf.mxu0 }
 0x140   : > { %3420 = vmatmul.mubr.bf16.gmra.mxu1 %v9611_v49  ;;  %v8350_v6 = vpop.f32.mrf.mxu0 }
 0x141   : > { %3259 = vmatmul.mubr.bf16.gmra.mxu0 %v9608_v24  ;;  %3427 = vmatprep.mubr.bf16.mxu1 %v9616_v59  ;;  %v8460_v24 = vadd.f32 %v8459_v5, %v8458_v34  ;;  %v8351_v31 = vadd.f32 %v8350_v6, %v8349_v19  ;;  %v9627_v19 = vld [vmem:[#allocation2 + $0x370] ss:$36 sps:$4 sm:$0xff]   ;;  %v9632_v5 = vld [vmem:[#allocation2 + $0x3bc] ss:$36 sps:$4 sm:$0xff]  }
 0x142   : > { %3266 = vmatprep.mubr.bf16.mxu0 %v9612_v29  ;;  %v8461_v29 = vpop.f32.mrf.mxu1  ;;  %v8352_v3 = vpop.f32.mrf.mxu0 }
 0x143   : > { %v11004_v33 = vadd.f32 %v8460_v24, %v8348_v16 }
 0x144   : > { %v8462_v49 = vpop.f32.mrf.mxu1  ;;  %v8353_v60 = vpop.f32.mrf.mxu0 }
 0x145   : > { %v8463_v59 = vadd.f32 %v8462_v49, %v8461_v29  ;;  %v8354_v1 = vadd.f32 %v8353_v60, %v8352_v3  ;;  %v9631_v3 = vld [vmem:[#allocation2 + $0x378] ss:$36 sps:$4 sm:$0xff]  }
 0x146   : > { %v8464_v45 = vpop.f32.mrf.mxu1  ;;  %v8355_v2 = vpop.f32.mrf.mxu0  ;;  %v9666_v60 = vld [vmem:[%s12881_s4 + $0x78] sm:$0xff]  }
 0x147   : > { %v11006_v63 = vadd.f32 %v8463_v59, %v8351_v31  ;;  %8793 = vmatprep.subr.bf16.mxu1 %v9666_v60 }
 0x148   : > { %3428 = vmatmul.mubr.bf16.gmra.mxu1 %v9618_v25  ;;  %v8465_v14 = vpop.f32.mrf.mxu1  ;;  %v8356_v28 = vpop.f32.mrf.mxu0 }
 0x149   : > { %3267 = vmatmul.mubr.bf16.gmra.mxu0 %v9614_v4  ;;  %3435 = vmatprep.mubr.bf16.mxu1 %v9622_v22  ;;  %v9629_v4 = vld [vmem:[#allocation2 + $0x37c] ss:$36 sps:$4 sm:$0xff]   ;;  %v8357_v34 = vadd.f32 %v8356_v28, %v8355_v2 }
 0x14a   : > { %3274 = vmatprep.mubr.bf16.mxu0 %v9619_v55  ;;  %v8466_v55 = vadd.f32 %v8465_v14, %v8464_v45  ;;  %v8467_v39 = vpop.f32.mrf.mxu1  ;;  %v8358_v25 = vpop.f32.mrf.mxu0  ;;  %v9634_v28 = vld [vmem:[#allocation2 + $0x3b8] ss:$36 sps:$4 sm:$0xff]  }
 0x14c   : > { %v11008_v16 = vadd.f32 %v8466_v55, %v8354_v1  ;;  %v8468_v22 = vpop.f32.mrf.mxu1  ;;  %v8359_v6 = vpop.f32.mrf.mxu0 }
 0x14d   : > { %v8469_v24 = vadd.f32 %v8468_v22, %v8467_v39  ;;  %v8360_v31 = vadd.f32 %v8359_v6, %v8358_v25 }
 0x14e   : > { %v8470_v29 = vpop.f32.mrf.mxu1  ;;  %v8361_v49 = vpop.f32.mrf.mxu0 }
 0x150   : > { %3436 = vmatmul.mubr.bf16.gmra.mxu1 %v9624_v32  ;;  %v8471_v59 = vpop.f32.mrf.mxu1  ;;  %v8362_v1 = vpop.f32.mrf.mxu0  ;;  %v9667_v32 = vld [vmem:[%s12881_s4 + $0x38] sm:$0xff]  }
 0x151   : > { %3275 = vmatmul.mubr.bf16.gmra.mxu0 %v9621_v46  ;;  %3443 = vmatprep.mubr.bf16.mxu1 %v9629_v4  ;;  %v11010_v46 = vadd.f32 %v8469_v24, %v8357_v34  ;;  %v8472_v45 = vadd.f32 %v8471_v59, %v8470_v29  ;;  %v8363_v4 = vadd.f32 %v8362_v1, %v8361_v49  ;;  %v9638_v34 = vld [vmem:[#allocation2 + $0x404] ss:$36 sps:$4 sm:$0xff]   ;;  %v9642_v49 = vld [vmem:[#allocation2 + $0x40c] ss:$36 sps:$4 sm:$0xff]  }
 0x152   : > { %3282 = vmatprep.mubr.bf16.mxu0 %v9625_v40  ;;  %v9635_v40 = vld [vmem:[#allocation2 + $0x3c4] ss:$36 sps:$4 sm:$0xff]   ;;  %v8473_v2 = vpop.f32.mrf.mxu1  ;;  %v8364_v55 = vpop.f32.mrf.mxu0  ;;  %8794 = vmatpush3.bf16.msra.mxu1 %v9667_v32 }
 0x153   : > { %v11018_v14 = vadd.f32 %v8472_v45, %v8360_v31  ;;  %v9637_v24 = vld [vmem:[#allocation2 + $0x3c0] ss:$36 sps:$4 sm:$0xff]  }
 0x154   : > { %v8474_v39 = vpop.f32.mrf.mxu1  ;;  %v9640_v32 = vld [vmem:[#allocation2 + $0x400] ss:$36 sps:$4 sm:$0xff]  }
 0x155   : > { %v8475_v25 = vadd.f32 %v8474_v39, %v8473_v2 }
 0x156   : > { %v8476_v22 = vpop.f32.mrf.mxu1 }
 0x157   : > { %v11020_v6 = vadd.f32 %v8475_v25, %v8363_v4 }
 0x158   : > { %3444 = vmatmul.mubr.bf16.gmra.mxu1 %v9631_v3  ;;  %v8477_v3 = vpop.f32.mrf.mxu1 }
 0x159   : > { %3283 = vmatmul.mubr.bf16.gmra.mxu0 %v9627_v19  ;;  %3451 = vmatprep.mubr.bf16.mxu1 %v9635_v40  ;;  %v8365_v19 = vpop.f32.mrf.mxu0  ;;  %v8478_v31 = vadd.f32 %v8477_v3, %v8476_v22 }
 0x15a   : > { %3290 = vmatprep.mubr.bf16.mxu0 %v9632_v5  ;;  %v8366_v5 = vadd.f32 %v8365_v19, %v8364_v55  ;;  %v8479_v60 = vpop.f32.mrf.mxu1  ;;  %v9645_v55 = vld [vmem:[#allocation2 + $0x44c] ss:$36 sps:$4 sm:$0xff]  }
 0x15b   : > { %v8367_v29 = vpop.f32.mrf.mxu0 }
 0x15c   : > { %v11022_v40 = vadd.f32 %v8478_v31, %v8366_v5  ;;  %v8480_v2 = vpop.f32.mrf.mxu1  ;;  %v9668_v5 = vld [vmem:[%s12881_s4 + $0x70] sm:$0xff]  }
 0x15d   : > { %v8368_v59 = vpop.f32.mrf.mxu0  ;;  %v8481_v39 = vadd.f32 %v8480_v2, %v8479_v60  ;;  %8795 = vmatprep.subr.bf16.mxu1 %v9668_v5 }
 0x15e   : > { %v8369_v45 = vadd.f32 %v8368_v59, %v8367_v29  ;;  %v8482_v25 = vpop.f32.mrf.mxu1 }
 0x15f   : > { %v8370_v1 = vpop.f32.mrf.mxu0 }
 0x160   : > { %3452 = vmatmul.mubr.bf16.gmra.mxu1 %v9637_v24  ;;  %v11024_v44 = vadd.f32 %v8481_v39, %v8369_v45  ;;  %v8483_v22 = vpop.f32.mrf.mxu1  ;;  %v9647_v45 = vld [vmem:[#allocation2 + $0x448] ss:$36 sps:$4 sm:$0xff]  }
 0x161   : > { %3291 = vmatmul.mubr.bf16.gmra.mxu0 %v9634_v28  ;;  %3459 = vmatprep.mubr.bf16.mxu1 %v9642_v49  ;;  %v8371_v4 = vpop.f32.mrf.mxu0  ;;  %v9644_v28 = vld [vmem:[#allocation2 + $0x408] ss:$36 sps:$4 sm:$0xff]   ;;  %v8484_v24 = vadd.f32 %v8483_v22, %v8482_v25  ;;  %v9669_v49 = vld [vmem:[%s12881_s4 + $0x30] sm:$0xff]  }
 0x162   : > { %3298 = vmatprep.mubr.bf16.mxu0 %v9638_v34  ;;  %v8372_v19 = vadd.f32 %v8371_v4, %v8370_v1  ;;  %v1513_v1 = vld [vmem:[#allocation2 + $0x450] sm:$0xff]  ;;  %8796 = vmatpush3.bf16.msra.mxu1 %v9669_v49 }
 0x163   : > { %v8373_v34 = vpop.f32.mrf.mxu0 }
 0x164   : > { %v11032_v59 = vadd.f32 %v8484_v24, %v8372_v19 }
 0x165   : > { %v8374_v29 = vpop.f32.mrf.mxu0 }
 0x166   : > { %v8375_v31 = vadd.f32 %v8374_v29, %v8373_v34 }
 0x167   : > { %v8485_v3 = vpop.f32.mrf.mxu1  ;;  %v8376_v60 = vpop.f32.mrf.mxu0 }
 0x168   : > { %3460 = vmatmul.mubr.bf16.gmra.mxu1 %v9644_v28 }
 0x169   : > { %3299 = vmatmul.mubr.bf16.gmra.mxu0 %v9640_v32  ;;  %v1518_v32 = vld [vmem:[#allocation2 + $0x474] sm:$0xff]  ;;  %3467 = vmatprep.mubr.bf16.mxu1 %v10974_v42  ;;  %v8486_v2 = vpop.f32.mrf.mxu1  ;;  %v8377_v4 = vpop.f32.mrf.mxu0 }
 0x16a   : > { %3306 = vmatprep.mubr.bf16.mxu0 %v9645_v55  ;;  %v9650_v55 = vld [vmem:[#allocation2 + $0x20] ss:$36 sps:$4 sm:$0xff]   ;;  %v8487_v39 = vadd.f32 %v8486_v2, %v8485_v3  ;;  %v8378_v22 = vadd.f32 %v8377_v4, %v8376_v60  ;;  %v7696_v53 = vcombine.low %v1513_v1, %v1518_v32  ;;  %v9652_v2 = vld [vmem:[#allocation2 + $0xb0] ss:$36 sps:$4 sm:$0xff]  }
 0x16b   : > { %v8488_v25 = vpop.f32.mrf.mxu1  ;;  %v8379_v28 = vpop.f32.mrf.mxu0 }
 0x16c   : > { %v11035_v38 = vadd.f32 %v8487_v39, %v8375_v31 }
 0x16d   : > { %v8489_v19 = vpop.f32.mrf.mxu1  ;;  %v8380_v5 = vpop.f32.mrf.mxu0 }
 0x16e   : > { %v8490_v34 = vadd.f32 %v8489_v19, %v8488_v25  ;;  %v8381_v29 = vadd.f32 %v8380_v5, %v8379_v28  ;;  %v9671_v25 = vld [vmem:[%s12881_s4 + $0x28] sm:$0xff]   ;;  %v9654_v5 = vld [vmem:[#allocation2 + $0x140] ss:$36 sps:$4 sm:$0xff]  }
 0x16f   : > { %v8491_v24 = vpop.f32.mrf.mxu1  ;;  %v8382_v49 = vpop.f32.mrf.mxu0 }
 0x170   : > { %3468 = vmatmul.mubr.bf16.gmra.mxu1 %v7696_v53  ;;  %v11037_v42 = vadd.f32 %v8490_v34, %v8378_v22  ;;  %v9670_v53 = vld [vmem:[%s12881_s4 + $0x68] sm:$0xff]   ;;  %v9653_v34 = vld [vmem:[#allocation2 + $0xf8] ss:$36 sps:$4 sm:$0xff]  }
 0x171   : > { %3307 = vmatmul.mubr.bf16.gmra.mxu0 %v9647_v45  ;;  %v8492_v3 = vpop.f32.mrf.mxu1  ;;  %v8383_v60 = vpop.f32.mrf.mxu0  ;;  %8797 = vmatprep.subr.bf16.mxu1 %v9670_v53 }
 0x172   : > { %9281 = vmatprep.mubr.bf16.mxu0 %v9650_v55  ;;  %v8493_v57 = vadd.f32 %v8492_v3, %v8491_v24  ;;  %v8384_v31 = vadd.f32 %v8383_v60, %v8382_v49  ;;  %8798 = vmatpush3.bf16.msra.mxu1 %v9671_v25  ;;  %v9655_v25 = vld [vmem:[#allocation2 + $0x188] ss:$36 sps:$4 sm:$0xff]  }
 0x173   : > { %v8494_v1 = vpop.f32.mrf.mxu1 }
 0x174   : > { %v11039_v32 = vadd.f32 %v8493_v57, %v8381_v29 }
 0x175   : > { %v8495_v55 = vpop.f32.mrf.mxu1 }
 0x176   : > { %v8496_v39 = vadd.f32 %v8495_v55, %v8494_v1 }
 0x177   : > { %v8497_v22 = vpop.f32.mrf.mxu1 }
 0x178   : > { %v11047_v19 = vadd.f32 %v8496_v39, %v8384_v31 }
 0x179   : > { %v8385_v45 = vpop.f32.mrf.mxu0  ;;  %9282 = vmatmul.mubr.bf16.vlgmr.msra.gmra.mxu0 %v9651_v62  ;;  %v8498_v62 = vpop.f32.mrf.mxu1 }
 0x17a   : > { %9285 = vmatprep.mubr.bf16.mxu0 %v9652_v2  ;;  %v8499_v24 = vadd.f32 %v8498_v62, %v8497_v22 }
 0x17b   : > { %v8386_v4 = vpop.f32.mrf.mxu0  ;;  %v8500_v49 = vpop.f32.mrf.mxu1 }
 0x17c   : > { %v8387_v28 = vadd.f32 %v8386_v4, %v8385_v45 }
 0x17d   : > { %v8388_v57 = vpop.f32.mrf.mxu0  ;;  %v8501_v1 = vpop.f32.mrf.mxu1 }
 0x17e   : > { %v11049_v2 = vadd.f32 %v8499_v24, %v8387_v28  ;;  %v8502_v55 = vadd.f32 %v8501_v1, %v8500_v49 }
 0x17f   : > { %v8389_v29 = vpop.f32.mrf.mxu0 }
 0x180   : > { %v8390_v3 = vadd.f32 %v8389_v29, %v8388_v57  ;;  %v8503_v53 = vpop.f32.mrf.mxu1 }
 0x181   : > { %v8391_v60 = vpop.f32.mrf.mxu0  ;;  %9286 = vmatmul.mubr.bf16.gmra.mxu0 %v9653_v34 }
 0x182   : > { %9289 = vmatprep.mubr.bf16.mxu0 %v9654_v5  ;;  %v11051_v39 = vadd.f32 %v8502_v55, %v8390_v3  ;;  %v8504_v51 = vpop.f32.mrf.mxu1  ;;  %v9672_v5 = vld [vmem:[%s12881_s4 + $0x60] sm:$0xff]  }
 0x183   : > { %v8392_v45 = vpop.f32.mrf.mxu0  ;;  %v8505_v22 = vadd.f32 %v8504_v51, %v8503_v53  ;;  %v9673_v3 = vld [vmem:[%s12881_s4 + $0x20] sm:$0xff]   ;;  %8799 = vmatprep.subr.bf16.mxu1 %v9672_v5 }
 0x184   : > { %v8393_v31 = vadd.f32 %v8392_v45, %v8391_v60  ;;  %v8506_v61 = vpop.f32.mrf.mxu1  ;;  %v9657_v45 = vld [vmem:[#allocation2 + $0x218] ss:$36 sps:$4 sm:$0xff]   ;;  %8800 = vmatpush3.bf16.msra.mxu1 %v9673_v3  ;;  %v9659_v3 = vld [vmem:[#allocation2 + $0x2a8] ss:$36 sps:$4 sm:$0xff]  }
 0x185   : > { %v8394_v4 = vpop.f32.mrf.mxu0 }
 0x186   : > { %v11053_v28 = vadd.f32 %v8505_v22, %v8393_v31  ;;  %v8507_v34 = vpop.f32.mrf.mxu1 }
 0x187   : > { %v8395_v62 = vpop.f32.mrf.mxu0  ;;  %v8508_v29 = vadd.f32 %v8507_v34, %v8506_v61 }
 0x188   : > { %v8396_v57 = vadd.f32 %v8395_v62, %v8394_v4  ;;  %v8509_v51 = vpop.f32.mrf.mxu1 }
 0x189   : > { %v8397_v24 = vpop.f32.mrf.mxu0  ;;  %9290 = vmatmul.mubr.bf16.gmra.mxu0 %v9655_v25 }
 0x18a   : > { %9293 = vmatprep.mubr.bf16.mxu0 %v9656_v47  ;;  %v11061_v1 = vadd.f32 %v8508_v29, %v8396_v57  ;;  %v8510_v53 = vpop.f32.mrf.mxu1  ;;  %v9658_v47 = vld [vmem:[#allocation2 + $0x260] ss:$36 sps:$4 sm:$0xff]  }
 0x18b   : > { %v8398_v49 = vpop.f32.mrf.mxu0  ;;  %v8511_v31 = vadd.f32 %v8510_v53, %v8509_v51 }
 0x18c   : > { %v8399_v60 = vadd.f32 %v8398_v49, %v8397_v24  ;;  %v8512_v25 = vpop.f32.mrf.mxu1 }
 0x18d   : > { %v8400_v55 = vpop.f32.mrf.mxu0 }
 0x18e   : > { %v11063_v61 = vadd.f32 %v8511_v31, %v8399_v60  ;;  %v8513_v34 = vpop.f32.mrf.mxu1 }
 0x18f   : > { %v8401_v4 = vpop.f32.mrf.mxu0  ;;  %v8514_v56 = vadd.f32 %v8513_v34, %v8512_v25  ;;  %v9675_v25 = vld [vmem:[%s12881_s4 + $0x18] sm:$0xff]  }
 0x190   : > { %v8402_v22 = vadd.f32 %v8401_v4, %v8400_v55  ;;  %v8515_v5 = vpop.f32.mrf.mxu1 }
 0x191   : > { %v8403_v62 = vpop.f32.mrf.mxu0  ;;  %9294 = vmatmul.mubr.bf16.gmra.mxu0 %v9657_v45 }
 0x192   : > { %9297 = vmatprep.mubr.bf16.mxu0 %v9658_v47  ;;  %v11065_v29 = vadd.f32 %v8514_v56, %v8402_v22  ;;  %v8516_v20 = vpop.f32.mrf.mxu1  ;;  %v9674_v47 = vld [vmem:[%s12881_s4 + $0x58] sm:$0xff]  }
 0x193   : > { %v8404_v24 = vpop.f32.mrf.mxu0  ;;  %v8517_v51 = vadd.f32 %v8516_v20, %v8515_v5  ;;  %8801 = vmatprep.subr.bf16.mxu1 %v9674_v47 }
 0x194   : > { %v8405_v57 = vadd.f32 %v8404_v24, %v8403_v62  ;;  %v8518_v7 = vpop.f32.mrf.mxu1  ;;  %v9661_v24 = vld [vmem:[#allocation2 + $0x338] ss:$36 sps:$4 sm:$0xff]   ;;  %8802 = vmatpush3.bf16.msra.mxu1 %v9675_v25  ;;  %v9663_v25 = vld [vmem:[#allocation2 + $0x3c8] ss:$36 sps:$4 sm:$0xff]  }
 0x195   : > { %v8406_v49 = vpop.f32.mrf.mxu0 }
 0x196   : > { %v11067_v60 = vadd.f32 %v8517_v51, %v8405_v57  ;;  %v8519_v45 = vpop.f32.mrf.mxu1 }
 0x197   : > { %v8407_v53 = vpop.f32.mrf.mxu0  ;;  %v8520_v56 = vadd.f32 %v8519_v45, %v8518_v7 }
 0x198   : > { %v8408_v55 = vadd.f32 %v8407_v53, %v8406_v49  ;;  %v8521_v20 = vpop.f32.mrf.mxu1 }
 0x199   : > { %v8409_v31 = vpop.f32.mrf.mxu0  ;;  %9298 = vmatmul.mubr.bf16.gmra.mxu0 %v9659_v3 }
 0x19a   : > { %9301 = vmatprep.mubr.bf16.mxu0 %v9660_v43  ;;  %v11075_v62 = vadd.f32 %v8520_v56, %v8408_v55  ;;  %v8522_v5 = vpop.f32.mrf.mxu1  ;;  %v9662_v43 = vld [vmem:[#allocation2 + $0x380] ss:$36 sps:$4 sm:$0xff]  }
 0x19b   : > { %v8410_v4 = vpop.f32.mrf.mxu0  ;;  %v8523_v57 = vadd.f32 %v8522_v5, %v8521_v20 }
 0x19c   : > { %v8411_v22 = vadd.f32 %v8410_v4, %v8409_v31  ;;  %v8524_v3 = vpop.f32.mrf.mxu1 }
 0x19d   : > { %v8412_v34 = vpop.f32.mrf.mxu0 }
 0x19e   : > { %v11077_v51 = vadd.f32 %v8523_v57, %v8411_v22  ;;  %v8525_v45 = vpop.f32.mrf.mxu1 }
 0x19f   : > { %v8413_v49 = vpop.f32.mrf.mxu0  ;;  %v8526_v48 = vadd.f32 %v8525_v45, %v8524_v3  ;;  %v9677_v3 = vld [vmem:[%s12881_s4 + $0x10] sm:$0xff]  }
 0x1a0   : > { %v8414_v7 = vadd.f32 %v8413_v49, %v8412_v34  ;;  %v8527_v47 = vpop.f32.mrf.mxu1 }
 0x1a1   : > { %v8415_v53 = vpop.f32.mrf.mxu0  ;;  %9302 = vmatmul.mubr.bf16.gmra.mxu0 %v9661_v24 }
 0x1a2   : > { %9305 = vmatprep.mubr.bf16.mxu0 %v9662_v43  ;;  %v11079_v56 = vadd.f32 %v8526_v48, %v8414_v7  ;;  %v8528_v12 = vpop.f32.mrf.mxu1  ;;  %v9676_v43 = vld [vmem:[%s12881_s4 + $0x50] sm:$0xff]  }
 0x1a3   : > { %v8416_v31 = vpop.f32.mrf.mxu0  ;;  %v8529_v20 = vadd.f32 %v8528_v12, %v8527_v47  ;;  %8803 = vmatprep.subr.bf16.mxu1 %v9676_v43 }
 0x1a4   : > { %v8417_v55 = vadd.f32 %v8416_v31, %v8415_v53  ;;  %v8530_v9 = vpop.f32.mrf.mxu1  ;;  %8804 = vmatpush3.bf16.msra.mxu1 %v9677_v3 }
 0x1a5   : > { %v8418_v4 = vpop.f32.mrf.mxu0 }
 0x1a6   : > { %v11081_v22 = vadd.f32 %v8529_v20, %v8417_v55  ;;  %v8531_v24 = vpop.f32.mrf.mxu1 }
 0x1a7   : > { %v8419_v5 = vpop.f32.mrf.mxu0  ;;  %v8532_v48 = vadd.f32 %v8531_v24, %v8530_v9 }
 0x1a8   : > { %v8420_v34 = vadd.f32 %v8419_v5, %v8418_v4  ;;  %v8533_v12 = vpop.f32.mrf.mxu1 }
 0x1a9   : > { %v8421_v57 = vpop.f32.mrf.mxu0  ;;  %9306 = vmatmul.mubr.bf16.gmra.mxu0 %v9663_v25 }
 0x1aa   : > { %9309 = vmatprep.mubr.bf16.mxu0 %v9664_v35  ;;  %v11089_v53 = vadd.f32 %v8532_v48, %v8420_v34  ;;  %v8534_v31 = vpop.f32.mrf.mxu1 }
 0x1ab   : > { %v8422_v49 = vpop.f32.mrf.mxu0  ;;  %v8535_v47 = vadd.f32 %v8534_v31, %v8533_v12 }
 0x1ac   : > { %v8423_v7 = vadd.f32 %v8422_v49, %v8421_v57  ;;  %v8536_v55 = vpop.f32.mrf.mxu1 }
 0x1ad   : > { %v8424_v45 = vpop.f32.mrf.mxu0 }
 0x1ae   : > { %v11091_v4 = vadd.f32 %v8535_v47, %v8423_v7  ;;  %v8537_v20 = vpop.f32.mrf.mxu1 }
 0x1af   : > { %v8425_v35 = vpop.f32.mrf.mxu0  ;;  %v8538_v5 = vadd.f32 %v8537_v20, %v8536_v55 }
 0x1b0   : > { %v8426_v25 = vadd.f32 %v8425_v35, %v8424_v45  ;;  %v8539_v54 = vpop.f32.mrf.mxu1 }
 0x1b1   : > { %v8427_v9 = vpop.f32.mrf.mxu0  ;;  %9310 = vmatmul.mubr.bf16.gmra.mxu0 %v10996_v27  ;;  %v9678_v27 = vld [vmem:[%s12881_s4 + $0x48] sm:$0xff]  }
 0x1b2   : > { %v11094_v43 = vadd.f32 %v8538_v5, %v8426_v25  ;;  %v8540_v48 = vpop.f32.mrf.mxu1  ;;  %8805 = vmatprep.subr.bf16.mxu1 %v9678_v27 }
 0x1b3   : > { %v8428_v24 = vpop.f32.mrf.mxu0  ;;  %v8541_v49 = vadd.f32 %v8540_v48, %v8539_v54  ;;  %v9680_v54 = vld [vmem:[%s12881_s4 + $0xf8] sm:$0xff]  }
 0x1b4   : > { %v8429_v57 = vadd.f32 %v8428_v24, %v8427_v9  ;;  %v8542_v12 = vpop.f32.mrf.mxu1  ;;  %8905 = vmatprep.subr.bf16.mxu0 %v9680_v54 }
 0x1b5   : > { %v8430_v34 = vpop.f32.mrf.mxu0 }
 0x1b6   : > { %v11096_v31 = vadd.f32 %v8541_v49, %v8429_v57  ;;  %v8543_v45 = vpop.f32.mrf.mxu1 }
 0x1b7   : > { %v8431_v3 = vpop.f32.mrf.mxu0  ;;  %v8544_v35 = vadd.f32 %v8543_v45, %v8542_v12  ;;  %v9682_v45 = vld [vmem:[%s12881_s4 + $0xf0] sm:$0xff]  }
 0x1b8   : > { %12951 = vst [vmem:[#allocation39_spill] sm:$0xff] %v11096_v31  ;;  %v8432_v7 = vadd.f32 %v8431_v3, %v8430_v34  ;;  %v8673_v9 = vpop.f32.mrf.mxu1  ;;  %v9681_v34 = vld [vmem:[%s12881_s4 + $0xb8] sm:$0xff]  }
 0x1b9   : > { %v8561_v47 = vpop.f32.mrf.mxu0  ;;  %8906 = vmatpush3.bf16.msra.mxu0 %v9681_v34 }
 0x1ba   : > { %v11101_v25 = vadd.f32 %v8544_v35, %v8432_v7  ;;  %v8674_v57 = vpop.f32.mrf.mxu1  ;;  %v9683_v35 = vld [vmem:[%s12881_s4 + $0xb0] sm:$0xff]   ;;  %8907 = vmatprep.subr.bf16.mxu0 %v9682_v45  ;;  %v9688_v45 = vld [vmem:[%s12881_s4 + $0xe0] sm:$0xff]  }
 0x1bb   : > { %v8562_v55 = vpop.f32.mrf.mxu0  ;;  %v8675_v48 = vadd.f32 %v8674_v57, %v8673_v9  ;;  %v9684_v57 = vld [vmem:[%s12881_s4 + $0xe8] sm:$0xff]  }
 0x1bc   : > { %v8563_v20 = vadd.f32 %v8562_v55, %v8561_v47  ;;  %12952 = vst [vmem:[#allocation40_spill] sm:$0xff] %v11101_v25  ;;  %v8676_v12 = vpop.f32.mrf.mxu1 }
 0x1bd   : > { %v8564_v5 = vpop.f32.mrf.mxu0  ;;  %8908 = vmatpush3.bf16.msra.mxu0 %v9683_v35  ;;  %v9689_v35 = vld [vmem:[%s12881_s4 + $0xa0] sm:$0xff]  }
 0x1be   : > { %v3189_v24 = vadd.f32 %v8563_v20, %v10998_v36  ;;  %v8677_v27 = vpop.f32.mrf.mxu1  ;;  %8909 = vmatprep.subr.bf16.mxu0 %v9684_v57 }
 0x1bf   : > { %v8565_v49 = vpop.f32.mrf.mxu0  ;;  %v8678_v55 = vadd.f32 %v8677_v27, %v8676_v12  ;;  %v9679_v27 = vld [vmem:[%s12881_s4 + $0x8] sm:$0xff]  }
 0x1c0   : > { %v8566_v3 = vadd.f32 %v8565_v49, %v8564_v5  ;;  %v11110_v47 = vadd.f32 %v8675_v48, %v3189_v24  ;;  %v11119_v5 = vpop.f32.mrf.mxu1  ;;  %v9685_v48 = vld [vmem:[%s12881_s4 + $0xa8] sm:$0xff]   ;;  %8806 = vmatpush3.bf16.msra.mxu1 %v9679_v27 }
 0x1c1   : > { %v8567_v7 = vpop.f32.mrf.mxu0  ;;  %8910 = vmatpush3.bf16.msra.mxu0 %v9685_v48 }
 0x1c2   : > { %12953 = vst [vmem:[#allocation41_spill] sm:$0xff] %v11110_v47  ;;  %v3192_v36 = vadd.f32 %v8566_v3, %v11000_v0  ;;  %v11129_v34 = vpop.f32.mrf.mxu1  ;;  %8911 = vmatprep.subr.bf16.mxu0 %v9688_v45  ;;  %v9687_v45 = vld [vmem:[%s12881_s4] sm:$0xff]  }
 0x1c3   : > { %v8568_v20 = vpop.f32.mrf.mxu0 }
 0x1c4   : > { %v8569_v9 = vadd.f32 %v8568_v20, %v8567_v7  ;;  %v11121_v24 = vadd.f32 %v8678_v55, %v3192_v36  ;;  %v11134_v12 = vpop.f32.mrf.mxu1 }
 0x1c5   : > { %v8570_v54 = vpop.f32.mrf.mxu0  ;;  %8912 = vmatpush3.bf16.msra.mxu0 %v9689_v35 }
 0x1c6   : > { %12954 = vst [vmem:[#allocation42_spill] sm:$0xff] %v11121_v24  ;;  %v11127_v0 = vadd.f32 %v8569_v9, %v11002_v18  ;;  %v11142_v36 = vpop.f32.mrf.mxu1 }
 0x1c7   : > { %v8571_v49 = vpop.f32.mrf.mxu0 }
 0x1c8   : > { %v8572_v3 = vadd.f32 %v8571_v49, %v8570_v54  ;;  %v11150_v9 = vpop.f32.mrf.mxu1  ;;  %v9686_v49 = vld [vmem:[%s12881_s4 + $0x40] sm:$0xff]  }
 0x1c9   : > { %v8573_v7 = vpop.f32.mrf.mxu0  ;;  %8807 = vmatprep.subr.bf16.mxu1 %v9686_v49 }
 0x1ca   : > { %v11140_v18 = vadd.f32 %v8572_v3, %v11004_v33  ;;  %v9690_v33 = vld [vmem:[%s12881_s4 + $0xd8] sm:$0xff]   ;;  %v11158_v48 = vpop.f32.mrf.mxu1  ;;  %8808 = vmatpush3.bf16.msra.mxu1 %v9687_v45 }
 0x1cb   : > { %v8574_v55 = vpop.f32.mrf.mxu0  ;;  %v9691_v3 = vld [vmem:[%s12881_s4 + $0x98] sm:$0xff]   ;;  %8913 = vmatprep.subr.bf16.mxu0 %v9690_v33 }
 0x1cc   : > { %v8575_v20 = vadd.f32 %v8574_v55, %v8573_v7  ;;  %v11169_v35 = vpop.f32.mrf.mxu1  ;;  %8914 = vmatpush3.bf16.msra.mxu0 %v9691_v3  ;;  %v9692_v55 = vld [vmem:[%s12881_s4 + $0xd0] sm:$0xff]  }
 0x1cd   : > { %v8576_v54 = vpop.f32.mrf.mxu0  ;;  %8915 = vmatprep.subr.bf16.mxu0 %v9692_v55  ;;  %v9698_v55 = vld [vmem:[%s12881_s4 + $0x88] sm:$0xff]  }
 0x1ce   : > { %v11156_v57 = vadd.f32 %v8575_v20, %v11006_v63  ;;  %v9695_v20 = vld [vmem:[#allocation2 + $0x4] ss:$36 sps:$4 sm:$0xff]   ;;  %v11177_v50 = vpop.f32.mrf.mxu1 }
 0x1cf   : > { %v8577_v7 = vpop.f32.mrf.mxu0  ;;  %6418 = vmatprep.mubr.bf16.mxu1 %v9695_v20 }
 0x1d0   : > { %v8578_v27 = vadd.f32 %v8577_v7, %v8576_v54  ;;  %v9696_v54 = vld [vmem:[%s12881_s4 + $0x90] sm:$0xff]   ;;  %v11182_v3 = vpop.f32.mrf.mxu1  ;;  %6419 = vmatmul.mubr.bf16.vlgmr.msra.gmra.mxu1 %v9693_v10 }
 0x1d1   : > { %v8579_v63 = vpop.f32.mrf.mxu0  ;;  %8916 = vmatpush3.bf16.msra.mxu0 %v9696_v54  ;;  %v9700_v54 = vld [vmem:[%s12881_s4 + $0xc0] sm:$0xff]  }
 0x1d2   : > { %v11175_v15 = vadd.f32 %v8578_v27, %v11008_v16  ;;  %v9697_v16 = vld [vmem:[%s12881_s4 + $0xc8] sm:$0xff]   ;;  %v11190_v27 = vpop.f32.mrf.mxu1 }
 0x1d3   : > { %v8580_v33 = vpop.f32.mrf.mxu0  ;;  %8917 = vmatprep.subr.bf16.mxu0 %v9697_v16 }
 0x1d4   : > { %v8581_v49 = vadd.f32 %v8580_v33, %v8579_v63  ;;  %v11195_v33 = vpop.f32.mrf.mxu1 }
 0x1d5   : > { %v8582_v7 = vpop.f32.mrf.mxu0  ;;  %8918 = vmatpush3.bf16.msra.mxu0 %v9698_v55 }
 0x1d6   : > { %v11188_v45 = vadd.f32 %v8581_v49, %v11010_v46  ;;  %v11203_v49 = vpop.f32.mrf.mxu1  ;;  %8919 = vmatprep.subr.bf16.mxu0 %v9700_v54 }
 0x1d7   : > { %v8583_v20 = vpop.f32.mrf.mxu0 }
 0x1d8   : > { %v8584_v63 = vadd.f32 %v8583_v20, %v8582_v7  ;;  %v11208_v16 = vpop.f32.mrf.mxu1 }
 0x1d9   : > { %v8585_v10 = vpop.f32.mrf.mxu0  ;;  %8920 = vmatpush3.bf16.msra.mxu0 %v9702_v52 }
 0x1da   : > { %v11201_v46 = vadd.f32 %v8584_v63, %v11018_v14  ;;  %v11213_v58 = vpop.f32.mrf.mxu1 }
 0x1db   : > { %v8586_v21 = vpop.f32.mrf.mxu0 }
 0x1dc   : > { %v8587_v7 = vadd.f32 %v8586_v21, %v8585_v10  ;;  %v11215_v13 = vpop.f32.mrf.mxu1 }
 0x1dd   : > { %v8588_v55 = vpop.f32.mrf.mxu0 }
 0x1de   : > { %v11211_v20 = vadd.f32 %v8587_v7, %v11020_v6  ;;  %v11220_v26 = vpop.f32.mrf.mxu1 }
 0x1df   : > { %v8589_v14 = vpop.f32.mrf.mxu0 }
 0x1e0   : > { %v8590_v63 = vadd.f32 %v8589_v14, %v8588_v55  ;;  %v11222_v54 = vpop.f32.mrf.mxu1 }
 0x1e1   : > { %v8591_v11 = vpop.f32.mrf.mxu0 }
 0x1e2   : > { %v11218_v37 = vadd.f32 %v8590_v63, %v11022_v40  ;;  %v11227_v7 = vpop.f32.mrf.mxu1  ;;  %v9699_v40 = vld [vmem:[%s12881_s4 + $0x178] sm:$0xff]  }
 0x1e3   : > { %v8592_v21 = vpop.f32.mrf.mxu0  ;;  %9017 = vmatprep.subr.bf16.mxu1 %v9699_v40 }
 0x1e4   : > { %12955 = vst [vmem:[#allocation43_spill] sm:$0xff] %v11218_v37  ;;  %v8593_v10 = vadd.f32 %v8592_v21, %v8591_v11  ;;  %v11229_v14 = vpop.f32.mrf.mxu1 }
 0x1e5   : > { %v8594_v52 = vpop.f32.mrf.mxu0 }
 0x1e6   : > { %v11225_v6 = vadd.f32 %v8593_v10, %v11024_v44  ;;  %v11237_v11 = vpop.f32.mrf.mxu1 }
 0x1e7   : > { %v8595_v23 = vpop.f32.mrf.mxu0 }
 0x1e8   : > { %12956 = vst [vmem:[#allocation44_spill] sm:$0xff] %v11225_v6  ;;  %v8596_v55 = vadd.f32 %v8595_v23, %v8594_v52  ;;  %v11239_v10 = vpop.f32.mrf.mxu1  ;;  %v9701_v23 = vld [vmem:[%s12881_s4 + $0x138] sm:$0xff]  }
 0x1e9   : > { %v8597_v17 = vpop.f32.mrf.mxu0  ;;  %9018 = vmatpush3.bf16.msra.mxu1 %v9701_v23 }
 0x1ea   : > { %v11235_v63 = vadd.f32 %v8596_v55, %v11032_v59  ;;  %v11247_v8 = vpop.f32.mrf.mxu1 }
 0x1eb   : > { %v8598_v21 = vpop.f32.mrf.mxu0 }
 0x1ec   : > { %12957 = vst [vmem:[#allocation45_spill] sm:$0xff] %v11235_v63  ;;  %v8599_v44 = vadd.f32 %v8598_v21, %v8597_v17  ;;  %v11249_v30 = vpop.f32.mrf.mxu1 }
 0x1ed   : > { %v8600_v52 = vpop.f32.mrf.mxu0 }
 0x1ee   : > { %v11245_v41 = vadd.f32 %v8599_v44, %v11035_v38  ;;  %v11254_v40 = vpop.f32.mrf.mxu1 }
 0x1ef   : > { %v8601_v59 = vpop.f32.mrf.mxu0 }
 0x1f0   : > { %12958 = vst [vmem:[#allocation46_spill] sm:$0xff] %v11245_v41  ;;  %v8602_v55 = vadd.f32 %v8601_v59, %v8600_v52  ;;  %v11256_v24 = vpop.f32.mrf.mxu1 }
 0x1f1   : > { %v8603_v25 = vpop.f32.mrf.mxu0 }
 0x1f2   : > { %v11252_v17 = vadd.f32 %v8602_v55, %v11037_v42  ;;  %v11261_v44 = vpop.f32.mrf.mxu1 }
 0x1f3   : > { %v8604_v21 = vpop.f32.mrf.mxu0 }
 0x1f4   : > { %12959 = vst [vmem:[#allocation47_spill] sm:$0xff] %v11252_v17  ;;  %v8605_v31 = vadd.f32 %v8604_v21, %v8603_v25  ;;  %v11263_v59 = vpop.f32.mrf.mxu1  ;;  %v9718_v25 = vld [vmem:[%s12881_s4 + $0x170] sm:$0xff]  }
 0x1f5   : > { %v8606_v47 = vpop.f32.mrf.mxu0  ;;  %9019 = vmatprep.subr.bf16.mxu1 %v9718_v25 }
 0x1f6   : > { %v11259_v38 = vadd.f32 %v8605_v31, %v11039_v32  ;;  %v11268_v55 = vpop.f32.mrf.mxu1 }
 0x1f7   : > { %v8607_v23 = vpop.f32.mrf.mxu0 }
 0x1f8   : > { %12960 = vst [vmem:[#allocation48_spill] sm:$0xff] %v11259_v38  ;;  %v8608_v52 = vadd.f32 %v8607_v23, %v8606_v47  ;;  %v11273_v32 = vpop.f32.mrf.mxu1 }
 0x1f9   : > { %v8609_v41 = vpop.f32.mrf.mxu0 }
 0x1fa   : > { %v11266_v42 = vadd.f32 %v8608_v52, %v11047_v19  ;;  %v11278_v23 = vpop.f32.mrf.mxu1  ;;  %v9722_v19 = vld [vmem:[%s12881_s4 + $0x130] sm:$0xff]  }
 0x1fb   : > { %v8610_v17 = vpop.f32.mrf.mxu0  ;;  %9020 = vmatpush3.bf16.msra.mxu1 %v9722_v19 }
 0x1fc   : > { %12961 = vst [vmem:[#allocation49_spill] sm:$0xff] %v11266_v42  ;;  %v8611_v21 = vadd.f32 %v8610_v17, %v8609_v41  ;;  %v11283_v38 = vpop.f32.mrf.mxu1 }
 0x1fd   : > { %v8612_v31 = vpop.f32.mrf.mxu0  ;;  %12963 = vst [vmem:[#allocation51_spill] sm:$0xff] %v11283_v38 }
 0x1fe   : > { %v11276_v47 = vadd.f32 %v8611_v21, %v11049_v2  ;;  %v11288_v17 = vpop.f32.mrf.mxu1 }
 0x1ff   : > { %v8613_v52 = vpop.f32.mrf.mxu0 }
 0x200   : > { %12962 = vst [vmem:[#allocation50_spill] sm:$0xff] %v11276_v47  ;;  %v8614_v42 = vadd.f32 %v8613_v52, %v8612_v31  ;;  %v11290_v21 = vpop.f32.mrf.mxu1 }
 0x201   : > { %v8615_v63 = vpop.f32.mrf.mxu0  ;;  %12965 = vst [vmem:[#allocation53_spill] sm:$0xff] %v11290_v21 }
 0x202   : > { %v11286_v41 = vadd.f32 %v8614_v42, %v11051_v39  ;;  %v11295_v6 = vpop.f32.mrf.mxu1 }
 0x203   : > { %v8616_v25 = vpop.f32.mrf.mxu0 }
 0x204   : > { %12964 = vst [vmem:[#allocation52_spill] sm:$0xff] %v11286_v41  ;;  %v8617_v2 = vadd.f32 %v8616_v25, %v8615_v63  ;;  %v11297_v38 = vpop.f32.mrf.mxu1 }
 0x205   : > { %v8618_v47 = vpop.f32.mrf.mxu0 }
 0x206   : > { %v11293_v37 = vadd.f32 %v8617_v2, %v11053_v28  ;;  %v11302_v42 = vpop.f32.mrf.mxu1 }
 0x207   : > { %v8619_v31 = vpop.f32.mrf.mxu0  ;;  %12968 = vst [vmem:[#allocation56_spill] sm:$0xff] %v11302_v42 }
 0x208   : > { %12966 = vst [vmem:[#allocation54_spill] sm:$0xff] %v11293_v37  ;;  %v8620_v52 = vadd.f32 %v8619_v31, %v8618_v47  ;;  %v11304_v25 = vpop.f32.mrf.mxu1  ;;  %v9732_v47 = vld [vmem:[%s12881_s4 + $0x168] sm:$0xff]  }
 0x209   : > { %v8621_v19 = vpop.f32.mrf.mxu0  ;;  %12969 = vst [vmem:[#allocation57_spill] sm:$0xff] %v11304_v25  ;;  %9021 = vmatprep.subr.bf16.mxu1 %v9732_v47 }
 0x20a   : > { %v11300_v39 = vadd.f32 %v8620_v52, %v11061_v1  ;;  %v11309_v2 = vpop.f32.mrf.mxu1  ;;  %v9736_v1 = vld [vmem:[%s12881_s4 + $0x128] sm:$0xff]  }
 0x20b   : > { %v8622_v41 = vpop.f32.mrf.mxu0  ;;  %12971 = vst [vmem:[#allocation59_spill] sm:$0xff] %v11309_v2  ;;  %9022 = vmatpush3.bf16.msra.mxu1 %v9736_v1  ;;  %v9750_v1 = vld [vmem:[%s12881_s4 + $0x120] sm:$0xff]  }
 0x20c   : > { %12967 = vst [vmem:[#allocation55_spill] sm:$0xff] %v11300_v39  ;;  %v8623_v63 = vadd.f32 %v8622_v41, %v8621_v19  ;;  %v11317_v52 = vpop.f32.mrf.mxu1 }
 0x20d   : > { %v8624_v21 = vpop.f32.mrf.mxu0 }
 0x20e   : > { %v11307_v28 = vadd.f32 %v8623_v63, %v11063_v61  ;;  %v11322_v61 = vpop.f32.mrf.mxu1 }
 0x20f   : > { %v8625_v37 = vpop.f32.mrf.mxu0 }
 0x210   : > { %12970 = vst [vmem:[#allocation58_spill] sm:$0xff] %v11307_v28  ;;  %v8626_v31 = vadd.f32 %v8625_v37, %v8624_v21  ;;  %v11324_v39 = vpop.f32.mrf.mxu1  ;;  %v9746_v21 = vld [vmem:[%s12881_s4 + $0x160] sm:$0xff]  }
 0x211   : > { %v8627_v41 = vpop.f32.mrf.mxu0  ;;  %12973 = vst [vmem:[#allocation61_spill] sm:$0xff] %v11324_v39  ;;  %9023 = vmatprep.subr.bf16.mxu1 %v9746_v21 }
 0x212   : > { %v11320_v19 = vadd.f32 %v8626_v31, %v11065_v29  ;;  %v11329_v42 = vpop.f32.mrf.mxu1  ;;  %9024 = vmatpush3.bf16.msra.mxu1 %v9750_v1 }
 0x213   : > { %v8628_v63 = vpop.f32.mrf.mxu0  ;;  %12975 = vst [vmem:[#allocation63_spill] sm:$0xff] %v11329_v42 }
 0x214   : > { %12972 = vst [vmem:[#allocation60_spill] sm:$0xff] %v11320_v19  ;;  %v8629_v28 = vadd.f32 %v8628_v63, %v8627_v41  ;;  %v11334_v47 = vpop.f32.mrf.mxu1 }
 0x215   : > { %v8630_v2 = vpop.f32.mrf.mxu0  ;;  %12976 = vst [vmem:[#allocation64_spill] sm:$0xff] %v11334_v47 }
 0x216   : > { %v11327_v25 = vadd.f32 %v8629_v28, %v11067_v60  ;;  %v11342_v60 = vpop.f32.mrf.mxu1 }
 0x217   : > { %v8631_v37 = vpop.f32.mrf.mxu0 }
 0x218   : > { %12974 = vst [vmem:[#allocation62_spill] sm:$0xff] %v11327_v25  ;;  %v8632_v29 = vadd.f32 %v8631_v37, %v8630_v2  ;;  %v11344_v25 = vpop.f32.mrf.mxu1 }
 0x219   : > { %v8633_v31 = vpop.f32.mrf.mxu0 }
 0x21a   : > { %v11340_v41 = vadd.f32 %v8632_v29, %v11075_v62  ;;  %v11349_v37 = vpop.f32.mrf.mxu1  ;;  %v9757_v62 = vld [vmem:[%s12881_s4 + $0x1f8] sm:$0xff]  }
 0x21b   : > { %v8634_v28 = vpop.f32.mrf.mxu0  ;;  %9129 = vmatprep.subr.bf16.mxu0 %v9757_v62  ;;  %v9766_v62 = vld [vmem:[%s12881_s4 + $0x118] sm:$0xff]  }
 0x21c   : > { %12977 = vst [vmem:[#allocation65_spill] sm:$0xff] %v11340_v41  ;;  %v8635_v63 = vadd.f32 %v8634_v28, %v8633_v31  ;;  %v11351_v39 = vpop.f32.mrf.mxu1  ;;  %v9762_v41 = vld [vmem:[%s12881_s4 + $0x158] sm:$0xff]  }
 0x21d   : > { %v8636_v19 = vpop.f32.mrf.mxu0  ;;  %9025 = vmatprep.subr.bf16.mxu1 %v9762_v41 }
 0x21e   : > { %v11347_v2 = vadd.f32 %v8635_v63, %v11077_v51  ;;  %v11359_v1 = vpop.f32.mrf.mxu1  ;;  %9026 = vmatpush3.bf16.msra.mxu1 %v9766_v62  ;;  %v8687_v62 = vadd.f32 %v11158_v48, %v11150_v9  ;;  %v8702_v9 = vadd.f32 %v11220_v26, %v11215_v13  ;;  %v9778_v13 = vld [vmem:[%s12881_s4 + $0x150] sm:$0xff]  }
 0x21f   : > { %v8637_v47 = vpop.f32.mrf.mxu0  ;;  %12980 = vst [vmem:[#allocation68_spill] sm:$0xff] %v11359_v1  ;;  %9027 = vmatprep.subr.bf16.mxu1 %v9778_v13 }
 0x220   : > { %12978 = vst [vmem:[#allocation66_spill] sm:$0xff] %v11347_v2  ;;  %v8638_v42 = vadd.f32 %v8637_v47, %v8636_v19  ;;  %v11361_v28 = vpop.f32.mrf.mxu1 }
 0x221   : > { %v8639_v21 = vpop.f32.mrf.mxu0  ;;  %12981 = vst [vmem:[#allocation69_spill] sm:$0xff] %v11361_v28 }
 0x222   : > { %v11357_v29 = vadd.f32 %v8638_v42, %v11079_v56  ;;  %v11366_v47 = vpop.f32.mrf.mxu1 }
 0x223   : > { %v8640_v31 = vpop.f32.mrf.mxu0  ;;  %12983 = vst [vmem:[#allocation71_spill] sm:$0xff] %v11366_v47 }
 0x224   : > { %12979 = vst [vmem:[#allocation67_spill] sm:$0xff] %v11357_v29  ;;  %v8641_v51 = vadd.f32 %v8640_v31, %v8639_v21  ;;  %v11371_v42 = vpop.f32.mrf.mxu1 }
 0x225   : > { %v8642_v63 = vpop.f32.mrf.mxu0  ;;  %12984 = vst [vmem:[#allocation72_spill] sm:$0xff] %v11371_v42 }
 0x226   : > { %v11364_v19 = vadd.f32 %v8641_v51, %v11081_v22  ;;  %v11379_v22 = vpop.f32.mrf.mxu1 }
 0x227   : > { %v8643_v2 = vpop.f32.mrf.mxu0 }
 0x228   : > { %12982 = vst [vmem:[#allocation70_spill] sm:$0xff] %v11364_v19  ;;  %v8644_v56 = vadd.f32 %v8643_v2, %v8642_v63  ;;  %v11381_v29 = vpop.f32.mrf.mxu1 }
 0x229   : > { %v8645_v21 = vpop.f32.mrf.mxu0 }
 0x22a   : > { %v11377_v31 = vadd.f32 %v8644_v56, %v11089_v53  ;;  %v11386_v63 = vpop.f32.mrf.mxu1  ;;  %v8681_v53 = vadd.f32 %v11129_v34, %v11119_v5  ;;  %v8684_v56 = vadd.f32 %v11142_v36, %v11134_v12  ;;  %v8696_v34 = vadd.f32 %v11203_v49, %v11195_v33 }
 0x22b   : > { %v8646_v51 = vpop.f32.mrf.mxu0  ;;  %v8699_v12 = vadd.f32 %v11213_v58, %v11208_v16  ;;  %v8708_v58 = vadd.f32 %v11237_v11, %v11229_v14  ;;  %v8723_v16 = vadd.f32 %v11278_v23, %v11273_v32  ;;  %v12987_v14 = vld [vmem:[#allocation56_spill] sm:$0xff]  ;;  %v12991_v23 = vld [vmem:[#allocation59_spill] sm:$0xff] }
 0x22c   : > { %v8647_v19 = vadd.f32 %v8646_v51, %v8645_v21  ;;  %v11388_v1 = vpop.f32.mrf.mxu1  ;;  %v11442_v49 = vadd.f32 %v8696_v34, %v11201_v46  ;;  %v8732_v11 = vadd.f32 %v12987_v14, %v11297_v38  ;;  %v11478_v21 = vld [vmem:[%s12880_s3] ss:$0 sm:$0xff] }
 0x22d   : > { %v8648_v47 = vpop.f32.mrf.mxu0  ;;  %v12992_v51 = vld [vmem:[#allocation45_spill] sm:$0xff] }
 0x22e   : > { %v11384_v2 = vadd.f32 %v8647_v19, %v11091_v4  ;;  %v11401_v19 = vpop.f32.mrf.mxu1 }
 0x22f   : > { %v8649_v42 = vpop.f32.mrf.mxu0 }
 0x230   : > { %v8650_v28 = vadd.f32 %v8649_v42, %v8648_v47  ;;  %v8690_v47 = vadd.f32 %v11177_v50, %v11169_v35  ;;  %v8693_v42 = vadd.f32 %v11190_v27, %v11182_v3  ;;  %v8705_v50 = vadd.f32 %v11227_v7, %v11222_v54  ;;  %v11420_v48 = vpop.f32.mrf.mxu1 }
 0x231   : > { %v11392_v41 = vpop.f32.mrf.mxu0  ;;  %v3361_v35 = vadd.f32 %v8684_v56, %v11140_v18  ;;  %v11424_v3 = vadd.f32 %v8687_v62, %v11156_v57  ;;  %v8711_v27 = vadd.f32 %v11247_v8, %v11239_v10  ;;  %v8714_v18 = vadd.f32 %v11254_v40, %v11249_v30  ;;  %v12985_v30 = vld [vmem:[#allocation51_spill] sm:$0xff]  ;;  %v12993_v56 = vld [vmem:[#allocation46_spill] sm:$0xff] }
 0x232   : > { %v11399_v4 = vadd.f32 %v8650_v28, %v11094_v43  ;;  %v3358_v43 = vadd.f32 %v8681_v53, %v11127_v0  ;;  %v3374_v33 = vadd.f32 %v8693_v42, %v11188_v45  ;;  %v11432_v26 = vadd.f32 %v8690_v47, %v11175_v15  ;;  %v9782_v15 = vld [vmem:[%s12881_s4 + $0x110] sm:$0xff]   ;;  %v8764_v10 = vpop.f32.mrf.mxu1  ;;  %v12994_v42 = vld [vmem:[#allocation41_spill] sm:$0xff] }
 0x233   : > { %v11407_v5 = vpop.f32.mrf.mxu0  ;;  %v8717_v57 = vadd.f32 %v11261_v44, %v11256_v24  ;;  %v11445_v8 = vadd.f32 %v8699_v12, %v11211_v20  ;;  %v8720_v45 = vadd.f32 %v11268_v55, %v11263_v59  ;;  %v8726_v54 = vadd.f32 %v11288_v17, %v12985_v30  ;;  %v12986_v24 = vld [vmem:[#allocation53_spill] sm:$0xff]  ;;  %v12988_v44 = vld [vmem:[#allocation44_spill] sm:$0xff]  ;;  %v12989_v55 = vld [vmem:[#allocation43_spill] sm:$0xff]  ;;  %9028 = vmatpush3.bf16.msra.mxu1 %v9782_v15 }
 0x234   : > { %v8729_v46 = vadd.f32 %v11295_v6, %v12986_v24  ;;  %v11461_v20 = vld [vmem:[%s12879_s2] ss:$0 sm:$0xff]  ;;  %v11466_v59 = vadd.f32 %v8705_v50, %v12988_v44  ;;  %v11469_v32 = vadd.f32 %v8702_v9, %v12989_v55  ;;  %v8738_v28 = vadd.f32 %v11322_v61, %v11317_v52  ;;  %v12995_v12 = vld [vmem:[#allocation48_spill] sm:$0xff]  ;;  %v12996_v52 = vld [vmem:[#allocation47_spill] sm:$0xff]  ;;  %v8766_v14 = vpop.f32.mrf.mxu1 }
 0x235   : > { %v11413_v36 = vpop.f32.mrf.mxu0  ;;  %v12990_v6 = vld [vmem:[#allocation57_spill] sm:$0xff]  ;;  %v11481_v53 = vadd.f32 %v8708_v58, %v12992_v51  ;;  %v11484_v62 = vadd.f32 %v8711_v27, %v12993_v56  ;;  %v11492_v61 = vadd.f32 %v8714_v18, %v12996_v52  ;;  %v12998_v15 = vld [vmem:[#allocation54_spill] sm:$0xff]  ;;  %v13000_v24 = vld [vmem:[#allocation52_spill] sm:$0xff]  ;;  %v8747_v52 = vadd.f32 %v11349_v37, %v11344_v25 }
 0x236   : > { %v8735_v17 = vadd.f32 %v12991_v23, %v12990_v6  ;;  %v12997_v50 = vld [vmem:[#allocation49_spill] sm:$0xff]  ;;  %v11498_v58 = vadd.f32 %v8729_v46, %v12998_v15  ;;  %v12999_v30 = vld [vmem:[#allocation50_spill] sm:$0xff]  ;;  %v13001_v44 = vld [vmem:[#allocation55_spill] sm:$0xff]  ;;  %v8767_v15 = vpop.f32.mrf.mxu1 }
 0x237   : > { %v8655_v0 = vpop.f32.mrf.mxu0  ;;  %v11495_v13 = vadd.f32 %v8720_v45, %v12997_v50  ;;  %v11501_v27 = vadd.f32 %v8723_v16, %v12999_v30  ;;  %v11509_v55 = vadd.f32 %v8732_v11, %v13001_v44  ;;  %v13002_v45 = vld [vmem:[#allocation61_spill] sm:$0xff]  ;;  %v13003_v6 = vld [vmem:[#allocation63_spill] sm:$0xff]  ;;  %v13004_v46 = vld [vmem:[#allocation64_spill] sm:$0xff] }
 0x238   : > { %v8741_v23 = vadd.f32 %v13003_v6, %v13002_v45  ;;  %v13005_v51 = vld [vmem:[#allocation58_spill] sm:$0xff]  ;;  %v8656_v50 = vadd.f32 %v8655_v0, %v11413_v36  ;;  %v13010_v44 = vld [vmem:[#allocation71_spill] sm:$0xff]  ;;  %v13011_v37 = vld [vmem:[#allocation72_spill] sm:$0xff] }
 0x239   : > { %v9283_v7 = vpop.f32.mrf.mxu0  ;;  %v11516_v56 = vadd.f32 %v8735_v17, %v13005_v51  ;;  %v13007_v11 = vld [vmem:[#allocation42_spill] sm:$0xff]  ;;  %v8653_v17 = vadd.f32 %v11407_v5, %v11392_v41  ;;  %v8759_v41 = vadd.f32 %v11386_v63, %v11381_v29  ;;  %v8762_v5 = vadd.f32 %v11401_v19, %v11388_v1 }
 0x23a   : > { %v3519_v40 = vadd.f32 %v9283_v7, %v3358_v43  ;;  %v11489_v43 = vadd.f32 %v8717_v57, %v12995_v12  ;;  %v11504_v7 = vadd.f32 %v8726_v54, %v13000_v24  ;;  %v13006_v54 = vld [vmem:[#allocation60_spill] sm:$0xff]  ;;  %v8765_v51 = vadd.f32 %v8764_v10, %v11420_v48  ;;  %v13016_v48 = vld [vmem:[#allocation66_spill] sm:$0xff] }
 0x23b   : > { %v3510_v38 = vpop.f32.mrf.mxu0  ;;  %v11557_v10 = vadd.f32 %v8747_v52, %v13016_v48 }
 0x23c   : > { %v3646_v47 = vmul.f32 %v11461_v20, %v3519_v40  ;;  %v3511_v34 = vadd.f32 %v3510_v38, %v12994_v42  ;;  %v8744_v38 = vadd.f32 %v11342_v60, %v13004_v46  ;;  %v11519_v42 = vadd.f32 %v8738_v28, %v13006_v54  ;;  %v13012_v46 = vld [vmem:[#allocation39_spill] sm:$0xff] }
 0x23d   : > { %v9284_v9 = vpop.f32.mrf.mxu0 }
 0x23e   : > { %v3685_v57 = vadd.f32 %v11478_v21, %v3646_v47  ;;  %v3644_v40 = vmul.f32 %v11461_v20, %v3511_v34  ;;  %v3522_v18 = vadd.f32 %v9284_v9, %v3361_v35  ;;  %v13008_v9 = vld [vmem:[#allocation68_spill] sm:$0xff] }
 0x23f   : > { %v3513_v16 = vpop.f32.mrf.mxu0  ;;  %v8750_v60 = vadd.f32 %v13008_v9, %v11351_v39  ;;  %v8756_v39 = vadd.f32 %v11379_v22, %v13011_v37  ;;  %v13013_v22 = vld [vmem:[#allocation40_spill] sm:$0xff] }
 0x240   : > { %v3717_v47 = vmax.f32 %v3685_v57, 0.0  ;;  %v3683_v34 = vadd.f32 %v11478_v21, %v3644_v40  ;;  %v3647_v35 = vmul.f32 %v11461_v20, %v3522_v18  ;;  %v3514_v12 = vadd.f32 %v3513_v16, %v13007_v11  ;;  %v13009_v18 = vld [vmem:[#allocation69_spill] sm:$0xff]  ;;  %v13014_v11 = vld [vmem:[#allocation62_spill] sm:$0xff] }
 0x241   : > { %v9287_v28 = vpop.f32.mrf.mxu0  ;;  %v8753_v25 = vadd.f32 %v13010_v44, %v13009_v18  ;;  %v3309_v16 = vadd.f32 %v8653_v17, %v13012_v46  ;;  %v3312_v54 = vadd.f32 %v8656_v50, %v13013_v22  ;;  %v9794_v50 = vld [vmem:[%s12881_s4 + $0x148] sm:$0xff]   ;;  %v11583_v18 = vadd.f32 %v8762_v5, %v11399_v4 }
 0x242   : > { %3804 = vst [vmem:[#allocation3 + $0x31] sm:$0xff] %v3717_v47  ;;  %v3715_v30 = vmax.f32 %v3683_v34, 0.0  ;;  %v3686_v24 = vadd.f32 %v11478_v21, %v3647_v35  ;;  %v3645_v57 = vmul.f32 %v11461_v20, %v3514_v12  ;;  %v3535_v40 = vadd.f32 %v9287_v28, %v3374_v33  ;;  %9029 = vmatprep.subr.bf16.mxu1 %v9794_v50 }
 0x243   : > { %v3526_v36 = vpop.f32.mrf.mxu0  ;;  %v8768_v47 = vadd.f32 %v8767_v15, %v8766_v14  ;;  %v11551_v12 = vadd.f32 %v8741_v23, %v13014_v11  ;;  %v13017_v14 = vld [vmem:[#allocation67_spill] sm:$0xff]  ;;  %v11586_v37 = vadd.f32 %v8765_v51, %v3309_v16 }
 0x244   : > { %3802 = vst [vmem:[#allocation3 + $0x19] sm:$0xff] %v3715_v30  ;;  %v3718_v0 = vmax.f32 %v3686_v24, 0.0  ;;  %v3684_v45 = vadd.f32 %v11478_v21, %v3645_v57  ;;  %v3650_v6 = vmul.f32 %v11461_v20, %v3535_v40  ;;  %v3527_v33 = vadd.f32 %v3526_v36, %v11424_v3  ;;  %v13015_v3 = vld [vmem:[#allocation65_spill] sm:$0xff]  ;;  %v13018_v30 = vld [vmem:[#allocation70_spill] sm:$0xff] }
 0x245   : > { %v9288_v29 = vpop.f32.mrf.mxu0  ;;  %v11554_v9 = vadd.f32 %v8744_v38, %v13015_v3  ;;  %v11560_v17 = vadd.f32 %v8750_v60, %v13017_v14  ;;  %v9798_v38 = vld [vmem:[%s12881_s4 + $0x108] sm:$0xff]   ;;  %v11574_v24 = vadd.f32 %v8753_v25, %v13018_v30  ;;  %v11577_v57 = vadd.f32 %v8756_v39, %v11377_v31 }
 0x246   : > { %3805 = vst [vmem:[#allocation3 + $0x39] sm:$0xff] %v3718_v0  ;;  %v3716_v63 = vmax.f32 %v3684_v45, 0.0  ;;  %v3689_v1 = vadd.f32 %v11478_v21, %v3650_v6  ;;  %v3648_v19 = vmul.f32 %v11461_v20, %v3527_v33  ;;  %v3538_v34 = vadd.f32 %v9288_v29, %v11442_v49  ;;  %9030 = vmatpush3.bf16.msra.mxu1 %v9798_v38 }
 0x247   : > { %v3529_v35 = vpop.f32.mrf.mxu0  ;;  %v11580_v40 = vadd.f32 %v8759_v41, %v11384_v2  ;;  %v11588_v36 = vadd.f32 %v8768_v47, %v3312_v54 }
 0x248   : > { %3803 = vst [vmem:[#allocation3 + $0x21] sm:$0xff] %v3716_v63  ;;  %v3721_v28 = vmax.f32 %v3689_v1, 0.0  ;;  %v3687_v49 = vadd.f32 %v11478_v21, %v3648_v19  ;;  %v3651_v23 = vmul.f32 %v11461_v20, %v3538_v34  ;;  %v3530_v15 = vadd.f32 %v3529_v35, %v11432_v26 }
 0x249   : > { %v11571_v52 = vld [vmem:[#allocation3 + $0x30] sm:$0xff]  ;;  %v9291_v60 = vpop.f32.mrf.mxu0 }
 0x24a   : > { %3808 = vst [vmem:[#allocation3 + $0x61] sm:$0xff] %v3721_v28  ;;  %v3719_v26 = vmax.f32 %v3687_v49, 0.0  ;;  %v3690_v44 = vadd.f32 %v11478_v21, %v3651_v23  ;;  %v4106_v25 = vrot.slane %v11571_v52, 1  ;;  %v3649_v2 = vmul.f32 %v11461_v20, %v3530_v15 }
 0x24b   : > { %v11591_v31 = vld [vmem:[#allocation3 + $0x18] sm:$0xff]  ;;  %v3551_v39 = vadd.f32 %v9291_v60, %v11466_v59  ;;  %v3542_v4 = vpop.f32.mrf.mxu0  ;;  %v8216_v41 = vpack.c.bf16 %v11571_v52, %v11571_v52  ;;  %v4378_v5 = vrot.slane %v11571_v52, 2 }
 0x24c   : > { %v4101_v0 = vrot.slane %v11591_v31, 1  ;;  %3806 = vst [vmem:[#allocation3 + $0x49] sm:$0xff] %v3719_v26  ;;  %v3722_v45 = vmax.f32 %v3690_v44, 0.0  ;;  %v3543_v6 = vadd.f32 %v3542_v4, %v11445_v8  ;;  %v4373_v33 = vrot.slane %v11591_v31, 2 }
 0x24d   : > { %v11601_v46 = vld [vmem:[#allocation3 + $0x38] sm:$0xff]  ;;  %v11603_v16 = vld [vmem:[#allocation3 + $0x40] sm:$0x3]  ;;  %v3688_v59 = vadd.f32 %v11478_v21, %v3649_v2  ;;  %v3654_v51 = vmul.f32 %v11461_v20, %v3551_v39  ;;  %v9292_v22 = vpop.f32.mrf.mxu0  ;;  %v8214_v54 = vpack.c.bf16 %v11591_v31, %v11591_v31  ;;  %4650 = vst [vmem:[#allocation2 + $0x54] sm:$0xf] %v8216_v41 }
 0x24e   : > { %4020 = vst [vmem:[#allocation2 + $0x90] sm:$0xf] %v8216_v41  ;;  %4785 = vst [vmem:[#allocation2 + $0x18] sm:$0xf] %v8216_v41  ;;  %v4107_v47 = vrot.slane %v11601_v46, 1  ;;  %v4109_v8 = vrot.slane %v11603_v16, 1  ;;  %v3652_v11 = vmul.f32 %v11461_v20, %v3543_v6  ;;  %v3554_v3 = vadd.f32 %v9292_v22, %v11481_v53 }
 0x24f   : > { %v4379_v29 = vrot.slane %v11601_v46, 2  ;;  %v4381_v63 = vrot.slane %v11603_v16, 2  ;;  %3809 = vst [vmem:[#allocation3 + $0x69] sm:$0xff] %v3722_v45  ;;  %v11613_v1 = vld [vmem:[#allocation3 + $0x20] sm:$0xff]  ;;  %v11615_v19 = vld [vmem:[#allocation3 + $0x28] sm:$0x3]  ;;  %v3693_v35 = vadd.f32 %v11478_v21, %v3654_v51  ;;  %v3545_v48 = vpop.f32.mrf.mxu0 }
 0x250   : > { %v3720_v34 = vmax.f32 %v3688_v59, 0.0  ;;  %4648 = vst [vmem:[#allocation2 + $0xc] sm:$0xf] %v8214_v54  ;;  %4018 = vst [vmem:[#allocation2 + $0x48] sm:$0xf] %v8214_v54  ;;  %v4102_v14 = vrot.slane %v11613_v1, 1  ;;  %v3691_v38 = vadd.f32 %v11478_v21, %v3652_v11  ;;  %v3655_v60 = vmul.f32 %v11461_v20, %v3554_v3 }
 0x251   : > { %v4104_v50 = vrot.slane %v11615_v19, 1  ;;  %v4374_v28 = vrot.slane %v11613_v1, 2  ;;  %v4376_v49 = vrot.slane %v11615_v19, 2  ;;  %v11624_v23 = vld [vmem:[#allocation3 + $0x60] sm:$0xff]  ;;  %v3725_v15 = vmax.f32 %v3693_v35, 0.0  ;;  %v9295_v30 = vpop.f32.mrf.mxu0 }
 0x252   : > { %3807 = vst [vmem:[#allocation3 + $0x51] sm:$0xff] %v3720_v34  ;;  %v3546_v53 = vadd.f32 %v3545_v48, %v11469_v32  ;;  %v4116_v26 = vrot.slane %v11624_v23, 1  ;;  %v3567_v2 = vadd.f32 %v9295_v30, %v11489_v43  ;;  %v8215_v39 = vpack.c.bf16 %v11613_v1, %v11613_v1 }
 0x253   : > { %v11634_v4 = vld [vmem:[#allocation3 + $0x48] sm:$0xff]  ;;  %3812 = vst [vmem:[#allocation3 + $0x91] sm:$0xff] %v3725_v15  ;;  %v3723_v41 = vmax.f32 %v3691_v38, 0.0  ;;  %v3694_v45 = vadd.f32 %v11478_v21, %v3655_v60  ;;  %v3558_v59 = vpop.f32.mrf.mxu0  ;;  %v4103_v32 = vsel %vm540_vm0, %v4101_v0, %v4102_v14  ;;  %v4105_v0 = vsel %vm540_vm0, %v4102_v14, %v4104_v50  ;;  %v9810_v14 = vld [vmem:[%s12881_s4 + $0x140] sm:$0xff]  }
 0x254   : > { %v3653_v6 = vmul.f32 %v11461_v20, %v3546_v53  ;;  %v4111_v51 = vrot.slane %v11634_v4, 1  ;;  %v4383_v22 = vrot.slane %v11634_v4, 2  ;;  %v3658_v43 = vmul.f32 %v11461_v20, %v3567_v2  ;;  %4649 = vst [vmem:[#allocation2 + $0x30] sm:$0xf] %v8215_v39  ;;  %4019 = vst [vmem:[#allocation2 + $0x6c] sm:$0xf] %v8215_v39  ;;  %9031 = vmatprep.subr.bf16.mxu1 %v9810_v14 }
 0x255   : > { %v3559_v54 = vadd.f32 %v3558_v59, %v11484_v62  ;;  %3810 = vst [vmem:[#allocation3 + $0x79] sm:$0xff] %v3723_v41  ;;  %v3726_v11 = vmax.f32 %v3694_v45, 0.0  ;;  %v9296_v48 = vpop.f32.mrf.mxu0  ;;  %v8246_v15 = vpack.c.bf16 %v4103_v32, %v4103_v32  ;;  %v8247_v32 = vpack.c.bf16 %v4105_v0, %v4105_v0 }
 0x256   : > { %v11643_v34 = vld [vmem:[#allocation3 + $0x68] sm:$0xff]  ;;  %v11645_v35 = vld [vmem:[#allocation3 + $0x70] sm:$0x3]  ;;  %v3692_v3 = vadd.f32 %v11478_v21, %v3653_v6  ;;  %v3697_v2 = vadd.f32 %v11478_v21, %v3658_v43  ;;  %v3570_v41 = vadd.f32 %v9296_v48, %v11495_v13  ;;  %v8217_v43 = vpack.c.bf16 %v11601_v46, %v11601_v46 }
 0x257   : > { %v4117_v38 = vrot.slane %v11643_v34, 1  ;;  %3813 = vst [vmem:[#allocation3 + $0x99] sm:$0xff] %v3726_v11  ;;  %v3656_v39 = vmul.f32 %v11461_v20, %v3559_v54  ;;  %v3561_v45 = vpop.f32.mrf.mxu0  ;;  %4338 = vst [vmem:[#allocation2 + $0x4c] sm:$0xf] %v8246_v15  ;;  %v4375_v13 = vsel %vm813_vm1, %v4373_v33, %v4374_v28  ;;  %v9814_v54 = vld [vmem:[%s12881_s4 + $0x100] sm:$0xff]  }
 0x258   : > { %v3724_v30 = vmax.f32 %v3692_v3, 0.0  ;;  %4698 = vst [vmem:[#allocation2 + $0x10] sm:$0xf] %v8246_v15  ;;  %v3562_v59 = vadd.f32 %v3561_v45, %v11492_v61  ;;  %v3729_v31 = vmax.f32 %v3697_v2, 0.0  ;;  %v3659_v45 = vmul.f32 %v11461_v20, %v3570_v41  ;;  %4339 = vst [vmem:[#allocation2 + $0x70] sm:$0xf] %v8247_v32  ;;  %9032 = vmatpush3.bf16.msra.mxu1 %v9814_v54 }
 0x259   : > { %v11659_v50 = vld [vmem:[#allocation3 + $0x50] sm:$0xff]  ;;  %v11661_v6 = vld [vmem:[#allocation3 + $0x58] sm:$0x3]  ;;  %v9299_v0 = vpop.f32.mrf.mxu0  ;;  %v3695_v33 = vadd.f32 %v11478_v21, %v3656_v39  ;;  %4699 = vst [vmem:[#allocation2 + $0x34] sm:$0xf] %v8247_v32  ;;  %v4377_v39 = vsel %vm813_vm1, %v4374_v28, %v4376_v49 }
 0x25a   : > { %v4112_v11 = vrot.slane %v11659_v50, 1  ;;  %v4114_v3 = vrot.slane %v11661_v6, 1  ;;  %v4384_v61 = vrot.slane %v11659_v50, 2  ;;  %v4386_v48 = vrot.slane %v11661_v6, 2  ;;  %3811 = vst [vmem:[#allocation3 + $0x81] sm:$0xff] %v3724_v30  ;;  %v11678_v15 = vld [vmem:[#allocation3 + $0x90] sm:$0xff] }
 0x25b   : > { %v3657_v53 = vmul.f32 %v11461_v20, %v3562_v59  ;;  %4651 = vst [vmem:[#allocation2 + $0x78] sm:$0xf] %v8217_v43  ;;  %4021 = vst [vmem:[#allocation2 + $0xb4] sm:$0xf] %v8217_v43  ;;  %v3583_v14 = vadd.f32 %v9299_v0, %v11498_v58  ;;  %v3574_v62 = vpop.f32.mrf.mxu0  ;;  %v9703_v2 = vld [vmem:[#allocation2 + $0x8] ss:$36 sps:$4 sm:$0xff]   ;;  %v3698_v32 = vadd.f32 %v11478_v21, %v3659_v45 }
 0x25c   : > { %4786 = vst [vmem:[#allocation2 + $0x3c] sm:$0xf] %v8217_v43  ;;  %v11691_v41 = vld [vmem:[#allocation3 + $0x78] sm:$0xff]  ;;  %3816 = vst [vmem:[#allocation3 + $0xc1] sm:$0xff] %v3729_v31  ;;  %v3727_v59 = vmax.f32 %v3695_v33, 0.0  ;;  %v3575_v54 = vadd.f32 %v3574_v62, %v11501_v27  ;;  %v8278_v0 = vpack.c.bf16 %v4375_v13, %v4375_v13  ;;  %v9773_v31 = vld [vmem:[%s12881_s4 + $0x1f0] sm:$0xff]  }
 0x25d   : > { %v3696_v43 = vadd.f32 %v11478_v21, %v3657_v53  ;;  %v9705_v30 = vld [vmem:[#allocation2 + $0xc] ss:$36 sps:$4 sm:$0xff]   ;;  %v9758_v58 = vld [vmem:[%s12881_s4 + $0x1b8] sm:$0xff]   ;;  %v3662_v28 = vmul.f32 %v11461_v20, %v3583_v14  ;;  %v9300_v49 = vpop.f32.mrf.mxu0  ;;  %v3730_v62 = vmax.f32 %v3698_v32, 0.0  ;;  %v8279_v14 = vpack.c.bf16 %v4377_v39, %v4377_v39 }
 0x25e   : > { %v11705_v53 = vld [vmem:[#allocation3 + $0x98] sm:$0xff]  ;;  %v11707_v27 = vld [vmem:[#allocation3 + $0xa0] sm:$0x3]  ;;  %3814 = vst [vmem:[#allocation3 + $0xa9] sm:$0xff] %v3727_v59  ;;  %v3660_v45 = vmul.f32 %v11461_v20, %v3575_v54  ;;  %6579 = vmatprep.mubr.bf16.mxu0 %v9705_v30  ;;  %v3586_v44 = vadd.f32 %v9300_v49, %v11509_v55  ;;  %4610 = vst [vmem:[#allocation2 + $0x50] sm:$0xf] %v8278_v0 }
 0x25f   : > { %v3728_v33 = vmax.f32 %v3696_v43, 0.0  ;;  %6580 = vmatmul.mubr.bf16.vlgmr.msra.gmra.mxu0 %v9703_v2  ;;  %v3577_v60 = vpop.f32.mrf.mxu0  ;;  %4745 = vst [vmem:[#allocation2 + $0x14] sm:$0xf] %v8278_v0  ;;  %3817 = vst [vmem:[#allocation3 + $0xc9] sm:$0xff] %v3730_v62  ;;  %v3701_v55 = vadd.f32 %v11478_v21, %v3662_v28  ;;  %v9774_v2 = vld [vmem:[%s12881_s4 + $0x1b0] sm:$0xff]  }
 0x260   : > { %v3699_v30 = vadd.f32 %v11478_v21, %v3660_v45  ;;  %v3663_v43 = vmul.f32 %v11461_v20, %v3586_v44  ;;  %v3578_v54 = vadd.f32 %v3577_v60, %v11504_v7  ;;  %9130 = vmatpush3.bf16.msra.mxu0 %v9758_v58  ;;  %v9789_v44 = vld [vmem:[%s12881_s4 + $0x1e8] sm:$0xff]   ;;  %4611 = vst [vmem:[#allocation2 + $0x74] sm:$0xf] %v8279_v14  ;;  %4746 = vst [vmem:[#allocation2 + $0x38] sm:$0xf] %v8279_v14 }
 0x261   : > { %v11715_v59 = vld [vmem:[#allocation3 + $0x80] sm:$0xff]  ;;  %v11717_v32 = vld [vmem:[#allocation3 + $0x88] sm:$0x3]  ;;  %3815 = vst [vmem:[#allocation3 + $0xb1] sm:$0xff] %v3728_v33  ;;  %v9303_v28 = vpop.f32.mrf.mxu0  ;;  %9131 = vmatprep.subr.bf16.mxu0 %v9773_v31  ;;  %v3733_v7 = vmax.f32 %v3701_v55, 0.0  ;;  %v4108_v31 = vsel %vm540_vm0, %v4106_v25, %v4107_v47  ;;  %v4110_v55 = vsel %vm540_vm0, %v4107_v47, %v4109_v8 }
 0x262   : > { %v4122_v49 = vrot.slane %v11715_v59, 1  ;;  %v4124_v0 = vrot.slane %v11717_v32, 1  ;;  %v4396_v33 = vrot.slane %v11717_v32, 2  ;;  %v3731_v60 = vmax.f32 %v3699_v30, 0.0  ;;  %v9706_v19 = vld [vmem:[#allocation2 + $0x48] ss:$36 sps:$4 sm:$0xff]  }
 0x263   : > { %v3702_v58 = vadd.f32 %v11478_v21, %v3663_v43  ;;  %v3661_v45 = vmul.f32 %v11461_v20, %v3578_v54  ;;  %v9708_v1 = vld [vmem:[#allocation2 + $0x4c] ss:$36 sps:$4 sm:$0xff]   ;;  %v11735_v13 = vld [vmem:[#allocation3 + $0xc0] sm:$0xff]  ;;  %v3599_v62 = vadd.f32 %v9303_v28, %v11551_v12  ;;  %v3590_v30 = vpop.f32.mrf.mxu0  ;;  %3820 = vst [vmem:[#allocation3 + $0xf1] sm:$0xff] %v3733_v7  ;;  %v8248_v8 = vpack.c.bf16 %v4108_v31, %v4108_v31  ;;  %v9711_v46 = vld [vmem:[#allocation2 + $0x54] ss:$36 sps:$4 sm:$0xff]  }
 0x264   : > { %3818 = vst [vmem:[#allocation3 + $0xd9] sm:$0xff] %v3731_v60  ;;  %6426 = vmatprep.mubr.bf16.mxu1 %v9708_v1  ;;  %9132 = vmatpush3.bf16.msra.mxu0 %v9774_v2  ;;  %v9790_v25 = vld [vmem:[%s12881_s4 + $0x1a8] sm:$0xff]   ;;  %v8249_v54 = vpack.c.bf16 %v4110_v55, %v4110_v55  ;;  %v3591_v7 = vadd.f32 %v3590_v30, %v11516_v56  ;;  %v9805_v1 = vld [vmem:[%s12881_s4 + $0x1e0] sm:$0xff]  }
 0x265   : > { %v3734_v12 = vmax.f32 %v3702_v58, 0.0  ;;  %v3700_v39 = vadd.f32 %v11478_v21, %v3661_v45  ;;  %v11754_v28 = vld [vmem:[#allocation3 + $0xa8] sm:$0xff]  ;;  %6427 = vmatmul.mubr.bf16.gmra.mxu1 %v9706_v19  ;;  %v3666_v47 = vmul.f32 %v11461_v20, %v3599_v62  ;;  %v9304_v60 = vpop.f32.mrf.mxu0  ;;  %9133 = vmatprep.subr.bf16.mxu0 %v9789_v44  ;;  %v9806_v19 = vld [vmem:[%s12881_s4 + $0x1a0] sm:$0xff]   ;;  %4340 = vst [vmem:[#allocation2 + $0x94] sm:$0xf] %v8248_v8 }
 0x266   : > { %v3602_v14 = vadd.f32 %v9304_v60, %v11554_v9  ;;  %v11767_v62 = vld [vmem:[#allocation3 + $0xc8] sm:$0xff]  ;;  %v11769_v56 = vld [vmem:[#allocation3 + $0xd0] sm:$0x3]  ;;  %4341 = vst [vmem:[#allocation2 + $0xb8] sm:$0xf] %v8249_v54  ;;  %v3664_v9 = vmul.f32 %v11461_v20, %v3591_v7  ;;  %v8218_v44 = vpack.c.bf16 %v11634_v4, %v11634_v4  ;;  %v8219_v30 = vpack.c.bf16 %v11659_v50, %v11659_v50 }
 0x267   : > { %3821 = vst [vmem:[#allocation3 + $0xf9] sm:$0xff] %v3734_v12  ;;  %v3732_v45 = vmax.f32 %v3700_v39, 0.0  ;;  %v3705_v55 = vadd.f32 %v11478_v21, %v3666_v47  ;;  %4700 = vst [vmem:[#allocation2 + $0x58] sm:$0xf] %v8248_v8  ;;  %v3593_v12 = vpop.f32.mrf.mxu0  ;;  %v9823_v7 = vld [vmem:[%s12881_s4 + $0x1d0] sm:$0xff]   ;;  %6587 = vmatprep.mubr.bf16.mxu0 %v9711_v46  ;;  %v9825_v46 = vld [vmem:[%s12881_s4 + $0x1c8] sm:$0xff]  }
 0x268   : > { %v11771_v31 = vld [vmem:[#allocation3 + $0xb0] sm:$0xff]  ;;  %4701 = vst [vmem:[#allocation2 + $0x7c] sm:$0xf] %v8249_v54  ;;  %4835 = vst [vmem:[#allocation2 + $0x1c] sm:$0xf] %v8248_v8  ;;  %9134 = vmatpush3.bf16.msra.mxu0 %v9790_v25  ;;  %v9815_v25 = vld [vmem:[%s12881_s4 + $0x1d8] sm:$0xff]   ;;  %v3703_v60 = vadd.f32 %v11478_v21, %v3664_v9  ;;  %v3667_v39 = vmul.f32 %v11461_v20, %v3602_v14  ;;  %v4382_v14 = vsel %vm813_vm1, %v4379_v29, %v4381_v63 }
 0x269   : > { %4836 = vst [vmem:[#allocation2 + $0x40] sm:$0xf] %v8249_v54  ;;  %v11783_v58 = vld [vmem:[#allocation3 + $0xb8] sm:$0x3]  ;;  %3819 = vst [vmem:[#allocation3 + $0xe1] sm:$0xff] %v3732_v45  ;;  %v9307_v47 = vpop.f32.mrf.mxu0  ;;  %9135 = vmatprep.subr.bf16.mxu0 %v9805_v1  ;;  %v3737_v43 = vmax.f32 %v3705_v55, 0.0  ;;  %v3594_v9 = vadd.f32 %v3593_v12, %v11519_v42  ;;  %v4113_v8 = vsel %vm540_vm0, %v4111_v51, %v4112_v11 }
 0x26a   : > { %4652 = vst [vmem:[#allocation2 + $0x9c] sm:$0xf] %v8218_v44  ;;  %4653 = vst [vmem:[#allocation2 + $0xc0] sm:$0xf] %v8219_v30  ;;  %v9830_v45 = vld [vmem:[%s12881_s4 + $0x238] sm:$0xff]   ;;  %v3615_v52 = vadd.f32 %v9307_v47, %v11574_v24  ;;  %v3735_v63 = vmax.f32 %v3703_v60, 0.0  ;;  %v3706_v12 = vadd.f32 %v11478_v21, %v3667_v39  ;;  %v8281_v47 = vpack.c.bf16 %v4382_v14, %v4382_v14 }
 0x26b   : > { %4022 = vst [vmem:[#allocation2 + $0xd8] sm:$0xf] %v8218_v44  ;;  %4023 = vst [vmem:[#allocation2 + $0xfc] sm:$0xf] %v8219_v30  ;;  %v9819_v1 = vld [vmem:[%s12881_s4 + $0x198] sm:$0xff]   ;;  %9313 = vmatprep.subr.bf16.mxu1 %v9830_v45  ;;  %v3665_v45 = vmul.f32 %v11461_v20, %v3594_v9  ;;  %v9824_v39 = vld [vmem:[%s12881_s4 + $0x190] sm:$0xff]   ;;  %v4115_v51 = vsel %vm540_vm0, %v4112_v11, %v4114_v3  ;;  %v8250_v16 = vpack.c.bf16 %v4113_v8, %v4113_v8 }
 0x26c   : > { %4787 = vst [vmem:[#allocation2 + $0x60] sm:$0xf] %v8218_v44  ;;  %4788 = vst [vmem:[#allocation2 + $0x84] sm:$0xf] %v8219_v30  ;;  %v4380_v44 = vsel %vm813_vm1, %v4378_v5, %v4379_v29  ;;  %v11805_v30 = vld [vmem:[#allocation3 + $0xf0] sm:$0xff]  ;;  %v11807_v2 = vld [vmem:[#allocation3 + $0xd8] sm:$0xff]  ;;  %v3606_v5 = vpop.f32.mrf.mxu0  ;;  %9136 = vmatpush3.bf16.msra.mxu0 %v9806_v19  ;;  %v3670_v9 = vmul.f32 %v11461_v20, %v3615_v52  ;;  %v8221_v3 = vpack.c.bf16 %v11643_v34, %v11643_v34 }
 0x26d   : > { %v8280_v55 = vpack.c.bf16 %v4380_v44, %v4380_v44  ;;  %3824 = vst [vmem:[#allocation3 + $0x121] sm:$0xff] %v3737_v43  ;;  %v9709_v24 = vld [vmem:[#allocation2 + $0x50] ss:$36 sps:$4 sm:$0xff]   ;;  %9137 = vmatprep.subr.bf16.mxu0 %v9815_v25  ;;  %3822 = vst [vmem:[#allocation3 + $0x109] sm:$0xff] %v3735_v63  ;;  %v3704_v25 = vadd.f32 %v11478_v21, %v3665_v45 }
 0x26e   : > { %v11823_v29 = vld [vmem:[#allocation3 + $0xf8] sm:$0xff]  ;;  %v11825_v42 = vld [vmem:[#allocation3 + $0x100] sm:$0x3]  ;;  %v9308_v44 = vpop.f32.mrf.mxu0  ;;  %4613 = vst [vmem:[#allocation2 + $0xbc] sm:$0xf] %v8281_v47  ;;  %6588 = vmatmul.mubr.bf16.gmra.mxu0 %v9709_v24  ;;  %v3709_v45 = vadd.f32 %v11478_v21, %v3670_v9  ;;  %v3607_v24 = vadd.f32 %v3606_v5, %v11557_v10  ;;  %v4385_v10 = vsel %vm813_vm1, %v4383_v22, %v4384_v61 }
 0x26f   : > { %4612 = vst [vmem:[#allocation2 + $0x98] sm:$0xf] %v8280_v55  ;;  %4747 = vst [vmem:[#allocation2 + $0x5c] sm:$0xf] %v8280_v55  ;;  %v3736_v52 = vmax.f32 %v3704_v25, 0.0  ;;  %v8220_v25 = vpack.c.bf16 %v11624_v23, %v11624_v23  ;;  %v8282_v50 = vpack.c.bf16 %v4385_v10, %v4385_v10  ;;  %v9835_v10 = vld [vmem:[%s12881_s4 + $0x180] sm:$0xff]  }
 0x270   : > { %4882 = vst [vmem:[#allocation2 + $0x20] sm:$0xf] %v8280_v55  ;;  %v11836_v60 = vld [vmem:[#allocation3 + $0xe0] sm:$0xff]  ;;  %v11838_v14 = vld [vmem:[#allocation3 + $0xe8] sm:$0x3]  ;;  %v3738_v55 = vmax.f32 %v3706_v12, 0.0  ;;  %v3609_v19 = vpop.f32.mrf.mxu0  ;;  %9138 = vmatpush3.bf16.msra.mxu0 %v9819_v1  ;;  %v8251_v12 = vpack.c.bf16 %v4115_v51, %v4115_v51  ;;  %v3668_v4 = vmul.f32 %v11461_v20, %v3607_v24 }
 0x271   : > { %4748 = vst [vmem:[#allocation2 + $0x80] sm:$0xf] %v8281_v47  ;;  %4883 = vst [vmem:[#allocation2 + $0x44] sm:$0xf] %v8281_v47  ;;  %v4142_v43 = vrot.slane %v11836_v60, 1  ;;  %v4414_v63 = vrot.slane %v11836_v60, 2  ;;  %9139 = vmatprep.subr.bf16.mxu0 %v9823_v7 }
 0x272   : > { %v9714_v47 = vld [vmem:[#allocation2 + $0x94] ss:$36 sps:$4 sm:$0xff]   ;;  %3825 = vst [vmem:[#allocation3 + $0x129] sm:$0xff] %v3738_v55  ;;  %v9311_v54 = vpop.f32.mrf.mxu0  ;;  %v3618_v55 = vadd.f32 %v9308_v44, %v11577_v57  ;;  %3823 = vst [vmem:[#allocation3 + $0x111] sm:$0xff] %v3736_v52  ;;  %v3741_v11 = vmax.f32 %v3709_v45, 0.0  ;;  %v4387_v57 = vsel %vm813_vm1, %v4384_v61, %v4386_v48  ;;  %v9826_v7 = vld [vmem:[%s12881_s4 + $0x188] sm:$0xff]   ;;  %v3610_v61 = vadd.f32 %v3609_v19, %v11560_v17 }
 0x273   : > { %v9712_v1 = vld [vmem:[#allocation2 + $0x90] ss:$36 sps:$4 sm:$0xff]   ;;  %6434 = vmatprep.mubr.bf16.mxu1 %v9714_v47  ;;  %4342 = vst [vmem:[#allocation2 + $0xdc] sm:$0xf] %v8250_v16  ;;  %4702 = vst [vmem:[#allocation2 + $0xa0] sm:$0xf] %v8250_v16  ;;  %v8283_v6 = vpack.c.bf16 %v4387_v57, %v4387_v57  ;;  %v3631_v48 = vadd.f32 %v9311_v54, %v11586_v37  ;;  %v4118_v17 = vsel %vm540_vm0, %v4116_v26, %v4117_v38 }
 0x274   : > { %v11864_v9 = vld [vmem:[#allocation3 + $0x120] sm:$0xff]  ;;  %4837 = vst [vmem:[#allocation2 + $0x64] sm:$0xf] %v8250_v16  ;;  %v11878_v8 = vpop.f32.mrf.mxu0  ;;  %6435 = vmatmul.mubr.bf16.gmra.mxu1 %v9712_v1  ;;  %4343 = vst [vmem:[#allocation2 + $0x100] sm:$0xf] %v8251_v12  ;;  %v3671_v22 = vmul.f32 %v11461_v20, %v3618_v55  ;;  %9140 = vmatpush3.bf16.msra.mxu0 %v9824_v39  ;;  %v3707_v39 = vadd.f32 %v11478_v21, %v3668_v4  ;;  %v13019_v37 = vrot.slane %v11645_v35, 1 }
 0x275   : > { %v4156_v5 = vrot.slane %v11864_v9, 1  ;;  %v4428_v16 = vrot.slane %v11864_v9, 2  ;;  %4703 = vst [vmem:[#allocation2 + $0xc4] sm:$0xf] %v8251_v12  ;;  %4838 = vst [vmem:[#allocation2 + $0x88] sm:$0xf] %v8251_v12  ;;  %9141 = vmatprep.subr.bf16.mxu0 %v9825_v46  ;;  %v3669_v46 = vmul.f32 %v11461_v20, %v3610_v61  ;;  %v3674_v26 = vmul.f32 %v11461_v20, %v3631_v48 }
 0x276   : > { %4654 = vst [vmem:[#allocation2 + $0xe4] sm:$0xf] %v8220_v25  ;;  %4024 = vst [vmem:[#allocation2 + $0x120] sm:$0xf] %v8220_v25  ;;  %v9834_v44 = vld [vmem:[%s12881_s4 + $0x1c0] sm:$0xff]   ;;  %v11892_v12 = vld [vmem:[#allocation3 + $0x108] sm:$0xff]  ;;  %v3710_v52 = vadd.f32 %v11478_v21, %v3671_v22  ;;  %v4120_v54 = vsel %vm540_vm0, %v4117_v38, %v13019_v37  ;;  %v9312_v1 = vpop.f32.mrf.mxu0 }
 0x277   : > { %4789 = vst [vmem:[#allocation2 + $0xa8] sm:$0xf] %v8220_v25  ;;  %3828 = vst [vmem:[#allocation3 + $0x151] sm:$0xff] %v3741_v11  ;;  %v9715_v47 = vld [vmem:[#allocation2 + $0x98] ss:$36 sps:$4 sm:$0xff]   ;;  %v4151_v19 = vrot.slane %v11892_v12, 1  ;;  %v8252_v11 = vpack.c.bf16 %v4118_v17, %v4118_v17  ;;  %v3713_v48 = vadd.f32 %v11478_v21, %v3674_v26 }
 0x278   : > { %4655 = vst [vmem:[#allocation2 + $0x108] sm:$0xf] %v8221_v3  ;;  %4025 = vst [vmem:[#allocation2 + $0x144] sm:$0xf] %v8221_v3  ;;  %v4423_v45 = vrot.slane %v11892_v12, 2  ;;  %v3739_v38 = vmax.f32 %v3707_v39, 0.0  ;;  %9142 = vmatpush3.bf16.msra.mxu0 %v9826_v7  ;;  %v3708_v7 = vadd.f32 %v11478_v21, %v3669_v46  ;;  %v3634_v39 = vadd.f32 %v9312_v1, %v11588_v36  ;;  %v3625_v36 = vpop.f32.mrf.mxu0 }
 0x279   : > { %4790 = vst [vmem:[#allocation2 + $0xcc] sm:$0xf] %v8221_v3  ;;  %v9717_v51 = vld [vmem:[#allocation2 + $0x9c] ss:$36 sps:$4 sm:$0xff]   ;;  %4614 = vst [vmem:[#allocation2 + $0xe0] sm:$0xf] %v8282_v50  ;;  %v8253_v3 = vpack.c.bf16 %v4120_v54, %v4120_v54  ;;  %9143 = vmatprep.subr.bf16.mxu0 %v9834_v44  ;;  %v3623_v44 = vadd.f32 %v11878_v8, %v11580_v40  ;;  %v8222_v40 = vpack.c.bf16 %v11691_v41, %v11691_v41 }
 0x27a   : > { %4615 = vst [vmem:[#allocation2 + $0x104] sm:$0xf] %v8283_v6  ;;  %4884 = vst [vmem:[#allocation2 + $0x68] sm:$0xf] %v8282_v50  ;;  %v11910_v24 = vld [vmem:[#allocation3 + $0x128] sm:$0xff]  ;;  %v3742_v25 = vmax.f32 %v3710_v52, 0.0  ;;  %6595 = vmatprep.mubr.bf16.mxu0 %v9717_v51 }
 0x27b   : > { %4885 = vst [vmem:[#allocation2 + $0x8c] sm:$0xf] %v8283_v6  ;;  %4749 = vst [vmem:[#allocation2 + $0xa4] sm:$0xf] %v8282_v50  ;;  %v11912_v55 = vld [vmem:[#allocation3 + $0x130] sm:$0x3]  ;;  %6596 = vmatmul.mubr.bf16.gmra.mxu0 %v9715_v47  ;;  %v3672_v26 = vmul.f32 %v11461_v20, %v3623_v44 }
 0x27c   : > { %4750 = vst [vmem:[#allocation2 + $0xc8] sm:$0xf] %v8283_v6  ;;  %v4157_v57 = vrot.slane %v11910_v24, 1  ;;  %v4159_v4 = vrot.slane %v11912_v55, 1  ;;  %v4429_v22 = vrot.slane %v11910_v24, 2  ;;  %v4431_v50 = vrot.slane %v11912_v55, 2  ;;  %9144 = vmatpush3.bf16.msra.mxu0 %v9835_v10 }
 0x27d   : > { %v11921_v6 = vld [vmem:[#allocation3 + $0x110] sm:$0xff]  ;;  %v11923_v61 = vld [vmem:[#allocation3 + $0x118] sm:$0x3]  ;;  %3826 = vst [vmem:[#allocation3 + $0x139] sm:$0xff] %v3739_v38  ;;  %3829 = vst [vmem:[#allocation3 + $0x159] sm:$0xff] %v3742_v25  ;;  %v3740_v46 = vmax.f32 %v3708_v7, 0.0  ;;  %v3675_v38 = vmul.f32 %v11461_v20, %v3634_v39  ;;  %v3711_v7 = vadd.f32 %v11478_v21, %v3672_v26 }
 0x27e   : > { %4344 = vst [vmem:[#allocation2 + $0x124] sm:$0xf] %v8252_v11  ;;  %4345 = vst [vmem:[#allocation2 + $0x148] sm:$0xf] %v8253_v3  ;;  %v4152_v52 = vrot.slane %v11921_v6, 1  ;;  %v4154_v17 = vrot.slane %v11923_v61, 1 }
 0x27f   : > { %4704 = vst [vmem:[#allocation2 + $0xe8] sm:$0xf] %v8252_v11  ;;  %4705 = vst [vmem:[#allocation2 + $0x10c] sm:$0xf] %v8253_v3  ;;  %v4424_v47 = vrot.slane %v11921_v6, 2  ;;  %v4426_v37 = vrot.slane %v11923_v61, 2 }
 0x280   : > { %4839 = vst [vmem:[#allocation2 + $0xac] sm:$0xf] %v8252_v11  ;;  %4840 = vst [vmem:[#allocation2 + $0xd0] sm:$0xf] %v8253_v3  ;;  %v11934_v54 = vld [vmem:[#allocation3 + $0x150] sm:$0xff]  ;;  %v3745_v11 = vmax.f32 %v3713_v48, 0.0  ;;  %v8223_v3 = vpack.c.bf16 %v11715_v59, %v11715_v59 }
 0x281   : > { %v9721_v51 = vld [vmem:[#allocation2 + $0xdc] ss:$36 sps:$4 sm:$0xff]   ;;  %3827 = vst [vmem:[#allocation3 + $0x141] sm:$0xff] %v3740_v46  ;;  %v13020_v10 = vrot.slane %v11643_v34, 2  ;;  %v13021_v39 = vrot.slane %v11624_v23, 2  ;;  %v13022_v48 = vrot.slane %v11645_v35, 2  ;;  %v3626_v23 = vadd.f32 %v3625_v36, %v11583_v18 }
 0x282   : > { %v9719_v25 = vld [vmem:[#allocation2 + $0xd8] ss:$36 sps:$4 sm:$0xff]   ;;  %6442 = vmatprep.mubr.bf16.mxu1 %v9721_v51  ;;  %v9947_v20 = vld [vmem:[%s12880_s3] ss:$0 sm:$0xff]  ;;  %4656 = vst [vmem:[#allocation2 + $0x12c] sm:$0xf] %v8222_v40 }
 0x283   : > { %v3714_v44 = vadd.f32 %v9947_v20, %v3675_v38  ;;  %v4390_v1 = vsel %vm813_vm1, %v13021_v39, %v13020_v10  ;;  %v13023_v8 = vmov %v13020_v10  ;;  %4026 = vst [vmem:[#allocation2 + $0x168] sm:$0xf] %v8222_v40  ;;  %4791 = vst [vmem:[#allocation2 + $0xf0] sm:$0xf] %v8222_v40  ;;  %v9725_v21 = vld [vmem:[#allocation2 + $0xe4] ss:$36 sps:$4 sm:$0xff]   ;;  %6443 = vmatmul.mubr.bf16.gmra.mxu1 %v9719_v25 }
 0x284   : > { %v4392_v51 = vsel %vm813_vm1, %v13023_v8, %v13022_v48  ;;  %3832 = vst [vmem:[#allocation3 + $0x181] sm:$0xff] %v3745_v11  ;;  %v8284_v46 = vpack.c.bf16 %v4390_v1, %v4390_v1  ;;  %4657 = vst [vmem:[#allocation2 + $0x150] sm:$0xf] %v8223_v3  ;;  %v13024_v35 = vrot.slane %v11691_v41, 1  ;;  %v9723_v38 = vld [vmem:[#allocation2 + $0xe0] ss:$36 sps:$4 sm:$0xff]   ;;  %v4125_v40 = vsel %vm540_vm0, %v4122_v49, %v4124_v0 }
 0x285   : > { %v8285_v26 = vpack.c.bf16 %v4392_v51, %v4392_v51  ;;  %4027 = vst [vmem:[#allocation2 + $0x18c] sm:$0xf] %v8223_v3  ;;  %4792 = vst [vmem:[#allocation2 + $0x114] sm:$0xf] %v8223_v3  ;;  %v3743_v8 = vmax.f32 %v3711_v7, 0.0  ;;  %v3746_v10 = vmax.f32 %v3714_v44, 0.0  ;;  %6603 = vmatprep.mubr.bf16.mxu0 %v9725_v21  ;;  %v8224_v0 = vpack.c.bf16 %v11678_v15, %v11678_v15 }
 0x286   : > { %v4123_v34 = vsel %vm540_vm0, %v13024_v35, %v4122_v49  ;;  %v11969_v25 = vld [vmem:[#allocation3 + $0x138] sm:$0xff]  ;;  %v11973_v18 = vld [vmem:[#allocation3 + $0x160] sm:$0x3]  ;;  %4616 = vst [vmem:[#allocation2 + $0x128] sm:$0xf] %v8284_v46  ;;  %v8255_v49 = vpack.c.bf16 %v4125_v40, %v4125_v40  ;;  %v8225_v7 = vpack.c.bf16 %v11705_v53, %v11705_v53  ;;  %6604 = vmatmul.mubr.bf16.gmra.mxu0 %v9723_v38  ;;  %v13025_v35 = vrot.slane %v11715_v59, 2 }
 0x287   : > { %v8254_v1 = vpack.c.bf16 %v4123_v34, %v4123_v34  ;;  %v11971_v11 = vld [vmem:[#allocation3 + $0x158] sm:$0xff]  ;;  %4617 = vst [vmem:[#allocation2 + $0x14c] sm:$0xf] %v8285_v26  ;;  %4751 = vst [vmem:[#allocation2 + $0xec] sm:$0xf] %v8284_v46  ;;  %v4161_v44 = vrot.slane %v11969_v25, 1 }
 0x288   : > { %4752 = vst [vmem:[#allocation2 + $0x110] sm:$0xf] %v8285_v26  ;;  %4886 = vst [vmem:[#allocation2 + $0xb0] sm:$0xf] %v8284_v46  ;;  %v9948_v36 = vld [vmem:[%s12879_s2] ss:$0 sm:$0xff]  ;;  %v13027_v38 = vmov %v13025_v35 }
 0x289   : > { %4887 = vst [vmem:[#allocation2 + $0xd4] sm:$0xf] %v8285_v26  ;;  %v3673_v3 = vmul.f32 %v9948_v36, %v3626_v23  ;;  %v4433_v39 = vrot.slane %v11969_v25, 2  ;;  %3830 = vst [vmem:[#allocation3 + $0x169] sm:$0xff] %v3743_v8  ;;  %v9728_v26 = vld [vmem:[#allocation2 + $0x124] ss:$36 sps:$4 sm:$0xff]  }
 0x28a   : > { %3833 = vst [vmem:[#allocation3 + $0x189] sm:$0xff] %v3746_v10  ;;  %4346 = vst [vmem:[#allocation2 + $0x16c] sm:$0xf] %v8254_v1  ;;  %v13026_v34 = vrot.slane %v11691_v41, 2  ;;  %v13028_v40 = vrot.slane %v11705_v53, 1  ;;  %v13030_v36 = vrot.slane %v11707_v27, 1  ;;  %6450 = vmatprep.mubr.bf16.mxu1 %v9728_v26 }
 0x28b   : > { %4706 = vst [vmem:[#allocation2 + $0x130] sm:$0xf] %v8254_v1  ;;  %4841 = vst [vmem:[#allocation2 + $0xf4] sm:$0xf] %v8254_v1  ;;  %v3712_v23 = vadd.f32 %v9947_v20, %v3673_v3  ;;  %v4397_v20 = vsel %vm813_vm1, %v13027_v38, %v4396_v33  ;;  %v13029_v1 = vrot.slane %v11678_v15, 1  ;;  %v12016_v46 = vld [vmem:[#allocation3 + $0x180] sm:$0xff] }
 0x28c   : > { %4347 = vst [vmem:[#allocation2 + $0x190] sm:$0xf] %v8255_v49  ;;  %4707 = vst [vmem:[#allocation2 + $0x154] sm:$0xf] %v8255_v49  ;;  %v4395_v8 = vsel %vm813_vm1, %v13026_v34, %v13025_v35  ;;  %v13031_v3 = vmov %v13028_v40  ;;  %v12010_v32 = vld [vmem:[#allocation3 + $0x148] sm:$0x3] }
 0x28d   : > { %4842 = vst [vmem:[#allocation2 + $0x118] sm:$0xf] %v8255_v49  ;;  %4658 = vst [vmem:[#allocation2 + $0x174] sm:$0xf] %v8224_v0  ;;  %v8286_v10 = vpack.c.bf16 %v4395_v8, %v4395_v8  ;;  %v4128_v41 = vsel %vm540_vm0, %v13029_v1, %v13028_v40  ;;  %v4130_v49 = vsel %vm540_vm0, %v13031_v3, %v13030_v36  ;;  %v9726_v59 = vld [vmem:[#allocation2 + $0x120] ss:$36 sps:$4 sm:$0xff]  }
 0x28e   : > { %4659 = vst [vmem:[#allocation2 + $0x198] sm:$0xf] %v8225_v7  ;;  %4028 = vst [vmem:[#allocation2 + $0x1b0] sm:$0xf] %v8224_v0  ;;  %v3744_v33 = vmax.f32 %v3712_v23, 0.0  ;;  %v8256_v35 = vpack.c.bf16 %v4128_v41, %v4128_v41  ;;  %v8257_v34 = vpack.c.bf16 %v4130_v49, %v4130_v49  ;;  %v4164_v38 = vrot.slane %v12010_v32, 1  ;;  %6451 = vmatmul.mubr.bf16.gmra.mxu1 %v9726_v59 }
 0x28f   : > { %4029 = vst [vmem:[#allocation2 + $0x1d4] sm:$0xf] %v8225_v7  ;;  %4793 = vst [vmem:[#allocation2 + $0x138] sm:$0xf] %v8224_v0  ;;  %v12008_v0 = vld [vmem:[#allocation3 + $0x140] sm:$0xff]  ;;  %v4436_v1 = vrot.slane %v12010_v32, 2  ;;  %v8226_v23 = vpack.c.bf16 %v11754_v28, %v11754_v28 }
 0x290   : > { %4794 = vst [vmem:[#allocation2 + $0x15c] sm:$0xf] %v8225_v7  ;;  %v8287_v7 = vpack.c.bf16 %v4397_v20, %v4397_v20  ;;  %v4162_v8 = vrot.slane %v12008_v0, 1  ;;  %v4434_v40 = vrot.slane %v12008_v0, 2  ;;  %4618 = vst [vmem:[#allocation2 + $0x170] sm:$0xf] %v8286_v10  ;;  %v8227_v20 = vpack.c.bf16 %v11771_v31, %v11771_v31 }
 0x291   : > { %4753 = vst [vmem:[#allocation2 + $0x134] sm:$0xf] %v8286_v10  ;;  %4888 = vst [vmem:[#allocation2 + $0xf8] sm:$0xf] %v8286_v10  ;;  %v13032_v10 = vrot.slane %v11705_v53, 2  ;;  %v13033_v41 = vrot.slane %v11678_v15, 2 }
 0x292   : > { %3831 = vst [vmem:[#allocation3 + $0x171] sm:$0xff] %v3744_v33  ;;  %4619 = vst [vmem:[#allocation2 + $0x194] sm:$0xf] %v8287_v7  ;;  %v13034_v49 = vrot.slane %v11707_v27, 2  ;;  %v13038_v26 = vrot.slane %v11783_v58, 1  ;;  %v12044_v21 = vld [vmem:[#allocation3 + $0x168] sm:$0xff]  ;;  %v4165_v55 = vsel %vm540_vm0, %v4162_v8, %v4164_v38  ;;  %v4437_v38 = vsel %vm813_vm1, %v4434_v40, %v4436_v1 }
 0x293   : > { %4754 = vst [vmem:[#allocation2 + $0x158] sm:$0xf] %v8287_v7  ;;  %4889 = vst [vmem:[#allocation2 + $0x11c] sm:$0xf] %v8287_v7  ;;  %v4400_v3 = vsel %vm813_vm1, %v13033_v41, %v13032_v10  ;;  %v13035_v59 = vmov %v13032_v10  ;;  %v13036_v7 = vrot.slane %v11771_v31, 1  ;;  %v12046_v10 = vld [vmem:[#allocation3 + $0x188] sm:$0xff] }
 0x294   : > { %4348 = vst [vmem:[#allocation2 + $0x1b4] sm:$0xf] %v8256_v35  ;;  %4349 = vst [vmem:[#allocation2 + $0x1d8] sm:$0xf] %v8257_v34  ;;  %v4402_v33 = vsel %vm813_vm1, %v13035_v59, %v13034_v49  ;;  %v12048_v27 = vld [vmem:[#allocation3 + $0x190] sm:$0x3]  ;;  %v8288_v53 = vpack.c.bf16 %v4400_v3, %v4400_v3 }
 0x295   : > { %4708 = vst [vmem:[#allocation2 + $0x178] sm:$0xf] %v8256_v35  ;;  %4709 = vst [vmem:[#allocation2 + $0x19c] sm:$0xf] %v8257_v34  ;;  %v13039_v36 = vmov %v13036_v7  ;;  %v8289_v41 = vpack.c.bf16 %v4402_v33, %v4402_v33  ;;  %v9731_v51 = vld [vmem:[#allocation2 + $0x12c] ss:$36 sps:$4 sm:$0xff]  }
 0x296   : > { %4843 = vst [vmem:[#allocation2 + $0x13c] sm:$0xf] %v8256_v35  ;;  %4844 = vst [vmem:[#allocation2 + $0x160] sm:$0xf] %v8257_v34  ;;  %v13037_v35 = vrot.slane %v11754_v28, 1  ;;  %v4135_v15 = vsel %vm540_vm0, %v13039_v36, %v13038_v26  ;;  %6611 = vmatprep.mubr.bf16.mxu0 %v9731_v51  ;;  %v13041_v33 = vrot.slane %v11754_v28, 2 }
 0x297   : > { %4660 = vst [vmem:[#allocation2 + $0x1bc] sm:$0xf] %v8226_v23  ;;  %4661 = vst [vmem:[#allocation2 + $0x1e0] sm:$0xf] %v8227_v20  ;;  %v8259_v59 = vpack.c.bf16 %v4135_v15, %v4135_v15  ;;  %v9729_v48 = vld [vmem:[#allocation2 + $0x128] ss:$36 sps:$4 sm:$0xff]  }
 0x298   : > { %v4133_v34 = vsel %vm540_vm0, %v13037_v35, %v13036_v7  ;;  %4030 = vst [vmem:[#allocation2 + $0x1f8] sm:$0xf] %v8226_v23  ;;  %4031 = vst [vmem:[#allocation2 + $0x21c] sm:$0xf] %v8227_v20  ;;  %v13040_v15 = vrot.slane %v11771_v31, 2  ;;  %v13045_v35 = vrot.slane %v11735_v13, 1  ;;  %6612 = vmatmul.mubr.bf16.gmra.mxu0 %v9729_v48  ;;  %v8231_v48 = vpack.c.bf16 %v11836_v60, %v11836_v60 }
 0x299   : > { %4795 = vst [vmem:[#allocation2 + $0x180] sm:$0xf] %v8226_v23  ;;  %4796 = vst [vmem:[#allocation2 + $0x1a4] sm:$0xf] %v8227_v20  ;;  %v8258_v49 = vpack.c.bf16 %v4133_v34, %v4133_v34  ;;  %v8228_v23 = vpack.c.bf16 %v11735_v13, %v11735_v13  ;;  %v8229_v20 = vpack.c.bf16 %v11767_v62, %v11767_v62  ;;  %v9735_v34 = vld [vmem:[#allocation2 + $0x16c] ss:$36 sps:$4 sm:$0xff]  }
 0x29a   : > { %4620 = vst [vmem:[#allocation2 + $0x1b8] sm:$0xf] %v8288_v53  ;;  %4621 = vst [vmem:[#allocation2 + $0x1dc] sm:$0xf] %v8289_v41  ;;  %v13043_v3 = vmov %v13040_v15  ;;  %v13046_v51 = vrot.slane %v11769_v56, 1  ;;  %6458 = vmatprep.mubr.bf16.mxu1 %v9735_v34 }
 0x29b   : > { %4755 = vst [vmem:[#allocation2 + $0x17c] sm:$0xf] %v8288_v53  ;;  %4756 = vst [vmem:[#allocation2 + $0x1a0] sm:$0xf] %v8289_v41  ;;  %v9733_v7 = vld [vmem:[#allocation2 + $0x168] ss:$36 sps:$4 sm:$0xff]  }
 0x29c   : > { %4890 = vst [vmem:[#allocation2 + $0x140] sm:$0xf] %v8288_v53  ;;  %4891 = vst [vmem:[#allocation2 + $0x164] sm:$0xf] %v8289_v41  ;;  %v4405_v53 = vsel %vm813_vm1, %v13041_v33, %v13040_v15  ;;  %v13042_v41 = vrot.slane %v11783_v58, 2  ;;  %v12080_v15 = vld [vmem:[#allocation3 + $0x170] sm:$0xff]  ;;  %6459 = vmatmul.mubr.bf16.gmra.mxu1 %v9733_v7 }
 0x29d   : > { %4350 = vst [vmem:[#allocation2 + $0x1fc] sm:$0xf] %v8258_v49  ;;  %4351 = vst [vmem:[#allocation2 + $0x220] sm:$0xf] %v8259_v59  ;;  %v8290_v33 = vpack.c.bf16 %v4405_v53, %v4405_v53  ;;  %v13048_v53 = vrot.slane %v11767_v62, 2  ;;  %v4172_v34 = vrot.slane %v12080_v15, 1 }
 0x29e   : > { %4710 = vst [vmem:[#allocation2 + $0x1c0] sm:$0xf] %v8258_v49  ;;  %4711 = vst [vmem:[#allocation2 + $0x1e4] sm:$0xf] %v8259_v59  ;;  %v13052_v7 = vrot.slane %v11807_v2, 1 }
 0x29f   : > { %4845 = vst [vmem:[#allocation2 + $0x184] sm:$0xf] %v8258_v49  ;;  %4846 = vst [vmem:[#allocation2 + $0x1a8] sm:$0xf] %v8259_v59  ;;  %v4407_v49 = vsel %vm813_vm1, %v13043_v3, %v13042_v41  ;;  %v13044_v59 = vrot.slane %v11767_v62, 1  ;;  %v13049_v41 = vrot.slane %v11735_v13, 2 }
 0x2a0   : > { %v8291_v58 = vpack.c.bf16 %v4407_v49, %v4407_v49  ;;  %4662 = vst [vmem:[#allocation2 + $0x204] sm:$0xf] %v8228_v23  ;;  %4663 = vst [vmem:[#allocation2 + $0x228] sm:$0xf] %v8229_v20  ;;  %v9739_v13 = vld [vmem:[#allocation2 + $0x174] ss:$36 sps:$4 sm:$0xff]  }
 0x2a1   : > { %v4138_v26 = vsel %vm540_vm0, %v13045_v35, %v13044_v59  ;;  %v13047_v36 = vmov %v13044_v59  ;;  %4032 = vst [vmem:[#allocation2 + $0x240] sm:$0xf] %v8228_v23  ;;  %4033 = vst [vmem:[#allocation2 + $0x264] sm:$0xf] %v8229_v20  ;;  %v12082_v35 = vld [vmem:[#allocation3 + $0x178] sm:$0x3]  ;;  %6619 = vmatprep.mubr.bf16.mxu0 %v9739_v13 }
 0x2a2   : > { %v4140_v28 = vsel %vm540_vm0, %v13047_v36, %v13046_v51  ;;  %4797 = vst [vmem:[#allocation2 + $0x1c8] sm:$0xf] %v8228_v23  ;;  %4798 = vst [vmem:[#allocation2 + $0x1ec] sm:$0xf] %v8229_v20  ;;  %v8260_v31 = vpack.c.bf16 %v4138_v26, %v4138_v26  ;;  %v8230_v36 = vpack.c.bf16 %v11807_v2, %v11807_v2  ;;  %v13050_v26 = vrot.slane %v11769_v56, 2 }
 0x2a3   : > { %v8261_v3 = vpack.c.bf16 %v4140_v28, %v4140_v28  ;;  %v4410_v23 = vsel %vm813_vm1, %v13049_v41, %v13048_v53  ;;  %v13051_v20 = vmov %v13048_v53  ;;  %v4174_v59 = vrot.slane %v12082_v35, 1  ;;  %4622 = vst [vmem:[#allocation2 + $0x200] sm:$0xf] %v8290_v33  ;;  %4623 = vst [vmem:[#allocation2 + $0x224] sm:$0xf] %v8291_v58 }
 0x2a4   : > { %v4412_v49 = vsel %vm813_vm1, %v13051_v20, %v13050_v26  ;;  %v4444_v51 = vrot.slane %v12080_v15, 2  ;;  %v4446_v28 = vrot.slane %v12082_v35, 2  ;;  %4757 = vst [vmem:[#allocation2 + $0x1c4] sm:$0xf] %v8290_v33  ;;  %4758 = vst [vmem:[#allocation2 + $0x1e8] sm:$0xf] %v8291_v58  ;;  %v8292_v62 = vpack.c.bf16 %v4410_v23, %v4410_v23 }
 0x2a5   : > { %4892 = vst [vmem:[#allocation2 + $0x188] sm:$0xf] %v8290_v33  ;;  %4893 = vst [vmem:[#allocation2 + $0x1ac] sm:$0xf] %v8291_v58  ;;  %v8293_v56 = vpack.c.bf16 %v4412_v49, %v4412_v49  ;;  %v4143_v33 = vsel %vm540_vm0, %v13052_v7, %v4142_v43  ;;  %v13053_v58 = vrot.slane %v11838_v14, 1  ;;  %v8232_v23 = vpack.c.bf16 %v11805_v30, %v11805_v30 }
 0x2a6   : > { %4352 = vst [vmem:[#allocation2 + $0x244] sm:$0xf] %v8260_v31  ;;  %4353 = vst [vmem:[#allocation2 + $0x268] sm:$0xf] %v8261_v3  ;;  %v8262_v53 = vpack.c.bf16 %v4143_v33, %v4143_v33  ;;  %v13055_v26 = vrot.slane %v11838_v14, 2  ;;  %v13056_v49 = vrot.slane %v11823_v29, 1 }
 0x2a7   : > { %4712 = vst [vmem:[#allocation2 + $0x208] sm:$0xf] %v8260_v31  ;;  %4713 = vst [vmem:[#allocation2 + $0x22c] sm:$0xf] %v8261_v3  ;;  %v13057_v13 = vrot.slane %v11805_v30, 1  ;;  %v13074_v35 = vrot.slane %v12046_v10, 1 }
 0x2a8   : > { %4847 = vst [vmem:[#allocation2 + $0x1cc] sm:$0xf] %v8260_v31  ;;  %4848 = vst [vmem:[#allocation2 + $0x1f0] sm:$0xf] %v8261_v3  ;;  %v4145_v31 = vsel %vm540_vm0, %v4142_v43, %v13053_v58  ;;  %v9742_v3 = vld [vmem:[#allocation2 + $0x1b4] ss:$36 sps:$4 sm:$0xff]   ;;  %v4417_v20 = vsel %vm813_vm1, %v4414_v63, %v13055_v26 }
 0x2a9   : > { %4664 = vst [vmem:[#allocation2 + $0x24c] sm:$0xf] %v8230_v36  ;;  %4665 = vst [vmem:[#allocation2 + $0x270] sm:$0xf] %v8231_v48  ;;  %v8263_v41 = vpack.c.bf16 %v4145_v31, %v4145_v31  ;;  %v13054_v43 = vrot.slane %v11807_v2, 2  ;;  %v4148_v7 = vsel %vm540_vm0, %v13057_v13, %v13056_v49  ;;  %6466 = vmatprep.mubr.bf16.mxu1 %v9742_v3  ;;  %v13062_v26 = vrot.slane %v11825_v42, 2 }
 0x2aa   : > { %4034 = vst [vmem:[#allocation2 + $0x288] sm:$0xf] %v8230_v36  ;;  %4035 = vst [vmem:[#allocation2 + $0x2ac] sm:$0xf] %v8231_v48  ;;  %v9737_v33 = vld [vmem:[#allocation2 + $0x170] ss:$36 sps:$4 sm:$0xff]   ;;  %v8295_v14 = vpack.c.bf16 %v4417_v20, %v4417_v20  ;;  %v8234_v3 = vpack.c.bf16 %v11892_v12, %v11892_v12  ;;  %v4160_v12 = vsel %vm540_vm0, %v4157_v57, %v4159_v4 }
 0x2ab   : > { %4799 = vst [vmem:[#allocation2 + $0x210] sm:$0xf] %v8230_v36  ;;  %4800 = vst [vmem:[#allocation2 + $0x234] sm:$0xf] %v8231_v48  ;;  %v8233_v36 = vpack.c.bf16 %v11823_v29, %v11823_v29  ;;  %v4415_v48 = vsel %vm813_vm1, %v13054_v43, %v4414_v63  ;;  %v8264_v63 = vpack.c.bf16 %v4148_v7, %v4148_v7  ;;  %v9745_v31 = vld [vmem:[#allocation2 + $0x1bc] ss:$36 sps:$4 sm:$0xff]   ;;  %6620 = vmatmul.mubr.bf16.gmra.mxu0 %v9737_v33 }
 0x2ac   : > { %4624 = vst [vmem:[#allocation2 + $0x248] sm:$0xf] %v8292_v62  ;;  %4625 = vst [vmem:[#allocation2 + $0x26c] sm:$0xf] %v8293_v56  ;;  %v8294_v60 = vpack.c.bf16 %v4415_v48, %v4415_v48  ;;  %v8235_v43 = vpack.c.bf16 %v11921_v6, %v11921_v6  ;;  %v9740_v20 = vld [vmem:[#allocation2 + $0x1b0] ss:$36 sps:$4 sm:$0xff]   ;;  %6627 = vmatprep.mubr.bf16.mxu0 %v9745_v31  ;;  %v8269_v61 = vpack.c.bf16 %v4160_v12, %v4160_v12 }
 0x2ad   : > { %4759 = vst [vmem:[#allocation2 + $0x20c] sm:$0xf] %v8292_v62  ;;  %4760 = vst [vmem:[#allocation2 + $0x230] sm:$0xf] %v8293_v56  ;;  %v9749_v13 = vld [vmem:[#allocation2 + $0x1fc] ss:$36 sps:$4 sm:$0xff]   ;;  %6467 = vmatmul.mubr.bf16.gmra.mxu1 %v9740_v20  ;;  %v8239_v4 = vpack.c.bf16 %v12008_v0, %v12008_v0  ;;  %v8271_v33 = vpack.c.bf16 %v4165_v55, %v4165_v55  ;;  %v8303_v0 = vpack.c.bf16 %v4437_v38, %v4437_v38 }
 0x2ae   : > { %4894 = vst [vmem:[#allocation2 + $0x1d0] sm:$0xf] %v8292_v62  ;;  %4895 = vst [vmem:[#allocation2 + $0x1f4] sm:$0xf] %v8293_v56  ;;  %v13058_v62 = vrot.slane %v11825_v42, 1  ;;  %v13059_v56 = vmov %v13056_v49  ;;  %v4155_v49 = vsel %vm540_vm0, %v4152_v52, %v4154_v17  ;;  %v4427_v17 = vsel %vm813_vm1, %v4424_v47, %v4426_v37  ;;  %6474 = vmatprep.mubr.bf16.mxu1 %v9749_v13 }
 0x2af   : > { %4354 = vst [vmem:[#allocation2 + $0x28c] sm:$0xf] %v8262_v53  ;;  %4355 = vst [vmem:[#allocation2 + $0x2b0] sm:$0xf] %v8263_v41  ;;  %v8299_v6 = vpack.c.bf16 %v4427_v17, %v4427_v17  ;;  %v4432_v37 = vsel %vm813_vm1, %v4429_v22, %v4431_v50  ;;  %v9756_v1 = vld [vmem:[#allocation2 + $0x244] ss:$36 sps:$4 sm:$0xff]   ;;  %v8309_v17 = vpack.c.bf16 %v12046_v10, %v12046_v10  ;;  %v13077_v12 = vmov %v13074_v35 }
 0x2b0   : > { %v4150_v2 = vsel %vm540_vm0, %v13059_v56, %v13058_v62  ;;  %4714 = vst [vmem:[#allocation2 + $0x250] sm:$0xf] %v8262_v53  ;;  %4715 = vst [vmem:[#allocation2 + $0x274] sm:$0xf] %v8263_v41  ;;  %v8267_v62 = vpack.c.bf16 %v4155_v49, %v4155_v49  ;;  %v8236_v56 = vpack.c.bf16 %v11864_v9, %v11864_v9  ;;  %v13070_v20 = vrot.slane %v11973_v18, 2 }
 0x2b1   : > { %4849 = vst [vmem:[#allocation2 + $0x214] sm:$0xf] %v8262_v53  ;;  %4850 = vst [vmem:[#allocation2 + $0x238] sm:$0xf] %v8263_v41  ;;  %v8265_v58 = vpack.c.bf16 %v4150_v2, %v4150_v2  ;;  %v13060_v53 = vrot.slane %v11823_v29, 2  ;;  %v13061_v41 = vrot.slane %v11805_v30, 2  ;;  %v4153_v29 = vsel %vm540_vm0, %v4151_v19, %v4152_v52 }
 0x2b2   : > { %4666 = vst [vmem:[#allocation2 + $0x294] sm:$0xf] %v8232_v23  ;;  %4667 = vst [vmem:[#allocation2 + $0x2b8] sm:$0xf] %v8233_v36  ;;  %v8266_v7 = vpack.c.bf16 %v4153_v29, %v4153_v29  ;;  %v8237_v19 = vpack.c.bf16 %v11910_v24, %v11910_v24  ;;  %v4425_v52 = vsel %vm813_vm1, %v4423_v45, %v4424_v47  ;;  %v9754_v55 = vld [vmem:[#allocation2 + $0x240] ss:$36 sps:$4 sm:$0xff]  }
 0x2b3   : > { %4036 = vst [vmem:[#allocation2 + $0x2d0] sm:$0xf] %v8232_v23  ;;  %4037 = vst [vmem:[#allocation2 + $0x2f4] sm:$0xf] %v8233_v36  ;;  %v4420_v48 = vsel %vm813_vm1, %v13061_v41, %v13060_v53  ;;  %v4158_v2 = vsel %vm540_vm0, %v4156_v5, %v4157_v57  ;;  %v8298_v45 = vpack.c.bf16 %v4425_v52, %v4425_v52 }
 0x2b4   : > { %4801 = vst [vmem:[#allocation2 + $0x258] sm:$0xf] %v8232_v23  ;;  %4802 = vst [vmem:[#allocation2 + $0x27c] sm:$0xf] %v8233_v36  ;;  %v13063_v23 = vmov %v13060_v53  ;;  %v8296_v30 = vpack.c.bf16 %v4420_v48, %v4420_v48  ;;  %v8268_v5 = vpack.c.bf16 %v4158_v2, %v4158_v2  ;;  %v8238_v57 = vpack.c.bf16 %v11969_v25, %v11969_v25  ;;  %v9747_v53 = vld [vmem:[#allocation2 + $0x1f8] ss:$36 sps:$4 sm:$0xff]  }
 0x2b5   : > { %v4422_v36 = vsel %vm813_vm1, %v13063_v23, %v13062_v26  ;;  %4626 = vst [vmem:[#allocation2 + $0x290] sm:$0xf] %v8294_v60  ;;  %4627 = vst [vmem:[#allocation2 + $0x2b4] sm:$0xf] %v8295_v14  ;;  %v4430_v47 = vsel %vm813_vm1, %v4428_v16, %v4429_v22  ;;  %v8301_v16 = vpack.c.bf16 %v4432_v37, %v4432_v37  ;;  %v9743_v22 = vld [vmem:[#allocation2 + $0x1b8] ss:$36 sps:$4 sm:$0xff]   ;;  %6475 = vmatmul.mubr.bf16.gmra.mxu1 %v9747_v53 }
 0x2b6   : > { %4761 = vst [vmem:[#allocation2 + $0x254] sm:$0xf] %v8294_v60  ;;  %4762 = vst [vmem:[#allocation2 + $0x278] sm:$0xf] %v8295_v14  ;;  %v8297_v42 = vpack.c.bf16 %v4422_v36, %v4422_v36  ;;  %v8300_v9 = vpack.c.bf16 %v4430_v47, %v4430_v47  ;;  %v4163_v24 = vsel %vm540_vm0, %v4161_v44, %v4162_v8  ;;  %6628 = vmatmul.mubr.bf16.gmra.mxu0 %v9743_v22  ;;  %v9751_v37 = vld [vmem:[#allocation2 + $0x200] ss:$36 sps:$4 sm:$0xff]  }
 0x2b7   : > { %4896 = vst [vmem:[#allocation2 + $0x218] sm:$0xf] %v8294_v60  ;;  %4897 = vst [vmem:[#allocation2 + $0x23c] sm:$0xf] %v8295_v14  ;;  %v8270_v50 = vpack.c.bf16 %v4163_v24, %v4163_v24  ;;  %v8240_v60 = vpack.c.bf16 %v11934_v54, %v11934_v54  ;;  %v8241_v44 = vpack.c.bf16 %v11971_v11, %v11971_v11  ;;  %v9753_v14 = vld [vmem:[#allocation2 + $0x204] ss:$36 sps:$4 sm:$0xff]   ;;  %6482 = vmatprep.mubr.bf16.mxu1 %v9756_v1 }
 0x2b8   : > { %4356 = vst [vmem:[#allocation2 + $0x2d4] sm:$0xf] %v8264_v63  ;;  %4357 = vst [vmem:[#allocation2 + $0x2f8] sm:$0xf] %v8265_v58  ;;  %v4435_v8 = vsel %vm813_vm1, %v4433_v39, %v4434_v40  ;;  %6635 = vmatprep.mubr.bf16.mxu0 %v9753_v14  ;;  %v8242_v41 = vpack.c.bf16 %v12044_v21, %v12044_v21  ;;  %v8243_v48 = vpack.c.bf16 %v12080_v15, %v12080_v15  ;;  %v9761_v24 = vld [vmem:[#allocation2 + $0x24c] ss:$36 sps:$4 sm:$0xff]  }
 0x2b9   : > { %4716 = vst [vmem:[#allocation2 + $0x298] sm:$0xf] %v8264_v63  ;;  %4717 = vst [vmem:[#allocation2 + $0x2bc] sm:$0xf] %v8265_v58  ;;  %v8302_v39 = vpack.c.bf16 %v4435_v8, %v4435_v8  ;;  %v13068_v26 = vrot.slane %v11971_v11, 2  ;;  %v13069_v23 = vrot.slane %v11934_v54, 2  ;;  %v4175_v49 = vsel %vm540_vm0, %v4172_v34, %v4174_v59  ;;  %v8809_v59 = vpop.f32.mrf.mxu1 }
 0x2ba   : > { %4851 = vst [vmem:[#allocation2 + $0x25c] sm:$0xf] %v8264_v63  ;;  %4852 = vst [vmem:[#allocation2 + $0x280] sm:$0xf] %v8265_v58  ;;  %v13064_v63 = vrot.slane %v11971_v11, 1  ;;  %v13065_v58 = vrot.slane %v11934_v54, 1 }
 0x2bb   : > { %4668 = vst [vmem:[#allocation2 + $0x2dc] sm:$0xf] %v8234_v3  ;;  %4669 = vst [vmem:[#allocation2 + $0x300] sm:$0xf] %v8235_v43  ;;  %v4440_v36 = vsel %vm813_vm1, %v13069_v23, %v13068_v26  ;;  %v13072_v11 = vrot.slane %v12044_v21, 1  ;;  %v8810_v15 = vpop.f32.mrf.mxu1  ;;  %v13076_v2 = vrot.slane %v12048_v27, 1 }
 0x2bc   : > { %4038 = vst [vmem:[#allocation2 + $0x318] sm:$0xf] %v8234_v3  ;;  %4039 = vst [vmem:[#allocation2 + $0x33c] sm:$0xf] %v8235_v43  ;;  %v4168_v31 = vsel %vm540_vm0, %v13065_v58, %v13064_v63  ;;  %v8304_v54 = vpack.c.bf16 %v4440_v36, %v4440_v36  ;;  %v9765_v22 = vld [vmem:[#allocation2 + $0x28c] ss:$36 sps:$4 sm:$0xff]  }
 0x2bd   : > { %4803 = vst [vmem:[#allocation2 + $0x2a0] sm:$0xf] %v8234_v3  ;;  %4804 = vst [vmem:[#allocation2 + $0x2c4] sm:$0xf] %v8235_v43  ;;  %v13066_v3 = vrot.slane %v11973_v18, 1  ;;  %v13067_v43 = vmov %v13064_v63  ;;  %v8272_v32 = vpack.c.bf16 %v4168_v31, %v4168_v31  ;;  %v4173_v18 = vsel %vm540_vm0, %v13072_v11, %v4172_v34  ;;  %6483 = vmatmul.mubr.bf16.gmra.mxu1 %v9754_v55 }
 0x2be   : > { %4628 = vst [vmem:[#allocation2 + $0x2d8] sm:$0xf] %v8296_v30  ;;  %4629 = vst [vmem:[#allocation2 + $0x2fc] sm:$0xf] %v8297_v42  ;;  %v8274_v13 = vpack.c.bf16 %v4173_v18, %v4173_v18  ;;  %v4447_v34 = vsel %vm813_vm1, %v4444_v51, %v4446_v28  ;;  %6636 = vmatmul.mubr.bf16.gmra.mxu0 %v9751_v37  ;;  %6490 = vmatprep.mubr.bf16.mxu1 %v9765_v22  ;;  %v9767_v14 = vld [vmem:[#allocation2 + $0x290] ss:$36 sps:$4 sm:$0xff]  }
 0x2bf   : > { %4763 = vst [vmem:[#allocation2 + $0x29c] sm:$0xf] %v8296_v30  ;;  %4764 = vst [vmem:[#allocation2 + $0x2c0] sm:$0xf] %v8297_v42  ;;  %v4170_v25 = vsel %vm540_vm0, %v13067_v43, %v13066_v3  ;;  %v8307_v52 = vpack.c.bf16 %v4447_v34, %v4447_v34  ;;  %6643 = vmatprep.mubr.bf16.mxu0 %v9761_v24  ;;  %v9770_v38 = vld [vmem:[#allocation2 + $0x2d0] ss:$36 sps:$4 sm:$0xff]  }
 0x2c0   : > { %4898 = vst [vmem:[#allocation2 + $0x260] sm:$0xf] %v8296_v30  ;;  %4899 = vst [vmem:[#allocation2 + $0x284] sm:$0xf] %v8297_v42  ;;  %v8273_v40 = vpack.c.bf16 %v4170_v25, %v4170_v25  ;;  %v13071_v30 = vmov %v13068_v26  ;;  %v9829_v11 = vld [vmem:[#allocation2 + $0x1c] ss:$36 sps:$4 sm:$0xff]  }
 0x2c1   : > { %4358 = vst [vmem:[#allocation2 + $0x31c] sm:$0xf] %v8266_v7  ;;  %4359 = vst [vmem:[#allocation2 + $0x340] sm:$0xf] %v8267_v62  ;;  %v4442_v42 = vsel %vm813_vm1, %v13071_v30, %v13070_v20  ;;  %v9820_v18 = vld [vmem:[#allocation2 + $0x10] ss:$36 sps:$4 sm:$0xff]  }
 0x2c2   : > { %4718 = vst [vmem:[#allocation2 + $0x2e0] sm:$0xf] %v8266_v7  ;;  %4719 = vst [vmem:[#allocation2 + $0x304] sm:$0xf] %v8267_v62  ;;  %v8305_v29 = vpack.c.bf16 %v4442_v42, %v4442_v42  ;;  %v9777_v8 = vld [vmem:[#allocation2 + $0x2dc] ss:$36 sps:$4 sm:$0xff]  }
 0x2c3   : > { %4853 = vst [vmem:[#allocation2 + $0x2a4] sm:$0xf] %v8266_v7  ;;  %4854 = vst [vmem:[#allocation2 + $0x2c8] sm:$0xf] %v8267_v62  ;;  %v8275_v7 = vpack.c.bf16 %v4175_v49, %v4175_v49  ;;  %v13073_v62 = vrot.slane %v12044_v21, 2  ;;  %v8308_v21 = vpack.c.bf16 %v12016_v46, %v12016_v46  ;;  %v9845_v49 = vld [vmem:[%s12881_s4 + $0x230] sm:$0xff]  }
 0x2c4   : > { %4670 = vst [vmem:[#allocation2 + $0x324] sm:$0xf] %v8236_v56  ;;  %4671 = vst [vmem:[#allocation2 + $0x348] sm:$0xf] %v8237_v19  ;;  %v9779_v3 = vld [vmem:[#allocation2 + $0x318] ss:$36 sps:$4 sm:$0xff]  }
 0x2c5   : > { %4040 = vst [vmem:[#allocation2 + $0x360] sm:$0xf] %v8236_v56  ;;  %4041 = vst [vmem:[#allocation2 + $0x384] sm:$0xf] %v8237_v19  ;;  %v9775_v58 = vld [vmem:[#allocation2 + $0x2d8] ss:$36 sps:$4 sm:$0xff]  }
 0x2c6   : > { %4805 = vst [vmem:[#allocation2 + $0x2e8] sm:$0xf] %v8236_v56  ;;  %4806 = vst [vmem:[#allocation2 + $0x30c] sm:$0xf] %v8237_v19  ;;  %v4445_v56 = vsel %vm813_vm1, %v13073_v62, %v4444_v51  ;;  %v13075_v51 = vrot.slane %v12016_v46, 1  ;;  %v9858_v62 = vld [vmem:[%s12881_s4 + $0x228] sm:$0xff]  }
 0x2c7   : > { %4630 = vst [vmem:[#allocation2 + $0x320] sm:$0xf] %v8298_v45  ;;  %4631 = vst [vmem:[#allocation2 + $0x344] sm:$0xf] %v8299_v6  ;;  %v8306_v19 = vpack.c.bf16 %v4445_v56, %v4445_v56  ;;  %v9827_v56 = vld [vmem:[#allocation2 + $0x18] ss:$36 sps:$4 sm:$0xff]  }
 0x2c8   : > { %4765 = vst [vmem:[#allocation2 + $0x2e4] sm:$0xf] %v8298_v45  ;;  %4766 = vst [vmem:[#allocation2 + $0x308] sm:$0xf] %v8299_v6  ;;  %v4685_v28 = vsel %vm540_vm0, %v13075_v51, %v13074_v35  ;;  %v9781_v63 = vld [vmem:[#allocation2 + $0x31c] ss:$36 sps:$4 sm:$0xff]  }
 0x2c9   : > { %4900 = vst [vmem:[#allocation2 + $0x2a8] sm:$0xf] %v8298_v45  ;;  %4901 = vst [vmem:[#allocation2 + $0x2cc] sm:$0xf] %v8299_v6  ;;  %v4687_v45 = vsel %vm540_vm0, %v13077_v12, %v13076_v2  ;;  %v13078_v6 = vrot.slane %v12046_v10, 2  ;;  %v9897_v51 = vld [vmem:[%s12881_s4 + $0x210] sm:$0xff]  }
 0x2ca   : > { %4360 = vst [vmem:[#allocation2 + $0x364] sm:$0xf] %v8268_v5  ;;  %4361 = vst [vmem:[#allocation2 + $0x388] sm:$0xf] %v8269_v61  ;;  %v9838_v34 = vld [vmem:[#allocation2 + $0x64] ss:$36 sps:$4 sm:$0xff]  }
 0x2cb   : > { %4720 = vst [vmem:[#allocation2 + $0x328] sm:$0xf] %v8268_v5  ;;  %4721 = vst [vmem:[#allocation2 + $0x34c] sm:$0xf] %v8269_v61  ;;  %v9785_v31 = vld [vmem:[#allocation2 + $0x324] ss:$36 sps:$4 sm:$0xff]  }
 0x2cc   : > { %4855 = vst [vmem:[#allocation2 + $0x2ec] sm:$0xf] %v8268_v5  ;;  %4856 = vst [vmem:[#allocation2 + $0x310] sm:$0xf] %v8269_v61  ;;  %v13079_v5 = vrot.slane %v12016_v46, 2  ;;  %v12290_v46 = vadd.f32 %v8810_v15, %v8809_v59  ;;  %v9910_v2 = vld [vmem:[%s12881_s4 + $0x208] sm:$0xff]  }
 0x2cd   : > { %4672 = vst [vmem:[#allocation2 + $0x36c] sm:$0xf] %v8238_v57  ;;  %4673 = vst [vmem:[#allocation2 + $0x390] sm:$0xf] %v8239_v4  ;;  %v9831_v59 = vld [vmem:[#allocation2 + $0x58] ss:$36 sps:$4 sm:$0xff]  }
 0x2ce   : > { %4042 = vst [vmem:[#allocation2 + $0x3a8] sm:$0xf] %v8238_v57  ;;  %4043 = vst [vmem:[#allocation2 + $0x3cc] sm:$0xf] %v8239_v4  ;;  %v4732_v61 = vsel %vm813_vm1, %v13079_v5, %v13078_v6  ;;  %v9783_v25 = vld [vmem:[#allocation2 + $0x320] ss:$36 sps:$4 sm:$0xff]  }
 0x2cf   : > { %4807 = vst [vmem:[#allocation2 + $0x330] sm:$0xf] %v8238_v57  ;;  %4808 = vst [vmem:[#allocation2 + $0x354] sm:$0xf] %v8239_v4  ;;  %v13080_v57 = vrot.slane %v12048_v27, 2  ;;  %v13081_v4 = vmov %v13078_v6  ;;  %v8312_v27 = vpack.c.bf16 %v4732_v61, %v4732_v61  ;;  %v9923_v5 = vld [vmem:[%s12881_s4 + $0x200] sm:$0xff]  }
 0x2d0   : > { %4632 = vst [vmem:[#allocation2 + $0x368] sm:$0xf] %v8300_v9  ;;  %4633 = vst [vmem:[#allocation2 + $0x38c] sm:$0xf] %v8301_v16  ;;  %v9844_v15 = vld [vmem:[#allocation2 + $0xac] ss:$36 sps:$4 sm:$0xff]  }
 0x2d1   : > { %4767 = vst [vmem:[#allocation2 + $0x32c] sm:$0xf] %v8300_v9  ;;  %4768 = vst [vmem:[#allocation2 + $0x350] sm:$0xf] %v8301_v16  ;;  %v4734_v47 = vsel %vm813_vm1, %v13081_v4, %v13080_v57  ;;  %v9788_v43 = vld [vmem:[#allocation2 + $0x364] ss:$36 sps:$4 sm:$0xff]  }
 0x2d2   : > { %4902 = vst [vmem:[#allocation2 + $0x2f0] sm:$0xf] %v8300_v9  ;;  %4903 = vst [vmem:[#allocation2 + $0x314] sm:$0xf] %v8301_v16  ;;  %v8310_v9 = vpack.c.bf16 %v4685_v28, %v4685_v28  ;;  %v8311_v16 = vpack.c.bf16 %v4687_v45, %v4687_v45  ;;  %v8313_v10 = vpack.c.bf16 %v4734_v47, %v4734_v47  ;;  %v9839_v35 = vld [vmem:[#allocation2 + $0xa0] ss:$36 sps:$4 sm:$0xff]  }
 0x2d3   : > { %4362 = vst [vmem:[#allocation2 + $0x3ac] sm:$0xf] %v8270_v50  ;;  %4363 = vst [vmem:[#allocation2 + $0x3d0] sm:$0xf] %v8271_v33  ;;  %v9848_v28 = vld [vmem:[#allocation2 + $0xec] ss:$36 sps:$4 sm:$0xff]  }
 0x2d4   : > { %4722 = vst [vmem:[#allocation2 + $0x370] sm:$0xf] %v8270_v50  ;;  %4723 = vst [vmem:[#allocation2 + $0x394] sm:$0xf] %v8271_v33  ;;  %v9793_v53 = vld [vmem:[#allocation2 + $0x36c] ss:$36 sps:$4 sm:$0xff]  }
 0x2d5   : > { %4857 = vst [vmem:[#allocation2 + $0x334] sm:$0xf] %v8270_v50  ;;  %4858 = vst [vmem:[#allocation2 + $0x358] sm:$0xf] %v8271_v33  ;;  %v9759_v50 = vld [vmem:[#allocation2 + $0x248] ss:$36 sps:$4 sm:$0xff]  }
 0x2d6   : > { %4674 = vst [vmem:[#allocation2 + $0x3b4] sm:$0xf] %v8240_v60  ;;  %4675 = vst [vmem:[#allocation2 + $0x3d8] sm:$0xf] %v8241_v44  ;;  %v9769_v33 = vld [vmem:[#allocation2 + $0x294] ss:$36 sps:$4 sm:$0xff]   ;;  %6644 = vmatmul.mubr.bf16.gmra.mxu0 %v9759_v50 }
 0x2d7   : > { %4044 = vst [vmem:[#allocation2 + $0x3f0] sm:$0xf] %v8240_v60  ;;  %4045 = vst [vmem:[#allocation2 + $0x414] sm:$0xf] %v8241_v44  ;;  %6651 = vmatprep.mubr.bf16.mxu0 %v9769_v33  ;;  %v9795_v1 = vld [vmem:[#allocation2 + $0x3a8] ss:$36 sps:$4 sm:$0xff]  }
 0x2d8   : > { %4809 = vst [vmem:[#allocation2 + $0x378] sm:$0xf] %v8240_v60  ;;  %4810 = vst [vmem:[#allocation2 + $0x39c] sm:$0xf] %v8241_v44  ;;  %v9763_v60 = vld [vmem:[#allocation2 + $0x288] ss:$36 sps:$4 sm:$0xff]  }
 0x2d9   : > { %4634 = vst [vmem:[#allocation2 + $0x3b0] sm:$0xf] %v8302_v39  ;;  %4635 = vst [vmem:[#allocation2 + $0x3d4] sm:$0xf] %v8303_v0  ;;  %v9772_v44 = vld [vmem:[#allocation2 + $0x2d4] ss:$36 sps:$4 sm:$0xff]   ;;  %6491 = vmatmul.mubr.bf16.gmra.mxu1 %v9763_v60 }
 0x2da   : > { %4769 = vst [vmem:[#allocation2 + $0x374] sm:$0xf] %v8302_v39  ;;  %4770 = vst [vmem:[#allocation2 + $0x398] sm:$0xf] %v8303_v0  ;;  %6498 = vmatprep.mubr.bf16.mxu1 %v9772_v44  ;;  %v9842_v12 = vld [vmem:[#allocation2 + $0xa8] ss:$36 sps:$4 sm:$0xff]  }
 0x2db   : > { %4904 = vst [vmem:[#allocation2 + $0x338] sm:$0xf] %v8302_v39  ;;  %4905 = vst [vmem:[#allocation2 + $0x35c] sm:$0xf] %v8303_v0  ;;  %v9786_v39 = vld [vmem:[#allocation2 + $0x360] ss:$36 sps:$4 sm:$0xff]  }
 0x2dc   : > { %4364 = vst [vmem:[#allocation2 + $0x3f4] sm:$0xf] %v8272_v32  ;;  %4365 = vst [vmem:[#allocation2 + $0x418] sm:$0xf] %v8273_v40  ;;  %v9797_v0 = vld [vmem:[#allocation2 + $0x3ac] ss:$36 sps:$4 sm:$0xff]  }
 0x2dd   : > { %4724 = vst [vmem:[#allocation2 + $0x3b8] sm:$0xf] %v8272_v32  ;;  %4725 = vst [vmem:[#allocation2 + $0x3dc] sm:$0xf] %v8273_v40  ;;  %v9851_v45 = vld [vmem:[#allocation2 + $0xf4] ss:$36 sps:$4 sm:$0xff]  }
 0x2de   : > { %4859 = vst [vmem:[#allocation2 + $0x37c] sm:$0xf] %v8272_v32  ;;  %4860 = vst [vmem:[#allocation2 + $0x3a0] sm:$0xf] %v8273_v40  ;;  %6652 = vmatmul.mubr.bf16.gmra.mxu0 %v9767_v14  ;;  %v9791_v32 = vld [vmem:[#allocation2 + $0x368] ss:$36 sps:$4 sm:$0xff]  }
 0x2df   : > { %4676 = vst [vmem:[#allocation2 + $0x3fc] sm:$0xf] %v8242_v41  ;;  %4677 = vst [vmem:[#allocation2 + $0x420] sm:$0xf] %v8243_v48  ;;  %6659 = vmatprep.mubr.bf16.mxu0 %v9777_v8  ;;  %v9801_v40 = vld [vmem:[#allocation2 + $0x3b4] ss:$36 sps:$4 sm:$0xff]   ;;  %v8812_v8 = vpop.f32.mrf.mxu1 }
 0x2e0   : > { %4046 = vst [vmem:[#allocation2 + $0x438] sm:$0xf] %v8242_v41  ;;  %4047 = vst [vmem:[#allocation2 + $0x45c] sm:$0xf] %v8243_v48  ;;  %v9802_v23 = vld [vmem:[#allocation2 + $0x3f0] ss:$36 sps:$4 sm:$0xff]  }
 0x2e1   : > { %4811 = vst [vmem:[#allocation2 + $0x3c0] sm:$0xf] %v8242_v41  ;;  %4812 = vst [vmem:[#allocation2 + $0x3e4] sm:$0xf] %v8243_v48  ;;  %6499 = vmatmul.mubr.bf16.gmra.mxu1 %v9770_v38  ;;  %v9799_v48 = vld [vmem:[#allocation2 + $0x3b0] ss:$36 sps:$4 sm:$0xff]  }
 0x2e2   : > { %4636 = vst [vmem:[#allocation2 + $0x3f8] sm:$0xf] %v8304_v54  ;;  %4637 = vst [vmem:[#allocation2 + $0x41c] sm:$0xf] %v8305_v29  ;;  %6506 = vmatprep.mubr.bf16.mxu1 %v9781_v63  ;;  %v9846_v6 = vld [vmem:[#allocation2 + $0xe8] ss:$36 sps:$4 sm:$0xff]  }
 0x2e3   : > { %4771 = vst [vmem:[#allocation2 + $0x3bc] sm:$0xf] %v8304_v54  ;;  %4772 = vst [vmem:[#allocation2 + $0x3e0] sm:$0xf] %v8305_v29  ;;  %v9804_v41 = vld [vmem:[#allocation2 + $0x3f4] ss:$36 sps:$4 sm:$0xff]  }
 0x2e4   : > { %4906 = vst [vmem:[#allocation2 + $0x380] sm:$0xf] %v8304_v54  ;;  %4907 = vst [vmem:[#allocation2 + $0x3a4] sm:$0xf] %v8305_v29  ;;  %v9822_v54 = vld [vmem:[#allocation2 + $0x14] ss:$36 sps:$4 sm:$0xff]  }
 0x2e5   : > { %4366 = vst [vmem:[#allocation2 + $0x43c] sm:$0xf] %v8274_v13  ;;  %4367 = vst [vmem:[#allocation2 + $0x460] sm:$0xf] %v8275_v7  ;;  %v9854_v61 = vld [vmem:[#allocation2 + $0x134] ss:$36 sps:$4 sm:$0xff]  }
 0x2e6   : > { %4726 = vst [vmem:[#allocation2 + $0x400] sm:$0xf] %v8274_v13  ;;  %4727 = vst [vmem:[#allocation2 + $0x424] sm:$0xf] %v8275_v7  ;;  %6660 = vmatmul.mubr.bf16.gmra.mxu0 %v9775_v58  ;;  %v9809_v26 = vld [vmem:[#allocation2 + $0x3fc] ss:$36 sps:$4 sm:$0xff]  }
 0x2e7   : > { %4861 = vst [vmem:[#allocation2 + $0x3c4] sm:$0xf] %v8274_v13  ;;  %4862 = vst [vmem:[#allocation2 + $0x3e8] sm:$0xf] %v8275_v7  ;;  %6667 = vmatprep.mubr.bf16.mxu0 %v9785_v31  ;;  %v9811_v42 = vld [vmem:[#allocation2 + $0x438] ss:$36 sps:$4 sm:$0xff]  }
 0x2e8   : > { %4638 = vst [vmem:[#allocation2 + $0x440] sm:$0xf] %v8306_v19  ;;  %4639 = vst [vmem:[#allocation2 + $0x464] sm:$0xf] %v8307_v52  ;;  %v9833_v13 = vld [vmem:[#allocation2 + $0x5c] ss:$36 sps:$4 sm:$0xff]  }
 0x2e9   : > { %4678 = vst [vmem:[#allocation2 + $0x444] sm:$0xf] %v8308_v21  ;;  %4679 = vst [vmem:[#allocation2 + $0x468] sm:$0xf] %v8309_v17  ;;  %6507 = vmatmul.mubr.bf16.gmra.mxu1 %v9779_v3  ;;  %v9807_v20 = vld [vmem:[#allocation2 + $0x3f8] ss:$36 sps:$4 sm:$0xff]   ;;  %v8813_v3 = vpop.f32.mrf.mxu1 }
 0x2ea   : > { %4773 = vst [vmem:[#allocation2 + $0x404] sm:$0xf] %v8306_v19  ;;  %4774 = vst [vmem:[#allocation2 + $0x428] sm:$0xf] %v8307_v52  ;;  %6514 = vmatprep.mubr.bf16.mxu1 %v9788_v43  ;;  %v9949_v7 = vld [vmem:[%s12881_s4 + $0x238] sm:$0xff]  }
 0x2eb   : > { %4813 = vst [vmem:[#allocation2 + $0x408] sm:$0xf] %v8308_v21  ;;  %4814 = vst [vmem:[#allocation2 + $0x42c] sm:$0xf] %v8309_v17  ;;  %v9884_v21 = vld [vmem:[%s12881_s4 + $0x218] sm:$0xff]  }
 0x2ec   : > { %4908 = vst [vmem:[#allocation2 + $0x3c8] sm:$0xf] %v8306_v19  ;;  %4909 = vst [vmem:[#allocation2 + $0x3ec] sm:$0xf] %v8307_v52  ;;  %v9813_v36 = vld [vmem:[#allocation2 + $0x43c] ss:$36 sps:$4 sm:$0xff]  }
 0x2ed   : > { %4863 = vst [vmem:[#allocation2 + $0x40c] sm:$0xf] %v8310_v9  ;;  %4864 = vst [vmem:[#allocation2 + $0x430] sm:$0xf] %v8311_v16  ;;  %v9871_v19 = vld [vmem:[%s12881_s4 + $0x220] sm:$0xff]  }
 0x2ee   : > { %4728 = vst [vmem:[#allocation2 + $0x448] sm:$0xf] %v8310_v9  ;;  %4729 = vst [vmem:[#allocation2 + $0x46c] sm:$0xf] %v8311_v16  ;;  %6668 = vmatmul.mubr.bf16.gmra.mxu0 %v9783_v25  ;;  %v9841_v52 = vld [vmem:[#allocation2 + $0xa4] ss:$36 sps:$4 sm:$0xff]  }
 0x2ef   : > { %4775 = vst [vmem:[#allocation2 + $0x44c] sm:$0xf] %v8312_v27  ;;  %4910 = vst [vmem:[#allocation2 + $0x410] sm:$0xf] %v8312_v27  ;;  %6675 = vmatprep.mubr.bf16.mxu0 %v9793_v53  ;;  %v9816_v29 = vld [vmem:[#allocation2 + $0x440] ss:$36 sps:$4 sm:$0xff]  }
 0x2f0   : > { %4776 = vst [vmem:[#allocation2 + $0x470] sm:$0xf] %v8313_v10  ;;  %4911 = vst [vmem:[#allocation2 + $0x434] sm:$0xf] %v8313_v10  ;;  %v9818_v30 = vld [vmem:[#allocation2 + $0x444] ss:$36 sps:$4 sm:$0xff]  }
 0x2f1   : > { %6515 = vmatmul.mubr.bf16.gmra.mxu1 %v9786_v39  ;;  %v9836_v17 = vld [vmem:[#allocation2 + $0x60] ss:$36 sps:$4 sm:$0xff]   ;;  %v9849_v57 = vld [vmem:[#allocation2 + $0xf0] ss:$36 sps:$4 sm:$0xff]   ;;  %v9855_v9 = vld [vmem:[#allocation2 + $0x138] ss:$36 sps:$4 sm:$0xff]  }
 0x2f2   : > { %6522 = vmatprep.mubr.bf16.mxu1 %v9797_v0  ;;  %v9857_v4 = vld [vmem:[#allocation2 + $0x13c] ss:$36 sps:$4 sm:$0xff]   ;;  %v9852_v47 = vld [vmem:[#allocation2 + $0x130] ss:$36 sps:$4 sm:$0xff]   ;;  %v9864_v16 = vld [vmem:[#allocation2 + $0x184] ss:$36 sps:$4 sm:$0xff]  }
 0x2f3   : > { %v9861_v37 = vld [vmem:[#allocation2 + $0x17c] ss:$36 sps:$4 sm:$0xff]   ;;  %v9867_v24 = vld [vmem:[#allocation2 + $0x1c4] ss:$36 sps:$4 sm:$0xff]   ;;  %v9870_v55 = vld [vmem:[#allocation2 + $0x1cc] ss:$36 sps:$4 sm:$0xff]  }
 0x2f4   : > { %v9859_v27 = vld [vmem:[#allocation2 + $0x178] ss:$36 sps:$4 sm:$0xff]   ;;  %v9862_v10 = vld [vmem:[#allocation2 + $0x180] ss:$36 sps:$4 sm:$0xff]   ;;  %v9874_v50 = vld [vmem:[#allocation2 + $0x20c] ss:$36 sps:$4 sm:$0xff]  }
 0x2f5   : > { %v9865_v22 = vld [vmem:[#allocation2 + $0x1c0] ss:$36 sps:$4 sm:$0xff]   ;;  %v9868_v33 = vld [vmem:[#allocation2 + $0x1c8] ss:$36 sps:$4 sm:$0xff]   ;;  %v9877_v60 = vld [vmem:[#allocation2 + $0x214] ss:$36 sps:$4 sm:$0xff]  }
 0x2f6   : > { %6676 = vmatmul.mubr.bf16.gmra.mxu0 %v9791_v32  ;;  %v9872_v44 = vld [vmem:[#allocation2 + $0x208] ss:$36 sps:$4 sm:$0xff]   ;;  %v9880_v14 = vld [vmem:[#allocation2 + $0x254] ss:$36 sps:$4 sm:$0xff]   ;;  %v9883_v25 = vld [vmem:[#allocation2 + $0x25c] ss:$36 sps:$4 sm:$0xff]  }
 0x2f7   : > { %6683 = vmatprep.mubr.bf16.mxu0 %v9801_v40  ;;  %v9875_v31 = vld [vmem:[#allocation2 + $0x210] ss:$36 sps:$4 sm:$0xff]   ;;  %v8814_v40 = vadd.f32 %v8813_v3, %v8812_v8 }
 0x2f8   : > { %v9878_v39 = vld [vmem:[#allocation2 + $0x250] ss:$36 sps:$4 sm:$0xff]  }
 0x2f9   : > { %6523 = vmatmul.mubr.bf16.gmra.mxu1 %v9795_v1  ;;  %v9887_v1 = vld [vmem:[#allocation2 + $0x29c] ss:$36 sps:$4 sm:$0xff]  }
 0x2fa   : > { %6530 = vmatprep.mubr.bf16.mxu1 %v9804_v41 }
 0x2fe   : > { %6684 = vmatmul.mubr.bf16.gmra.mxu0 %v9799_v48 }
 0x2ff   : > { %6691 = vmatprep.mubr.bf16.mxu0 %v9809_v26 }
 0x301   : > { %6531 = vmatmul.mubr.bf16.gmra.mxu1 %v9802_v23 }
 0x302   : > { %6538 = vmatprep.mubr.bf16.mxu1 %v9813_v36 }
 0x306   : > { %6692 = vmatmul.mubr.bf16.gmra.mxu0 %v9807_v20  ;;  %v9881_v20 = vld [vmem:[#allocation2 + $0x258] ss:$36 sps:$4 sm:$0xff]  }
 0x307   : > { %6699 = vmatprep.mubr.bf16.mxu0 %v9818_v30 }
 0x309   : > { %6539 = vmatmul.mubr.bf16.gmra.mxu1 %v9811_v42  ;;  %v9890_v42 = vld [vmem:[#allocation2 + $0x2a4] ss:$36 sps:$4 sm:$0xff]  }
 0x30a   : > { %6740 = vmatprep.mubr.bf16.mxu1 %v9822_v54  ;;  %v9885_v54 = vld [vmem:[#allocation2 + $0x298] ss:$36 sps:$4 sm:$0xff]  }
 0x30e   : > { %6700 = vmatmul.mubr.bf16.gmra.mxu0 %v9816_v29  ;;  %v9893_v29 = vld [vmem:[#allocation2 + $0x2e4] ss:$36 sps:$4 sm:$0xff]  }
 0x30f   : > { %6901 = vmatprep.mubr.bf16.mxu0 %v9829_v11 }
 0x311   : > { %6741 = vmatmul.mubr.bf16.vlgmr.msra.gmra.mxu1 %v9820_v18  ;;  %v9888_v18 = vld [vmem:[#allocation2 + $0x2a0] ss:$36 sps:$4 sm:$0xff]  }
 0x312   : > { %6748 = vmatprep.mubr.bf16.mxu1 %v9833_v13  ;;  %9314 = vmatpush3.bf16.msra.mxu1 %v9949_v7  ;;  %v9896_v13 = vld [vmem:[#allocation2 + $0x2ec] ss:$36 sps:$4 sm:$0xff]  }
 0x313   : > { %9315 = vmatprep.subr.bf16.mxu1 %v9845_v49 }
 0x316   : > { %9316 = vmatpush3.bf16.msra.mxu1 %v9845_v49  ;;  %6902 = vmatmul.mubr.bf16.vlgmr.msra.gmra.mxu0 %v9827_v56  ;;  %v9891_v56 = vld [vmem:[#allocation2 + $0x2e0] ss:$36 sps:$4 sm:$0xff]  }
 0x317   : > { %9317 = vmatprep.subr.bf16.mxu1 %v9858_v62  ;;  %6909 = vmatprep.mubr.bf16.mxu0 %v9838_v34 }
 0x319   : > { %6749 = vmatmul.mubr.bf16.gmra.mxu1 %v9831_v59 }
 0x31a   : > { %6756 = vmatprep.mubr.bf16.mxu1 %v9841_v52  ;;  %9318 = vmatpush3.bf16.msra.mxu1 %v9858_v62 }
 0x31b   : > { %9319 = vmatprep.subr.bf16.mxu1 %v9871_v19 }
 0x31e   : > { %9320 = vmatpush3.bf16.msra.mxu1 %v9871_v19  ;;  %6910 = vmatmul.mubr.bf16.gmra.mxu0 %v9836_v17  ;;  %v9900_v19 = vld [vmem:[#allocation2 + $0x32c] ss:$36 sps:$4 sm:$0xff]  }
 0x31f   : > { %9321 = vmatprep.subr.bf16.mxu1 %v9884_v21  ;;  %6917 = vmatprep.mubr.bf16.mxu0 %v9844_v15  ;;  %v8921_v38 = vpop.f32.mrf.mxu0 }
 0x321   : > { %6757 = vmatmul.mubr.bf16.gmra.mxu1 %v9839_v35  ;;  %v8922_v63 = vpop.f32.mrf.mxu0 }
 0x322   : > { %6764 = vmatprep.mubr.bf16.mxu1 %v9848_v28  ;;  %9322 = vmatpush3.bf16.msra.mxu1 %v9884_v21  ;;  %v8923_v58 = vadd.f32 %v8922_v63, %v8921_v38 }
 0x323   : > { %9323 = vmatprep.subr.bf16.mxu1 %v9897_v51  ;;  %v8924_v43 = vpop.f32.mrf.mxu0 }
 0x324   : > { %v12317_v53 = vadd.f32 %v8923_v58, %v12290_v46 }
 0x325   : > { %v8815_v0 = vpop.f32.mrf.mxu1  ;;  %v8925_v32 = vpop.f32.mrf.mxu0 }
 0x326   : > { %9324 = vmatpush3.bf16.msra.mxu1 %v9897_v51  ;;  %6918 = vmatmul.mubr.bf16.gmra.mxu0 %v9842_v12  ;;  %v8926_v41 = vadd.f32 %v8925_v32, %v8924_v43  ;;  %v9894_v12 = vld [vmem:[#allocation2 + $0x2e8] ss:$36 sps:$4 sm:$0xff]  }
 0x327   : > { %9325 = vmatprep.subr.bf16.mxu1 %v9910_v2  ;;  %6925 = vmatprep.mubr.bf16.mxu0 %v9851_v45  ;;  %v8816_v48 = vpop.f32.mrf.mxu1 }
 0x328   : > { %v8817_v26 = vadd.f32 %v8816_v48, %v8815_v0  ;;  %v12319_v23 = vadd.f32 %v8926_v41, %v8814_v40  ;;  %v9907_v40 = vld [vmem:[#allocation2 + $0x378] ss:$36 sps:$4 sm:$0xff]   ;;  %v9916_v48 = vld [vmem:[#allocation2 + $0x3c4] ss:$36 sps:$4 sm:$0xff]  }
 0x329   : > { %6765 = vmatmul.mubr.bf16.gmra.mxu1 %v9846_v6  ;;  %v8818_v36 = vpop.f32.mrf.mxu1  ;;  %v9903_v6 = vld [vmem:[#allocation2 + $0x334] ss:$36 sps:$4 sm:$0xff]  }
 0x32a   : > { %6772 = vmatprep.mubr.bf16.mxu1 %v9854_v61  ;;  %9326 = vmatpush3.bf16.msra.mxu1 %v9910_v2  ;;  %v9898_v61 = vld [vmem:[#allocation2 + $0x328] ss:$36 sps:$4 sm:$0xff]  }
 0x32b   : > { %9327 = vmatprep.subr.bf16.mxu1 %v9923_v5  ;;  %v8819_v30 = vpop.f32.mrf.mxu1 }
 0x32c   : > { %v8820_v46 = vadd.f32 %v8819_v30, %v8818_v36 }
 0x32e   : > { %9328 = vmatpush3.bf16.msra.mxu1 %v9923_v5  ;;  %6926 = vmatmul.mubr.bf16.gmra.mxu0 %v9849_v57  ;;  %v8927_v11 = vpop.f32.mrf.mxu0 }
 0x32f   : > { %6933 = vmatprep.mubr.bf16.mxu0 %v9857_v4 }
 0x330   : > { %v8928_v49 = vpop.f32.mrf.mxu0 }
 0x331   : > { %6773 = vmatmul.mubr.bf16.gmra.mxu1 %v9852_v47  ;;  %v8929_v7 = vadd.f32 %v8928_v49, %v8927_v11  ;;  %v9906_v47 = vld [vmem:[#allocation2 + $0x374] ss:$36 sps:$4 sm:$0xff]  }
 0x332   : > { %6780 = vmatprep.mubr.bf16.mxu1 %v9861_v37  ;;  %v8930_v34 = vpop.f32.mrf.mxu0 }
 0x333   : > { %v12321_v59 = vadd.f32 %v8929_v7, %v8817_v26  ;;  %v9911_v26 = vld [vmem:[#allocation2 + $0x3b8] ss:$36 sps:$4 sm:$0xff]   ;;  %v9914_v7 = vld [vmem:[#allocation2 + $0x3c0] ss:$36 sps:$4 sm:$0xff]  }
 0x334   : > { %v8821_v62 = vpop.f32.mrf.mxu1  ;;  %v8931_v17 = vpop.f32.mrf.mxu0 }
 0x335   : > { %v8932_v15 = vadd.f32 %v8931_v17, %v8930_v34 }
 0x336   : > { %6934 = vmatmul.mubr.bf16.gmra.mxu0 %v9855_v9  ;;  %v8822_v52 = vpop.f32.mrf.mxu1 }
 0x337   : > { %6941 = vmatprep.mubr.bf16.mxu0 %v9864_v16  ;;  %v8823_v21 = vadd.f32 %v8822_v52, %v8821_v62  ;;  %v12323_v51 = vadd.f32 %v8932_v15, %v8820_v46  ;;  %v9917_v52 = vld [vmem:[#allocation2 + $0x400] ss:$36 sps:$4 sm:$0xff]  }
 0x338   : > { %v8824_v35 = vpop.f32.mrf.mxu1 }
 0x339   : > { %6781 = vmatmul.mubr.bf16.gmra.mxu1 %v9859_v27 }
 0x33a   : > { %6788 = vmatprep.mubr.bf16.mxu1 %v9867_v24  ;;  %v8825_v2 = vpop.f32.mrf.mxu1 }
 0x33b   : > { %v8933_v28 = vpop.f32.mrf.mxu0  ;;  %v8826_v45 = vadd.f32 %v8825_v2, %v8824_v35 }
 0x33d   : > { %v8934_v5 = vpop.f32.mrf.mxu0 }
 0x33e   : > { %6942 = vmatmul.mubr.bf16.gmra.mxu0 %v9862_v10  ;;  %v8935_v57 = vadd.f32 %v8934_v5, %v8933_v28  ;;  %v9926_v28 = vld [vmem:[#allocation2 + $0x44c] ss:$36 sps:$4 sm:$0xff]  }
 0x33f   : > { %6949 = vmatprep.mubr.bf16.mxu0 %v9870_v55  ;;  %v8936_v4 = vpop.f32.mrf.mxu0 }
 0x340   : > { %v12325_v37 = vadd.f32 %v8935_v57, %v8823_v21 }
 0x341   : > { %6789 = vmatmul.mubr.bf16.gmra.mxu1 %v9865_v22  ;;  %v8937_v16 = vpop.f32.mrf.mxu0  ;;  %v9901_v22 = vld [vmem:[#allocation2 + $0x330] ss:$36 sps:$4 sm:$0xff]  }
 0x342   : > { %6796 = vmatprep.mubr.bf16.mxu1 %v9874_v50  ;;  %v8938_v24 = vadd.f32 %v8937_v16, %v8936_v4  ;;  %v9930_v4 = vld [vmem:[#allocation2 + $0x454] ss:$36 sps:$4 sm:$0xff]  }
 0x343   : > { %v8827_v9 = vpop.f32.mrf.mxu1 }
 0x344   : > { %v12327_v50 = vadd.f32 %v8938_v24, %v8826_v45  ;;  %v9924_v24 = vld [vmem:[#allocation2 + $0x448] ss:$36 sps:$4 sm:$0xff]  }
 0x345   : > { %v8828_v27 = vpop.f32.mrf.mxu1 }
 0x346   : > { %6950 = vmatmul.mubr.bf16.gmra.mxu0 %v9868_v33  ;;  %v8829_v10 = vadd.f32 %v8828_v27, %v8827_v9  ;;  %v8939_v55 = vpop.f32.mrf.mxu0 }
 0x347   : > { %6957 = vmatprep.mubr.bf16.mxu0 %v9877_v60  ;;  %v8830_v33 = vpop.f32.mrf.mxu1  ;;  %v9909_v60 = vld [vmem:[#allocation2 + $0x37c] ss:$36 sps:$4 sm:$0xff]  }
 0x349   : > { %6797 = vmatmul.mubr.bf16.gmra.mxu1 %v9872_v44  ;;  %v8940_v44 = vpop.f32.mrf.mxu0  ;;  %v8831_v8 = vpop.f32.mrf.mxu1 }
 0x34a   : > { %6804 = vmatprep.mubr.bf16.mxu1 %v9880_v14  ;;  %v9904_v14 = vld [vmem:[#allocation2 + $0x370] ss:$36 sps:$4 sm:$0xff]   ;;  %v8941_v38 = vadd.f32 %v8940_v44, %v8939_v55  ;;  %v8832_v63 = vadd.f32 %v8831_v8, %v8830_v33 }
 0x34b   : > { %v8942_v58 = vpop.f32.mrf.mxu0 }
 0x34c   : > { %v12329_v3 = vadd.f32 %v8941_v38, %v8829_v10 }
 0x34e   : > { %6958 = vmatmul.mubr.bf16.gmra.mxu0 %v9875_v31  ;;  %v9913_v31 = vld [vmem:[#allocation2 + $0x3bc] ss:$36 sps:$4 sm:$0xff]   ;;  %v8833_v43 = vpop.f32.mrf.mxu1 }
 0x34f   : > { %6965 = vmatprep.mubr.bf16.mxu0 %v9883_v25  ;;  %v8943_v25 = vpop.f32.mrf.mxu0 }
 0x350   : > { %v8944_v0 = vadd.f32 %v8943_v25, %v8942_v58  ;;  %v9928_v58 = vld [vmem:[#allocation2 + $0x450] ss:$36 sps:$4 sm:$0xff]  }
 0x351   : > { %6805 = vmatmul.mubr.bf16.gmra.mxu1 %v9878_v39  ;;  %v8834_v39 = vpop.f32.mrf.mxu1 }
 0x352   : > { %6812 = vmatprep.mubr.bf16.mxu1 %v9887_v1  ;;  %v8835_v32 = vadd.f32 %v8834_v39, %v8833_v43  ;;  %v12331_v1 = vadd.f32 %v8944_v0, %v8832_v63 }
 0x353   : > { %v8836_v41 = vpop.f32.mrf.mxu1 }
 0x356   : > { %6966 = vmatmul.mubr.bf16.gmra.mxu0 %v9881_v20  ;;  %v8837_v20 = vpop.f32.mrf.mxu1 }
 0x357   : > { %6973 = vmatprep.mubr.bf16.mxu0 %v9890_v42  ;;  %v8838_v30 = vadd.f32 %v8837_v20, %v8836_v41  ;;  %v9919_v42 = vld [vmem:[#allocation2 + $0x404] ss:$36 sps:$4 sm:$0xff]  }
 0x358   : > { %v8945_v36 = vpop.f32.mrf.mxu0  ;;  %v9931_v41 = vld [vmem:[#allocation2 + $0x68] ss:$36 sps:$4 sm:$0xff]  }
 0x359   : > { %6813 = vmatmul.mubr.bf16.gmra.mxu1 %v9885_v54 }
 0x35a   : > { %6820 = vmatprep.mubr.bf16.mxu1 %v9893_v29  ;;  %v8946_v46 = vpop.f32.mrf.mxu0 }
 0x35b   : > { %v8947_v29 = vadd.f32 %v8946_v46, %v8945_v36  ;;  %v9932_v36 = vld [vmem:[#allocation2 + $0xb0] ss:$36 sps:$4 sm:$0xff]  }
 0x35c   : > { %v8839_v54 = vpop.f32.mrf.mxu1  ;;  %v8948_v11 = vpop.f32.mrf.mxu0 }
 0x35d   : > { %v12333_v49 = vadd.f32 %v8947_v29, %v8835_v32 }
 0x35e   : > { %6974 = vmatmul.mubr.bf16.gmra.mxu0 %v9888_v18  ;;  %v8840_v18 = vpop.f32.mrf.mxu1  ;;  %v8949_v62 = vpop.f32.mrf.mxu0 }
 0x35f   : > { %6981 = vmatprep.mubr.bf16.mxu0 %v9896_v13  ;;  %v8841_v13 = vadd.f32 %v8840_v18, %v8839_v54  ;;  %v8950_v34 = vadd.f32 %v8949_v62, %v8948_v11 }
 0x361   : > { %6821 = vmatmul.mubr.bf16.gmra.mxu1 %v9891_v56  ;;  %v8842_v56 = vpop.f32.mrf.mxu1  ;;  %v12335_v15 = vadd.f32 %v8950_v34, %v8838_v30  ;;  %v9933_v34 = vld [vmem:[#allocation2 + $0xf8] ss:$36 sps:$4 sm:$0xff]  }
 0x362   : > { %6828 = vmatprep.mubr.bf16.mxu1 %v9900_v19  ;;  %v9922_v19 = vld [vmem:[#allocation2 + $0x40c] ss:$36 sps:$4 sm:$0xff]  }
 0x363   : > { %v8843_v17 = vpop.f32.mrf.mxu1 }
 0x364   : > { %v8844_v35 = vadd.f32 %v8843_v17, %v8842_v56 }
 0x366   : > { %6982 = vmatmul.mubr.bf16.gmra.mxu0 %v9894_v12 }
 0x367   : > { %6989 = vmatprep.mubr.bf16.mxu0 %v9903_v6 }
 0x369   : > { %6829 = vmatmul.mubr.bf16.gmra.mxu1 %v9898_v61 }
 0x36a   : > { %6836 = vmatprep.mubr.bf16.mxu1 %v9906_v47  ;;  %v9920_v47 = vld [vmem:[#allocation2 + $0x408] ss:$36 sps:$4 sm:$0xff]  }
 0x36b   : > { %v8951_v21 = vpop.f32.mrf.mxu0 }
 0x36d   : > { %v8952_v2 = vpop.f32.mrf.mxu0  ;;  %v8845_v12 = vpop.f32.mrf.mxu1 }
 0x36e   : > { %6990 = vmatmul.mubr.bf16.gmra.mxu0 %v9901_v22  ;;  %v8953_v45 = vadd.f32 %v8952_v2, %v8951_v21  ;;  %v9934_v21 = vld [vmem:[#allocation2 + $0x140] ss:$36 sps:$4 sm:$0xff]  }
 0x36f   : > { %6997 = vmatprep.mubr.bf16.mxu0 %v9909_v60  ;;  %v8954_v6 = vpop.f32.mrf.mxu0  ;;  %v8846_v5 = vpop.f32.mrf.mxu1  ;;  %v9927_v60 = vld [vmem:[#allocation2 + $0x20] ss:$36 sps:$4 sm:$0xff]  }
 0x370   : > { %v12337_v61 = vadd.f32 %v8953_v45, %v8841_v13  ;;  %v8847_v57 = vadd.f32 %v8846_v5, %v8845_v12 }
 0x371   : > { %6837 = vmatmul.mubr.bf16.gmra.mxu1 %v9904_v14  ;;  %v8955_v9 = vpop.f32.mrf.mxu0  ;;  %v8848_v16 = vpop.f32.mrf.mxu1 }
 0x372   : > { %6844 = vmatprep.mubr.bf16.mxu1 %v9913_v31  ;;  %v8956_v27 = vadd.f32 %v8955_v9, %v8954_v6 }
 0x373   : > { %v8849_v55 = vpop.f32.mrf.mxu1 }
 0x374   : > { %v12339_v22 = vadd.f32 %v8956_v27, %v8844_v35  ;;  %v8850_v33 = vadd.f32 %v8849_v55, %v8848_v16  ;;  %v9935_v16 = vld [vmem:[#allocation2 + $0x188] ss:$36 sps:$4 sm:$0xff]  }
 0x375   : > { %v8851_v14 = vpop.f32.mrf.mxu1 }
 0x376   : > { %6998 = vmatmul.mubr.bf16.gmra.mxu0 %v9907_v40  ;;  %v8957_v10 = vpop.f32.mrf.mxu0 }
 0x377   : > { %7005 = vmatprep.mubr.bf16.mxu0 %v9916_v48  ;;  %v8852_v63 = vpop.f32.mrf.mxu1 }
 0x378   : > { %v8958_v44 = vpop.f32.mrf.mxu0  ;;  %v8853_v43 = vadd.f32 %v8852_v63, %v8851_v14 }
 0x379   : > { %6845 = vmatmul.mubr.bf16.gmra.mxu1 %v9911_v26  ;;  %v8959_v8 = vadd.f32 %v8958_v44, %v8957_v10  ;;  %v8854_v39 = vpop.f32.mrf.mxu1  ;;  %v9936_v10 = vld [vmem:[#allocation2 + $0x1d0] ss:$36 sps:$4 sm:$0xff]  }
 0x37a   : > { %6852 = vmatprep.mubr.bf16.mxu1 %v9919_v42  ;;  %v8960_v38 = vpop.f32.mrf.mxu0 }
 0x37b   : > { %v12341_v31 = vadd.f32 %v8959_v8, %v8847_v57  ;;  %v8855_v40 = vpop.f32.mrf.mxu1 }
 0x37c   : > { %v8961_v25 = vpop.f32.mrf.mxu0  ;;  %v8856_v26 = vadd.f32 %v8855_v40, %v8854_v39 }
 0x37d   : > { %v8962_v0 = vadd.f32 %v8961_v25, %v8960_v38  ;;  %v8857_v30 = vpop.f32.mrf.mxu1 }
 0x37e   : > { %7006 = vmatmul.mubr.bf16.gmra.mxu0 %v9914_v7  ;;  %v8963_v32 = vpop.f32.mrf.mxu0 }
 0x37f   : > { %7013 = vmatprep.mubr.bf16.mxu0 %v9922_v19  ;;  %v12343_v48 = vadd.f32 %v8962_v0, %v8850_v33  ;;  %v8858_v54 = vpop.f32.mrf.mxu1  ;;  %v9937_v0 = vld [vmem:[#allocation2 + $0x218] ss:$36 sps:$4 sm:$0xff]  }
 0x380   : > { %v8964_v20 = vpop.f32.mrf.mxu0  ;;  %v8859_v11 = vadd.f32 %v8858_v54, %v8857_v30 }
 0x381   : > { %6853 = vmatmul.mubr.bf16.gmra.mxu1 %v9917_v52  ;;  %v8965_v42 = vadd.f32 %v8964_v20, %v8963_v32  ;;  %v8860_v13 = vpop.f32.mrf.mxu1 }
 0x382   : > { %6860 = vmatprep.mubr.bf16.mxu1 %v9926_v28  ;;  %v8966_v46 = vpop.f32.mrf.mxu0 }
 0x383   : > { %v12345_v29 = vadd.f32 %v8965_v42, %v8853_v43  ;;  %v8861_v56 = vpop.f32.mrf.mxu1 }
 0x384   : > { %v8967_v18 = vpop.f32.mrf.mxu0  ;;  %v8862_v52 = vadd.f32 %v8861_v56, %v8860_v13  ;;  %v9939_v56 = vld [vmem:[#allocation2 + $0x2a8] ss:$36 sps:$4 sm:$0xff]  }
 0x385   : > { %v8968_v7 = vadd.f32 %v8967_v18, %v8966_v46 }
 0x386   : > { %7014 = vmatmul.mubr.bf16.gmra.mxu0 %v9920_v47 }
 0x387   : > { %7021 = vmatprep.mubr.bf16.mxu0 %v9930_v4  ;;  %v12347_v19 = vadd.f32 %v8968_v7, %v8856_v26 }
 0x389   : > { %6861 = vmatmul.mubr.bf16.gmra.mxu1 %v9924_v24 }
 0x38a   : > { %9329 = vmatprep.mubr.bf16.mxu1 %v9927_v60 }
 0x38e   : > { %7022 = vmatmul.mubr.bf16.gmra.mxu0 %v9928_v58 }
 0x391   : > { %9330 = vmatmul.mubr.bf16.vlgmr.msra.gmra.mxu1 %v9931_v41  ;;  %v9938_v41 = vld [vmem:[#allocation2 + $0x260] ss:$36 sps:$4 sm:$0xff]  }
 0x392   : > { %9333 = vmatprep.mubr.bf16.mxu1 %v9932_v36 }
 0x396   : > { %v8969_v62 = vpop.f32.mrf.mxu0 }
 0x398   : > { %v8970_v17 = vpop.f32.mrf.mxu0 }
 0x399   : > { %v8863_v35 = vpop.f32.mrf.mxu1  ;;  %9334 = vmatmul.mubr.bf16.gmra.mxu1 %v9933_v34  ;;  %v8971_v28 = vadd.f32 %v8970_v17, %v8969_v62 }
 0x39a   : > { %9337 = vmatprep.mubr.bf16.mxu1 %v9934_v21  ;;  %v8972_v2 = vpop.f32.mrf.mxu0  ;;  %v9940_v21 = vld [vmem:[#allocation2 + $0x2f0] ss:$36 sps:$4 sm:$0xff]  }
 0x39b   : > { %v8864_v12 = vpop.f32.mrf.mxu1  ;;  %v12349_v45 = vadd.f32 %v8971_v28, %v8859_v11 }
 0x39c   : > { %v8865_v6 = vadd.f32 %v8864_v12, %v8863_v35  ;;  %v8973_v5 = vpop.f32.mrf.mxu0 }
 0x39d   : > { %v8866_v57 = vpop.f32.mrf.mxu1  ;;  %v8974_v4 = vadd.f32 %v8973_v5, %v8972_v2 }
 0x39e   : > { %v8975_v47 = vpop.f32.mrf.mxu0 }
 0x39f   : > { %v8867_v9 = vpop.f32.mrf.mxu1  ;;  %v12351_v27 = vadd.f32 %v8974_v4, %v8862_v52 }
 0x3a0   : > { %v8868_v24 = vadd.f32 %v8867_v9, %v8866_v57  ;;  %v8976_v55 = vpop.f32.mrf.mxu0 }
 0x3a1   : > { %v8869_v33 = vpop.f32.mrf.mxu1  ;;  %9338 = vmatmul.mubr.bf16.gmra.mxu1 %v9935_v16  ;;  %v8977_v60 = vadd.f32 %v8976_v55, %v8975_v47 }
 0x3a2   : > { %9341 = vmatprep.mubr.bf16.mxu1 %v9936_v10  ;;  %v8978_v44 = vpop.f32.mrf.mxu0 }
 0x3a3   : > { %v8870_v14 = vpop.f32.mrf.mxu1  ;;  %v12353_v8 = vadd.f32 %v8977_v60, %v8865_v6 }
 0x3a4   : > { %v8871_v38 = vadd.f32 %v8870_v14, %v8869_v33  ;;  %v8979_v63 = vpop.f32.mrf.mxu0  ;;  %v9942_v33 = vld [vmem:[#allocation2 + $0x380] ss:$36 sps:$4 sm:$0xff]  }
 0x3a5   : > { %v8872_v58 = vpop.f32.mrf.mxu1  ;;  %v8980_v43 = vadd.f32 %v8979_v63, %v8978_v44 }
 0x3a6   : > { %v8981_v25 = vpop.f32.mrf.mxu0 }
 0x3a7   : > { %v8873_v39 = vpop.f32.mrf.mxu1  ;;  %v12355_v32 = vadd.f32 %v8980_v43, %v8868_v24  ;;  %v9941_v24 = vld [vmem:[#allocation2 + $0x338] ss:$36 sps:$4 sm:$0xff]  }
 0x3a8   : > { %v8874_v40 = vadd.f32 %v8873_v39, %v8872_v58  ;;  %v8982_v26 = vpop.f32.mrf.mxu0 }
 0x3a9   : > { %v8875_v36 = vpop.f32.mrf.mxu1  ;;  %9342 = vmatmul.mubr.bf16.gmra.mxu1 %v9937_v0  ;;  %v8983_v20 = vadd.f32 %v8982_v26, %v8981_v25  ;;  %v9943_v26 = vld [vmem:[#allocation2 + $0x3c8] ss:$36 sps:$4 sm:$0xff]  }
 0x3aa   : > { %9345 = vmatprep.mubr.bf16.mxu1 %v9938_v41  ;;  %v8984_v30 = vpop.f32.mrf.mxu0 }
 0x3ab   : > { %v8876_v42 = vpop.f32.mrf.mxu1  ;;  %v12357_v46 = vadd.f32 %v8983_v20, %v8871_v38 }
 0x3ac   : > { %v8877_v54 = vadd.f32 %v8876_v42, %v8875_v36  ;;  %v8985_v11 = vpop.f32.mrf.mxu0 }
 0x3ad   : > { %v8878_v18 = vpop.f32.mrf.mxu1  ;;  %v8986_v13 = vadd.f32 %v8985_v11, %v8984_v30  ;;  %v9944_v30 = vld [vmem:[#allocation2 + $0x410] ss:$36 sps:$4 sm:$0xff]  }
 0x3ae   : > { %v8987_v7 = vpop.f32.mrf.mxu0 }
 0x3af   : > { %v8879_v62 = vpop.f32.mrf.mxu1  ;;  %v12359_v34 = vadd.f32 %v8986_v13, %v8874_v40 }
 0x3b0   : > { %v8880_v52 = vadd.f32 %v8879_v62, %v8878_v18  ;;  %v8988_v17 = vpop.f32.mrf.mxu0 }
 0x3b1   : > { %v8881_v35 = vpop.f32.mrf.mxu1  ;;  %9346 = vmatmul.mubr.bf16.gmra.mxu1 %v9939_v56  ;;  %v8989_v28 = vadd.f32 %v8988_v17, %v8987_v7 }
 0x3b2   : > { %9349 = vmatprep.mubr.bf16.mxu1 %v9940_v21  ;;  %v8990_v2 = vpop.f32.mrf.mxu0  ;;  %v9945_v21 = vld [vmem:[#allocation2 + $0x458] ss:$36 sps:$4 sm:$0xff]  }
 0x3b3   : > { %v8882_v12 = vpop.f32.mrf.mxu1  ;;  %v12361_v6 = vadd.f32 %v8989_v28, %v8877_v54 }
 0x3b4   : > { %v8883_v5 = vadd.f32 %v8882_v12, %v8881_v35  ;;  %v8991_v57 = vpop.f32.mrf.mxu0 }
 0x3b5   : > { %v8884_v4 = vpop.f32.mrf.mxu1  ;;  %v8992_v47 = vadd.f32 %v8991_v57, %v8990_v2 }
 0x3b6   : > { %v8993_v9 = vpop.f32.mrf.mxu0 }
 0x3b7   : > { %v8885_v16 = vpop.f32.mrf.mxu1  ;;  %v12363_v10 = vadd.f32 %v8992_v47, %v8880_v52 }
 0x3b8   : > { %v8886_v55 = vadd.f32 %v8885_v16, %v8884_v4  ;;  %v8994_v60 = vpop.f32.mrf.mxu0 }
 0x3b9   : > { %v8887_v44 = vpop.f32.mrf.mxu1  ;;  %9350 = vmatmul.mubr.bf16.gmra.mxu1 %v9941_v24  ;;  %v8995_v14 = vadd.f32 %v8994_v60, %v8993_v9 }
 0x3ba   : > { %9353 = vmatprep.mubr.bf16.mxu1 %v9942_v33  ;;  %v8996_v38 = vpop.f32.mrf.mxu0 }
 0x3bb   : > { %v8888_v63 = vpop.f32.mrf.mxu1  ;;  %v12365_v58 = vadd.f32 %v8995_v14, %v8883_v5 }
 0x3bc   : > { %v8889_v43 = vadd.f32 %v8888_v63, %v8887_v44  ;;  %v8997_v25 = vpop.f32.mrf.mxu0 }
 0x3bd   : > { %v8890_v39 = vpop.f32.mrf.mxu1  ;;  %v8998_v0 = vadd.f32 %v8997_v25, %v8996_v38 }
 0x3be   : > { %v8999_v40 = vpop.f32.mrf.mxu0 }
 0x3bf   : > { %v8891_v41 = vpop.f32.mrf.mxu1  ;;  %v12367_v36 = vadd.f32 %v8998_v0, %v8886_v55 }
 0x3c0   : > { %v8892_v20 = vadd.f32 %v8891_v41, %v8890_v39  ;;  %v9000_v42 = vpop.f32.mrf.mxu0 }
 0x3c1   : > { %v8893_v54 = vpop.f32.mrf.mxu1  ;;  %9354 = vmatmul.mubr.bf16.gmra.mxu1 %v9943_v26  ;;  %v9001_v11 = vadd.f32 %v9000_v42, %v8999_v40 }
 0x3c2   : > { %9357 = vmatprep.mubr.bf16.mxu1 %v9944_v30  ;;  %v9002_v18 = vpop.f32.mrf.mxu0 }
 0x3c3   : > { %v8894_v13 = vpop.f32.mrf.mxu1  ;;  %v12369_v7 = vadd.f32 %v9001_v11, %v8889_v43 }
 0x3c4   : > { %v8895_v62 = vadd.f32 %v8894_v13, %v8893_v54  ;;  %v9003_v56 = vpop.f32.mrf.mxu0 }
 0x3c5   : > { %v8896_v52 = vpop.f32.mrf.mxu1  ;;  %v9004_v17 = vadd.f32 %v9003_v56, %v9002_v18 }
 0x3c6   : > { %v9005_v35 = vpop.f32.mrf.mxu0 }
 0x3c7   : > { %v8897_v28 = vpop.f32.mrf.mxu1  ;;  %v12371_v2 = vadd.f32 %v9004_v17, %v8892_v20 }
 0x3c8   : > { %v8898_v12 = vadd.f32 %v8897_v28, %v8896_v52  ;;  %v9006_v5 = vpop.f32.mrf.mxu0 }
 0x3c9   : > { %v8899_v57 = vpop.f32.mrf.mxu1  ;;  %9358 = vmatmul.mubr.bf16.gmra.mxu1 %v9945_v21  ;;  %v9007_v4 = vadd.f32 %v9006_v5, %v9005_v35 }
 0x3ca   : > { %v9008_v47 = vpop.f32.mrf.mxu0 }
 0x3cb   : > { %v8900_v9 = vpop.f32.mrf.mxu1  ;;  %v12373_v16 = vadd.f32 %v9007_v4, %v8895_v62 }
 0x3cc   : > { %v8901_v24 = vadd.f32 %v8900_v9, %v8899_v57  ;;  %v9009_v55 = vpop.f32.mrf.mxu0 }
 0x3cd   : > { %v8902_v33 = vpop.f32.mrf.mxu1  ;;  %v9010_v60 = vadd.f32 %v9009_v55, %v9008_v47 }
 0x3ce   : > { %v9011_v44 = vpop.f32.mrf.mxu0 }
 0x3cf   : > { %v8903_v14 = vpop.f32.mrf.mxu1  ;;  %v12375_v38 = vadd.f32 %v9010_v60, %v8898_v12 }
 0x3d0   : > { %v8904_v63 = vadd.f32 %v8903_v14, %v8902_v33  ;;  %v9012_v43 = vpop.f32.mrf.mxu0 }
 0x3d1   : > { %v9033_v25 = vpop.f32.mrf.mxu1  ;;  %v9013_v39 = vadd.f32 %v9012_v43, %v9011_v44 }
 0x3d2   : > { %v9014_v0 = vpop.f32.mrf.mxu0 }
 0x3d3   : > { %v9034_v40 = vpop.f32.mrf.mxu1  ;;  %v12377_v41 = vadd.f32 %v9013_v39, %v8901_v24 }
 0x3d4   : > { %v9035_v26 = vadd.f32 %v9034_v40, %v9033_v25  ;;  %v9015_v20 = vpop.f32.mrf.mxu0 }
 0x3d5   : > { %13082 = vst [vmem:[#allocation51_spill] sm:$0xff] %v12377_v41  ;;  %v9036_v30 = vpop.f32.mrf.mxu1  ;;  %v9016_v54 = vadd.f32 %v9015_v20, %v9014_v0 }
 0x3d6   : > { %v6743_v42 = vadd.f32 %v9035_v26, %v12317_v53  ;;  %v9145_v11 = vpop.f32.mrf.mxu0 }
 0x3d7   : > { %v9037_v18 = vpop.f32.mrf.mxu1  ;;  %v12380_v13 = vadd.f32 %v9016_v54, %v8904_v63 }
 0x3d8   : > { %v9038_v62 = vadd.f32 %v9037_v18, %v9036_v30  ;;  %v9146_v56 = vpop.f32.mrf.mxu0 }
 0x3d9   : > { %13083 = vst [vmem:[#allocation53_spill] sm:$0xff] %v12380_v13  ;;  %v9039_v52 = vpop.f32.mrf.mxu1  ;;  %v9147_v17 = vadd.f32 %v9146_v56, %v9145_v11 }
 0x3da   : > { %v6746_v21 = vadd.f32 %v9038_v62, %v12319_v23  ;;  %v9148_v35 = vpop.f32.mrf.mxu0 }
 0x3db   : > { %v9040_v28 = vpop.f32.mrf.mxu1  ;;  %v12383_v5 = vadd.f32 %v9147_v17, %v6743_v42 }
 0x3dc   : > { %v9041_v12 = vadd.f32 %v9040_v28, %v9039_v52  ;;  %v9149_v57 = vpop.f32.mrf.mxu0 }
 0x3dd   : > { %v9042_v4 = vpop.f32.mrf.mxu1  ;;  %v9150_v47 = vadd.f32 %v9149_v57, %v9148_v35 }
 0x3de   : > { %v12386_v53 = vadd.f32 %v9041_v12, %v12321_v59  ;;  %v12388_v9 = vpop.f32.mrf.mxu0 }
 0x3df   : > { %v9043_v24 = vpop.f32.mrf.mxu1  ;;  %v12390_v33 = vadd.f32 %v9150_v47, %v6746_v21 }
 0x3e0   : > { %v9044_v55 = vadd.f32 %v9043_v24, %v9042_v4  ;;  %v12392_v60 = vpop.f32.mrf.mxu0 }
 0x3e1   : > { %v9045_v23 = vpop.f32.mrf.mxu1 }
 0x3e2   : > { %v12395_v44 = vadd.f32 %v9044_v55, %v12323_v51  ;;  %v12397_v14 = vpop.f32.mrf.mxu0 }
 0x3e3   : > { %v9046_v63 = vpop.f32.mrf.mxu1 }
 0x3e4   : > { %v9047_v43 = vadd.f32 %v9046_v63, %v9045_v23  ;;  %v12399_v25 = vpop.f32.mrf.mxu0 }
 0x3e5   : > { %v9048_v59 = vpop.f32.mrf.mxu1 }
 0x3e6   : > { %v12402_v39 = vadd.f32 %v9047_v43, %v12325_v37  ;;  %v12404_v0 = vpop.f32.mrf.mxu0 }
 0x3e7   : > { %v9049_v40 = vpop.f32.mrf.mxu1 }
 0x3e8   : > { %v9050_v26 = vadd.f32 %v9049_v40, %v9048_v59  ;;  %v12406_v20 = vpop.f32.mrf.mxu0 }
 0x3e9   : > { %v9051_v30 = vpop.f32.mrf.mxu1 }
 0x3ea   : > { %v12409_v51 = vadd.f32 %v9050_v26, %v12327_v50  ;;  %v12411_v42 = vpop.f32.mrf.mxu0 }
 0x3eb   : > { %v9052_v54 = vpop.f32.mrf.mxu1 }
 0x3ec   : > { %v9053_v11 = vadd.f32 %v9052_v54, %v9051_v30  ;;  %v12413_v18 = vpop.f32.mrf.mxu0 }
 0x3ed   : > { %v9054_v62 = vpop.f32.mrf.mxu1 }
 0x3ee   : > { %v12416_v37 = vadd.f32 %v9053_v11, %v12329_v3  ;;  %v12418_v56 = vpop.f32.mrf.mxu0 }
 0x3ef   : > { %v9055_v52 = vpop.f32.mrf.mxu1 }
 0x3f0   : > { %v9056_v21 = vadd.f32 %v9055_v52, %v9054_v62  ;;  %v12420_v17 = vpop.f32.mrf.mxu0 }
 0x3f1   : > { %v9057_v35 = vpop.f32.mrf.mxu1 }
 0x3f2   : > { %v12423_v50 = vadd.f32 %v9056_v21, %v12331_v1  ;;  %v12425_v28 = vpop.f32.mrf.mxu0 }
 0x3f3   : > { %v9058_v12 = vpop.f32.mrf.mxu1 }
 0x3f4   : > { %v9059_v57 = vadd.f32 %v9058_v12, %v9057_v35  ;;  %v12427_v4 = vpop.f32.mrf.mxu0 }
 0x3f5   : > { %v9060_v47 = vpop.f32.mrf.mxu1 }
 0x3f6   : > { %v12430_v3 = vadd.f32 %v9059_v57, %v12333_v49  ;;  %v12432_v24 = vpop.f32.mrf.mxu0 }
 0x3f7   : > { %v9061_v55 = vpop.f32.mrf.mxu1 }
 0x3f8   : > { %v9062_v23 = vadd.f32 %v9061_v55, %v9060_v47  ;;  %v12434_v63 = vpop.f32.mrf.mxu0 }
 0x3f9   : > { %v9063_v43 = vpop.f32.mrf.mxu1 }
 0x3fa   : > { %v12437_v1 = vadd.f32 %v9062_v23, %v12335_v15  ;;  %v12439_v59 = vpop.f32.mrf.mxu0 }
 0x3fb   : > { %v9064_v40 = vpop.f32.mrf.mxu1 }
 0x3fc   : > { %13084 = vst [vmem:[#allocation56_spill] sm:$0xff] %v12437_v1  ;;  %v9065_v26 = vadd.f32 %v9064_v40, %v9063_v43  ;;  %v12441_v30 = vpop.f32.mrf.mxu0 }
 0x3fd   : > { %v9066_v54 = vpop.f32.mrf.mxu1 }
 0x3fe   : > { %v12444_v49 = vadd.f32 %v9065_v26, %v12337_v61  ;;  %v12446_v11 = vpop.f32.mrf.mxu0 }
 0x3ff   : > { %v9067_v62 = vpop.f32.mrf.mxu1 }
 0x400   : > { %v9068_v52 = vadd.f32 %v9067_v62, %v9066_v54  ;;  %v12448_v21 = vpop.f32.mrf.mxu0 }
 0x401   : > { %v9069_v35 = vpop.f32.mrf.mxu1 }
 0x402   : > { %v12451_v15 = vadd.f32 %v9068_v52, %v12339_v22  ;;  %v12453_v12 = vpop.f32.mrf.mxu0 }
 0x403   : > { %v9070_v57 = vpop.f32.mrf.mxu1 }
 0x404   : > { %v9071_v47 = vadd.f32 %v9070_v57, %v9069_v35  ;;  %v12455_v55 = vpop.f32.mrf.mxu0 }
 0x405   : > { %v9072_v23 = vpop.f32.mrf.mxu1 }
 0x406   : > { %v12458_v61 = vadd.f32 %v9071_v47, %v12341_v31  ;;  %v12460_v43 = vpop.f32.mrf.mxu0 }
 0x407   : > { %v9073_v40 = vpop.f32.mrf.mxu1 }
 0x408   : > { %13085 = vst [vmem:[#allocation44_spill] sm:$0xff] %v12458_v61  ;;  %v9074_v26 = vadd.f32 %v9073_v40, %v9072_v23  ;;  %v12462_v54 = vpop.f32.mrf.mxu0 }
 0x409   : > { %v9075_v62 = vpop.f32.mrf.mxu1 }
 0x40a   : > { %v12465_v22 = vadd.f32 %v9074_v26, %v12343_v48  ;;  %v12467_v52 = vpop.f32.mrf.mxu0 }
 0x40b   : > { %13087 = vst [vmem:[#allocation57_spill] sm:$0xff] %v12467_v52  ;;  %v9076_v13 = vpop.f32.mrf.mxu1 }
 0x40c   : > { %13086 = vst [vmem:[#allocation43_spill] sm:$0xff] %v12465_v22  ;;  %v9077_v35 = vadd.f32 %v9076_v13, %v9075_v62  ;;  %v12469_v57 = vpop.f32.mrf.mxu0 }
 0x40d   : > { %13088 = vst [vmem:[#allocation59_spill] sm:$0xff] %v12469_v57  ;;  %v9078_v41 = vpop.f32.mrf.mxu1 }
 0x40e   : > { %v12472_v31 = vadd.f32 %v9077_v35, %v12345_v29  ;;  %v12474_v47 = vpop.f32.mrf.mxu0 }
 0x40f   : > { %v9079_v61 = vpop.f32.mrf.mxu1 }
 0x410   : > { %13089 = vst [vmem:[#allocation45_spill] sm:$0xff] %v12472_v31  ;;  %v9080_v23 = vadd.f32 %v9079_v61, %v9078_v41  ;;  %v12476_v40 = vpop.f32.mrf.mxu0 }
 0x411   : > { %v9081_v1 = vpop.f32.mrf.mxu1 }
 0x412   : > { %v12479_v48 = vadd.f32 %v9080_v23, %v12347_v19  ;;  %v12481_v26 = vpop.f32.mrf.mxu0 }
 0x413   : > { %v9082_v22 = vpop.f32.mrf.mxu1 }
 0x414   : > { %13090 = vst [vmem:[#allocation46_spill] sm:$0xff] %v12479_v48  ;;  %v9083_v13 = vadd.f32 %v9082_v22, %v9081_v1  ;;  %v12483_v62 = vpop.f32.mrf.mxu0 }
 0x415   : > { %13091 = vst [vmem:[#allocation41_spill] sm:$0xff] %v12483_v62  ;;  %v9084_v57 = vpop.f32.mrf.mxu1 }
 0x416   : > { %v12486_v29 = vadd.f32 %v9083_v13, %v12349_v45  ;;  %v12488_v35 = vpop.f32.mrf.mxu0 }
 0x417   : > { %v9085_v52 = vpop.f32.mrf.mxu1 }
 0x418   : > { %13092 = vst [vmem:[#allocation48_spill] sm:$0xff] %v12486_v29  ;;  %v9086_v41 = vadd.f32 %v9085_v52, %v9084_v57  ;;  %v12490_v61 = vpop.f32.mrf.mxu0 }
 0x419   : > { %13093 = vst [vmem:[#allocation47_spill] sm:$0xff] %v12490_v61  ;;  %v9087_v31 = vpop.f32.mrf.mxu1 }
 0x41a   : > { %v12493_v19 = vadd.f32 %v9086_v41, %v12351_v27  ;;  %v12495_v23 = vpop.f32.mrf.mxu0 }
 0x41b   : > { %13095 = vst [vmem:[#allocation54_spill] sm:$0xff] %v12495_v23  ;;  %v9088_v48 = vpop.f32.mrf.mxu1 }
 0x41c   : > { %13094 = vst [vmem:[#allocation49_spill] sm:$0xff] %v12493_v19  ;;  %v9089_v1 = vadd.f32 %v9088_v48, %v9087_v31  ;;  %v12497_v22 = vpop.f32.mrf.mxu0 }
 0x41d   : > { %13096 = vst [vmem:[#allocation50_spill] sm:$0xff] %v12497_v22  ;;  %v9090_v62 = vpop.f32.mrf.mxu1 }
 0x41e   : > { %v12500_v45 = vadd.f32 %v9089_v1, %v12353_v8  ;;  %v12502_v13 = vpop.f32.mrf.mxu0 }
 0x41f   : > { %v9091_v29 = vpop.f32.mrf.mxu1 }
 0x420   : > { %13097 = vst [vmem:[#allocation52_spill] sm:$0xff] %v12500_v45  ;;  %v9092_v52 = vadd.f32 %v9091_v29, %v9090_v62  ;;  %v12504_v57 = vpop.f32.mrf.mxu0 }
 0x421   : > { %v9093_v61 = vpop.f32.mrf.mxu1 }
 0x422   : > { %v12507_v27 = vadd.f32 %v9092_v52, %v12355_v32  ;;  %v12509_v41 = vpop.f32.mrf.mxu0 }
 0x423   : > { %13099 = vst [vmem:[#allocation61_spill] sm:$0xff] %v12509_v41  ;;  %v9094_v19 = vpop.f32.mrf.mxu1 }
 0x424   : > { %13098 = vst [vmem:[#allocation55_spill] sm:$0xff] %v12507_v27  ;;  %v9095_v31 = vadd.f32 %v9094_v19, %v9093_v61  ;;  %v12511_v48 = vpop.f32.mrf.mxu0 }
 0x425   : > { %13100 = vst [vmem:[#allocation63_spill] sm:$0xff] %v12511_v48  ;;  %v9096_v22 = vpop.f32.mrf.mxu1 }
 0x426   : > { %v12514_v8 = vadd.f32 %v9095_v31, %v12357_v46  ;;  %v12516_v23 = vpop.f32.mrf.mxu0 }
 0x427   : > { %v9097_v1 = vpop.f32.mrf.mxu1 }
 0x428   : > { %13101 = vst [vmem:[#allocation64_spill] sm:$0xff] %v12514_v8  ;;  %v9098_v62 = vadd.f32 %v9097_v1, %v9096_v22  ;;  %v12521_v52 = vpop.f32.mrf.mxu0 }
 0x429   : > { %v9099_v29 = vpop.f32.mrf.mxu1 }
 0x42a   : > { %v12519_v45 = vadd.f32 %v9098_v62, %v12359_v34  ;;  %v12526_v48 = vpop.f32.mrf.mxu0 }
 0x42b   : > { %v9100_v32 = vpop.f32.mrf.mxu1  ;;  %13103 = vst [vmem:[#allocation60_spill] sm:$0xff] %v12526_v48 }
 0x42c   : > { %13102 = vst [vmem:[#allocation58_spill] sm:$0xff] %v12519_v45  ;;  %v9101_v27 = vadd.f32 %v9100_v32, %v9099_v29  ;;  %v12531_v1 = vpop.f32.mrf.mxu0 }
 0x42d   : > { %v9102_v41 = vpop.f32.mrf.mxu1 }
 0x42e   : > { %v12524_v61 = vadd.f32 %v9101_v27, %v12361_v6  ;;  %v12536_v32 = vpop.f32.mrf.mxu0 }
 0x42f   : > { %v9103_v19 = vpop.f32.mrf.mxu1 }
 0x430   : > { %v9104_v46 = vadd.f32 %v9103_v19, %v9102_v41  ;;  %v12541_v19 = vpop.f32.mrf.mxu0 }
 0x431   : > { %v9105_v31 = vpop.f32.mrf.mxu1 }
 0x432   : > { %v12529_v8 = vadd.f32 %v9104_v46, %v12363_v10 }
 0x433   : > { %v9106_v22 = vpop.f32.mrf.mxu1 }
 0x434   : > { %13104 = vst [vmem:[#allocation42_spill] sm:$0xff] %v12529_v8  ;;  %v9107_v34 = vadd.f32 %v9106_v22, %v9105_v31  ;;  %v12546_v22 = vpop.f32.mrf.mxu0 }
 0x435   : > { %v9108_v62 = vpop.f32.mrf.mxu1 }
 0x436   : > { %v12534_v45 = vadd.f32 %v9107_v34, %v12365_v58 }
 0x437   : > { %v9109_v29 = vpop.f32.mrf.mxu1 }
 0x438   : > { %13105 = vst [vmem:[#allocation68_spill] sm:$0xff] %v12534_v45  ;;  %v9110_v6 = vadd.f32 %v9109_v29, %v9108_v62  ;;  %v12551_v29 = vpop.f32.mrf.mxu0 }
 0x439   : > { %v9111_v27 = vpop.f32.mrf.mxu1 }
 0x43a   : > { %v12539_v48 = vadd.f32 %v9110_v6, %v12367_v36 }
 0x43b   : > { %v9112_v41 = vpop.f32.mrf.mxu1 }
 0x43c   : > { %13106 = vst [vmem:[#allocation69_spill] sm:$0xff] %v12539_v48  ;;  %v9113_v10 = vadd.f32 %v9112_v41, %v9111_v27 }
 0x43d   : > { %v9114_v46 = vpop.f32.mrf.mxu1 }
 0x43e   : > { %v12544_v8 = vadd.f32 %v9113_v10, %v12369_v7  ;;  %v12556_v7 = vpop.f32.mrf.mxu0 }
 0x43f   : > { %v9115_v31 = vpop.f32.mrf.mxu1 }
 0x440   : > { %v9116_v58 = vadd.f32 %v9115_v31, %v9114_v46  ;;  %v9153_v31 = vadd.f32 %v12392_v60, %v12388_v9  ;;  %v12587_v60 = vld [vmem:[%s12883_s6] ss:$0 sm:$0xff] }
 0x441   : > { %v9117_v34 = vpop.f32.mrf.mxu1 }
 0x442   : > { %v12549_v45 = vadd.f32 %v9116_v58, %v12371_v2  ;;  %v12567_v58 = vpop.f32.mrf.mxu0 }
 0x443   : > { %v9118_v62 = vpop.f32.mrf.mxu1 }
 0x444   : > { %13107 = vst [vmem:[#allocation71_spill] sm:$0xff] %v12549_v45  ;;  %v9119_v36 = vadd.f32 %v9118_v62, %v9117_v34  ;;  %v9156_v62 = vadd.f32 %v12399_v25, %v12397_v14 }
 0x445   : > { %v9120_v6 = vpop.f32.mrf.mxu1 }
 0x446   : > { %v12554_v48 = vadd.f32 %v9119_v36, %v12373_v16  ;;  %v12575_v36 = vpop.f32.mrf.mxu0 }
 0x447   : > { %v9121_v27 = vpop.f32.mrf.mxu1 }
 0x448   : > { %13108 = vst [vmem:[#allocation72_spill] sm:$0xff] %v12554_v48  ;;  %v9122_v41 = vadd.f32 %v9121_v27, %v9120_v6  ;;  %v12581_v27 = vld [vmem:[%s12882_s5] ss:$0 sm:$0xff]  ;;  %v12589_v14 = vpop.f32.mrf.mxu0 }
 0x449   : > { %v12558_v10 = vpop.f32.mrf.mxu1 }
 0x44a   : > { %v12561_v46 = vadd.f32 %v9122_v41, %v12375_v38  ;;  %v6912_v38 = vadd.f32 %v9153_v31, %v12386_v53  ;;  %v6915_v31 = vadd.f32 %v9156_v62, %v12395_v44  ;;  %v13112_v44 = vld [vmem:[#allocation9_spill] sm:$0xff] }
 0x44b   : > { %v12563_v2 = vpop.f32.mrf.mxu1 }
 0x44c   : > { %13109 = vst [vmem:[#allocation39_spill] sm:$0xff] %v12561_v46  ;;  %v9159_v46 = vadd.f32 %v12406_v20, %v12404_v0 }
 0x44d   : > { %v12569_v34 = vpop.f32.mrf.mxu1 }
 0x44e   : > { %13110 = vst [vmem:[#allocation40_spill] sm:$0xff] %v12569_v34 }
 0x44f   : > { %v12571_v16 = vpop.f32.mrf.mxu1 }
 0x450   : > { %13111 = vst [vmem:[#allocation62_spill] sm:$0xff] %v12571_v16 }
 0x451   : > { %v9331_v6 = vpop.f32.mrf.mxu1 }
 0x452   : > { %v7073_v9 = vadd.f32 %v9331_v6, %v6912_v38  ;;  %v9165_v38 = vadd.f32 %v12420_v17, %v12418_v56  ;;  %v9162_v17 = vadd.f32 %v12413_v18, %v12411_v42  ;;  %v13114_v18 = vld [vmem:[#allocation10_spill] sm:$0xff] }
 0x453   : > { %v7064_v41 = vpop.f32.mrf.mxu1 }
 0x454   : > { %v7200_v25 = vmul.f32 %v12581_v27, %v7073_v9  ;;  %v7065_v53 = vadd.f32 %v7064_v41, %v12383_v5  ;;  %v9168_v9 = vadd.f32 %v12427_v4, %v12425_v28  ;;  %v12604_v41 = vpop.f32.mrf.mxu0  ;;  %v13113_v4 = vld [vmem:[#allocation7_spill] sm:$0xff] }
 0x455   : > { %v9332_v6 = vpop.f32.mrf.mxu1 }
 0x456   : > { %v7239_v48 = vadd.f32 %v12587_v60, %v7200_v25  ;;  %v7198_v16 = vmul.f32 %v12581_v27, %v7065_v53  ;;  %v7076_v34 = vadd.f32 %v9332_v6, %v6915_v31  ;;  %v6928_v25 = vadd.f32 %v9165_v38, %v12416_v37  ;;  %v12620_v42 = vpop.f32.mrf.mxu0 }
 0x457   : > { %v7067_v5 = vpop.f32.mrf.mxu1  ;;  %v6920_v31 = vadd.f32 %v9159_v46, %v12402_v39 }
 0x458   : > { %v7271_v62 = vadd.f32 %v7239_v48, %v13112_v44  ;;  %v7237_v0 = vadd.f32 %v12587_v60, %v7198_v16  ;;  %v7201_v20 = vmul.f32 %v12581_v27, %v7076_v34  ;;  %v7068_v56 = vadd.f32 %v7067_v5, %v12390_v33 }
 0x459   : > { %v9335_v53 = vpop.f32.mrf.mxu1  ;;  %v9177_v34 = vadd.f32 %v12448_v21, %v12446_v11  ;;  %v6931_v5 = vadd.f32 %v9168_v9, %v12423_v50  ;;  %v6923_v44 = vadd.f32 %v9162_v17, %v12409_v51  ;;  %v13115_v9 = vld [vmem:[#allocation8_spill] sm:$0xff]  ;;  %v12638_v51 = vpop.f32.mrf.mxu0 }
 0x45a   : > { %v7303_v28 = vmax.f32 %v7271_v62, 0.0  ;;  %v7269_v6 = vadd.f32 %v7237_v0, %v13113_v4  ;;  %v7240_v45 = vadd.f32 %v12587_v60, %v7201_v20  ;;  %v7199_v48 = vmul.f32 %v12581_v27, %v7068_v56 }
 0x45b   : > { %v7089_v16 = vadd.f32 %v9335_v53, %v6928_v25  ;;  %v7080_v33 = vpop.f32.mrf.mxu1  ;;  %v9180_v56 = vadd.f32 %v12455_v55, %v12453_v12  ;;  %v13117_v55 = vld [vmem:[#allocation11_spill] sm:$0xff] }
 0x45c   : > { %7335 = vst [vmem:[%s12622_s18 + $0x10] sm:$0xff] %v7303_v28  ;;  %v7301_v39 = vmax.f32 %v7269_v6, 0.0  ;;  %v7272_v37 = vadd.f32 %v7240_v45, %v13114_v18  ;;  %v7238_v46 = vadd.f32 %v12587_v60, %v7199_v48  ;;  %v7081_v38 = vadd.f32 %v7080_v33, %v6920_v31 }
 0x45d   : > { %v7204_v11 = vmul.f32 %v12581_v27, %v7089_v16  ;;  %v9336_v21 = vpop.f32.mrf.mxu1  ;;  %v9171_v45 = vadd.f32 %v12434_v63, %v12432_v24  ;;  %v6944_v31 = vadd.f32 %v9177_v34, %v12444_v49  ;;  %v9174_v24 = vadd.f32 %v12441_v30, %v12439_v59  ;;  %v13116_v63 = vld [vmem:[#allocation13_spill] sm:$0xff] }
 0x45e   : > { %7333 = vst [vmem:[%s12622_s18] sm:$0xff] %v7301_v39  ;;  %v7304_v50 = vmax.f32 %v7272_v37, 0.0  ;;  %v7270_v62 = vadd.f32 %v7238_v46, %v13115_v9  ;;  %v7202_v0 = vmul.f32 %v12581_v27, %v7081_v38  ;;  %v7092_v20 = vadd.f32 %v9336_v21, %v6931_v5  ;;  %v12654_v37 = vpop.f32.mrf.mxu0  ;;  %v13118_v38 = vld [vmem:[#allocation14_spill] sm:$0xff] }
 0x45f   : > { %v7243_v25 = vadd.f32 %v12587_v60, %v7204_v11  ;;  %v7083_v53 = vpop.f32.mrf.mxu1  ;;  %v9189_v5 = vadd.f32 %v12476_v40, %v12474_v47  ;;  %v6936_v18 = vadd.f32 %v9171_v45, %v12430_v3  ;;  %v6947_v30 = vadd.f32 %v9180_v56, %v12451_v15  ;;  %v13119_v3 = vld [vmem:[#allocation56_spill] sm:$0xff] }
 0x460   : > { %7336 = vst [vmem:[%s12622_s18 + $0x18] sm:$0xff] %v7304_v50  ;;  %v7302_v17 = vmax.f32 %v7270_v62, 0.0  ;;  %v7241_v28 = vadd.f32 %v12587_v60, %v7202_v0  ;;  %v7205_v4 = vmul.f32 %v12581_v27, %v7092_v20  ;;  %v7084_v6 = vadd.f32 %v7083_v53, %v6923_v44  ;;  %v13120_v62 = vld [vmem:[#allocation12_spill] sm:$0xff]  ;;  %v13121_v53 = vld [vmem:[#allocation45_spill] sm:$0xff] }
 0x461   : > { %v7275_v48 = vadd.f32 %v7243_v25, %v13116_v63  ;;  %v9339_v12 = vpop.f32.mrf.mxu1  ;;  %v9183_v50 = vadd.f32 %v12462_v54, %v12460_v43  ;;  %v6939_v9 = vadd.f32 %v9174_v24, %v13119_v3  ;;  %v13122_v54 = vld [vmem:[#allocation17_spill] sm:$0xff]  ;;  %v13124_v63 = vld [vmem:[#allocation59_spill] sm:$0xff] }
 0x462   : > { %7334 = vst [vmem:[%s12622_s18 + $0x8] sm:$0xff] %v7302_v17  ;;  %v7273_v16 = vadd.f32 %v7241_v28, %v13117_v55  ;;  %v7244_v49 = vadd.f32 %v12587_v60, %v7205_v4  ;;  %v7203_v34 = vmul.f32 %v12581_v27, %v7084_v6  ;;  %v7105_v33 = vadd.f32 %v9339_v12, %v6944_v31  ;;  %v12668_v17 = vpop.f32.mrf.mxu0  ;;  %v13123_v24 = vld [vmem:[#allocation57_spill] sm:$0xff]  ;;  %v13129_v3 = vld [vmem:[#allocation47_spill] sm:$0xff] }
 0x463   : > { %v7307_v39 = vmax.f32 %v7275_v48, 0.0  ;;  %v7096_v59 = vpop.f32.mrf.mxu1  ;;  %v6960_v31 = vadd.f32 %v9189_v5, %v13121_v53  ;;  %v9186_v48 = vadd.f32 %v13124_v63, %v13123_v24  ;;  %v13125_v12 = vld [vmem:[#allocation41_spill] sm:$0xff] }
 0x464   : > { %v7305_v46 = vmax.f32 %v7273_v16, 0.0  ;;  %v7276_v11 = vadd.f32 %v7244_v49, %v13118_v38  ;;  %v7242_v21 = vadd.f32 %v12587_v60, %v7203_v34  ;;  %v7208_v44 = vmul.f32 %v12581_v27, %v7105_v33  ;;  %v13126_v34 = vld [vmem:[#allocation44_spill] sm:$0xff] }
 0x465   : > { %7339 = vst [vmem:[%s12622_s18 + $0x30] sm:$0xff] %v7307_v39  ;;  %v7097_v47 = vadd.f32 %v7096_v59, %v6936_v18  ;;  %v9340_v40 = vpop.f32.mrf.mxu1  ;;  %v9192_v55 = vadd.f32 %v13125_v12, %v12481_v26  ;;  %v6952_v33 = vadd.f32 %v9183_v50, %v13126_v34  ;;  %v13128_v26 = vld [vmem:[#allocation18_spill] sm:$0xff]  ;;  %v13136_v12 = vld [vmem:[#allocation21_spill] sm:$0xff] }
 0x466   : > { %7337 = vst [vmem:[%s12622_s18 + $0x20] sm:$0xff] %v7305_v46  ;;  %v7308_v15 = vmax.f32 %v7276_v11, 0.0  ;;  %v7274_v0 = vadd.f32 %v7242_v21, %v13120_v62  ;;  %v7247_v20 = vadd.f32 %v12587_v60, %v7208_v44  ;;  %v7108_v45 = vadd.f32 %v9340_v40, %v6947_v30  ;;  %v13127_v46 = vld [vmem:[#allocation15_spill] sm:$0xff]  ;;  %v12685_v21 = vpop.f32.mrf.mxu0 }
 0x467   : > { %v7206_v56 = vmul.f32 %v12581_v27, %v7097_v47  ;;  %v7099_v25 = vpop.f32.mrf.mxu1  ;;  %v9201_v30 = vadd.f32 %v12504_v57, %v12502_v13  ;;  %v13130_v13 = vld [vmem:[#allocation46_spill] sm:$0xff] }
 0x468   : > { %7340 = vst [vmem:[%s12622_s18 + $0x38] sm:$0xff] %v7308_v15  ;;  %v7306_v43 = vmax.f32 %v7274_v0, 0.0  ;;  %v7279_v28 = vadd.f32 %v7247_v20, %v13122_v54  ;;  %v7209_v4 = vmul.f32 %v12581_v27, %v7108_v45  ;;  %v7100_v6 = vadd.f32 %v7099_v25, %v6939_v9  ;;  %v13131_v0 = vld [vmem:[#allocation43_spill] sm:$0xff]  ;;  %v12702_v63 = vpop.f32.mrf.mxu0 }
 0x469   : > { %v7245_v16 = vadd.f32 %v12587_v60, %v7206_v56  ;;  %v9343_v49 = vpop.f32.mrf.mxu1  ;;  %v9195_v9 = vadd.f32 %v13129_v3, %v12488_v35  ;;  %v6963_v57 = vadd.f32 %v9192_v55, %v13130_v13  ;;  %v6955_v20 = vadd.f32 %v9186_v48, %v13131_v0  ;;  %v13132_v56 = vld [vmem:[#allocation16_spill] sm:$0xff]  ;;  %v13134_v54 = vld [vmem:[#allocation63_spill] sm:$0xff] }
 0x46a   : > { %7338 = vst [vmem:[%s12622_s18 + $0x28] sm:$0xff] %v7306_v43  ;;  %v7311_v5 = vmax.f32 %v7279_v28, 0.0  ;;  %v7248_v39 = vadd.f32 %v12587_v60, %v7209_v4  ;;  %v7207_v18 = vmul.f32 %v12581_v27, %v7100_v6  ;;  %v7121_v59 = vadd.f32 %v9343_v49, %v6960_v31  ;;  %v13133_v43 = vld [vmem:[#allocation61_spill] sm:$0xff]  ;;  %v13135_v6 = vld [vmem:[#allocation52_spill] sm:$0xff]  ;;  %v13141_v3 = vld [vmem:[#allocation55_spill] sm:$0xff] }
 0x46b   : > { %v7277_v38 = vadd.f32 %v7245_v16, %v13127_v46  ;;  %v7112_v11 = vpop.f32.mrf.mxu1  ;;  %v9204_v28 = vadd.f32 %v13134_v54, %v13133_v43  ;;  %v6976_v24 = vadd.f32 %v9201_v30, %v13135_v6  ;;  %v9216_v54 = vadd.f32 %v12551_v29, %v12546_v22 }
 0x46c   : > { %7343 = vst [vmem:[%s12622_s18 + $0x50] sm:$0xff] %v7311_v5  ;;  %v7280_v44 = vadd.f32 %v7248_v39, %v13128_v26  ;;  %v7246_v50 = vadd.f32 %v12587_v60, %v7207_v18  ;;  %v7212_v47 = vmul.f32 %v12581_v27, %v7121_v59  ;;  %v7113_v40 = vadd.f32 %v7112_v11, %v6952_v33  ;;  %v13137_v5 = vld [vmem:[#allocation48_spill] sm:$0xff]  ;;  %v13138_v59 = vld [vmem:[#allocation19_spill] sm:$0xff]  ;;  %v13139_v11 = vld [vmem:[#allocation54_spill] sm:$0xff] }
 0x46d   : > { %v7309_v15 = vmax.f32 %v7277_v38, 0.0  ;;  %v9344_v62 = vpop.f32.mrf.mxu1  ;;  %v6968_v39 = vadd.f32 %v9195_v9, %v13137_v5  ;;  %v13140_v26 = vld [vmem:[#allocation50_spill] sm:$0xff]  ;;  %v12718_v9 = vpop.f32.mrf.mxu0 }
 0x46e   : > { %v7312_v45 = vmax.f32 %v7280_v44, 0.0  ;;  %v7278_v25 = vadd.f32 %v7246_v50, %v13132_v56  ;;  %v7251_v53 = vadd.f32 %v12587_v60, %v7212_v47  ;;  %v7210_v31 = vmul.f32 %v12581_v27, %v7113_v40 }
 0x46f   : > { %7341 = vst [vmem:[%s12622_s18 + $0x40] sm:$0xff] %v7309_v15  ;;  %v7124_v4 = vadd.f32 %v9344_v62, %v6963_v57  ;;  %v7115_v35 = vpop.f32.mrf.mxu1  ;;  %v9198_v44 = vadd.f32 %v13140_v26, %v13139_v11  ;;  %v9213_v50 = vadd.f32 %v12541_v19, %v12536_v32  ;;  %v6979_v15 = vadd.f32 %v9204_v28, %v13141_v3  ;;  %v13143_v19 = vld [vmem:[#allocation20_spill] sm:$0xff]  ;;  %v9235_v6 = vpop.f32.mrf.mxu0 }
 0x470   : > { %7344 = vst [vmem:[%s12622_s18 + $0x58] sm:$0xff] %v7312_v45  ;;  %v7310_v48 = vmax.f32 %v7278_v25, 0.0  ;;  %v7283_v55 = vadd.f32 %v7251_v53, %v13136_v12  ;;  %v7249_v16 = vadd.f32 %v12587_v60, %v7210_v31  ;;  %v7116_v49 = vadd.f32 %v7115_v35, %v6955_v20  ;;  %v13142_v45 = vld [vmem:[#allocation22_spill] sm:$0xff] }
 0x471   : > { %v7213_v34 = vmul.f32 %v12581_v27, %v7124_v4  ;;  %v9347_v33 = vpop.f32.mrf.mxu1  ;;  %v9207_v20 = vadd.f32 %v12521_v52, %v12516_v23  ;;  %v13144_v4 = vld [vmem:[#allocation49_spill] sm:$0xff]  ;;  %v6992_v52 = vadd.f32 %v9213_v50, %v12524_v61  ;;  %v13148_v61 = vld [vmem:[#allocation23_spill] sm:$0xff] }
 0x472   : > { %7342 = vst [vmem:[%s12622_s18 + $0x48] sm:$0xff] %v7310_v48  ;;  %v7315_v18 = vmax.f32 %v7283_v55, 0.0  ;;  %v7281_v46 = vadd.f32 %v7249_v16, %v13138_v59  ;;  %v7211_v30 = vmul.f32 %v12581_v27, %v7116_v49  ;;  %v7137_v38 = vadd.f32 %v9347_v33, %v6976_v24  ;;  %v13145_v48 = vld [vmem:[#allocation25_spill] sm:$0xff]  ;;  %v13146_v49 = vld [vmem:[#allocation60_spill] sm:$0xff] }
 0x473   : > { %v7252_v47 = vadd.f32 %v12587_v60, %v7213_v34  ;;  %v7128_v40 = vpop.f32.mrf.mxu1  ;;  %v6971_v35 = vadd.f32 %v9198_v44, %v13144_v4  ;;  %v9210_v34 = vadd.f32 %v12531_v1, %v13146_v49  ;;  %v13147_v33 = vld [vmem:[#allocation64_spill] sm:$0xff]  ;;  %v13149_v1 = vld [vmem:[#allocation42_spill] sm:$0xff]  ;;  %v9236_v44 = vpop.f32.mrf.mxu0 }
 0x474   : > { %7347 = vst [vmem:[%s12622_s18 + $0x70] sm:$0xff] %v7315_v18  ;;  %v7313_v13 = vmax.f32 %v7281_v46, 0.0  ;;  %v7250_v57 = vadd.f32 %v12587_v60, %v7211_v30  ;;  %v7216_v62 = vmul.f32 %v12581_v27, %v7137_v38  ;;  %v7129_v0 = vadd.f32 %v7128_v40, %v6968_v39 }
 0x475   : > { %v7284_v56 = vadd.f32 %v7252_v47, %v13142_v45  ;;  %v9348_v32 = vpop.f32.mrf.mxu1  ;;  %v6984_v5 = vadd.f32 %v9207_v20, %v13147_v33  ;;  %v9219_v30 = vadd.f32 %v12567_v58, %v12556_v7  ;;  %v6995_v26 = vadd.f32 %v9216_v54, %v13149_v1  ;;  %v13150_v47 = vld [vmem:[#allocation26_spill] sm:$0xff] }
 0x476   : > { %7345 = vst [vmem:[%s12622_s18 + $0x60] sm:$0xff] %v7313_v13  ;;  %v7282_v25 = vadd.f32 %v7250_v57, %v13143_v19  ;;  %v7255_v53 = vadd.f32 %v12587_v60, %v7216_v62  ;;  %v7214_v31 = vmul.f32 %v12581_v27, %v7129_v0  ;;  %v7140_v43 = vadd.f32 %v9348_v32, %v6979_v15  ;;  %v13151_v58 = vld [vmem:[#allocation58_spill] sm:$0xff]  ;;  %v13152_v19 = vld [vmem:[#allocation24_spill] sm:$0xff] }
 0x477   : > { %v7316_v28 = vmax.f32 %v7284_v56, 0.0  ;;  %v7131_v23 = vpop.f32.mrf.mxu1  ;;  %v9225_v13 = vadd.f32 %v12620_v42, %v12604_v41  ;;  %v6987_v62 = vadd.f32 %v9210_v34, %v13151_v58  ;;  %v9228_v32 = vadd.f32 %v12654_v37, %v12638_v51  ;;  %v9238_v42 = vpop.f32.mrf.mxu0 }
 0x478   : > { %v7314_v24 = vmax.f32 %v7282_v25, 0.0  ;;  %v7287_v12 = vadd.f32 %v7255_v53, %v13145_v48  ;;  %v7253_v55 = vadd.f32 %v12587_v60, %v7214_v31  ;;  %v7217_v16 = vmul.f32 %v12581_v27, %v7140_v43  ;;  %v13153_v31 = vld [vmem:[#allocation68_spill] sm:$0xff]  ;;  %v13154_v43 = vld [vmem:[#allocation29_spill] sm:$0xff] }
 0x479   : > { %7348 = vst [vmem:[%s12622_s18 + $0x78] sm:$0xff] %v7316_v28  ;;  %v7132_v22 = vadd.f32 %v7131_v23, %v6971_v35  ;;  %v9351_v29 = vpop.f32.mrf.mxu1  ;;  %v7000_v41 = vadd.f32 %v9219_v30, %v13153_v31  ;;  %v9222_v23 = vadd.f32 %v12589_v14, %v12575_v36  ;;  %v9125_v51 = vadd.f32 %v12563_v2, %v12558_v10  ;;  %v13156_v36 = vld [vmem:[#allocation71_spill] sm:$0xff]  ;;  %v9239_v33 = vpop.f32.mrf.mxu0  ;;  %v13157_v2 = vld [vmem:[#allocation30_spill] sm:$0xff] }
 0x47a   : > { %7346 = vst [vmem:[%s12622_s18 + $0x68] sm:$0xff] %v7314_v24  ;;  %v7319_v39 = vmax.f32 %v7287_v12, 0.0  ;;  %v7285_v18 = vadd.f32 %v7253_v55, %v13148_v61  ;;  %v7256_v59 = vadd.f32 %v12587_v60, %v7217_v16  ;;  %v7153_v46 = vadd.f32 %v9351_v29, %v6992_v52  ;;  %v13155_v12 = vld [vmem:[#allocation27_spill] sm:$0xff] }
 0x47b   : > { %v7215_v38 = vmul.f32 %v12581_v27, %v7132_v22  ;;  %v7144_v11 = vpop.f32.mrf.mxu1  ;;  %v7008_v52 = vadd.f32 %v9225_v13, %v12544_v8  ;;  %v9237_v34 = vadd.f32 %v9236_v44, %v9235_v6  ;;  %v7011_v14 = vadd.f32 %v9228_v32, %v13156_v36  ;;  %v13158_v61 = vld [vmem:[#allocation51_spill] sm:$0xff]  ;;  %v13162_v44 = vld [vmem:[#allocation28_spill] sm:$0xff] }
 0x47c   : > { %7351 = vst [vmem:[%s12622_s18 + $0x90] sm:$0xff] %v7319_v39  ;;  %v7317_v50 = vmax.f32 %v7285_v18, 0.0  ;;  %v7288_v40 = vadd.f32 %v7256_v59, %v13150_v47  ;;  %v7220_v3 = vmul.f32 %v12581_v27, %v7153_v46  ;;  %v7145_v15 = vadd.f32 %v7144_v11, %v6984_v5  ;;  %v13159_v59 = vld [vmem:[#allocation40_spill] sm:$0xff]  ;;  %v13160_v46 = vld [vmem:[#allocation62_spill] sm:$0xff]  ;;  %v13161_v11 = vld [vmem:[#allocation69_spill] sm:$0xff] }
 0x47d   : > { %v7254_v57 = vadd.f32 %v12587_v60, %v7215_v38  ;;  %v9352_v7 = vpop.f32.mrf.mxu1  ;;  %v6863_v18 = vadd.f32 %v9125_v51, %v13158_v61  ;;  %v9128_v6 = vadd.f32 %v13160_v46, %v13159_v59  ;;  %v7003_v1 = vadd.f32 %v9222_v23, %v13161_v11  ;;  %v13171_v59 = vld [vmem:[#allocation35_spill] sm:$0xff] }
 0x47e   : > { %7349 = vst [vmem:[%s12622_s18 + $0x80] sm:$0xff] %v7317_v50  ;;  %v7320_v0 = vmax.f32 %v7288_v40, 0.0  ;;  %v7259_v20 = vadd.f32 %v12587_v60, %v7220_v3  ;;  %v7218_v45 = vmul.f32 %v12581_v27, %v7145_v15  ;;  %v7156_v56 = vadd.f32 %v9352_v7, %v6995_v26 }
 0x47f   : > { %v7286_v25 = vadd.f32 %v7254_v57, %v13152_v19  ;;  %v7147_v53 = vpop.f32.mrf.mxu1  ;;  %v9231_v3 = vadd.f32 %v12685_v21, %v12668_v17  ;;  %v9240_v15 = vadd.f32 %v9239_v33, %v9238_v42  ;;  %v7024_v7 = vadd.f32 %v9237_v34, %v6863_v18  ;;  %v13164_v19 = vld [vmem:[#allocation33_spill] sm:$0xff] }
 0x480   : > { %7352 = vst [vmem:[%s12622_s18 + $0x98] sm:$0xff] %v7320_v0  ;;  %v7291_v54 = vadd.f32 %v7259_v20, %v13154_v43  ;;  %v7257_v28 = vadd.f32 %v12587_v60, %v7218_v45  ;;  %v7221_v4 = vmul.f32 %v12581_v27, %v7156_v56  ;;  %v7148_v35 = vadd.f32 %v7147_v53, %v6987_v62  ;;  %v13163_v56 = vld [vmem:[#allocation53_spill] sm:$0xff] }
 0x481   : > { %v7318_v37 = vmax.f32 %v7286_v25, 0.0  ;;  %v9355_v24 = vpop.f32.mrf.mxu1  ;;  %v9234_v45 = vadd.f32 %v12718_v9, %v12702_v63  ;;  %v6866_v32 = vadd.f32 %v9128_v6, %v13163_v56  ;;  %v13165_v25 = vld [vmem:[#allocation31_spill] sm:$0xff]  ;;  %v13170_v33 = vld [vmem:[#allocation37_spill] sm:$0xff]  ;;  %v13172_v6 = vld [vmem:[#allocation38_spill] sm:$0xff] }
 0x482   : > { %v7323_v48 = vmax.f32 %v7291_v54, 0.0  ;;  %v7289_v55 = vadd.f32 %v7257_v28, %v13155_v12  ;;  %v7260_v16 = vadd.f32 %v12587_v60, %v7221_v4  ;;  %v7219_v49 = vmul.f32 %v12581_v27, %v7148_v35  ;;  %v13166_v54 = vld [vmem:[#allocation72_spill] sm:$0xff]  ;;  %v13167_v35 = vld [vmem:[#allocation34_spill] sm:$0xff] }
 0x483   : > { %7350 = vst [vmem:[%s12622_s18 + $0x88] sm:$0xff] %v7318_v37  ;;  %v7169_v22 = vadd.f32 %v9355_v24, %v7008_v52  ;;  %v7160_v29 = vpop.f32.mrf.mxu1  ;;  %v7016_v28 = vadd.f32 %v9231_v3, %v13166_v54  ;;  %v7027_v63 = vadd.f32 %v9240_v15, %v6866_v32 }
 0x484   : > { %7355 = vst [vmem:[%s12622_s18 + $0xb0] sm:$0xff] %v7323_v48  ;;  %v7321_v10 = vmax.f32 %v7289_v55, 0.0  ;;  %v7292_v8 = vadd.f32 %v7260_v16, %v13157_v2  ;;  %v7258_v5 = vadd.f32 %v12587_v60, %v7219_v49  ;;  %v7161_v39 = vadd.f32 %v7160_v29, %v7000_v41  ;;  %v13168_v48 = vld [vmem:[#allocation39_spill] sm:$0xff]  ;;  %v13169_v16 = vld [vmem:[#allocation32_spill] sm:$0xff] }
 0x485   : > { %v7224_v30 = vmul.f32 %v12581_v27, %v7169_v22  ;;  %v9356_v38 = vpop.f32.mrf.mxu1  ;;  %v7019_v12 = vadd.f32 %v9234_v45, %v13168_v48 }
 0x486   : > { %7353 = vst [vmem:[%s12622_s18 + $0xa0] sm:$0xff] %v7321_v10  ;;  %v7324_v26 = vmax.f32 %v7292_v8, 0.0  ;;  %v7290_v50 = vadd.f32 %v7258_v5, %v13162_v44  ;;  %v7222_v47 = vmul.f32 %v12581_v27, %v7161_v39  ;;  %v7172_v40 = vadd.f32 %v9356_v38, %v7011_v14 }
 0x487   : > { %v7263_v13 = vadd.f32 %v12587_v60, %v7224_v30  ;;  %v7163_v57 = vpop.f32.mrf.mxu1 }
 0x488   : > { %7356 = vst [vmem:[%s12622_s18 + $0xb8] sm:$0xff] %v7324_v26  ;;  %v7322_v58 = vmax.f32 %v7290_v50, 0.0  ;;  %v7261_v62 = vadd.f32 %v12587_v60, %v7222_v47  ;;  %v7225_v0 = vmul.f32 %v12581_v27, %v7172_v40  ;;  %v7164_v20 = vadd.f32 %v7163_v57, %v7003_v1  ;;  %v13173_v26 = vld [vmem:[#allocation36_spill] sm:$0xff] }
 0x489   : > { %v7295_v17 = vadd.f32 %v7263_v13, %v13164_v19  ;;  %v9359_v21 = vpop.f32.mrf.mxu1 }
 0x48a   : > { %7354 = vst [vmem:[%s12622_s18 + $0xa8] sm:$0xff] %v7322_v58  ;;  %v7293_v53 = vadd.f32 %v7261_v62, %v13165_v25  ;;  %v7264_v31 = vadd.f32 %v12587_v60, %v7225_v0  ;;  %v7223_v41 = vmul.f32 %v12581_v27, %v7164_v20  ;;  %v7185_v42 = vadd.f32 %v9359_v21, %v7024_v7 }
 0x48b   : > { %v7327_v43 = vmax.f32 %v7295_v17, 0.0  ;;  %v7176_v4 = vpop.f32.mrf.mxu1 }
 0x48c   : > { %v7325_v9 = vmax.f32 %v7293_v53, 0.0  ;;  %v7296_v23 = vadd.f32 %v7264_v31, %v13167_v35  ;;  %v7262_v51 = vadd.f32 %v12587_v60, %v7223_v41  ;;  %v7228_v37 = vmul.f32 %v12581_v27, %v7185_v42 }
 0x48d   : > { %7359 = vst [vmem:[%s12622_s18 + $0xd0] sm:$0xff] %v7327_v43  ;;  %v7177_v52 = vadd.f32 %v7176_v4, %v7016_v28  ;;  %v9360_v24 = vpop.f32.mrf.mxu1 }
 0x48e   : > { %7357 = vst [vmem:[%s12622_s18 + $0xc0] sm:$0xff] %v7325_v9  ;;  %v7328_v55 = vmax.f32 %v7296_v23, 0.0  ;;  %v7294_v49 = vadd.f32 %v7262_v51, %v13169_v16  ;;  %v7267_v34 = vadd.f32 %v12587_v60, %v7228_v37  ;;  %v7188_v22 = vadd.f32 %v9360_v24, %v7027_v63 }
 0x48f   : > { %v7226_v29 = vmul.f32 %v12581_v27, %v7177_v52  ;;  %v7179_v36 = vpop.f32.mrf.mxu1 }
 0x490   : > { %7360 = vst [vmem:[%s12622_s18 + $0xd8] sm:$0xff] %v7328_v55  ;;  %v7326_v14 = vmax.f32 %v7294_v49, 0.0  ;;  %v7299_v10 = vadd.f32 %v7267_v34, %v13170_v33  ;;  %v7229_v2 = vmul.f32 %v12581_v27, %v7188_v22  ;;  %v7180_v8 = vadd.f32 %v7179_v36, %v7019_v12 }
 0x491   : > { %v7265_v5 = vadd.f32 %v12587_v60, %v7226_v29 }
 0x492   : > { %7358 = vst [vmem:[%s12622_s18 + $0xc8] sm:$0xff] %v7326_v14  ;;  %v7331_v39 = vmax.f32 %v7299_v10, 0.0  ;;  %v7268_v61 = vadd.f32 %v12587_v60, %v7229_v2  ;;  %v7227_v18 = vmul.f32 %v12581_v27, %v7180_v8 }
 0x493   : > { %v7297_v46 = vadd.f32 %v7265_v5, %v13171_v59 }
 0x494   : > { %7363 = vst [vmem:[%s12622_s18 + $0xf0] sm:$0xff] %v7331_v39  ;;  %v7300_v30 = vadd.f32 %v7268_v61, %v13172_v6  ;;  %v7266_v38 = vadd.f32 %v12587_v60, %v7227_v18 }
 0x495   : > { %v7329_v11 = vmax.f32 %v7297_v46, 0.0 }
 0x496   : > { %v7332_v1 = vmax.f32 %v7300_v30, 0.0  ;;  %v7298_v44 = vadd.f32 %v7266_v38, %v13173_v26 }
 0x497   : > { %7361 = vst [vmem:[%s12622_s18 + $0xe0] sm:$0xff] %v7329_v11 }
 0x498   : > { %7364 = vst [vmem:[%s12622_s18 + $0xf8] sm:$0xff] %v7332_v1  ;;  %v7330_v27 = vmax.f32 %v7298_v44, 0.0 }
 0x49a   : > { %7362 = vst [vmem:[%s12622_s18 + $0xe8] sm:$0xff] %v7330_v27 }
 0x49b   : > { %9963 = shalt.err (!%p9960_p3)
}
 0x49c   : > { %s9964_s14 = scalar_lea.hbm %s12829_s9, 4096  ;;  %s9968_s17 = scalar_lea.hbm %s12884_s7, 8192 }
 0x49d   : > { %p9965_p4 = scmp.ne.s32.totalorder %s12829_s9, %s9964_s14  ;;  %p9969_p9 = scmp.lt.s32.totalorder %s12829_s9, %s12884_s7 }
 0x49e   : > { %p9970_p10 = scmp.lt.s32.totalorder %s9968_s17, %s9964_s14 }
 0x49f   : > { %p9966_p7 = pnand %p9965_p4, %p10095_p5 }
 0x4a0   : > { %p9971_p11 = por %p9970_p10, %p9969_p9 }
 0x4a1   : > { %p9967_p8 = pneg %p9966_p7 }
 0x4a3   : > { %p9972_p12 = pnand %p9971_p11, %p9967_p8 }
 0x4a5   : > { %9975 = shalt.err (!%p9972_p12)
}
 0x4a6   : > { %s10015_s23 = smov 128   ;;  %s10016_s29 = smov 8  }
 0x4a7   : > { %9362 = dma.vmem_to_hbm [thread:$0]  (%p10095_p5), %s12831_s21, 4096, %s12829_s9, %s12837_s28, %s10015_s23, %s10015_s23, %s10016_s29  }
 0x4a8 PF: > { %p9368_p13 = scmp.ge.s32.totalorder %s10010_s27, 2  ;;  %s7394_s13 = sand.u32 1, %s9998_s24  }
 0x4a9   : > { %s7395_s20 = scalar_lea.sflag [#allocation5], %s7394_s13 }
 0x4aa   : > { %p9365_p0 = pnand %p9368_p13, %p10099_p6 }
 0x4ac   : > { %p9366_p1 = pneg %p9365_p0 }
 0x4ae   : > { %9993 = dma.done.wait (%p9366_p1), %s7395_s20, 4096  }
 0x4af   : > { %9995 = vsyncadd (%p9366_p1), %s7395_s20, 4294963200  ;;  %p17_p2 = scmp.ge.s32.totalorder %s10082_s30, 4   ;;  %s13174_s24 = smov %s10002_s25 }
 0x4b0   : > { %s13175_s25 = smov %s10006_s26  ;;  %s13176_s26 = smov %s10093_s10 }
 0x4b1   : > { %s13177_s27 = smov %s10082_s30  ;;  %19 = sbr.rel (!%p17_p2) target bundleno = 3 (0x3), region = 84 }
 0x4b6   :  { %7400 = vsyncpa [#allocation5], 1 }
 0x4b7   :  { %7402 = vsyncpa [#allocation5 + $0x1], 1 }

</bundles_post_ra>
